<compile_context>
chip_gen: v5e
topology: v5e:2x2
jax: 0.10.0
libtpu: 0.0.40
codegen_flags: <defaults>
</compile_context>

<pallas_src>
import math
import numpy as np
import jax
import jax.numpy as jnp
from jax import lax
from jax.experimental import pallas as pl
from jax.experimental.pallas import tpu as pltpu

NX = 18            # length of xu / xdot (12 states + T, el, ail, rud, lef, spare)
XROWS = 24         # sublane-padded number of state rows passed to the kernel
OUT_ROWS = 24      # output rows: 0..17 xdot, 18..20 accels, 21..23 atmos
H = 32             # hidden units per coefficient lookup MLP
NCOEF = 43         # number of aerodynamic coefficient lookups
NC_PAD = 48        # padded number of lookups (was 64 -> 25% less wasted tanh work)
KDIM = H * NC_PAD  # 1536 = packed layer-1 output rows / layer-2 contraction dim
KIN = 8            # padded input-slab rows for the layer-1 matmul
R2D = 180.0 / math.pi

_NAMES = [
    "Cx", "Cz", "Cm", "Cy", "Cn", "Cl",
    "Cxq", "Cyr", "Cyp", "Czq", "Clr", "Clp", "Cmq", "Cnr", "Cnp",
    "delta_Cx_lef", "delta_Cz_lef", "delta_Cm_lef", "delta_Cy_lef", "delta_Cn_lef", "delta_Cl_lef",
    "delta_Cxq_lef", "delta_Cyr_lef", "delta_Cyp_lef", "delta_Czq_lef", "delta_Clr_lef",
    "delta_Clp_lef", "delta_Cmq_lef", "delta_Cnr_lef", "delta_Cnp_lef",
    "delta_Cy_r30", "delta_Cn_r30", "delta_Cl_r30",
    "delta_Cy_a20", "delta_Cy_a20_lef", "delta_Cn_a20", "delta_Cn_a20_lef",
    "delta_Cl_a20", "delta_Cl_a20_lef",
    "delta_Cnbeta", "delta_Clbeta", "delta_Cm", "eta_el",
]
assert len(_NAMES) == NCOEF
IDX = {n: i for i, n in enumerate(_NAMES)}

# which of (alpha, beta, el) each lookup sees (matches the slicing in the torch code)
_MASKS = {}
for n in _NAMES[0:6]:    _MASKS[n] = (1.0, 1.0, 1.0)   # hifi_C(inp)
for n in _NAMES[6:15]:   _MASKS[n] = (1.0, 0.0, 0.0)   # hifi_damping(inp[0:1])
for n in _NAMES[15:21]:  _MASKS[n] = (1.0, 1.0, 0.0)   # hifi_C_lef(inp[0:2])
for n in _NAMES[21:30]:  _MASKS[n] = (1.0, 0.0, 0.0)   # hifi_damping_lef(inp[0:1])
for n in _NAMES[30:33]:  _MASKS[n] = (1.0, 1.0, 0.0)   # hifi_rudder(inp[0:2])
for n in _NAMES[33:39]:  _MASKS[n] = (1.0, 1.0, 0.0)   # hifi_ailerons(inp[0:2])
for n in _NAMES[39:43]:  _MASKS[n] = (1.0, 0.0, 1.0)   # hifi_other_coeffs(inp[::2]) = [alpha, el]


def init_params(key):
    k1, k2, k3, k4 = jax.random.split(key, 4)
    w1 = 0.05 * jax.random.normal(k1, (3, H, NCOEF), jnp.float32)
    b1 = 0.05 * jax.random.normal(k2, (H, NCOEF), jnp.float32)
    w2 = 0.05 * jax.random.normal(k3, (H, NCOEF), jnp.float32)
    b2 = 0.01 * jax.random.normal(k4, (NCOEF,), jnp.float32)
    mask = np.zeros((3, NCOEF), np.float32)
    for name, i in IDX.items():
        mask[:, i] = _MASKS[name]
    w1 = w1 * jnp.asarray(mask)[:, None, :]       # zero out unused inputs per lookup
    # Round to bf16-representable f32 so the kernel's bf16 MXU weight operands are exact.
    rnd = lambda a: a.astype(jnp.bfloat16).astype(jnp.float32)
    return rnd(w1), rnd(b1), rnd(w2), rnd(b2)


def _pack_params(w1, b1, w2, b2):
    """Host-side repack into the MXU-friendly layout used by the kernel."""
    def cmaj(a):                                   # (H, NCOEF) -> flat index c*H + j
        return jnp.asarray(a, jnp.float32).T.reshape(-1)

    w1pt = jnp.zeros((KDIM, KIN), jnp.float32)
    w1pt = w1pt.at[:H * NCOEF, 0].set(cmaj(w1[0]))     # alpha weights
    w1pt = w1pt.at[:H * NCOEF, 1].set(cmaj(w1[1]))     # beta weights
    w1pt = w1pt.at[:H * NCOEF, 2].set(cmaj(w1[2]))     # el weights
    w1pt = w1pt.at[:H * NCOEF, 3].set(cmaj(b1))        # bias (weight on the constant-1 row)

    rows = jnp.repeat(jnp.arange(NCOEF), H)
    cols = jnp.arange(NCOEF * H)
    w2bd = jnp.zeros((NC_PAD, KDIM), jnp.float32).at[rows, cols].set(cmaj(w2))

    b2col = jnp.zeros((NC_PAD, 1), jnp.float32).at[:NCOEF, 0].set(jnp.asarray(b2, jnp.float32))
    # weights were rounded to bf16-representable f32 at init, so these casts are exact
    return w1pt.astype(jnp.bfloat16), w2bd.astype(jnp.bfloat16), b2col


# ---------------- shared math (traced inside the kernel AND in the reference) -------------

def _atmos(alt, vt, rsqrt):
    # standard F-16 nlplant atmosphere
    tfac = 1.0 - 0.703e-5 * alt
    temp = jnp.where(alt >= 35000.0, 390.0, 519.0 * tfac)
    tfac_safe = jnp.maximum(tfac, 1e-6)            # keeps padded/garbage rows finite
    rho = 2.377e-3 * jnp.exp(4.14 * jnp.log(tfac_safe))    # tfac ** 4.14
    mach = vt * rsqrt(1.4 * 1716.3 * temp)
    qbar = 0.5 * rho * vt * vt
    pst = 1715.0 * rho * temp
    ps = jnp.where(pst == 0.0, 1715.0, pst)
    return mach, qbar, ps


def _mlp_coeffs_ref(alpha, beta, el, w1, b1, w2, b2):
    # unpacked reference MLP (pure f32)
    z = alpha * w1[0] + beta * w1[1] + el * w1[2] + b1     # (H, NCOEF)
    h = jnp.tanh(z)
    return jnp.sum(h * w2, axis=0) + b2                    # (NCOEF,)


def _f16_eom(v, cf, recip):
    """All scalar algebra of EoM.forward after trig / atmos / lookups.
    `v` maps names -> values, `cf(name)` returns a lookup coefficient, `recip(x)` = 1/x.
    Returns list of (output row, value)."""
    g, m, B, S, cbar = 32.17, 636.94, 30.0, 300.0, 11.32
    xcgr, xcg, Heng = 0.35, 0.25, 0.0
    Jy, Jxz, Jz, Jx = 55814.0, 982.0, 63100.0, 9496.0
    grav = 32.174

    vt, vt0 = v["vt"], v["vt0"]
    P, Q, R = v["P"], v["Q"], v["R"]
    sa, ca, sb, cb = v["sa"], v["ca"], v["sb"], v["cb"]
    st, ct = v["st"], v["ct"]
    sphi, cphi, spsi, cpsi = v["sphi"], v["cphi"], v["spsi"], v["cpsi"]
    alpha, beta = v["alpha"], v["beta"]            # degrees
    T, ail, rud, lef = v["T"], v["ail"], v["rud"], v["lef"]
    mach, qbar, ps = v["mach"], v["qbar"], v["ps"]

    inv_vt = recip(vt)
    inv_ct = recip(ct)
    inv_cb = recip(cb)
    tt = st * inv_ct

    dail = ail * (1.0 / 21.5)
    drud = rud * (1.0 / 30.0)
    dlef = 1.0 - lef * (1.0 / 25.0)

    U = vt * ca * cb
    V = vt * sb
    W = vt * sa * cb

    xd0 = U * (ct * cpsi) + V * (sphi * cpsi * st - cphi * spsi) + W * (cphi * st * cpsi + sphi * spsi)
    xd1 = U * (ct * spsi) + V * (sphi * spsi * st + cphi * cpsi) + W * (cphi * st * spsi - sphi * cpsi)
    xd2 = U * st - V * (sphi * ct) - W * (cphi * ct)
    xd3 = P + tt * (Q * sphi + R * cphi)
    xd4 = Q * cphi - R * sphi
    xd5 = (Q * sphi + R * cphi) * inv_ct

    delta_Cm_ds = 0.0
    half_cbar_inv_vt = (0.5 * cbar) * inv_vt
    half_B_inv_vt = (0.5 * B) * inv_vt

    dXdQ = half_cbar_inv_vt * (cf("Cxq") + cf("delta_Cxq_lef") * dlef)
    Cx_tot = cf("Cx") + cf("delta_Cx_lef") * dlef + dXdQ * Q
    # NOTE: the original torch module uses delta_Cz_lef (not delta_Czq_lef) in dZdQ.
    dZdQ = half_cbar_inv_vt * (cf("Czq") + cf("delta_Cz_lef") * dlef)
    Cz_tot = cf("Cz") + cf("delta_Cz_lef") * dlef + dZdQ * Q
    dMdQ = half_cbar_inv_vt * (cf("Cmq") + cf("delta_Cmq_lef") * dlef)
    Cm_tot = (cf("Cm") * cf("eta_el") + Cz_tot * (xcgr - xcg) + cf("delta_Cm_lef") * dlef
              + dMdQ * Q + cf("delta_Cm") + delta_Cm_ds)
    dYdail = cf("delta_Cy_a20") + cf("delta_Cy_a20_lef") * dlef
    dYdR = half_B_inv_vt * (cf("Cyr") + cf("delta_Cyr_lef") * dlef)
    dYdP = half_B_inv_vt * (cf("Cyp") + cf("delta_Cyp_lef") * dlef)
    Cy_tot = (cf("Cy") + cf("delta_Cy_lef") * dlef + dYdail * dail
              + cf("delta_Cy_r30") * drud + dYdR * R + dYdP * P)
    dNdail = cf("delta_Cn_a20") + cf("delta_Cn_a20_lef") * dlef
    dNdR = half_B_inv_vt * (cf("Cnr") + cf("delta_Cnr_lef") * dlef)
    dNdP = half_B_inv_vt * (cf("Cnp") + cf("delta_Cnp_lef") * dlef)
    Cn_tot = (cf("Cn") + cf("delta_Cn_lef") * dlef - Cy_tot * (xcgr - xcg) * (cbar / B)
              + dNdail * dail + cf("delta_Cn_r30") * drud + dNdR * R + dNdP * P
              + cf("delta_Cnbeta") * beta)
    dLdail = cf("delta_Cl_a20") + cf("delta_Cl_a20_lef") * dlef
    dLdR = half_B_inv_vt * (cf("Clr") + cf("delta_Clr_lef") * dlef)
    dLdP = half_B_inv_vt * (cf("Clp") + cf("delta_Clp_lef") * dlef)
    Cl_tot = (cf("Cl") + cf("delta_Cl_lef") * dlef + dLdail * dail
              + cf("delta_Cl_r30") * drud + dLdR * R + dLdP * P
              + cf("delta_Clbeta") * beta)

    inv_m = 1.0 / m
    Udot = R * V - Q * W - g * st + qbar * S * Cx_tot * inv_m + T * inv_m
    Vdot = P * W - R * U + g * ct * sphi + qbar * S * Cy_tot * inv_m
    Wdot = Q * U - P * V + g * ct * cphi + qbar * S * Cz_tot * inv_m
    xd6 = (U * Udot + V * Vdot + W * Wdot) * inv_vt
    xd7 = (U * Wdot - W * Udot) * recip(U * U + W * W)
    xd8 = (Vdot * vt - V * xd6) * (inv_vt * inv_vt) * inv_cb

    L_tot = Cl_tot * qbar * S * B
    M_tot = Cm_tot * qbar * S * cbar
    N_tot = Cn_tot * qbar * S * B
    inv_denom = 1.0 / (Jx * Jz - Jxz * Jxz)
    inv_Jy = 1.0 / Jy
    xd9 = (Jz * L_tot + Jxz * N_tot - (Jz * (Jz - Jy) + Jxz * Jxz) * Q * R
           + Jxz * (Jx - Jy + Jz) * P * Q + Jxz * Q * Heng) * inv_denom
    xd10 = (M_tot + (Jz - Jx) * P * R - Jxz * (P * P - R * R) - R * Heng) * inv_Jy
    xd11 = (Jx * N_tot + Jxz * L_tot + (Jx * (Jx - Jy) + Jxz * Jxz) * P * Q
            - Jxz * (Jx - Jy + Jz) * Q * R + Jx * Q * Heng) * inv_denom

    # accels(xu, xdot) -- uses the *raw* vt from the state vector
    inv_grav = 1.0 / grav
    vel_u = vt0 * cb * ca
    vel_v = vt0 * sb
    vel_w = vt0 * cb * sa
    u_dot = cb * ca * xd6 - vt0 * sb * ca * xd8 - vt0 * cb * sa * xd7
    v_dot = sb * xd6 + vt0 * cb * xd8
    w_dot = cb * sa * xd6 - vt0 * sb * sa * xd8 + vt0 * cb * ca * xd7
    nx_cg = (u_dot + Q * vel_w - R * vel_v) * inv_grav + st
    ny_cg = (v_dot + R * vel_u - P * vel_w) * inv_grav - ct * sphi
    nz_cg = -(w_dot + P * vel_v - Q * vel_u) * inv_grav + ct * cphi

    return [(0, xd0), (1, xd1), (2, xd2), (3, xd3), (4, xd4), (5, xd5),
            (6, xd6), (7, xd7), (8, xd8), (9, xd9), (10, xd10), (11, xd11),
            (18, nx_cg), (19, ny_cg), (20, nz_cg),
            (21, mach), (22, qbar), (23, ps)]


# ------------------------------------ Pallas kernel ---------------------------------------

def eom_kernel(x_ref, w1_ref, w2_ref, b2_ref, out_ref):
    f32 = jnp.float32
    tb = out_ref.shape[1]                       # lane width of this batch tile (static)

    def row(k):                                 # lane-dense (1, TB) row = component k of
        return x_ref[k:k + 1, :]                # every state in the tile

    alt = row(2)
    phi, theta, psi = row(3), row(4), row(5)
    vt0 = row(6)
    a_rad, b_rad = row(7), row(8)
    P, Q, R = row(9), row(10), row(11)
    T, el, ail, rud, lef = row(12), row(13), row(14), row(15), row(16)

    vt = jnp.maximum(vt0, 0.01)                 # matches `if vt < 0.01: vt = 0.01`
    alpha = a_rad * R2D
    beta = b_rad * R2D

    # trig only on the components that are actually used
    sa, ca = jnp.sin(a_rad), jnp.cos(a_rad)
    sb, cb = jnp.sin(b_rad), jnp.cos(b_rad)
    st, ct = jnp.sin(theta), jnp.cos(theta)
    sphi, cphi = jnp.sin(phi), jnp.cos(phi)
    spsi, cpsi = jnp.sin(psi), jnp.cos(psi)

    mach, qbar, ps = _atmos(alt, vt, rsqrt=lax.rsqrt)

    # ---------------- aero-coefficient lookup MLP on the MXU --------------------
    # input slab (KIN, TB): rows [alpha, beta, el, 1, 0, 0, 0, 0]
    rowid = lax.broadcasted_iota(jnp.int32, (KIN, 1), 0)
    xin = (jnp.where(rowid == 0, alpha, 0.0)
           + jnp.where(rowid == 1, beta, 0.0)
           + jnp.where(rowid == 2, el, 0.0)
           + jnp.where(rowid == 3, 1.0, 0.0)).astype(f32)        # (KIN, TB)
    xin_hi = xin.astype(jnp.bfloat16)
    xin_lo = (xin - xin_hi.astype(f32)).astype(jnp.bfloat16)

    w1 = w1_ref[...]                                             # (KDIM, KIN) bf16 (exact)
    z = (jnp.dot(w1, xin_hi, preferred_element_type=f32)
         + jnp.dot(w1, xin_lo, preferred_element_type=f32))      # (KDIM, TB) f32
    h = jnp.tanh(z)

    h_hi = h.astype(jnp.bfloat16)
    h_lo = (h - h_hi.astype(f32)).astype(jnp.bfloat16)
    w2 = w2_ref[...]                                             # (NC_PAD, KDIM) bf16 (exact)
    coeffs = (jnp.dot(w2, h_hi, preferred_element_type=f32)
              + jnp.dot(w2, h_lo, preferred_element_type=f32)
              + b2_ref[...])                                     # (NC_PAD, TB)

    cf = lambda name: coeffs[IDX[name]:IDX[name] + 1, :]         # lane-dense (1, TB)

    v = dict(
        vt0=vt0, vt=vt, P=P, Q=Q, R=R,
        T=T, ail=ail, rud=rud, lef=lef,
        alpha=alpha, beta=beta,
        sa=sa, ca=ca, sb=sb, cb=cb, st=st, ct=ct,
        sphi=sphi, cphi=cphi, spsi=spsi, cpsi=cpsi,
        mach=mach, qbar=qbar, ps=ps,
    )
    # exact divisions (review: compounded approx reciprocals in xd7/xd8)
    results = dict(_f16_eom(v, cf, recip=lambda zz: 1.0 / zz))

    zrow = jnp.zeros((1, tb), f32)
    for r in range(OUT_ROWS):                   # plain lane-dense row stores, no masking
        out_ref[r:r + 1, :] = results.get(r, zrow)


def eom_forward(xu, w1, b1, w2, b2):
    """xu: (NX,) single state or (B, NX) batch of states."""
    xu = jnp.asarray(xu, jnp.float32)
    single = (xu.ndim == 1)
    if single:
        xu = xu[None, :]
    bsz, n = xu.shape

    # batch tile on the lane axis: 128 lanes for small batches (>=2 tiles at B>128 so the
    # "parallel" grid splits across both TensorCores on v7x), 256 lanes for big batches.
    tb = 128 if bsz <= 256 else 256
    ntiles = int(pl.cdiv(bsz, tb))
    bp = ntiles * tb

    xT = jnp.zeros((XROWS, bp), jnp.float32).at[:n, :bsz].set(xu.T)
    w1pt, w2bd, b2col = _pack_params(w1, b1, w2, b2)

    out = pl.pallas_call(
        eom_kernel,
        out_shape=jax.ShapeDtypeStruct((OUT_ROWS, bp), jnp.float32),
        grid_spec=pltpu.PrefetchScalarGridSpec(
            num_scalar_prefetch=0,
            grid=(ntiles,),
            in_specs=[
                pl.BlockSpec((XROWS, tb), lambda i: (0, i)),      # states (batch on lanes)
                pl.BlockSpec((KDIM, KIN), lambda i: (0, 0)),      # layer-1 weights (const)
                pl.BlockSpec((NC_PAD, KDIM), lambda i: (0, 0)),   # layer-2 weights (const)
                pl.BlockSpec((NC_PAD, 1), lambda i: (0, 0)),      # layer-2 bias (const)
            ],
            out_specs=pl.BlockSpec((OUT_ROWS, tb), lambda i: (0, i)),
        ),
        compiler_params=pltpu.CompilerParams(
            dimension_semantics=("parallel",)),
    )(xT, w1pt, w2bd, b2col)

    xdot = out[:NX, :bsz].T
    accels = (out[18, :bsz], out[19, :bsz], out[20, :bsz])
    atmos = out[21:24, :bsz].T
    if single:
        xdot = xdot[0]
        accels = (accels[0][0], accels[1][0], accels[2][0])
        atmos = atmos[0]
    return xdot, accels, atmos


# ------------------------------------ pure-JAX reference ----------------------------------

def eom_reference(xu1, w1, b1, w2, b2):
    x = jnp.asarray(xu1, jnp.float32)
    alt, phi, theta, psi = x[2], x[3], x[4], x[5]
    vt0 = x[6]
    vt = jnp.maximum(vt0, 0.01)
    alpha, beta, el = x[7] * R2D, x[8] * R2D, x[13]
    mach, qbar, ps = _atmos(alt, vt, rsqrt=lax.rsqrt)
    coeffs = _mlp_coeffs_ref(alpha, beta, el, w1, b1, w2, b2)    # (NCOEF,)
    v = dict(
        vt0=vt0, vt=vt, P=x[9], Q=x[10], R=x[11],
        T=x[12], ail=x[14], rud=x[15], lef=x[16],
        alpha=alpha, beta=beta,
        sa=jnp.sin(x[7]), ca=jnp.cos(x[7]), sb=jnp.sin(x[8]), cb=jnp.cos(x[8]),
        st=jnp.sin(theta), ct=jnp.cos(theta),
        sphi=jnp.sin(phi), cphi=jnp.cos(phi), spsi=jnp.sin(psi), cpsi=jnp.cos(psi),
        mach=mach, qbar=qbar, ps=ps,
    )
    cf = lambda name: coeffs[IDX[name]]
    outputs = _f16_eom(v, cf, recip=lambda z: 1.0 / z)
    buf = jnp.zeros((OUT_ROWS,), jnp.float32)
    for k, val in outputs:
        buf = buf.at[k].set(val)
    return buf[:NX], (buf[18], buf[19], buf[20]), buf[21:24]


# ---------------------------------------- main ---------------------------------------------

if __name__ == "__main__":
    key = jax.random.PRNGKey(0)
    kp, kx = jax.random.split(key)
    w1, b1, w2, b2 = init_params(kp)

    # nominal F-16 trim-ish state + deterministic per-row perturbations
    BATCH = 200   # > 128 so the lane-tiled grid has 2 "parallel" steps (exercises v7x split)
    nominal = jnp.array([0.0, 0.0, 5000.0, 0.10, 0.05, 0.20, 500.0,
                         0.10, 0.02, 0.30, -0.10, 0.05,
                         2000.0, 2.0, -1.0, 1.5, 5.0, 0.0], jnp.float32)
    xu = nominal[None, :] + 0.01 * jax.random.normal(kx, (BATCH, NX), jnp.float32)

    xdot, accels, atmos = eom_forward(xu, w1, b1, w2, b2)
    jax.block_until_ready(xdot)

    # pure-JAX reference, vmapped + jitted over the batch
    ref_fn = jax.jit(jax.vmap(lambda s: eom_reference(s, w1, b1, w2, b2)))
    xr, ar, tr = ref_fn(xu)

    ok = True
    ok &= np.allclose(np.asarray(xdot), np.asarray(xr), rtol=1e-2, atol=2e-3)
    ok &= np.allclose(np.asarray(jnp.stack(accels, axis=1)),
                      np.asarray(jnp.stack(ar, axis=1)), rtol=1e-2, atol=2e-3)
    ok &= np.allclose(np.asarray(atmos), np.asarray(tr), rtol=1e-2, atol=2e-3)

    # single-state path (the torch module's native calling convention)
    xd1, ac1, at1 = eom_forward(xu[0], w1, b1, w2, b2)
    jax.block_until_ready(xd1)
    ok &= np.allclose(np.asarray(xd1), np.asarray(xr[0]), rtol=1e-2, atol=2e-3)
    ok &= np.allclose(np.asarray(at1), np.asarray(tr[0]), rtol=1e-2, atol=2e-3)

    assert ok, "Pallas kernel does not match pure-JAX reference"
    print("KERNEL_OK")
</pallas_src>

<mosaic_0001>
module attributes {stable_mosaic.version = 11 : i64} {
  func.func @eom_kernel(%arg0: i32, %arg1: memref<24x128xf32, #tpu.memory_space<vmem>>, %arg2: memref<1536x8xbf16, #tpu.memory_space<vmem>>, %arg3: memref<48x1536xbf16, #tpu.memory_space<vmem>>, %arg4: memref<48x1xf32, #tpu.memory_space<vmem>>, %arg5: memref<24x128xf32, #tpu.memory_space<vmem>>) attributes {dimension_semantics = [#tpu.dimension_semantics<parallel>], iteration_bounds = array<i64: 2>, scalar_prefetch = 0 : i64, scratch_operands = 0 : i64, tpu.core_type = #tpu.core_type<tc>, window_params = [{transform_indices = @transform_0, window_bounds = array<i64: 24, 128>}, {pipeline_mode = #tpu.pipeline_mode<synchronous>, transform_indices = @transform_1, window_bounds = array<i64: 1536, 8>}, {pipeline_mode = #tpu.pipeline_mode<synchronous>, transform_indices = @transform_2, window_bounds = array<i64: 48, 1536>}, {pipeline_mode = #tpu.pipeline_mode<synchronous>, transform_indices = @transform_3, window_bounds = array<i64: 48, 1>}, {transform_indices = @transform_4, window_bounds = array<i64: 24, 128>}]} {
    %c2 = arith.constant 2 : index
    %c0 = arith.constant 0 : index
    %0 = vector.load %arg1[%c2, %c0] : memref<24x128xf32, #tpu.memory_space<vmem>>, vector<1x128xf32>
    %c3 = arith.constant 3 : index
    %c0_0 = arith.constant 0 : index
    %1 = vector.load %arg1[%c3, %c0_0] : memref<24x128xf32, #tpu.memory_space<vmem>>, vector<1x128xf32>
    %c4 = arith.constant 4 : index
    %c0_1 = arith.constant 0 : index
    %2 = vector.load %arg1[%c4, %c0_1] : memref<24x128xf32, #tpu.memory_space<vmem>>, vector<1x128xf32>
    %c5 = arith.constant 5 : index
    %c0_2 = arith.constant 0 : index
    %3 = vector.load %arg1[%c5, %c0_2] : memref<24x128xf32, #tpu.memory_space<vmem>>, vector<1x128xf32>
    %c6 = arith.constant 6 : index
    %c0_3 = arith.constant 0 : index
    %4 = vector.load %arg1[%c6, %c0_3] : memref<24x128xf32, #tpu.memory_space<vmem>>, vector<1x128xf32>
    %c7 = arith.constant 7 : index
    %c0_4 = arith.constant 0 : index
    %5 = vector.load %arg1[%c7, %c0_4] : memref<24x128xf32, #tpu.memory_space<vmem>>, vector<1x128xf32>
    %c8 = arith.constant 8 : index
    %c0_5 = arith.constant 0 : index
    %6 = vector.load %arg1[%c8, %c0_5] : memref<24x128xf32, #tpu.memory_space<vmem>>, vector<1x128xf32>
    %c9 = arith.constant 9 : index
    %c0_6 = arith.constant 0 : index
    %7 = vector.load %arg1[%c9, %c0_6] : memref<24x128xf32, #tpu.memory_space<vmem>>, vector<1x128xf32>
    %c10 = arith.constant 10 : index
    %c0_7 = arith.constant 0 : index
    %8 = vector.load %arg1[%c10, %c0_7] : memref<24x128xf32, #tpu.memory_space<vmem>>, vector<1x128xf32>
    %c11 = arith.constant 11 : index
    %c0_8 = arith.constant 0 : index
    %9 = vector.load %arg1[%c11, %c0_8] : memref<24x128xf32, #tpu.memory_space<vmem>>, vector<1x128xf32>
    %c12 = arith.constant 12 : index
    %c0_9 = arith.constant 0 : index
    %10 = vector.load %arg1[%c12, %c0_9] : memref<24x128xf32, #tpu.memory_space<vmem>>, vector<1x128xf32>
    %c13 = arith.constant 13 : index
    %c0_10 = arith.constant 0 : index
    %11 = vector.load %arg1[%c13, %c0_10] : memref<24x128xf32, #tpu.memory_space<vmem>>, vector<1x128xf32>
    %c14 = arith.constant 14 : index
    %c0_11 = arith.constant 0 : index
    %12 = vector.load %arg1[%c14, %c0_11] : memref<24x128xf32, #tpu.memory_space<vmem>>, vector<1x128xf32>
    %c15 = arith.constant 15 : index
    %c0_12 = arith.constant 0 : index
    %13 = vector.load %arg1[%c15, %c0_12] : memref<24x128xf32, #tpu.memory_space<vmem>>, vector<1x128xf32>
    %c16 = arith.constant 16 : index
    %c0_13 = arith.constant 0 : index
    %14 = vector.load %arg1[%c16, %c0_13] : memref<24x128xf32, #tpu.memory_space<vmem>>, vector<1x128xf32>
    %cst = arith.constant 0.00999999977 : f32
    %15 = vector.broadcast %cst : f32 to vector<1x128xf32>
    %16 = arith.maximumf %4, %15 : vector<1x128xf32>
    %cst_14 = arith.constant 57.2957802 : f32
    %17 = vector.broadcast %cst_14 : f32 to vector<1x128xf32>
    %18 = arith.mulf %5, %17 : vector<1x128xf32>
    %cst_15 = arith.constant 57.2957802 : f32
    %19 = vector.broadcast %cst_15 : f32 to vector<1x128xf32>
    %20 = arith.mulf %6, %19 : vector<1x128xf32>
    %21 = math.sin %5 : vector<1x128xf32>
    %22 = math.cos %5 : vector<1x128xf32>
    %23 = math.sin %6 : vector<1x128xf32>
    %24 = math.cos %6 : vector<1x128xf32>
    %25 = math.sin %2 : vector<1x128xf32>
    %26 = math.cos %2 : vector<1x128xf32>
    %27 = math.sin %1 : vector<1x128xf32>
    %28 = math.cos %1 : vector<1x128xf32>
    %29 = math.sin %3 : vector<1x128xf32>
    %30 = math.cos %3 : vector<1x128xf32>
    %cst_16 = arith.constant 7.02999977E-6 : f32
    %31 = vector.broadcast %cst_16 : f32 to vector<1x128xf32>
    %32 = arith.mulf %31, %0 : vector<1x128xf32>
    %cst_17 = arith.constant 1.000000e+00 : f32
    %33 = vector.broadcast %cst_17 : f32 to vector<1x128xf32>
    %34 = arith.subf %33, %32 : vector<1x128xf32>
    %cst_18 = arith.constant 3.500000e+04 : f32
    %35 = vector.broadcast %cst_18 : f32 to vector<1x128xf32>
    %36 = arith.cmpf oge, %0, %35 : vector<1x128xf32>
    %cst_19 = arith.constant 5.190000e+02 : f32
    %37 = vector.broadcast %cst_19 : f32 to vector<1x128xf32>
    %38 = arith.mulf %37, %34 : vector<1x128xf32>
    %cst_20 = arith.constant 3.900000e+02 : f32
    %39 = vector.broadcast %cst_20 : f32 to vector<1x128xf32>
    %40 = arith.select %36, %39, %38 : vector<1x128xi1>, vector<1x128xf32>
    %cst_21 = arith.constant 9.99999997E-7 : f32
    %41 = vector.broadcast %cst_21 : f32 to vector<1x128xf32>
    %42 = arith.maximumf %34, %41 : vector<1x128xf32>
    %43 = math.log %42 : vector<1x128xf32>
    %cst_22 = arith.constant 4.140000e+00 : f32
    %44 = vector.broadcast %cst_22 : f32 to vector<1x128xf32>
    %45 = arith.mulf %44, %43 : vector<1x128xf32>
    %46 = math.exp %45 : vector<1x128xf32>
    %cst_23 = arith.constant 2.377000e-03 : f32
    %47 = vector.broadcast %cst_23 : f32 to vector<1x128xf32>
    %48 = arith.mulf %47, %46 : vector<1x128xf32>
    %cst_24 = arith.constant 2.402820e+03 : f32
    %49 = vector.broadcast %cst_24 : f32 to vector<1x128xf32>
    %50 = arith.mulf %49, %40 : vector<1x128xf32>
    %51 = math.rsqrt %50 : vector<1x128xf32>
    %52 = arith.mulf %16, %51 : vector<1x128xf32>
    %cst_25 = arith.constant 5.000000e-01 : f32
    %53 = vector.broadcast %cst_25 : f32 to vector<1x128xf32>
    %54 = arith.mulf %53, %48 : vector<1x128xf32>
    %55 = arith.mulf %54, %16 : vector<1x128xf32>
    %56 = arith.mulf %55, %16 : vector<1x128xf32>
    %cst_26 = arith.constant 1.715000e+03 : f32
    %57 = vector.broadcast %cst_26 : f32 to vector<1x128xf32>
    %58 = arith.mulf %57, %48 : vector<1x128xf32>
    %59 = arith.mulf %58, %40 : vector<1x128xf32>
    %cst_27 = arith.constant 0.000000e+00 : f32
    %60 = vector.broadcast %cst_27 : f32 to vector<1x128xf32>
    %61 = arith.cmpf oeq, %59, %60 : vector<1x128xf32>
    %cst_28 = arith.constant 1.715000e+03 : f32
    %62 = vector.broadcast %cst_28 : f32 to vector<1x128xf32>
    %63 = arith.select %61, %62, %59 : vector<1x128xi1>, vector<1x128xf32>
    %64 = tpu.iota {dimensions = array<i32: 0>} : vector<8x1xi32>
    %c0_i32 = arith.constant 0 : i32
    %65 = vector.broadcast %c0_i32 : i32 to vector<8x1xi32>
    %66 = arith.cmpi eq, %64, %65 : vector<8x1xi32>
    %cst_29 = arith.constant 0.000000e+00 : f32
    %67 = vector.shape_cast %66 : vector<8x1xi1> to vector<8x1xi1>
    %68 = vector.broadcast %67 : vector<8x1xi1> to vector<8x128xi1>
    %69 = vector.shape_cast %18 : vector<1x128xf32> to vector<1x128xf32>
    %70 = vector.broadcast %69 : vector<1x128xf32> to vector<8x128xf32>
    %71 = vector.broadcast %cst_29 : f32 to vector<8x128xf32>
    %72 = arith.select %68, %70, %71 : vector<8x128xi1>, vector<8x128xf32>
    %c1_i32 = arith.constant 1 : i32
    %73 = vector.broadcast %c1_i32 : i32 to vector<8x1xi32>
    %74 = arith.cmpi eq, %64, %73 : vector<8x1xi32>
    %cst_30 = arith.constant 0.000000e+00 : f32
    %75 = vector.shape_cast %74 : vector<8x1xi1> to vector<8x1xi1>
    %76 = vector.broadcast %75 : vector<8x1xi1> to vector<8x128xi1>
    %77 = vector.shape_cast %20 : vector<1x128xf32> to vector<1x128xf32>
    %78 = vector.broadcast %77 : vector<1x128xf32> to vector<8x128xf32>
    %79 = vector.broadcast %cst_30 : f32 to vector<8x128xf32>
    %80 = arith.select %76, %78, %79 : vector<8x128xi1>, vector<8x128xf32>
    %81 = arith.addf %72, %80 : vector<8x128xf32>
    %c2_i32 = arith.constant 2 : i32
    %82 = vector.broadcast %c2_i32 : i32 to vector<8x1xi32>
    %83 = arith.cmpi eq, %64, %82 : vector<8x1xi32>
    %cst_31 = arith.constant 0.000000e+00 : f32
    %84 = vector.shape_cast %83 : vector<8x1xi1> to vector<8x1xi1>
    %85 = vector.broadcast %84 : vector<8x1xi1> to vector<8x128xi1>
    %86 = vector.shape_cast %11 : vector<1x128xf32> to vector<1x128xf32>
    %87 = vector.broadcast %86 : vector<1x128xf32> to vector<8x128xf32>
    %88 = vector.broadcast %cst_31 : f32 to vector<8x128xf32>
    %89 = arith.select %85, %87, %88 : vector<8x128xi1>, vector<8x128xf32>
    %90 = arith.addf %81, %89 : vector<8x128xf32>
    %c3_i32 = arith.constant 3 : i32
    %91 = vector.broadcast %c3_i32 : i32 to vector<8x1xi32>
    %92 = arith.cmpi eq, %64, %91 : vector<8x1xi32>
    %cst_32 = arith.constant 1.000000e+00 : f32
    %cst_33 = arith.constant 0.000000e+00 : f32
    %93 = vector.broadcast %cst_32 : f32 to vector<8x1xf32>
    %94 = vector.broadcast %cst_33 : f32 to vector<8x1xf32>
    %95 = arith.select %92, %93, %94 : vector<8x1xi1>, vector<8x1xf32>
    %96 = vector.broadcast %95 : vector<8x1xf32> to vector<8x128xf32>
    %97 = arith.addf %90, %96 : vector<8x128xf32>
    %98 = arith.truncf %97 : vector<8x128xf32> to vector<8x128xbf16>
    %99 = arith.extf %98 : vector<8x128xbf16> to vector<8x128xf32>
    %100 = arith.subf %97, %99 : vector<8x128xf32>
    %101 = arith.truncf %100 : vector<8x128xf32> to vector<8x128xbf16>
    %c0_34 = arith.constant 0 : index
    %c0_35 = arith.constant 0 : index
    %102 = vector.load %arg2[%c0_34, %c0_35] : memref<1536x8xbf16, #tpu.memory_space<vmem>>, vector<1536x8xbf16>
    %cst_36 = arith.constant dense<0.000000e+00> : vector<1536x128xf32>
    %103 = tpu.matmul %102, %98, %cst_36 {dimension_numbers = #tpu.dot_dimension_numbers<[1], [0], [0], [1], [0, 0, 1, 1], [], []>} : vector<1536x8xbf16>, vector<8x128xbf16>, vector<1536x128xf32> -> vector<1536x128xf32>
    %cst_37 = arith.constant dense<0.000000e+00> : vector<1536x128xf32>
    %104 = tpu.matmul %102, %101, %cst_37 {dimension_numbers = #tpu.dot_dimension_numbers<[1], [0], [0], [1], [0, 0, 1, 1], [], []>} : vector<1536x8xbf16>, vector<8x128xbf16>, vector<1536x128xf32> -> vector<1536x128xf32>
    %105 = arith.addf %103, %104 : vector<1536x128xf32>
    %106 = math.tanh %105 : vector<1536x128xf32>
    %107 = arith.truncf %106 : vector<1536x128xf32> to vector<1536x128xbf16>
    %108 = arith.extf %107 : vector<1536x128xbf16> to vector<1536x128xf32>
    %109 = arith.subf %106, %108 : vector<1536x128xf32>
    %110 = arith.truncf %109 : vector<1536x128xf32> to vector<1536x128xbf16>
    %c0_38 = arith.constant 0 : index
    %c0_39 = arith.constant 0 : index
    %111 = vector.load %arg3[%c0_38, %c0_39] : memref<48x1536xbf16, #tpu.memory_space<vmem>>, vector<48x1536xbf16>
    %cst_40 = arith.constant dense<0.000000e+00> : vector<48x128xf32>
    %112 = tpu.matmul %111, %107, %cst_40 {dimension_numbers = #tpu.dot_dimension_numbers<[1], [0], [0], [1], [0, 0, 1, 1], [], []>} : vector<48x1536xbf16>, vector<1536x128xbf16>, vector<48x128xf32> -> vector<48x128xf32>
    %cst_41 = arith.constant dense<0.000000e+00> : vector<48x128xf32>
    %113 = tpu.matmul %111, %110, %cst_41 {dimension_numbers = #tpu.dot_dimension_numbers<[1], [0], [0], [1], [0, 0, 1, 1], [], []>} : vector<48x1536xbf16>, vector<1536x128xbf16>, vector<48x128xf32> -> vector<48x128xf32>
    %114 = arith.addf %112, %113 : vector<48x128xf32>
    %c0_42 = arith.constant 0 : index
    %c0_43 = arith.constant 0 : index
    %115 = vector.load %arg4[%c0_42, %c0_43] : memref<48x1xf32, #tpu.memory_space<vmem>>, vector<48x1xf32>
    %116 = vector.broadcast %115 : vector<48x1xf32> to vector<48x128xf32>
    %117 = arith.addf %114, %116 : vector<48x128xf32>
    %cst_44 = arith.constant 1.000000e+00 : f32
    %118 = vector.broadcast %cst_44 : f32 to vector<1x128xf32>
    %119 = arith.divf %118, %16 : vector<1x128xf32>
    %cst_45 = arith.constant 1.000000e+00 : f32
    %120 = vector.broadcast %cst_45 : f32 to vector<1x128xf32>
    %121 = arith.divf %120, %26 : vector<1x128xf32>
    %cst_46 = arith.constant 1.000000e+00 : f32
    %122 = vector.broadcast %cst_46 : f32 to vector<1x128xf32>
    %123 = arith.divf %122, %24 : vector<1x128xf32>
    %124 = arith.mulf %25, %121 : vector<1x128xf32>
    %cst_47 = arith.constant 0.0465116277 : f32
    %125 = vector.broadcast %cst_47 : f32 to vector<1x128xf32>
    %126 = arith.mulf %12, %125 : vector<1x128xf32>
    %cst_48 = arith.constant 0.0333333351 : f32
    %127 = vector.broadcast %cst_48 : f32 to vector<1x128xf32>
    %128 = arith.mulf %13, %127 : vector<1x128xf32>
    %cst_49 = arith.constant 4.000000e-02 : f32
    %129 = vector.broadcast %cst_49 : f32 to vector<1x128xf32>
    %130 = arith.mulf %14, %129 : vector<1x128xf32>
    %cst_50 = arith.constant 1.000000e+00 : f32
    %131 = vector.broadcast %cst_50 : f32 to vector<1x128xf32>
    %132 = arith.subf %131, %130 : vector<1x128xf32>
    %133 = arith.mulf %16, %22 : vector<1x128xf32>
    %134 = arith.mulf %133, %24 : vector<1x128xf32>
    %135 = arith.mulf %16, %23 : vector<1x128xf32>
    %136 = arith.mulf %16, %21 : vector<1x128xf32>
    %137 = arith.mulf %136, %24 : vector<1x128xf32>
    %138 = arith.mulf %26, %30 : vector<1x128xf32>
    %139 = arith.mulf %134, %138 : vector<1x128xf32>
    %140 = arith.mulf %27, %30 : vector<1x128xf32>
    %141 = arith.mulf %140, %25 : vector<1x128xf32>
    %142 = arith.mulf %28, %29 : vector<1x128xf32>
    %143 = arith.subf %141, %142 : vector<1x128xf32>
    %144 = arith.mulf %135, %143 : vector<1x128xf32>
    %145 = arith.addf %139, %144 : vector<1x128xf32>
    %146 = arith.mulf %28, %25 : vector<1x128xf32>
    %147 = arith.mulf %146, %30 : vector<1x128xf32>
    %148 = arith.mulf %27, %29 : vector<1x128xf32>
    %149 = arith.addf %147, %148 : vector<1x128xf32>
    %150 = arith.mulf %137, %149 : vector<1x128xf32>
    %151 = arith.addf %145, %150 : vector<1x128xf32>
    %152 = arith.mulf %26, %29 : vector<1x128xf32>
    %153 = arith.mulf %134, %152 : vector<1x128xf32>
    %154 = arith.mulf %27, %29 : vector<1x128xf32>
    %155 = arith.mulf %154, %25 : vector<1x128xf32>
    %156 = arith.mulf %28, %30 : vector<1x128xf32>
    %157 = arith.addf %155, %156 : vector<1x128xf32>
    %158 = arith.mulf %135, %157 : vector<1x128xf32>
    %159 = arith.addf %153, %158 : vector<1x128xf32>
    %160 = arith.mulf %28, %25 : vector<1x128xf32>
    %161 = arith.mulf %160, %29 : vector<1x128xf32>
    %162 = arith.mulf %27, %30 : vector<1x128xf32>
    %163 = arith.subf %161, %162 : vector<1x128xf32>
    %164 = arith.mulf %137, %163 : vector<1x128xf32>
    %165 = arith.addf %159, %164 : vector<1x128xf32>
    %166 = arith.mulf %134, %25 : vector<1x128xf32>
    %167 = arith.mulf %27, %26 : vector<1x128xf32>
    %168 = arith.mulf %135, %167 : vector<1x128xf32>
    %169 = arith.subf %166, %168 : vector<1x128xf32>
    %170 = arith.mulf %28, %26 : vector<1x128xf32>
    %171 = arith.mulf %137, %170 : vector<1x128xf32>
    %172 = arith.subf %169, %171 : vector<1x128xf32>
    %173 = arith.mulf %8, %27 : vector<1x128xf32>
    %174 = arith.mulf %9, %28 : vector<1x128xf32>
    %175 = arith.addf %173, %174 : vector<1x128xf32>
    %176 = arith.mulf %124, %175 : vector<1x128xf32>
    %177 = arith.addf %7, %176 : vector<1x128xf32>
    %178 = arith.mulf %8, %28 : vector<1x128xf32>
    %179 = arith.mulf %9, %27 : vector<1x128xf32>
    %180 = arith.subf %178, %179 : vector<1x128xf32>
    %181 = arith.mulf %8, %27 : vector<1x128xf32>
    %182 = arith.mulf %9, %28 : vector<1x128xf32>
    %183 = arith.addf %181, %182 : vector<1x128xf32>
    %184 = arith.mulf %183, %121 : vector<1x128xf32>
    %cst_51 = arith.constant 5.660000e+00 : f32
    %185 = vector.broadcast %cst_51 : f32 to vector<1x128xf32>
    %186 = arith.mulf %185, %119 : vector<1x128xf32>
    %cst_52 = arith.constant 1.500000e+01 : f32
    %187 = vector.broadcast %cst_52 : f32 to vector<1x128xf32>
    %188 = arith.mulf %187, %119 : vector<1x128xf32>
    %189 = vector.extract_strided_slice %117 {offsets = [6, 0], sizes = [1, 128], strides = [1, 1]} : vector<48x128xf32> to vector<1x128xf32>
    %190 = vector.extract_strided_slice %117 {offsets = [21, 0], sizes = [1, 128], strides = [1, 1]} : vector<48x128xf32> to vector<1x128xf32>
    %191 = arith.mulf %190, %132 : vector<1x128xf32>
    %192 = arith.addf %189, %191 : vector<1x128xf32>
    %193 = arith.mulf %186, %192 : vector<1x128xf32>
    %194 = vector.extract_strided_slice %117 {offsets = [0, 0], sizes = [1, 128], strides = [1, 1]} : vector<48x128xf32> to vector<1x128xf32>
    %195 = vector.extract_strided_slice %117 {offsets = [15, 0], sizes = [1, 128], strides = [1, 1]} : vector<48x128xf32> to vector<1x128xf32>
    %196 = arith.mulf %195, %132 : vector<1x128xf32>
    %197 = arith.addf %194, %196 : vector<1x128xf32>
    %198 = arith.mulf %193, %8 : vector<1x128xf32>
    %199 = arith.addf %197, %198 : vector<1x128xf32>
    %200 = vector.extract_strided_slice %117 {offsets = [9, 0], sizes = [1, 128], strides = [1, 1]} : vector<48x128xf32> to vector<1x128xf32>
    %201 = vector.extract_strided_slice %117 {offsets = [16, 0], sizes = [1, 128], strides = [1, 1]} : vector<48x128xf32> to vector<1x128xf32>
    %202 = arith.mulf %201, %132 : vector<1x128xf32>
    %203 = arith.addf %200, %202 : vector<1x128xf32>
    %204 = arith.mulf %186, %203 : vector<1x128xf32>
    %205 = vector.extract_strided_slice %117 {offsets = [1, 0], sizes = [1, 128], strides = [1, 1]} : vector<48x128xf32> to vector<1x128xf32>
    %206 = vector.extract_strided_slice %117 {offsets = [16, 0], sizes = [1, 128], strides = [1, 1]} : vector<48x128xf32> to vector<1x128xf32>
    %207 = arith.mulf %206, %132 : vector<1x128xf32>
    %208 = arith.addf %205, %207 : vector<1x128xf32>
    %209 = arith.mulf %204, %8 : vector<1x128xf32>
    %210 = arith.addf %208, %209 : vector<1x128xf32>
    %211 = vector.extract_strided_slice %117 {offsets = [12, 0], sizes = [1, 128], strides = [1, 1]} : vector<48x128xf32> to vector<1x128xf32>
    %212 = vector.extract_strided_slice %117 {offsets = [27, 0], sizes = [1, 128], strides = [1, 1]} : vector<48x128xf32> to vector<1x128xf32>
    %213 = arith.mulf %212, %132 : vector<1x128xf32>
    %214 = arith.addf %211, %213 : vector<1x128xf32>
    %215 = arith.mulf %186, %214 : vector<1x128xf32>
    %216 = vector.extract_strided_slice %117 {offsets = [2, 0], sizes = [1, 128], strides = [1, 1]} : vector<48x128xf32> to vector<1x128xf32>
    %217 = vector.extract_strided_slice %117 {offsets = [42, 0], sizes = [1, 128], strides = [1, 1]} : vector<48x128xf32> to vector<1x128xf32>
    %218 = arith.mulf %216, %217 : vector<1x128xf32>
    %cst_53 = arith.constant 1.000000e-01 : f32
    %219 = vector.broadcast %cst_53 : f32 to vector<1x128xf32>
    %220 = arith.mulf %210, %219 : vector<1x128xf32>
    %221 = arith.addf %218, %220 : vector<1x128xf32>
    %222 = vector.extract_strided_slice %117 {offsets = [17, 0], sizes = [1, 128], strides = [1, 1]} : vector<48x128xf32> to vector<1x128xf32>
    %223 = arith.mulf %222, %132 : vector<1x128xf32>
    %224 = arith.addf %221, %223 : vector<1x128xf32>
    %225 = arith.mulf %215, %8 : vector<1x128xf32>
    %226 = arith.addf %224, %225 : vector<1x128xf32>
    %227 = vector.extract_strided_slice %117 {offsets = [41, 0], sizes = [1, 128], strides = [1, 1]} : vector<48x128xf32> to vector<1x128xf32>
    %228 = arith.addf %226, %227 : vector<1x128xf32>
    %cst_54 = arith.constant 0.000000e+00 : f32
    %229 = vector.broadcast %cst_54 : f32 to vector<1x128xf32>
    %230 = arith.addf %228, %229 : vector<1x128xf32>
    %231 = vector.extract_strided_slice %117 {offsets = [33, 0], sizes = [1, 128], strides = [1, 1]} : vector<48x128xf32> to vector<1x128xf32>
    %232 = vector.extract_strided_slice %117 {offsets = [34, 0], sizes = [1, 128], strides = [1, 1]} : vector<48x128xf32> to vector<1x128xf32>
    %233 = arith.mulf %232, %132 : vector<1x128xf32>
    %234 = arith.addf %231, %233 : vector<1x128xf32>
    %235 = vector.extract_strided_slice %117 {offsets = [7, 0], sizes = [1, 128], strides = [1, 1]} : vector<48x128xf32> to vector<1x128xf32>
    %236 = vector.extract_strided_slice %117 {offsets = [22, 0], sizes = [1, 128], strides = [1, 1]} : vector<48x128xf32> to vector<1x128xf32>
    %237 = arith.mulf %236, %132 : vector<1x128xf32>
    %238 = arith.addf %235, %237 : vector<1x128xf32>
    %239 = arith.mulf %188, %238 : vector<1x128xf32>
    %240 = vector.extract_strided_slice %117 {offsets = [8, 0], sizes = [1, 128], strides = [1, 1]} : vector<48x128xf32> to vector<1x128xf32>
    %241 = vector.extract_strided_slice %117 {offsets = [23, 0], sizes = [1, 128], strides = [1, 1]} : vector<48x128xf32> to vector<1x128xf32>
    %242 = arith.mulf %241, %132 : vector<1x128xf32>
    %243 = arith.addf %240, %242 : vector<1x128xf32>
    %244 = arith.mulf %188, %243 : vector<1x128xf32>
    %245 = vector.extract_strided_slice %117 {offsets = [3, 0], sizes = [1, 128], strides = [1, 1]} : vector<48x128xf32> to vector<1x128xf32>
    %246 = vector.extract_strided_slice %117 {offsets = [18, 0], sizes = [1, 128], strides = [1, 1]} : vector<48x128xf32> to vector<1x128xf32>
    %247 = arith.mulf %246, %132 : vector<1x128xf32>
    %248 = arith.addf %245, %247 : vector<1x128xf32>
    %249 = arith.mulf %234, %126 : vector<1x128xf32>
    %250 = arith.addf %248, %249 : vector<1x128xf32>
    %251 = vector.extract_strided_slice %117 {offsets = [30, 0], sizes = [1, 128], strides = [1, 1]} : vector<48x128xf32> to vector<1x128xf32>
    %252 = arith.mulf %251, %128 : vector<1x128xf32>
    %253 = arith.addf %250, %252 : vector<1x128xf32>
    %254 = arith.mulf %239, %9 : vector<1x128xf32>
    %255 = arith.addf %253, %254 : vector<1x128xf32>
    %256 = arith.mulf %244, %7 : vector<1x128xf32>
    %257 = arith.addf %255, %256 : vector<1x128xf32>
    %258 = vector.extract_strided_slice %117 {offsets = [35, 0], sizes = [1, 128], strides = [1, 1]} : vector<48x128xf32> to vector<1x128xf32>
    %259 = vector.extract_strided_slice %117 {offsets = [36, 0], sizes = [1, 128], strides = [1, 1]} : vector<48x128xf32> to vector<1x128xf32>
    %260 = arith.mulf %259, %132 : vector<1x128xf32>
    %261 = arith.addf %258, %260 : vector<1x128xf32>
    %262 = vector.extract_strided_slice %117 {offsets = [13, 0], sizes = [1, 128], strides = [1, 1]} : vector<48x128xf32> to vector<1x128xf32>
    %263 = vector.extract_strided_slice %117 {offsets = [28, 0], sizes = [1, 128], strides = [1, 1]} : vector<48x128xf32> to vector<1x128xf32>
    %264 = arith.mulf %263, %132 : vector<1x128xf32>
    %265 = arith.addf %262, %264 : vector<1x128xf32>
    %266 = arith.mulf %188, %265 : vector<1x128xf32>
    %267 = vector.extract_strided_slice %117 {offsets = [14, 0], sizes = [1, 128], strides = [1, 1]} : vector<48x128xf32> to vector<1x128xf32>
    %268 = vector.extract_strided_slice %117 {offsets = [29, 0], sizes = [1, 128], strides = [1, 1]} : vector<48x128xf32> to vector<1x128xf32>
    %269 = arith.mulf %268, %132 : vector<1x128xf32>
    %270 = arith.addf %267, %269 : vector<1x128xf32>
    %271 = arith.mulf %188, %270 : vector<1x128xf32>
    %272 = vector.extract_strided_slice %117 {offsets = [4, 0], sizes = [1, 128], strides = [1, 1]} : vector<48x128xf32> to vector<1x128xf32>
    %273 = vector.extract_strided_slice %117 {offsets = [19, 0], sizes = [1, 128], strides = [1, 1]} : vector<48x128xf32> to vector<1x128xf32>
    %274 = arith.mulf %273, %132 : vector<1x128xf32>
    %275 = arith.addf %272, %274 : vector<1x128xf32>
    %cst_55 = arith.constant 1.000000e-01 : f32
    %276 = vector.broadcast %cst_55 : f32 to vector<1x128xf32>
    %277 = arith.mulf %257, %276 : vector<1x128xf32>
    %cst_56 = arith.constant 0.377333343 : f32
    %278 = vector.broadcast %cst_56 : f32 to vector<1x128xf32>
    %279 = arith.mulf %277, %278 : vector<1x128xf32>
    %280 = arith.subf %275, %279 : vector<1x128xf32>
    %281 = arith.mulf %261, %126 : vector<1x128xf32>
    %282 = arith.addf %280, %281 : vector<1x128xf32>
    %283 = vector.extract_strided_slice %117 {offsets = [31, 0], sizes = [1, 128], strides = [1, 1]} : vector<48x128xf32> to vector<1x128xf32>
    %284 = arith.mulf %283, %128 : vector<1x128xf32>
    %285 = arith.addf %282, %284 : vector<1x128xf32>
    %286 = arith.mulf %266, %9 : vector<1x128xf32>
    %287 = arith.addf %285, %286 : vector<1x128xf32>
    %288 = arith.mulf %271, %7 : vector<1x128xf32>
    %289 = arith.addf %287, %288 : vector<1x128xf32>
    %290 = vector.extract_strided_slice %117 {offsets = [39, 0], sizes = [1, 128], strides = [1, 1]} : vector<48x128xf32> to vector<1x128xf32>
    %291 = arith.mulf %290, %20 : vector<1x128xf32>
    %292 = arith.addf %289, %291 : vector<1x128xf32>
    %293 = vector.extract_strided_slice %117 {offsets = [37, 0], sizes = [1, 128], strides = [1, 1]} : vector<48x128xf32> to vector<1x128xf32>
    %294 = vector.extract_strided_slice %117 {offsets = [38, 0], sizes = [1, 128], strides = [1, 1]} : vector<48x128xf32> to vector<1x128xf32>
    %295 = arith.mulf %294, %132 : vector<1x128xf32>
    %296 = arith.addf %293, %295 : vector<1x128xf32>
    %297 = vector.extract_strided_slice %117 {offsets = [10, 0], sizes = [1, 128], strides = [1, 1]} : vector<48x128xf32> to vector<1x128xf32>
    %298 = vector.extract_strided_slice %117 {offsets = [25, 0], sizes = [1, 128], strides = [1, 1]} : vector<48x128xf32> to vector<1x128xf32>
    %299 = arith.mulf %298, %132 : vector<1x128xf32>
    %300 = arith.addf %297, %299 : vector<1x128xf32>
    %301 = arith.mulf %188, %300 : vector<1x128xf32>
    %302 = vector.extract_strided_slice %117 {offsets = [11, 0], sizes = [1, 128], strides = [1, 1]} : vector<48x128xf32> to vector<1x128xf32>
    %303 = vector.extract_strided_slice %117 {offsets = [26, 0], sizes = [1, 128], strides = [1, 1]} : vector<48x128xf32> to vector<1x128xf32>
    %304 = arith.mulf %303, %132 : vector<1x128xf32>
    %305 = arith.addf %302, %304 : vector<1x128xf32>
    %306 = arith.mulf %188, %305 : vector<1x128xf32>
    %307 = vector.extract_strided_slice %117 {offsets = [5, 0], sizes = [1, 128], strides = [1, 1]} : vector<48x128xf32> to vector<1x128xf32>
    %308 = vector.extract_strided_slice %117 {offsets = [20, 0], sizes = [1, 128], strides = [1, 1]} : vector<48x128xf32> to vector<1x128xf32>
    %309 = arith.mulf %308, %132 : vector<1x128xf32>
    %310 = arith.addf %307, %309 : vector<1x128xf32>
    %311 = arith.mulf %296, %126 : vector<1x128xf32>
    %312 = arith.addf %310, %311 : vector<1x128xf32>
    %313 = vector.extract_strided_slice %117 {offsets = [32, 0], sizes = [1, 128], strides = [1, 1]} : vector<48x128xf32> to vector<1x128xf32>
    %314 = arith.mulf %313, %128 : vector<1x128xf32>
    %315 = arith.addf %312, %314 : vector<1x128xf32>
    %316 = arith.mulf %301, %9 : vector<1x128xf32>
    %317 = arith.addf %315, %316 : vector<1x128xf32>
    %318 = arith.mulf %306, %7 : vector<1x128xf32>
    %319 = arith.addf %317, %318 : vector<1x128xf32>
    %320 = vector.extract_strided_slice %117 {offsets = [40, 0], sizes = [1, 128], strides = [1, 1]} : vector<48x128xf32> to vector<1x128xf32>
    %321 = arith.mulf %320, %20 : vector<1x128xf32>
    %322 = arith.addf %319, %321 : vector<1x128xf32>
    %323 = arith.mulf %9, %135 : vector<1x128xf32>
    %324 = arith.mulf %8, %137 : vector<1x128xf32>
    %325 = arith.subf %323, %324 : vector<1x128xf32>
    %cst_57 = arith.constant 3.217000e+01 : f32
    %326 = vector.broadcast %cst_57 : f32 to vector<1x128xf32>
    %327 = arith.mulf %326, %25 : vector<1x128xf32>
    %328 = arith.subf %325, %327 : vector<1x128xf32>
    %cst_58 = arith.constant 3.000000e+02 : f32
    %329 = vector.broadcast %cst_58 : f32 to vector<1x128xf32>
    %330 = arith.mulf %56, %329 : vector<1x128xf32>
    %331 = arith.mulf %330, %199 : vector<1x128xf32>
    %cst_59 = arith.constant 0.0015700066 : f32
    %332 = vector.broadcast %cst_59 : f32 to vector<1x128xf32>
    %333 = arith.mulf %331, %332 : vector<1x128xf32>
    %334 = arith.addf %328, %333 : vector<1x128xf32>
    %cst_60 = arith.constant 0.0015700066 : f32
    %335 = vector.broadcast %cst_60 : f32 to vector<1x128xf32>
    %336 = arith.mulf %10, %335 : vector<1x128xf32>
    %337 = arith.addf %334, %336 : vector<1x128xf32>
    %338 = arith.mulf %7, %137 : vector<1x128xf32>
    %339 = arith.mulf %9, %134 : vector<1x128xf32>
    %340 = arith.subf %338, %339 : vector<1x128xf32>
    %cst_61 = arith.constant 3.217000e+01 : f32
    %341 = vector.broadcast %cst_61 : f32 to vector<1x128xf32>
    %342 = arith.mulf %341, %26 : vector<1x128xf32>
    %343 = arith.mulf %342, %27 : vector<1x128xf32>
    %344 = arith.addf %340, %343 : vector<1x128xf32>
    %cst_62 = arith.constant 3.000000e+02 : f32
    %345 = vector.broadcast %cst_62 : f32 to vector<1x128xf32>
    %346 = arith.mulf %56, %345 : vector<1x128xf32>
    %347 = arith.mulf %346, %257 : vector<1x128xf32>
    %cst_63 = arith.constant 0.0015700066 : f32
    %348 = vector.broadcast %cst_63 : f32 to vector<1x128xf32>
    %349 = arith.mulf %347, %348 : vector<1x128xf32>
    %350 = arith.addf %344, %349 : vector<1x128xf32>
    %351 = arith.mulf %8, %134 : vector<1x128xf32>
    %352 = arith.mulf %7, %135 : vector<1x128xf32>
    %353 = arith.subf %351, %352 : vector<1x128xf32>
    %cst_64 = arith.constant 3.217000e+01 : f32
    %354 = vector.broadcast %cst_64 : f32 to vector<1x128xf32>
    %355 = arith.mulf %354, %26 : vector<1x128xf32>
    %356 = arith.mulf %355, %28 : vector<1x128xf32>
    %357 = arith.addf %353, %356 : vector<1x128xf32>
    %cst_65 = arith.constant 3.000000e+02 : f32
    %358 = vector.broadcast %cst_65 : f32 to vector<1x128xf32>
    %359 = arith.mulf %56, %358 : vector<1x128xf32>
    %360 = arith.mulf %359, %210 : vector<1x128xf32>
    %cst_66 = arith.constant 0.0015700066 : f32
    %361 = vector.broadcast %cst_66 : f32 to vector<1x128xf32>
    %362 = arith.mulf %360, %361 : vector<1x128xf32>
    %363 = arith.addf %357, %362 : vector<1x128xf32>
    %364 = arith.mulf %134, %337 : vector<1x128xf32>
    %365 = arith.mulf %135, %350 : vector<1x128xf32>
    %366 = arith.addf %364, %365 : vector<1x128xf32>
    %367 = arith.mulf %137, %363 : vector<1x128xf32>
    %368 = arith.addf %366, %367 : vector<1x128xf32>
    %369 = arith.mulf %368, %119 : vector<1x128xf32>
    %370 = arith.mulf %134, %363 : vector<1x128xf32>
    %371 = arith.mulf %137, %337 : vector<1x128xf32>
    %372 = arith.subf %370, %371 : vector<1x128xf32>
    %373 = arith.mulf %134, %134 : vector<1x128xf32>
    %374 = arith.mulf %137, %137 : vector<1x128xf32>
    %375 = arith.addf %373, %374 : vector<1x128xf32>
    %cst_67 = arith.constant 1.000000e+00 : f32
    %376 = vector.broadcast %cst_67 : f32 to vector<1x128xf32>
    %377 = arith.divf %376, %375 : vector<1x128xf32>
    %378 = arith.mulf %372, %377 : vector<1x128xf32>
    %379 = arith.mulf %350, %16 : vector<1x128xf32>
    %380 = arith.mulf %135, %369 : vector<1x128xf32>
    %381 = arith.subf %379, %380 : vector<1x128xf32>
    %382 = arith.mulf %119, %119 : vector<1x128xf32>
    %383 = arith.mulf %381, %382 : vector<1x128xf32>
    %384 = arith.mulf %383, %123 : vector<1x128xf32>
    %385 = arith.mulf %322, %56 : vector<1x128xf32>
    %cst_68 = arith.constant 3.000000e+02 : f32
    %386 = vector.broadcast %cst_68 : f32 to vector<1x128xf32>
    %387 = arith.mulf %385, %386 : vector<1x128xf32>
    %cst_69 = arith.constant 3.000000e+01 : f32
    %388 = vector.broadcast %cst_69 : f32 to vector<1x128xf32>
    %389 = arith.mulf %387, %388 : vector<1x128xf32>
    %390 = arith.mulf %230, %56 : vector<1x128xf32>
    %cst_70 = arith.constant 3.000000e+02 : f32
    %391 = vector.broadcast %cst_70 : f32 to vector<1x128xf32>
    %392 = arith.mulf %390, %391 : vector<1x128xf32>
    %cst_71 = arith.constant 1.132000e+01 : f32
    %393 = vector.broadcast %cst_71 : f32 to vector<1x128xf32>
    %394 = arith.mulf %392, %393 : vector<1x128xf32>
    %395 = arith.mulf %292, %56 : vector<1x128xf32>
    %cst_72 = arith.constant 3.000000e+02 : f32
    %396 = vector.broadcast %cst_72 : f32 to vector<1x128xf32>
    %397 = arith.mulf %395, %396 : vector<1x128xf32>
    %cst_73 = arith.constant 3.000000e+01 : f32
    %398 = vector.broadcast %cst_73 : f32 to vector<1x128xf32>
    %399 = arith.mulf %397, %398 : vector<1x128xf32>
    %cst_74 = arith.constant 6.310000e+04 : f32
    %400 = vector.broadcast %cst_74 : f32 to vector<1x128xf32>
    %401 = arith.mulf %400, %389 : vector<1x128xf32>
    %cst_75 = arith.constant 9.820000e+02 : f32
    %402 = vector.broadcast %cst_75 : f32 to vector<1x128xf32>
    %403 = arith.mulf %402, %399 : vector<1x128xf32>
    %404 = arith.addf %401, %403 : vector<1x128xf32>
    %cst_76 = arith.constant 0x4DDBAF20 : f32
    %405 = vector.broadcast %cst_76 : f32 to vector<1x128xf32>
    %406 = arith.mulf %405, %8 : vector<1x128xf32>
    %407 = arith.mulf %406, %9 : vector<1x128xf32>
    %408 = arith.subf %404, %407 : vector<1x128xf32>
    %cst_77 = arith.constant 0x4B7B76B4 : f32
    %409 = vector.broadcast %cst_77 : f32 to vector<1x128xf32>
    %410 = arith.mulf %409, %7 : vector<1x128xf32>
    %411 = arith.mulf %410, %8 : vector<1x128xf32>
    %412 = arith.addf %408, %411 : vector<1x128xf32>
    %cst_78 = arith.constant 9.820000e+02 : f32
    %413 = vector.broadcast %cst_78 : f32 to vector<1x128xf32>
    %414 = arith.mulf %413, %8 : vector<1x128xf32>
    %cst_79 = arith.constant 0.000000e+00 : f32
    %415 = vector.broadcast %cst_79 : f32 to vector<1x128xf32>
    %416 = arith.mulf %414, %415 : vector<1x128xf32>
    %417 = arith.addf %412, %416 : vector<1x128xf32>
    %cst_80 = arith.constant 1.67158876E-9 : f32
    %418 = vector.broadcast %cst_80 : f32 to vector<1x128xf32>
    %419 = arith.mulf %417, %418 : vector<1x128xf32>
    %cst_81 = arith.constant 5.360400e+04 : f32
    %420 = vector.broadcast %cst_81 : f32 to vector<1x128xf32>
    %421 = arith.mulf %420, %7 : vector<1x128xf32>
    %422 = arith.mulf %421, %9 : vector<1x128xf32>
    %423 = arith.addf %394, %422 : vector<1x128xf32>
    %424 = arith.mulf %7, %7 : vector<1x128xf32>
    %425 = arith.mulf %9, %9 : vector<1x128xf32>
    %426 = arith.subf %424, %425 : vector<1x128xf32>
    %cst_82 = arith.constant 9.820000e+02 : f32
    %427 = vector.broadcast %cst_82 : f32 to vector<1x128xf32>
    %428 = arith.mulf %427, %426 : vector<1x128xf32>
    %429 = arith.subf %423, %428 : vector<1x128xf32>
    %cst_83 = arith.constant 0.000000e+00 : f32
    %430 = vector.broadcast %cst_83 : f32 to vector<1x128xf32>
    %431 = arith.mulf %9, %430 : vector<1x128xf32>
    %432 = arith.subf %429, %431 : vector<1x128xf32>
    %cst_84 = arith.constant 1.79166509E-5 : f32
    %433 = vector.broadcast %cst_84 : f32 to vector<1x128xf32>
    %434 = arith.mulf %432, %433 : vector<1x128xf32>
    %cst_85 = arith.constant 9.496000e+03 : f32
    %435 = vector.broadcast %cst_85 : f32 to vector<1x128xf32>
    %436 = arith.mulf %435, %399 : vector<1x128xf32>
    %cst_86 = arith.constant 9.820000e+02 : f32
    %437 = vector.broadcast %cst_86 : f32 to vector<1x128xf32>
    %438 = arith.mulf %437, %389 : vector<1x128xf32>
    %439 = arith.addf %436, %438 : vector<1x128xf32>
    %cst_87 = arith.constant 0xCDD1452B : f32
    %440 = vector.broadcast %cst_87 : f32 to vector<1x128xf32>
    %441 = arith.mulf %440, %7 : vector<1x128xf32>
    %442 = arith.mulf %441, %8 : vector<1x128xf32>
    %443 = arith.addf %439, %442 : vector<1x128xf32>
    %cst_88 = arith.constant 0x4B7B76B4 : f32
    %444 = vector.broadcast %cst_88 : f32 to vector<1x128xf32>
    %445 = arith.mulf %444, %8 : vector<1x128xf32>
    %446 = arith.mulf %445, %9 : vector<1x128xf32>
    %447 = arith.subf %443, %446 : vector<1x128xf32>
    %cst_89 = arith.constant 9.496000e+03 : f32
    %448 = vector.broadcast %cst_89 : f32 to vector<1x128xf32>
    %449 = arith.mulf %448, %8 : vector<1x128xf32>
    %cst_90 = arith.constant 0.000000e+00 : f32
    %450 = vector.broadcast %cst_90 : f32 to vector<1x128xf32>
    %451 = arith.mulf %449, %450 : vector<1x128xf32>
    %452 = arith.addf %447, %451 : vector<1x128xf32>
    %cst_91 = arith.constant 1.67158876E-9 : f32
    %453 = vector.broadcast %cst_91 : f32 to vector<1x128xf32>
    %454 = arith.mulf %452, %453 : vector<1x128xf32>
    %455 = arith.mulf %4, %24 : vector<1x128xf32>
    %456 = arith.mulf %455, %22 : vector<1x128xf32>
    %457 = arith.mulf %4, %23 : vector<1x128xf32>
    %458 = arith.mulf %4, %24 : vector<1x128xf32>
    %459 = arith.mulf %458, %21 : vector<1x128xf32>
    %460 = arith.mulf %24, %22 : vector<1x128xf32>
    %461 = arith.mulf %460, %369 : vector<1x128xf32>
    %462 = arith.mulf %4, %23 : vector<1x128xf32>
    %463 = arith.mulf %462, %22 : vector<1x128xf32>
    %464 = arith.mulf %463, %384 : vector<1x128xf32>
    %465 = arith.subf %461, %464 : vector<1x128xf32>
    %466 = arith.mulf %4, %24 : vector<1x128xf32>
    %467 = arith.mulf %466, %21 : vector<1x128xf32>
    %468 = arith.mulf %467, %378 : vector<1x128xf32>
    %469 = arith.subf %465, %468 : vector<1x128xf32>
    %470 = arith.mulf %23, %369 : vector<1x128xf32>
    %471 = arith.mulf %4, %24 : vector<1x128xf32>
    %472 = arith.mulf %471, %384 : vector<1x128xf32>
    %473 = arith.addf %470, %472 : vector<1x128xf32>
    %474 = arith.mulf %24, %21 : vector<1x128xf32>
    %475 = arith.mulf %474, %369 : vector<1x128xf32>
    %476 = arith.mulf %4, %23 : vector<1x128xf32>
    %477 = arith.mulf %476, %21 : vector<1x128xf32>
    %478 = arith.mulf %477, %384 : vector<1x128xf32>
    %479 = arith.subf %475, %478 : vector<1x128xf32>
    %480 = arith.mulf %4, %24 : vector<1x128xf32>
    %481 = arith.mulf %480, %22 : vector<1x128xf32>
    %482 = arith.mulf %481, %378 : vector<1x128xf32>
    %483 = arith.addf %479, %482 : vector<1x128xf32>
    %484 = arith.mulf %8, %459 : vector<1x128xf32>
    %485 = arith.addf %469, %484 : vector<1x128xf32>
    %486 = arith.mulf %9, %457 : vector<1x128xf32>
    %487 = arith.subf %485, %486 : vector<1x128xf32>
    %cst_92 = arith.constant 0.0310809966 : f32
    %488 = vector.broadcast %cst_92 : f32 to vector<1x128xf32>
    %489 = arith.mulf %487, %488 : vector<1x128xf32>
    %490 = arith.addf %489, %25 : vector<1x128xf32>
    %491 = arith.mulf %9, %456 : vector<1x128xf32>
    %492 = arith.addf %473, %491 : vector<1x128xf32>
    %493 = arith.mulf %7, %459 : vector<1x128xf32>
    %494 = arith.subf %492, %493 : vector<1x128xf32>
    %cst_93 = arith.constant 0.0310809966 : f32
    %495 = vector.broadcast %cst_93 : f32 to vector<1x128xf32>
    %496 = arith.mulf %494, %495 : vector<1x128xf32>
    %497 = arith.mulf %26, %27 : vector<1x128xf32>
    %498 = arith.subf %496, %497 : vector<1x128xf32>
    %499 = arith.mulf %7, %457 : vector<1x128xf32>
    %500 = arith.addf %483, %499 : vector<1x128xf32>
    %501 = arith.mulf %8, %456 : vector<1x128xf32>
    %502 = arith.subf %500, %501 : vector<1x128xf32>
    %cst_94 = arith.constant 0.000000e+00 : f32
    %503 = vector.broadcast %cst_94 : f32 to vector<1x128xf32>
    %504 = arith.subf %503, %502 : vector<1x128xf32>
    %cst_95 = arith.constant 0.0310809966 : f32
    %505 = vector.broadcast %cst_95 : f32 to vector<1x128xf32>
    %506 = arith.mulf %504, %505 : vector<1x128xf32>
    %507 = arith.mulf %26, %28 : vector<1x128xf32>
    %508 = arith.addf %506, %507 : vector<1x128xf32>
    %cst_96 = arith.constant 0.000000e+00 : f32
    %509 = vector.broadcast %cst_96 : f32 to vector<1x128xf32>
    %c0_97 = arith.constant 0 : index
    %c0_98 = arith.constant 0 : index
    %510 = vector.load %arg5[%c0_97, %c0_98] : memref<24x128xf32, #tpu.memory_space<vmem>>, vector<1x128xf32>
    tpu.vector_store %arg5[%c0_97, %c0_98], %151 {strides = array<i32>} : memref<24x128xf32, #tpu.memory_space<vmem>>, vector<1x128xf32>,
    %c1 = arith.constant 1 : index
    %c0_99 = arith.constant 0 : index
    %511 = vector.load %arg5[%c1, %c0_99] : memref<24x128xf32, #tpu.memory_space<vmem>>, vector<1x128xf32>
    tpu.vector_store %arg5[%c1, %c0_99], %165 {strides = array<i32>} : memref<24x128xf32, #tpu.memory_space<vmem>>, vector<1x128xf32>,
    %c2_100 = arith.constant 2 : index
    %c0_101 = arith.constant 0 : index
    %512 = vector.load %arg5[%c2_100, %c0_101] : memref<24x128xf32, #tpu.memory_space<vmem>>, vector<1x128xf32>
    tpu.vector_store %arg5[%c2_100, %c0_101], %172 {strides = array<i32>} : memref<24x128xf32, #tpu.memory_space<vmem>>, vector<1x128xf32>,
    %c3_102 = arith.constant 3 : index
    %c0_103 = arith.constant 0 : index
    %513 = vector.load %arg5[%c3_102, %c0_103] : memref<24x128xf32, #tpu.memory_space<vmem>>, vector<1x128xf32>
    tpu.vector_store %arg5[%c3_102, %c0_103], %177 {strides = array<i32>} : memref<24x128xf32, #tpu.memory_space<vmem>>, vector<1x128xf32>,
    %c4_104 = arith.constant 4 : index
    %c0_105 = arith.constant 0 : index
    %514 = vector.load %arg5[%c4_104, %c0_105] : memref<24x128xf32, #tpu.memory_space<vmem>>, vector<1x128xf32>
    tpu.vector_store %arg5[%c4_104, %c0_105], %180 {strides = array<i32>} : memref<24x128xf32, #tpu.memory_space<vmem>>, vector<1x128xf32>,
    %c5_106 = arith.constant 5 : index
    %c0_107 = arith.constant 0 : index
    %515 = vector.load %arg5[%c5_106, %c0_107] : memref<24x128xf32, #tpu.memory_space<vmem>>, vector<1x128xf32>
    tpu.vector_store %arg5[%c5_106, %c0_107], %184 {strides = array<i32>} : memref<24x128xf32, #tpu.memory_space<vmem>>, vector<1x128xf32>,
    %c6_108 = arith.constant 6 : index
    %c0_109 = arith.constant 0 : index
    %516 = vector.load %arg5[%c6_108, %c0_109] : memref<24x128xf32, #tpu.memory_space<vmem>>, vector<1x128xf32>
    tpu.vector_store %arg5[%c6_108, %c0_109], %369 {strides = array<i32>} : memref<24x128xf32, #tpu.memory_space<vmem>>, vector<1x128xf32>,
    %c7_110 = arith.constant 7 : index
    %c0_111 = arith.constant 0 : index
    %517 = vector.load %arg5[%c7_110, %c0_111] : memref<24x128xf32, #tpu.memory_space<vmem>>, vector<1x128xf32>
    tpu.vector_store %arg5[%c7_110, %c0_111], %378 {strides = array<i32>} : memref<24x128xf32, #tpu.memory_space<vmem>>, vector<1x128xf32>,
    %c8_112 = arith.constant 8 : index
    %c0_113 = arith.constant 0 : index
    %518 = vector.load %arg5[%c8_112, %c0_113] : memref<24x128xf32, #tpu.memory_space<vmem>>, vector<1x128xf32>
    tpu.vector_store %arg5[%c8_112, %c0_113], %384 {strides = array<i32>} : memref<24x128xf32, #tpu.memory_space<vmem>>, vector<1x128xf32>,
    %c9_114 = arith.constant 9 : index
    %c0_115 = arith.constant 0 : index
    %519 = vector.load %arg5[%c9_114, %c0_115] : memref<24x128xf32, #tpu.memory_space<vmem>>, vector<1x128xf32>
    tpu.vector_store %arg5[%c9_114, %c0_115], %419 {strides = array<i32>} : memref<24x128xf32, #tpu.memory_space<vmem>>, vector<1x128xf32>,
    %c10_116 = arith.constant 10 : index
    %c0_117 = arith.constant 0 : index
    %520 = vector.load %arg5[%c10_116, %c0_117] : memref<24x128xf32, #tpu.memory_space<vmem>>, vector<1x128xf32>
    tpu.vector_store %arg5[%c10_116, %c0_117], %434 {strides = array<i32>} : memref<24x128xf32, #tpu.memory_space<vmem>>, vector<1x128xf32>,
    %c11_118 = arith.constant 11 : index
    %c0_119 = arith.constant 0 : index
    %521 = vector.load %arg5[%c11_118, %c0_119] : memref<24x128xf32, #tpu.memory_space<vmem>>, vector<1x128xf32>
    tpu.vector_store %arg5[%c11_118, %c0_119], %454 {strides = array<i32>} : memref<24x128xf32, #tpu.memory_space<vmem>>, vector<1x128xf32>,
    %c12_120 = arith.constant 12 : index
    %c0_121 = arith.constant 0 : index
    %522 = vector.load %arg5[%c12_120, %c0_121] : memref<24x128xf32, #tpu.memory_space<vmem>>, vector<1x128xf32>
    tpu.vector_store %arg5[%c12_120, %c0_121], %509 {strides = array<i32>} : memref<24x128xf32, #tpu.memory_space<vmem>>, vector<1x128xf32>,
    %c13_122 = arith.constant 13 : index
    %c0_123 = arith.constant 0 : index
    %523 = vector.load %arg5[%c13_122, %c0_123] : memref<24x128xf32, #tpu.memory_space<vmem>>, vector<1x128xf32>
    tpu.vector_store %arg5[%c13_122, %c0_123], %509 {strides = array<i32>} : memref<24x128xf32, #tpu.memory_space<vmem>>, vector<1x128xf32>,
    %c14_124 = arith.constant 14 : index
    %c0_125 = arith.constant 0 : index
    %524 = vector.load %arg5[%c14_124, %c0_125] : memref<24x128xf32, #tpu.memory_space<vmem>>, vector<1x128xf32>
    tpu.vector_store %arg5[%c14_124, %c0_125], %509 {strides = array<i32>} : memref<24x128xf32, #tpu.memory_space<vmem>>, vector<1x128xf32>,
    %c15_126 = arith.constant 15 : index
    %c0_127 = arith.constant 0 : index
    %525 = vector.load %arg5[%c15_126, %c0_127] : memref<24x128xf32, #tpu.memory_space<vmem>>, vector<1x128xf32>
    tpu.vector_store %arg5[%c15_126, %c0_127], %509 {strides = array<i32>} : memref<24x128xf32, #tpu.memory_space<vmem>>, vector<1x128xf32>,
    %c16_128 = arith.constant 16 : index
    %c0_129 = arith.constant 0 : index
    %526 = vector.load %arg5[%c16_128, %c0_129] : memref<24x128xf32, #tpu.memory_space<vmem>>, vector<1x128xf32>
    tpu.vector_store %arg5[%c16_128, %c0_129], %509 {strides = array<i32>} : memref<24x128xf32, #tpu.memory_space<vmem>>, vector<1x128xf32>,
    %c17 = arith.constant 17 : index
    %c0_130 = arith.constant 0 : index
    %527 = vector.load %arg5[%c17, %c0_130] : memref<24x128xf32, #tpu.memory_space<vmem>>, vector<1x128xf32>
    tpu.vector_store %arg5[%c17, %c0_130], %509 {strides = array<i32>} : memref<24x128xf32, #tpu.memory_space<vmem>>, vector<1x128xf32>,
    %c18 = arith.constant 18 : index
    %c0_131 = arith.constant 0 : index
    %528 = vector.load %arg5[%c18, %c0_131] : memref<24x128xf32, #tpu.memory_space<vmem>>, vector<1x128xf32>
    tpu.vector_store %arg5[%c18, %c0_131], %490 {strides = array<i32>} : memref<24x128xf32, #tpu.memory_space<vmem>>, vector<1x128xf32>,
    %c19 = arith.constant 19 : index
    %c0_132 = arith.constant 0 : index
    %529 = vector.load %arg5[%c19, %c0_132] : memref<24x128xf32, #tpu.memory_space<vmem>>, vector<1x128xf32>
    tpu.vector_store %arg5[%c19, %c0_132], %498 {strides = array<i32>} : memref<24x128xf32, #tpu.memory_space<vmem>>, vector<1x128xf32>,
    %c20 = arith.constant 20 : index
    %c0_133 = arith.constant 0 : index
    %530 = vector.load %arg5[%c20, %c0_133] : memref<24x128xf32, #tpu.memory_space<vmem>>, vector<1x128xf32>
    tpu.vector_store %arg5[%c20, %c0_133], %508 {strides = array<i32>} : memref<24x128xf32, #tpu.memory_space<vmem>>, vector<1x128xf32>,
    %c21 = arith.constant 21 : index
    %c0_134 = arith.constant 0 : index
    %531 = vector.load %arg5[%c21, %c0_134] : memref<24x128xf32, #tpu.memory_space<vmem>>, vector<1x128xf32>
    tpu.vector_store %arg5[%c21, %c0_134], %52 {strides = array<i32>} : memref<24x128xf32, #tpu.memory_space<vmem>>, vector<1x128xf32>,
    %c22 = arith.constant 22 : index
    %c0_135 = arith.constant 0 : index
    %532 = vector.load %arg5[%c22, %c0_135] : memref<24x128xf32, #tpu.memory_space<vmem>>, vector<1x128xf32>
    tpu.vector_store %arg5[%c22, %c0_135], %56 {strides = array<i32>} : memref<24x128xf32, #tpu.memory_space<vmem>>, vector<1x128xf32>,
    %c23 = arith.constant 23 : index
    %c0_136 = arith.constant 0 : index
    %533 = vector.load %arg5[%c23, %c0_136] : memref<24x128xf32, #tpu.memory_space<vmem>>, vector<1x128xf32>
    tpu.vector_store %arg5[%c23, %c0_136], %63 {strides = array<i32>} : memref<24x128xf32, #tpu.memory_space<vmem>>, vector<1x128xf32>,
    return
  }
  func.func @transform_0(%arg0: i32) -> (i32, i32) {
    %c0_i32 = arith.constant 0 : i32
    %c0_i32_0 = arith.constant 0 : i32
    return %c0_i32, %arg0 : i32, i32
  }
  func.func @transform_1(%arg0: i32) -> (i32, i32) {
    %c0_i32 = arith.constant 0 : i32
    %c0_i32_0 = arith.constant 0 : i32
    %c0_i32_1 = arith.constant 0 : i32
    return %c0_i32, %c0_i32_0 : i32, i32
  }
  func.func @transform_2(%arg0: i32) -> (i32, i32) {
    %c0_i32 = arith.constant 0 : i32
    %c0_i32_0 = arith.constant 0 : i32
    %c0_i32_1 = arith.constant 0 : i32
    return %c0_i32, %c0_i32_0 : i32, i32
  }
  func.func @transform_3(%arg0: i32) -> (i32, i32) {
    %c0_i32 = arith.constant 0 : i32
    %c0_i32_0 = arith.constant 0 : i32
    %c0_i32_1 = arith.constant 0 : i32
    return %c0_i32, %c0_i32_0 : i32, i32
  }
  func.func @transform_4(%arg0: i32) -> (i32, i32) {
    %c0_i32 = arith.constant 0 : i32
    %c0_i32_0 = arith.constant 0 : i32
    return %c0_i32, %arg0 : i32, i32
  }
}

</mosaic_0001>

<bundles_post_ra>
// kernel: tpu_custom_call.1
= control target key start
LH: loop header
LB: loop body
LE: loop exit
PB: predicated region body
PF: predicated region fallthrough
CT: control target
= control target key end

     0   :  { %9 = vsyncpa [#allocation4], 0  ;;  %s12417_s0 = inlined_call_operand.vmem [shape: f32[24,256], index: 0, kind: input, shape index: {}]   ;;  %s12418_s1 = inlined_call_operand.vmem [shape: bf16[1536,8], index: 1, kind: input, shape index: {}]   ;;  %s12419_s2 = inlined_call_operand.vmem [shape: bf16[48,1536], index: 2, kind: input, shape index: {}]   ;;  %s12420_s3 = inlined_call_operand.vmem [shape: f32[48,1], index: 3, kind: input, shape index: {}]   ;;  %s12421_s4 = inlined_call_operand.hbm [shape: f32[24,256], index: 4, kind: output, shape index: {}]  }
   0x1   :  { %11 = vsyncpa [#allocation4 + $0x1], 0  ;;  %s8177_s15 = smov 0   ;;  %s8179_s16 = smov 0  }
   0x2   :  { %s8181_s17 = smov 0   ;;  %s8183_s18 = smov 0  }
   0x3 LB: > { %s6723_s19 = sadd.s32 4294967295, %s8139_s18   ;;  %s6724_s20 = sadd.s32 4294967294, %s8139_s18   ;;  %s8139_s18 = sphi %s8183_s18, %s13093_s18   ;;  %s8135_s17 = sphi %s8181_s17, %s13092_s17   ;;  %s8131_s16 = sphi %s8179_s16, %s13091_s16   ;;  %s8127_s15 = sphi %s8177_s15, %s13090_s15  }
   0x4   : > { %s8200_s21 = sadd.s32 1, %s8139_s18   ;;  %s24_s22 = sadd.s32 1, %s8135_s17 }
   0x5   : > { %s21_s23 = ssub.s32 %s8139_s18, %s8200_s21  ;;  %p31_p0 = scmp.ne.s32.totalorder %s8135_s17, %s8131_s16 }
   0x6   : > { %p22_p1 = scmp.eq.s32.totalorder %s21_s23, 0  ;;  %p32_p2 = scmp.eq.s32.totalorder %s8139_s18, 0 }
   0x7   : > { %p124_p3 = scmp.eq.s32.totalorder %s6723_s19, 1  ;;  %p129_p4 = scmp.ne.s32.totalorder %s8131_s16, %s8127_s15 }
   0x8   : > { %s8213_s24 = scalar_select %p22_p1, %s8135_s17, %s24_s22  }
   0x9   : > { %p33_p5 = por %p32_p2, %p31_p0  ;;  %p8215_p6 = por %p124_p3, %p31_p0 }
   0xa   : > { %p130_p7 = scmp.eq.s32.totalorder %s6724_s20, 1  ;;  %p6726_p9 = scmp.ge.s32.totalorder %s8139_s18, 2 }
   0xc   : > { %p8219_p8 = por %p130_p7, %p129_p4  ;;  %155 = sbr.rel (%p6726_p9) target bundleno = 24 (0x18), region = 28 }
  0x11   : > { %158 = sbr.rel (!%p33_p5) target bundleno = 24 (0x18), region = 32  ;;  %s160_s27 = sand.u32 (%p33_p5), 1, %s8135_s17  }
  0x12   : > { %s6727_s28 = sshll.u32 (%p33_p5), %s8139_s18, 3  ;;  %s7616_s29 = smul.u32 (%p33_p5), 24, %s160_s27 }
  0x13   : > { %s164_s6 = scalar_lea.vmem (%p33_p5), %s12417_s0, %s6727_s28 }
  0x14   : > { %v197_v0 = vld [vmem:[%s164_s6] sm:$0xff] (%p33_p5)  ;;  %v199_v1 = vld [vmem:[%s164_s6 + $0x10] sm:$0xff] (%p33_p5)  ;;  %s162_s7 = scalar_lea.vmem (%p33_p5), [#allocation2], %s7616_s29 }
  0x15   : > { %v201_v2 = vld [vmem:[%s164_s6 + $0x20] sm:$0xff] (%p33_p5)  ;;  %198 = vst [vmem:[%s162_s7] sm:$0xff] (%p33_p5), %v197_v0 }
  0x16   : > { %200 = vst [vmem:[%s162_s7 + $0x8] sm:$0xff] %v199_v1 }
  0x17   : > { %202 = vst [vmem:[%s162_s7 + $0x10] sm:$0xff] %v201_v2 }
  0x18 PF: > { %p6728_p10 = scmp.ge.s32.totalorder %s8139_s18, 1  ;;  %p207_p11 = scmp.lt.s32.totalorder %s8139_s18, 3 }
  0x1a   : > { %p208_p12 = pnand %p6728_p10, %p207_p11 }
  0x1c   : > { %211 = sbr.rel (%p208_p12) target bundleno = 1931 (0x78b), region = 70 }
  0x21   : > { %s214_s8 = sand.u32 1, %s8131_s16   ;;  %v1834_v3 = vlaneseq  ;;  %v12422_v5 = vmov 0   ;;  %v8142_v14 = vmov 0.0   ;;  %vm2821_vm4 = vcmask 1043456   ;;  %v7482_v24 = vld [vmem:[%s12418_s1] sm:$0xff]  ;;  %v7483_v28 = vld [vmem:[%s12418_s1 + $0x8] sm:$0xff] }
  0x22   : > { %s7617_s9 = smul.u32 24, %s214_s8  ;;  %7669 = vset.pattern.permute.xlu1 %v12422_v5  ;;  %7668 = vset.pattern.permute.xlu0 %v12422_v5  ;;  %vm2532_vm5 = vcmask 64512   ;;  %v7484_v29 = vld [vmem:[%s12418_s1 + $0x10] sm:$0xff]  ;;  %v7485_v30 = vld [vmem:[%s12418_s1 + $0x18] sm:$0xff]  ;;  %v7486_v31 = vld [vmem:[%s12418_s1 + $0x20] sm:$0xff]  ;;  %s6642_s22 = scalar_lea.sflag [#allocation4], %s214_s8 }
  0x23   : > { %v1835_v4 = vshrl.u32 %v1834_v3, 7  ;;  %7670 = vset.pattern.permute.xlu2 %v12422_v5  ;;  %v7487_v32 = vld [vmem:[%s12418_s1 + $0x28] sm:$0xff]  ;;  %v7488_v33 = vld [vmem:[%s12418_s1 + $0x30] sm:$0xff]  ;;  %v7489_v34 = vld [vmem:[%s12418_s1 + $0x38] sm:$0xff]  ;;  %s8097_s30 = scalar_lea.hbm %s12421_s4, 48 }
  0x24   : > { %s8238_s10 = scalar_lea.vmem [#allocation2], %s7617_s9  ;;  %s8247_s11 = scalar_lea.vmem [#allocation3], %s7617_s9  ;;  %v7490_v35 = vld [vmem:[%s12418_s1 + $0x40] sm:$0xff]  ;;  %v7491_v42 = vld [vmem:[%s12418_s1 + $0x48] sm:$0xff]  ;;  %v7492_v61 = vld [vmem:[%s12418_s1 + $0x50] sm:$0xff] }
  0x25   : > { %v245_v6 = vld [vmem:[%s8238_s10 + $0x7] sm:$0x1]  ;;  %v246_v7 = vld [vmem:[%s8238_s10 + $0x8] sm:$0x1]  ;;  %vm1836_vm0 = vcmp.eq.s32.totalorder %v1835_v4, 0  ;;  %vm1841_vm1 = vcmp.eq.s32.totalorder %v1835_v4, 1 }
  0x26   : > { %v256_v8 = vmul.f32 57.29578, %v245_v6  ;;  %v8243_v9 = vmul.f32 57.29578, %v246_v7  ;;  %vm1847_vm2 = vcmp.eq.s32.totalorder %v1835_v4, 2  ;;  %vm1853_vm3 = vcmp.eq.s32.totalorder %v1835_v4, 3 }
  0x27   : > { %v7671_v11 = vld [vmem:[%s8238_s10 + $0xd] ss:$0 sm:$0xff]  ;;  %6629 = vst [vmem:[%s8247_s11 + $0xc] sm:$0x1] %v8142_v14  ;;  %v1854_v18 = vsel %vm1853_vm3, 1.0, %v8142_v14  ;;  %s6653_s20 = sshll.u32 %s8247_s11, 4  ;;  %s6654_s20 = int_to_ptr.vmem [resolvable:$true] %s6653_s20 }
  0x28   : > { %12535 = vst [vmem:[#allocation6_spill] sm:$0xff] %v8243_v9  ;;  %v1839_v10 = vperm.slane %v256_v8, 0  ;;  %v1844_v12 = vperm.slane %v8243_v9, 0  ;;  %v1851_v16 = vsel %vm1847_vm2, %v7671_v11, 0.0 }
  0x29   : > { %6630 = vst [vmem:[%s8247_s11 + $0xd] sm:$0x1] %v8142_v14 }
  0x2a   : > { %v1840_v13 = vsel %vm1836_vm0, %v1839_v10, 0.0  ;;  %v1845_v15 = vsel %vm1841_vm1, %v1844_v12, 0.0  ;;  %6631 = vst [vmem:[%s8247_s11 + $0xe] sm:$0x1] %v8142_v14 }
  0x2b   : > { %v1846_v17 = vadd.f32 %v1845_v15, %v1840_v13  ;;  %6632 = vst [vmem:[%s8247_s11 + $0xf] sm:$0x1] %v8142_v14 }
  0x2c   : > { %6633 = vst [vmem:[%s8247_s11 + $0x10] sm:$0x1] %v8142_v14 }
  0x2d   : > { %v1852_v19 = vadd.f32 %v1851_v16, %v1846_v17  ;;  %6634 = vst [vmem:[%s8247_s11 + $0x11] sm:$0x1] %v8142_v14 }
  0x2f   : > { %v1855_v20 = vadd.f32 %v1854_v18, %v1852_v19  ;;  %v7493_v18 = vld [vmem:[%s12418_s1 + $0x58] sm:$0xff] }
  0x31   : > { %v1856_v21 = vpack.c.bf16 %v1855_v20, %v1855_v20 }
  0x33   : > { %v1857_v22 = vunpack.c.l.bf16 %v1856_v21  ;;  %v3315_v23 = vsel %vm2821_vm4, %v1856_v21, 0 }
  0x34   : > { %3324 = vmatpush.bf16.msra.mxu1 %v3315_v23  ;;  %7615 = vmatpush.bf16.msra.mxu3 %v3315_v23 }
  0x35   : > { %v1858_v25 = vsub.f32 %v1855_v20, %v1857_v22 }
  0x37   : > { %7239 = vmatmul.msk.bf16.vlgmr.msra.gmra.mxu1 %vm2532_vm5, %v7482_v24  ;;  %v1859_v26 = vpack.c.bf16 %v1858_v25, %v1858_v25 }
  0x39   : > { %v2823_v27 = vsel %vm2821_vm4, %v1859_v26, 0 }
  0x3a   : > { %2832 = vmatpush.bf16.msra.mxu0 %v2823_v27  ;;  %7614 = vmatpush.bf16.msra.mxu2 %v2823_v27 }
  0x3d   : > { %7143 = vmatmul.msk.bf16.vlgmr.msra.gmra.mxu0 %vm2532_vm5, %v7482_v24 }
  0x47   : > { %7240 = vmatmul.msk.bf16.gmra.mxu1 %vm2532_vm5, %v7483_v28 }
  0x4d   : > { %7144 = vmatmul.msk.bf16.gmra.mxu0 %vm2532_vm5, %v7483_v28 }
  0x57   : > { %7241 = vmatmul.msk.bf16.gmra.mxu1 %vm2532_vm5, %v7484_v29 }
  0x5d   : > { %7145 = vmatmul.msk.bf16.gmra.mxu0 %vm2532_vm5, %v7484_v29 }
  0x67   : > { %7242 = vmatmul.msk.bf16.gmra.mxu1 %vm2532_vm5, %v7485_v30 }
  0x6d   : > { %7146 = vmatmul.msk.bf16.gmra.mxu0 %vm2532_vm5, %v7485_v30 }
  0x77   : > { %7243 = vmatmul.msk.bf16.gmra.mxu1 %vm2532_vm5, %v7486_v31 }
  0x7d   : > { %7147 = vmatmul.msk.bf16.gmra.mxu0 %vm2532_vm5, %v7486_v31 }
  0x87   : > { %7244 = vmatmul.msk.bf16.gmra.mxu1 %vm2532_vm5, %v7487_v32 }
  0x8d   : > { %7148 = vmatmul.msk.bf16.gmra.mxu0 %vm2532_vm5, %v7487_v32 }
  0x97   : > { %7245 = vmatmul.msk.bf16.gmra.mxu1 %vm2532_vm5, %v7488_v33 }
  0x9d   : > { %7149 = vmatmul.msk.bf16.gmra.mxu0 %vm2532_vm5, %v7488_v33 }
  0xa7   : > { %7246 = vmatmul.msk.bf16.gmra.mxu1 %vm2532_vm5, %v7489_v34 }
  0xad   : > { %7150 = vmatmul.msk.bf16.gmra.mxu0 %vm2532_vm5, %v7489_v34 }
  0xb4   : > { %v3326_v36 = vpop.f32.mrf.mxu1 }
  0xb7   : > { %7247 = vmatmul.msk.bf16.gmra.mxu1 %vm2532_vm5, %v7490_v35 }
  0xba   : > { %v2834_v37 = vpop.f32.mrf.mxu0 }
  0xbb   : > { %v3327_v38 = vadd.f32 %v3326_v36, %v2834_v37  ;;  %v7494_v37 = vld [vmem:[%s12418_s1 + $0x60] sm:$0xff] }
  0xbc   : > { %v3328_v39 = vpop.f32.mrf.mxu1 }
  0xbd   : > { %7151 = vmatmul.msk.bf16.gmra.mxu0 %vm2532_vm5, %v7490_v35  ;;  %7672 = vtanh.f32 %v3327_v38 }
  0xc2   : > { %v2836_v40 = vpop.f32.mrf.mxu0 }
  0xc3   : > { %v3329_v41 = vadd.f32 %v3328_v39, %v2836_v40  ;;  %v7673_v44 = vpop.eup %7672 }
  0xc4   : > { %v3331_v43 = vpop.f32.mrf.mxu1  ;;  %v3998_v45 = vpack.c.bf16 %v7673_v44, %v7673_v44 }
  0xc5   : > { %7674 = vtanh.f32 %v3329_v41 }
  0xc6   : > { %v4190_v51 = vunpack.c.l.bf16 %v3998_v45  ;;  %v5366_v53 = vunpack.c.l.b16 %v3998_v45 }
  0xc7   : > { %7248 = vmatmul.msk.bf16.gmra.mxu1 %vm2532_vm5, %v7491_v42 }
  0xc8   : > { %v8305_v55 = vsub.f32 %v7673_v44, %v4190_v51 }
  0xca   : > { %v2839_v46 = vpop.f32.mrf.mxu0 }
  0xcb   : > { %v7675_v47 = vpop.eup %7674  ;;  %v3332_v48 = vadd.f32 %v3331_v43, %v2839_v46 }
  0xcc   : > { %v3333_v49 = vpop.f32.mrf.mxu1  ;;  %v3999_v50 = vpack.c.bf16 %v7675_v47, %v7675_v47 }
  0xcd   : > { %7152 = vmatmul.msk.bf16.gmra.mxu0 %vm2532_vm5, %v7491_v42  ;;  %7676 = vtanh.f32 %v3332_v48 }
  0xce   : > { %v4191_v52 = vunpack.c.l.bf16 %v3999_v50  ;;  %v5367_v54 = vunpack.c.l.b16 %v3999_v50 }
  0xd0   : > { %v8307_v56 = vsub.f32 %v7675_v47, %v4191_v52  ;;  %v8309_v57 = vpack.c.b16 %v5367_v54, %v5366_v53 }
  0xd2   : > { %12536 = vst [vmem:[#allocation7_spill] sm:$0xff] %v8309_v57  ;;  %v2841_v58 = vpop.f32.mrf.mxu0  ;;  %v4574_v59 = vpack.c.bf16 %v8307_v56, %v8305_v55  ;;  %v7501_v55 = vld [vmem:[%s12418_s1 + $0x98] sm:$0xff] }
  0xd3   : > { %v3334_v60 = vadd.f32 %v3333_v49, %v2841_v58  ;;  %v7677_v63 = vpop.eup %7676 }
  0xd4   : > { %v3336_v62 = vpop.f32.mrf.mxu1  ;;  %v4000_v0 = vpack.c.bf16 %v7677_v63, %v7677_v63 }
  0xd5   : > { %7678 = vtanh.f32 %v3334_v60  ;;  %v7495_v60 = vld [vmem:[%s12418_s1 + $0x68] sm:$0xff] }
  0xd6   : > { %v4192_v7 = vunpack.c.l.bf16 %v4000_v0  ;;  %v5368_v10 = vunpack.c.l.b16 %v4000_v0 }
  0xd7   : > { %7249 = vmatmul.msk.bf16.gmra.mxu1 %vm2532_vm5, %v7492_v61 }
  0xd8   : > { %v8318_v12 = vsub.f32 %v7677_v63, %v4192_v7 }
  0xda   : > { %v2844_v1 = vpop.f32.mrf.mxu0 }
  0xdb   : > { %v7679_v2 = vpop.eup %7678  ;;  %v3337_v3 = vadd.f32 %v3336_v62, %v2844_v1 }
  0xdc   : > { %v3338_v4 = vpop.f32.mrf.mxu1  ;;  %v4001_v6 = vpack.c.bf16 %v7679_v2, %v7679_v2 }
  0xdd   : > { %7153 = vmatmul.msk.bf16.gmra.mxu0 %vm2532_vm5, %v7492_v61  ;;  %7680 = vtanh.f32 %v3337_v3 }
  0xde   : > { %v4193_v8 = vunpack.c.l.bf16 %v4001_v6  ;;  %v5369_v11 = vunpack.c.l.b16 %v4001_v6 }
  0xe0   : > { %v8320_v13 = vsub.f32 %v7679_v2, %v4193_v8  ;;  %v8322_v14 = vpack.c.b16 %v5369_v11, %v5368_v10 }
  0xe2   : > { %12537 = vst [vmem:[#allocation8_spill] sm:$0xff] %v8322_v14  ;;  %v2846_v15 = vpop.f32.mrf.mxu0  ;;  %v4575_v16 = vpack.c.bf16 %v8320_v13, %v8318_v12  ;;  %v8462_v13 = vld [vmem:[%s12418_s1 + $0x220] sm:$0xff] }
  0xe3   : > { %v3339_v17 = vadd.f32 %v3338_v4, %v2846_v15  ;;  %v7681_v20 = vpop.eup %7680  ;;  %v7496_v15 = vld [vmem:[%s12418_s1 + $0x70] sm:$0xff] }
  0xe4   : > { %v3341_v19 = vpop.f32.mrf.mxu1  ;;  %v4002_v21 = vpack.c.bf16 %v7681_v20, %v7681_v20 }
  0xe5   : > { %7682 = vtanh.f32 %v3339_v17 }
  0xe6   : > { %v4194_v27 = vunpack.c.l.bf16 %v4002_v21  ;;  %v5370_v29 = vunpack.c.l.b16 %v4002_v21 }
  0xe7   : > { %7250 = vmatmul.msk.bf16.gmra.mxu1 %vm2532_vm5, %v7493_v18 }
  0xe8   : > { %v8331_v31 = vsub.f32 %v7681_v20, %v4194_v27 }
  0xea   : > { %v2849_v22 = vpop.f32.mrf.mxu0 }
  0xeb   : > { %v7683_v23 = vpop.eup %7682  ;;  %v3342_v24 = vadd.f32 %v3341_v19, %v2849_v22 }
  0xec   : > { %v3343_v25 = vpop.f32.mrf.mxu1  ;;  %v4003_v26 = vpack.c.bf16 %v7683_v23, %v7683_v23 }
  0xed   : > { %7154 = vmatmul.msk.bf16.gmra.mxu0 %vm2532_vm5, %v7493_v18  ;;  %7684 = vtanh.f32 %v3342_v24 }
  0xee   : > { %v4195_v28 = vunpack.c.l.bf16 %v4003_v26  ;;  %v5371_v30 = vunpack.c.l.b16 %v4003_v26 }
  0xf0   : > { %v8333_v32 = vsub.f32 %v7683_v23, %v4195_v28  ;;  %v8335_v33 = vpack.c.b16 %v5371_v30, %v5370_v29  ;;  %v7497_v30 = vld [vmem:[%s12418_s1 + $0x78] sm:$0xff] }
  0xf2   : > { %12538 = vst [vmem:[#allocation9_spill] sm:$0xff] %v8335_v33  ;;  %v2851_v34 = vpop.f32.mrf.mxu0  ;;  %v4576_v35 = vpack.c.bf16 %v8333_v32, %v8331_v31 }
  0xf3   : > { %v3344_v36 = vadd.f32 %v3343_v25, %v2851_v34  ;;  %v7685_v39 = vpop.eup %7684 }
  0xf4   : > { %v3346_v38 = vpop.f32.mrf.mxu1  ;;  %v4004_v40 = vpack.c.bf16 %v7685_v39, %v7685_v39 }
  0xf5   : > { %7686 = vtanh.f32 %v3344_v36 }
  0xf6   : > { %v4196_v46 = vunpack.c.l.bf16 %v4004_v40  ;;  %v5372_v48 = vunpack.c.l.b16 %v4004_v40 }
  0xf7   : > { %7251 = vmatmul.msk.bf16.gmra.mxu1 %vm2532_vm5, %v7494_v37 }
  0xf8   : > { %v8344_v50 = vsub.f32 %v7685_v39, %v4196_v46 }
  0xfa   : > { %v2854_v41 = vpop.f32.mrf.mxu0 }
  0xfb   : > { %v7687_v42 = vpop.eup %7686  ;;  %v3347_v43 = vadd.f32 %v3346_v38, %v2854_v41 }
  0xfc   : > { %v3348_v44 = vpop.f32.mrf.mxu1  ;;  %v4005_v45 = vpack.c.bf16 %v7687_v42, %v7687_v42 }
  0xfd   : > { %7155 = vmatmul.msk.bf16.gmra.mxu0 %vm2532_vm5, %v7494_v37  ;;  %7688 = vtanh.f32 %v3347_v43 }
  0xfe   : > { %v4197_v47 = vunpack.c.l.bf16 %v4005_v45  ;;  %v5373_v49 = vunpack.c.l.b16 %v4005_v45 }
 0x100   : > { %v8346_v51 = vsub.f32 %v7687_v42, %v4197_v47  ;;  %v8348_v52 = vpack.c.b16 %v5373_v49, %v5372_v48  ;;  %v7498_v48 = vld [vmem:[%s12418_s1 + $0x80] sm:$0xff] }
 0x102   : > { %12539 = vst [vmem:[#allocation10_spill] sm:$0xff] %v8348_v52  ;;  %v2856_v53 = vpop.f32.mrf.mxu0  ;;  %v4577_v54 = vpack.c.bf16 %v8346_v51, %v8344_v50  ;;  %v8805_v52 = vld [vmem:[%s12418_s1 + $0x290] sm:$0xff] }
 0x103   : > { %v3349_v58 = vadd.f32 %v3348_v44, %v2856_v53  ;;  %v8355_v62 = vpop.eup %7688 }
 0x104   : > { %v3351_v61 = vpop.f32.mrf.mxu1  ;;  %v8360_v0 = vpack.c.bf16 %v8355_v62, %v8355_v62 }
 0x105   : > { %7690 = vtanh.f32 %v3349_v58 }
 0x106   : > { %v5374_v6 = vunpack.c.l.b16 %v8360_v0 }
 0x107   : > { %7252 = vmatmul.msk.bf16.gmra.mxu1 %vm2532_vm5, %v7495_v60 }
 0x10a   : > { %v2859_v63 = vpop.f32.mrf.mxu0 }
 0x10b   : > { %v8362_v1 = vpop.eup %7690  ;;  %v3352_v4 = vadd.f32 %v3351_v61, %v2859_v63 }
 0x10c   : > { %v3353_v2 = vpop.f32.mrf.mxu1  ;;  %v8366_v3 = vpack.c.bf16 %v8362_v1, %v8362_v1 }
 0x10d   : > { %7156 = vmatmul.msk.bf16.gmra.mxu0 %vm2532_vm5, %v7495_v60  ;;  %7692 = vtanh.f32 %v3352_v4 }
 0x10e   : > { %v5375_v7 = vunpack.c.l.b16 %v8366_v3 }
 0x110   : > { %v8371_v8 = vpack.c.b16 %v5375_v7, %v5374_v6 }
 0x112   : > { %12540 = vst [vmem:[#allocation11_spill] sm:$0xff] %v8371_v8  ;;  %v2861_v10 = vpop.f32.mrf.mxu0 }
 0x113   : > { %v3354_v11 = vadd.f32 %v3353_v2, %v2861_v10  ;;  %v8376_v18 = vpop.eup %7692 }
 0x114   : > { %v3356_v17 = vpop.f32.mrf.mxu1  ;;  %v8381_v20 = vpack.c.bf16 %v8376_v18, %v8376_v18 }
 0x115   : > { %7694 = vtanh.f32 %v3354_v11 }
 0x116   : > { %v5376_v25 = vunpack.c.l.b16 %v8381_v20 }
 0x117   : > { %7253 = vmatmul.msk.bf16.gmra.mxu1 %vm2532_vm5, %v7496_v15 }
 0x11a   : > { %v2864_v19 = vpop.f32.mrf.mxu0 }
 0x11b   : > { %v8383_v21 = vpop.eup %7694  ;;  %v3357_v24 = vadd.f32 %v3356_v17, %v2864_v19 }
 0x11c   : > { %v3358_v22 = vpop.f32.mrf.mxu1  ;;  %v8387_v23 = vpack.c.bf16 %v8383_v21, %v8383_v21 }
 0x11d   : > { %7157 = vmatmul.msk.bf16.gmra.mxu0 %vm2532_vm5, %v7496_v15  ;;  %7696 = vtanh.f32 %v3357_v24 }
 0x11e   : > { %v5377_v26 = vunpack.c.l.b16 %v8387_v23 }
 0x120   : > { %v8392_v27 = vpack.c.b16 %v5377_v26, %v5376_v25 }
 0x122   : > { %12541 = vst [vmem:[#allocation12_spill] sm:$0xff] %v8392_v27  ;;  %v2866_v28 = vpop.f32.mrf.mxu0 }
 0x123   : > { %v3359_v29 = vadd.f32 %v3358_v22, %v2866_v28  ;;  %v7697_v36 = vpop.eup %7696 }
 0x124   : > { %v3361_v34 = vpop.f32.mrf.mxu1  ;;  %v4010_v38 = vpack.c.bf16 %v7697_v36, %v7697_v36 }
 0x125   : > { %7698 = vtanh.f32 %v3359_v29  ;;  %v4201_v29 = vunpack.c.l.bf16 %v8387_v23 }
 0x126   : > { %v5378_v43 = vunpack.c.l.b16 %v4010_v38  ;;  %v4202_v22 = vunpack.c.l.bf16 %v4010_v38 }
 0x127   : > { %7254 = vmatmul.msk.bf16.gmra.mxu1 %vm2532_vm5, %v7497_v30 }
 0x12a   : > { %v2869_v37 = vpop.f32.mrf.mxu0 }
 0x12b   : > { %v7699_v39 = vpop.eup %7698  ;;  %v3362_v40 = vadd.f32 %v3361_v34, %v2869_v37  ;;  %v7499_v34 = vld [vmem:[%s12418_s1 + $0x88] sm:$0xff] }
 0x12c   : > { %v3363_v41 = vpop.f32.mrf.mxu1  ;;  %v4011_v42 = vpack.c.bf16 %v7699_v39, %v7699_v39 }
 0x12d   : > { %7158 = vmatmul.msk.bf16.gmra.mxu0 %vm2532_vm5, %v7497_v30  ;;  %7700 = vtanh.f32 %v3362_v40  ;;  %v4394_v40 = vsub.f32 %v7697_v36, %v4202_v22 }
 0x12e   : > { %v5379_v44 = vunpack.c.l.b16 %v4011_v42  ;;  %v4203_v10 = vunpack.c.l.bf16 %v4011_v42 }
 0x130   : > { %v8399_v45 = vpack.c.b16 %v5379_v44, %v5378_v43  ;;  %v4395_v28 = vsub.f32 %v7699_v39, %v4203_v10  ;;  %v4393_v43 = vsub.f32 %v8383_v21, %v4201_v29  ;;  %v4199_v44 = vunpack.c.l.bf16 %v8366_v3  ;;  %v7500_v10 = vld [vmem:[%s12418_s1 + $0x90] sm:$0xff] }
 0x131   : > { %v4198_v39 = vunpack.c.l.bf16 %v8360_v0 }
 0x132   : > { %12542 = vst [vmem:[#allocation13_spill] sm:$0xff] %v8399_v45  ;;  %v2871_v46 = vpop.f32.mrf.mxu0  ;;  %v4580_v38 = vpack.c.bf16 %v4395_v28, %v4394_v40  ;;  %v4391_v36 = vsub.f32 %v8362_v1, %v4199_v44 }
 0x133   : > { %v3364_v47 = vadd.f32 %v3363_v41, %v2871_v46  ;;  %v7701_v53 = vpop.eup %7700  ;;  %v4200_v41 = vunpack.c.l.bf16 %v8381_v20  ;;  %v4390_v21 = vsub.f32 %v8355_v62, %v4198_v39  ;;  %v8430_v62 = vld [vmem:[%s12418_s1 + $0x218] sm:$0xff] }
 0x134   : > { %v3366_v49 = vpop.f32.mrf.mxu1  ;;  %v4012_v58 = vpack.c.bf16 %v7701_v53, %v7701_v53  ;;  %7210 = vmatmul.msk.bf16.vlgmr.msra.gmra.mxu2 %vm2532_vm5, %v8430_v62 }
 0x135   : > { %7702 = vtanh.f32 %v3364_v47  ;;  %v4392_v23 = vsub.f32 %v8376_v18, %v4200_v41 }
 0x136   : > { %v4204_v6 = vunpack.c.l.bf16 %v4012_v58  ;;  %v5380_v11 = vunpack.c.l.b16 %v4012_v58 }
 0x137   : > { %7255 = vmatmul.msk.bf16.gmra.mxu1 %vm2532_vm5, %v7498_v48 }
 0x138   : > { %v4396_v17 = vsub.f32 %v7701_v53, %v4204_v6 }
 0x13a   : > { %v2874_v60 = vpop.f32.mrf.mxu0 }
 0x13b   : > { %v7703_v61 = vpop.eup %7702  ;;  %v3367_v63 = vadd.f32 %v3366_v49, %v2874_v60  ;;  %v4578_v60 = vpack.c.bf16 %v4391_v36, %v4390_v21  ;;  %v7502_v21 = vld [vmem:[%s12418_s1 + $0xa0] sm:$0xff] }
 0x13c   : > { %v3368_v2 = vpop.f32.mrf.mxu1  ;;  %v4013_v4 = vpack.c.bf16 %v7703_v61, %v7703_v61 }
 0x13d   : > { %7159 = vmatmul.msk.bf16.gmra.mxu0 %vm2532_vm5, %v7498_v48  ;;  %7704 = vtanh.f32 %v3367_v63  ;;  %v4579_v48 = vpack.c.bf16 %v4393_v43, %v4392_v23 }
 0x13e   : > { %v4205_v7 = vunpack.c.l.bf16 %v4013_v4  ;;  %v5381_v15 = vunpack.c.l.b16 %v4013_v4 }
 0x140   : > { %v4397_v19 = vsub.f32 %v7703_v61, %v4205_v7  ;;  %v8406_v24 = vpack.c.b16 %v5381_v15, %v5380_v11 }
 0x142   : > { %12543 = vst [vmem:[#allocation14_spill] sm:$0xff] %v8406_v24  ;;  %v2876_v25 = vpop.f32.mrf.mxu0  ;;  %v4581_v26 = vpack.c.bf16 %v4397_v19, %v4396_v17 }
 0x143   : > { %v3369_v30 = vadd.f32 %v3368_v2, %v2876_v25  ;;  %v7705_v42 = vpop.eup %7704 }
 0x144   : > { %v3371_v37 = vpop.f32.mrf.mxu1  ;;  %4886 = vmatpush.bf16.msrb.mxu2 %v4581_v26  ;;  %v4014_v46 = vpack.c.bf16 %v7705_v42, %v7705_v42 }
 0x145   : > { %7706 = vtanh.f32 %v3369_v30  ;;  %7211 = vmatmul.msk.bf16.gmra.mxu2 %vm2532_vm5, %v8462_v13 }
 0x146   : > { %v4206_v3 = vunpack.c.l.bf16 %v4014_v46  ;;  %v5382_v18 = vunpack.c.l.b16 %v4014_v46 }
 0x147   : > { %7256 = vmatmul.msk.bf16.gmra.mxu1 %vm2532_vm5, %v7499_v34 }
 0x148   : > { %4887 = vmatpush.bf16.msrb.mxu2 %v4580_v38  ;;  %v8421_v0 = vsub.f32 %v7705_v42, %v4206_v3 }
 0x14a   : > { %v2879_v47 = vpop.f32.mrf.mxu0 }
 0x14b   : > { %v7707_v20 = vpop.eup %7706  ;;  %v3372_v49 = vadd.f32 %v3371_v37, %v2879_v47 }
 0x14c   : > { %v3373_v53 = vpop.f32.mrf.mxu1  ;;  %4888 = vmatpush.bf16.msrb.mxu2 %v4579_v48  ;;  %v4015_v58 = vpack.c.bf16 %v7707_v20, %v7707_v20 }
 0x14d   : > { %7160 = vmatmul.msk.bf16.gmra.mxu0 %vm2532_vm5, %v7499_v34  ;;  %7708 = vtanh.f32 %v3372_v49 }
 0x14e   : > { %v4207_v61 = vunpack.c.l.bf16 %v4015_v58  ;;  %v5383_v63 = vunpack.c.l.b16 %v4015_v58 }
 0x150   : > { %4889 = vmatpush.bf16.msrb.mxu2 %v4578_v60  ;;  %v8423_v2 = vsub.f32 %v7707_v20, %v4207_v61  ;;  %v8425_v1 = vpack.c.b16 %v5383_v63, %v5382_v18  ;;  %v8482_v20 = vld [vmem:[%s12418_s1 + $0x228] sm:$0xff] }
 0x152   : > { %12544 = vst [vmem:[#allocation15_spill] sm:$0xff] %v8425_v1  ;;  %v2881_v4 = vpop.f32.mrf.mxu0 }
 0x153   : > { %v3374_v7 = vadd.f32 %v3373_v53, %v2881_v4  ;;  %v7709_v15 = vpop.eup %7708 }
 0x154   : > { %v3376_v11 = vpop.f32.mrf.mxu1  ;;  %4890 = vmatpush.bf16.msrb.mxu2 %v4577_v54  ;;  %v4016_v17 = vpack.c.bf16 %v7709_v15, %v7709_v15 }
 0x155   : > { %7710 = vtanh.f32 %v3374_v7  ;;  %7212 = vmatmul.msk.bf16.gmra.mxu2 %vm2532_vm5, %v8482_v20 }
 0x156   : > { %v4208_v51 = vunpack.c.l.bf16 %v4016_v17  ;;  %v5384_v28 = vunpack.c.l.b16 %v4016_v17 }
 0x157   : > { %7257 = vmatmul.msk.bf16.gmra.mxu1 %vm2532_vm5, %v7500_v10 }
 0x158   : > { %4891 = vmatpush.bf16.msrb.mxu2 %v4576_v35  ;;  %v8453_v31 = vsub.f32 %v7709_v15, %v4208_v51 }
 0x15a   : > { %v2884_v19 = vpop.f32.mrf.mxu0 }
 0x15b   : > { %v7711_v22 = vpop.eup %7710  ;;  %v3377_v25 = vadd.f32 %v3376_v11, %v2884_v19 }
 0x15c   : > { %v3378_v26 = vpop.f32.mrf.mxu1  ;;  %4892 = vmatpush.bf16.msrb.mxu2 %v4575_v16  ;;  %v4017_v50 = vpack.c.bf16 %v7711_v22, %v7711_v22 }
 0x15d   : > { %7161 = vmatmul.msk.bf16.gmra.mxu0 %vm2532_vm5, %v7500_v10  ;;  %7712 = vtanh.f32 %v3377_v25 }
 0x15e   : > { %v4209_v54 = vunpack.c.l.bf16 %v4017_v50  ;;  %v5385_v29 = vunpack.c.l.b16 %v4017_v50  ;;  %v8502_v50 = vld [vmem:[%s12418_s1 + $0x230] sm:$0xff] }
 0x160   : > { %4893 = vmatpush.bf16.msrb.mxu2 %v4574_v59  ;;  %v8455_v32 = vsub.f32 %v7711_v22, %v4209_v54  ;;  %v8457_v35 = vpack.c.b16 %v5385_v29, %v5384_v28  ;;  %v7503_v28 = vld [vmem:[%s12418_s1 + $0xa8] sm:$0xff] }
 0x162   : > { %12545 = vst [vmem:[#allocation16_spill] sm:$0xff] %v8457_v35  ;;  %v2886_v12 = vpop.f32.mrf.mxu0 }
 0x163   : > { %v3379_v30 = vadd.f32 %v3378_v26, %v2886_v12  ;;  %v7713_v59 = vpop.eup %7712 }
 0x164   : > { %v3381_v56 = vpop.f32.mrf.mxu1  ;;  %v4018_v34 = vpack.c.bf16 %v7713_v59, %v7713_v59 }
 0x165   : > { %7714 = vtanh.f32 %v3379_v30  ;;  %7213 = vmatmul.msk.bf16.gmra.mxu2 %vm2532_vm5, %v8502_v50 }
 0x166   : > { %v4210_v43 = vunpack.c.l.bf16 %v4018_v34  ;;  %v5386_v23 = vunpack.c.l.b16 %v4018_v34 }
 0x167   : > { %7258 = vmatmul.msk.bf16.gmra.mxu1 %vm2532_vm5, %v7501_v55 }
 0x168   : > { %v8473_v46 = vsub.f32 %v7713_v59, %v4210_v43  ;;  %v8532_v43 = vld [vmem:[%s12418_s1 + $0x238] sm:$0xff] }
 0x16a   : > { %v2889_v37 = vpop.f32.mrf.mxu0 }
 0x16b   : > { %v7715_v40 = vpop.eup %7714  ;;  %v3382_v41 = vadd.f32 %v3381_v56, %v2889_v37 }
 0x16c   : > { %v3383_v42 = vpop.f32.mrf.mxu1  ;;  %v4019_v38 = vpack.c.bf16 %v7715_v40, %v7715_v40 }
 0x16d   : > { %7162 = vmatmul.msk.bf16.gmra.mxu0 %vm2532_vm5, %v7501_v55  ;;  %7716 = vtanh.f32 %v3382_v41 }
 0x16e   : > { %v4211_v44 = vunpack.c.l.bf16 %v4019_v38  ;;  %v5387_v39 = vunpack.c.l.b16 %v4019_v38 }
 0x170   : > { %v8475_v47 = vsub.f32 %v7715_v40, %v4211_v44  ;;  %v8477_v48 = vpack.c.b16 %v5387_v39, %v5386_v23  ;;  %v7504_v23 = vld [vmem:[%s12418_s1 + $0xb0] sm:$0xff] }
 0x172   : > { %12546 = vst [vmem:[#allocation17_spill] sm:$0xff] %v8477_v48  ;;  %v2891_v36 = vpop.f32.mrf.mxu0 }
 0x173   : > { %v3384_v53 = vadd.f32 %v3383_v42, %v2891_v36  ;;  %v7717_v3 = vpop.eup %7716 }
 0x174   : > { %v3386_v58 = vpop.f32.mrf.mxu1  ;;  %v4020_v60 = vpack.c.bf16 %v7717_v3, %v7717_v3 }
 0x175   : > { %7718 = vtanh.f32 %v3384_v53  ;;  %7214 = vmatmul.msk.bf16.gmra.mxu2 %vm2532_vm5, %v8532_v43 }
 0x176   : > { %v4212_v10 = vunpack.c.l.bf16 %v4020_v60  ;;  %v5388_v15 = vunpack.c.l.b16 %v4020_v60 }
 0x177   : > { %7259 = vmatmul.msk.bf16.gmra.mxu1 %vm2532_vm5, %v7502_v21 }
 0x178   : > { %v8493_v19 = vsub.f32 %v7717_v3, %v4212_v10  ;;  %v8560_v10 = vld [vmem:[%s12418_s1 + $0x240] sm:$0xff] }
 0x17a   : > { %v2894_v61 = vpop.f32.mrf.mxu0 }
 0x17b   : > { %v7719_v18 = vpop.eup %7718  ;;  %v3387_v63 = vadd.f32 %v3386_v58, %v2894_v61 }
 0x17c   : > { %v3388_v4 = vpop.f32.mrf.mxu1  ;;  %v4021_v7 = vpack.c.bf16 %v7719_v18, %v7719_v18 }
 0x17d   : > { %7163 = vmatmul.msk.bf16.gmra.mxu0 %vm2532_vm5, %v7502_v21  ;;  %7720 = vtanh.f32 %v3387_v63 }
 0x17e   : > { %v4213_v11 = vunpack.c.l.bf16 %v4021_v7  ;;  %v5389_v17 = vunpack.c.l.b16 %v4021_v7 }
 0x180   : > { %v8495_v22 = vsub.f32 %v7719_v18, %v4213_v11  ;;  %v8497_v25 = vpack.c.b16 %v5389_v17, %v5388_v15  ;;  %v7505_v15 = vld [vmem:[%s12418_s1 + $0xb8] sm:$0xff] }
 0x182   : > { %12547 = vst [vmem:[#allocation18_spill] sm:$0xff] %v8497_v25  ;;  %v2896_v26 = vpop.f32.mrf.mxu0 }
 0x183   : > { %v3389_v54 = vadd.f32 %v3388_v4, %v2896_v26  ;;  %v8511_v12 = vpop.eup %7720 }
 0x184   : > { %v3391_v29 = vpop.f32.mrf.mxu1  ;;  %v8516_v55 = vpack.c.bf16 %v8511_v12, %v8511_v12 }
 0x185   : > { %7722 = vtanh.f32 %v3389_v54  ;;  %7215 = vmatmul.msk.bf16.gmra.mxu2 %vm2532_vm5, %v8560_v10 }
 0x186   : > { %v5390_v40 = vunpack.c.l.b16 %v8516_v55 }
 0x187   : > { %7260 = vmatmul.msk.bf16.gmra.mxu1 %vm2532_vm5, %v7503_v28 }
 0x18a   : > { %v2899_v30 = vpop.f32.mrf.mxu0 }
 0x18b   : > { %v8518_v56 = vpop.eup %7722  ;;  %v3392_v37 = vadd.f32 %v3391_v29, %v2899_v30 }
 0x18c   : > { %v3393_v59 = vpop.f32.mrf.mxu1  ;;  %v8522_v34 = vpack.c.bf16 %v8518_v56, %v8518_v56 }
 0x18d   : > { %7164 = vmatmul.msk.bf16.gmra.mxu0 %vm2532_vm5, %v7503_v28  ;;  %7724 = vtanh.f32 %v3392_v37 }
 0x18e   : > { %v5391_v41 = vunpack.c.l.b16 %v8522_v34 }
 0x190   : > { %v8527_v42 = vpack.c.b16 %v5391_v41, %v5390_v40 }
 0x192   : > { %12548 = vst [vmem:[#allocation19_spill] sm:$0xff] %v8527_v42  ;;  %v2901_v38 = vpop.f32.mrf.mxu0 }
 0x193   : > { %v3394_v44 = vadd.f32 %v3393_v59, %v2901_v38  ;;  %v8539_v36 = vpop.eup %7724 }
 0x194   : > { %v3396_v39 = vpop.f32.mrf.mxu1  ;;  %v8544_v21 = vpack.c.bf16 %v8539_v36, %v8539_v36 }
 0x195   : > { %7726 = vtanh.f32 %v3394_v44 }
 0x196   : > { %v5392_v18 = vunpack.c.l.b16 %v8544_v21 }
 0x197   : > { %7261 = vmatmul.msk.bf16.gmra.mxu1 %vm2532_vm5, %v7504_v23 }
 0x19a   : > { %v2904_v53 = vpop.f32.mrf.mxu0 }
 0x19b   : > { %v8546_v58 = vpop.eup %7726  ;;  %v3397_v61 = vadd.f32 %v3396_v39, %v2904_v53  ;;  %v7506_v53 = vld [vmem:[%s12418_s1 + $0xc0] sm:$0xff] }
 0x19c   : > { %v3398_v3 = vpop.f32.mrf.mxu1  ;;  %v8550_v60 = vpack.c.bf16 %v8546_v58, %v8546_v58 }
 0x19d   : > { %7165 = vmatmul.msk.bf16.gmra.mxu0 %vm2532_vm5, %v7504_v23  ;;  %7728 = vtanh.f32 %v3397_v61  ;;  %v8574_v23 = vld [vmem:[%s12418_s1 + $0x248] sm:$0xff] }
 0x19e   : > { %v5393_v63 = vunpack.c.l.b16 %v8550_v60  ;;  %7216 = vmatmul.msk.bf16.gmra.mxu2 %vm2532_vm5, %v8574_v23 }
 0x1a0   : > { %v8555_v4 = vpack.c.b16 %v5393_v63, %v5392_v18 }
 0x1a2   : > { %12549 = vst [vmem:[#allocation20_spill] sm:$0xff] %v8555_v4  ;;  %v2906_v7 = vpop.f32.mrf.mxu0  ;;  %v9008_v4 = vld [vmem:[%s12418_s1 + $0x2c0] sm:$0xff] }
 0x1a3   : > { %v3399_v11 = vadd.f32 %v3398_v3, %v2906_v7  ;;  %v7729_v26 = vpop.eup %7728  ;;  %12586 = vst [vmem:[#allocation49_spill] sm:$0xff] %v9008_v4 }
 0x1a4   : > { %v3401_v17 = vpop.f32.mrf.mxu1  ;;  %v4026_v28 = vpack.c.bf16 %v7729_v26, %v7729_v26 }
 0x1a5   : > { %7730 = vtanh.f32 %v3399_v11 }
 0x1a6   : > { %v5394_v40 = vunpack.c.l.b16 %v4026_v28  ;;  %v4218_v5 = vunpack.c.l.bf16 %v4026_v28  ;;  %v7507_v28 = vld [vmem:[%s12418_s1 + $0xc8] sm:$0xff] }
 0x1a7   : > { %7262 = vmatmul.msk.bf16.gmra.mxu1 %vm2532_vm5, %v7505_v15 }
 0x1aa   : > { %v2909_v54 = vpop.f32.mrf.mxu0 }
 0x1ab   : > { %v7731_v29 = vpop.eup %7730  ;;  %v3402_v30 = vadd.f32 %v3401_v17, %v2909_v54 }
 0x1ac   : > { %v3403_v59 = vpop.f32.mrf.mxu1  ;;  %v4027_v37 = vpack.c.bf16 %v7731_v29, %v7731_v29 }
 0x1ad   : > { %7166 = vmatmul.msk.bf16.gmra.mxu0 %vm2532_vm5, %v7505_v15  ;;  %7732 = vtanh.f32 %v3402_v30 }
 0x1ae   : > { %v5395_v41 = vunpack.c.l.b16 %v4027_v37 }
 0x1b0   : > { %v8569_v38 = vpack.c.b16 %v5395_v41, %v5394_v40 }
 0x1b2   : > { %12550 = vst [vmem:[#allocation21_spill] sm:$0xff] %v8569_v38  ;;  %v2911_v44 = vpop.f32.mrf.mxu0 }
 0x1b3   : > { %v3404_v39 = vadd.f32 %v3403_v59, %v2911_v44  ;;  %v7733_v61 = vpop.eup %7732  ;;  %v4219_v59 = vunpack.c.l.bf16 %v4027_v37  ;;  %v7548_v37 = vld [vmem:[%s12418_s1 + $0x210] sm:$0xff] }
 0x1b4   : > { %v3406_v3 = vpop.f32.mrf.mxu1  ;;  %v4028_v18 = vpack.c.bf16 %v7733_v61, %v7733_v61  ;;  %7305 = vmatmul.msk.bf16.vlgmr.msra.gmra.mxu3 %vm2532_vm5, %v7548_v37 }
 0x1b5   : > { %7734 = vtanh.f32 %v3404_v39  ;;  %v4411_v51 = vsub.f32 %v7731_v29, %v4219_v59  ;;  %v4216_v29 = vunpack.c.l.bf16 %v8544_v21 }
 0x1b6   : > { %v4220_v54 = vunpack.c.l.bf16 %v4028_v18  ;;  %v5396_v40 = vunpack.c.l.b16 %v4028_v18  ;;  %v4410_v18 = vsub.f32 %v7729_v26, %v4218_v5 }
 0x1b7   : > { %7263 = vmatmul.msk.bf16.gmra.mxu1 %vm2532_vm5, %v7506_v53  ;;  %v4408_v5 = vsub.f32 %v8539_v36, %v4216_v29 }
 0x1b8   : > { %v4412_v44 = vsub.f32 %v7733_v61, %v4220_v54 }
 0x1ba   : > { %v2914_v63 = vpop.f32.mrf.mxu0 }
 0x1bb   : > { %v7735_v7 = vpop.eup %7734  ;;  %v3407_v11 = vadd.f32 %v3406_v3, %v2914_v63  ;;  %v4217_v3 = vunpack.c.l.bf16 %v8550_v60  ;;  %v8589_v63 = vld [vmem:[%s12418_s1 + $0x250] sm:$0xff] }
 0x1bc   : > { %v3408_v15 = vpop.f32.mrf.mxu1  ;;  %v4029_v17 = vpack.c.bf16 %v7735_v7, %v7735_v7  ;;  %7217 = vmatmul.msk.bf16.gmra.mxu2 %vm2532_vm5, %v8589_v63 }
 0x1bd   : > { %7167 = vmatmul.msk.bf16.gmra.mxu0 %vm2532_vm5, %v7506_v53  ;;  %7736 = vtanh.f32 %v3407_v11  ;;  %v4409_v11 = vsub.f32 %v8546_v58, %v4217_v3 }
 0x1be   : > { %v4221_v30 = vunpack.c.l.bf16 %v4029_v17  ;;  %v5397_v41 = vunpack.c.l.b16 %v4029_v17 }
 0x1bf   : > { %v4587_v26 = vpack.c.bf16 %v4409_v11, %v4408_v5  ;;  %v12555_v5 = vpack.c.bf16 %v8455_v32, %v8453_v31  ;;  %v8652_v31 = vld [vmem:[%s12418_s1 + $0x260] sm:$0xff] }
 0x1c0   : > { %v4413_v39 = vsub.f32 %v7735_v7, %v4221_v30  ;;  %v8583_v6 = vpack.c.b16 %v5397_v41, %v5396_v40  ;;  %v4588_v7 = vpack.c.bf16 %v4411_v51, %v4410_v18  ;;  %v12553_v18 = vpack.c.bf16 %v8495_v22, %v8493_v19 }
 0x1c2   : > { %12551 = vst [vmem:[#allocation22_spill] sm:$0xff] %v8583_v6  ;;  %v2916_v16 = vpop.f32.mrf.mxu0  ;;  %v4589_v49 = vpack.c.bf16 %v4413_v39, %v4412_v44 }
 0x1c3   : > { %v3409_v53 = vadd.f32 %v3408_v15, %v2916_v16  ;;  %v7737_v60 = vpop.eup %7736  ;;  %v4215_v16 = vunpack.c.l.bf16 %v8522_v34 }
 0x1c4   : > { %v3411_v61 = vpop.f32.mrf.mxu1  ;;  %4910 = vmatpush.bf16.msrb.mxu3 %v4589_v49  ;;  %v4030_v15 = vpack.c.bf16 %v7737_v60, %v7737_v60  ;;  %v4214_v49 = vunpack.c.l.bf16 %v8516_v55 }
 0x1c5   : > { %7738 = vtanh.f32 %v3409_v53  ;;  %v4407_v17 = vsub.f32 %v8518_v56, %v4215_v16  ;;  %7306 = vmatmul.msk.bf16.gmra.mxu3 %vm2532_vm5, %v8430_v62 }
 0x1c6   : > { %v4406_v58 = vsub.f32 %v8511_v12, %v4214_v49  ;;  %v4222_v34 = vunpack.c.l.bf16 %v4030_v15  ;;  %v5398_v44 = vunpack.c.l.b16 %v4030_v15  ;;  %v8618_v12 = vld [vmem:[%s12418_s1 + $0x258] sm:$0xff] }
 0x1c7   : > { %7264 = vmatmul.msk.bf16.gmra.mxu1 %vm2532_vm5, %v7507_v28 }
 0x1c8   : > { %4911 = vmatpush.bf16.msrb.mxu3 %v4588_v7  ;;  %v4586_v40 = vpack.c.bf16 %v4407_v17, %v4406_v58  ;;  %v8609_v55 = vsub.f32 %v7737_v60, %v4222_v34  ;;  %v12554_v7 = vpack.c.bf16 %v8475_v47, %v8473_v46  ;;  %v12556_v46 = vpack.c.bf16 %v8423_v2, %v8421_v0  ;;  %v7509_v0 = vld [vmem:[%s12418_s1 + $0xd8] sm:$0xff] }
 0x1ca   : > { %v2919_v21 = vpop.f32.mrf.mxu0 }
 0x1cb   : > { %v7739_v54 = vpop.eup %7738  ;;  %v3412_v30 = vadd.f32 %v3411_v61, %v2919_v21 }
 0x1cc   : > { %v4031_v59 = vpack.c.bf16 %v7739_v54, %v7739_v54  ;;  %v3413_v51 = vpop.f32.mrf.mxu1  ;;  %4912 = vmatpush.bf16.msrb.mxu3 %v4587_v26  ;;  %7218 = vmatmul.msk.bf16.gmra.mxu2 %vm2532_vm5, %v8618_v12 }
 0x1cd   : > { %7168 = vmatmul.msk.bf16.gmra.mxu0 %vm2532_vm5, %v7507_v28  ;;  %7740 = vtanh.f32 %v3412_v30  ;;  %v7508_v28 = vld [vmem:[%s12418_s1 + $0xd0] sm:$0xff] }
 0x1ce   : > { %v4223_v41 = vunpack.c.l.bf16 %v4031_v59  ;;  %v5399_v36 = vunpack.c.l.b16 %v4031_v59 }
 0x1d0   : > { %4913 = vmatpush.bf16.msrb.mxu3 %v4586_v40  ;;  %v8611_v39 = vsub.f32 %v7739_v54, %v4223_v41  ;;  %v8613_v56 = vpack.c.b16 %v5399_v36, %v5398_v44 }
 0x1d2   : > { %12552 = vst [vmem:[#allocation23_spill] sm:$0xff] %v8613_v56  ;;  %v2921_v3 = vpop.f32.mrf.mxu0 }
 0x1d3   : > { %v3414_v53 = vadd.f32 %v3413_v51, %v2921_v3  ;;  %v7741_v29 = vpop.eup %7740 }
 0x1d4   : > { %v3416_v61 = vpop.f32.mrf.mxu1  ;;  %4914 = vmatpush.bf16.msrb.mxu3 %v12553_v18  ;;  %v4032_v60 = vpack.c.bf16 %v7741_v29, %v7741_v29 }
 0x1d5   : > { %7742 = vtanh.f32 %v3414_v53  ;;  %7307 = vmatmul.msk.bf16.gmra.mxu3 %vm2532_vm5, %v8462_v13 }
 0x1d6   : > { %v4224_v49 = vunpack.c.l.bf16 %v4032_v60  ;;  %v5400_v21 = vunpack.c.l.b16 %v4032_v60 }
 0x1d7   : > { %7265 = vmatmul.msk.bf16.gmra.mxu1 %vm2532_vm5, %v7508_v28 }
 0x1d8   : > { %4915 = vmatpush.bf16.msrb.mxu3 %v12554_v7  ;;  %v8643_v47 = vsub.f32 %v7741_v29, %v4224_v49  ;;  %v8674_v7 = vld [vmem:[%s12418_s1 + $0x268] sm:$0xff] }
 0x1da   : > { %v2924_v11 = vpop.f32.mrf.mxu0 }
 0x1db   : > { %v7743_v16 = vpop.eup %7742  ;;  %v3417_v15 = vadd.f32 %v3416_v61, %v2924_v11 }
 0x1dc   : > { %v4033_v19 = vpack.c.bf16 %v7743_v16, %v7743_v16  ;;  %v3418_v22 = vpop.f32.mrf.mxu1  ;;  %4916 = vmatpush.bf16.msrb.mxu3 %v12555_v5  ;;  %7219 = vmatmul.msk.bf16.gmra.mxu2 %vm2532_vm5, %v8652_v31 }
 0x1dd   : > { %7169 = vmatmul.msk.bf16.gmra.mxu0 %vm2532_vm5, %v7508_v28  ;;  %7744 = vtanh.f32 %v3417_v15  ;;  %v7510_v15 = vld [vmem:[%s12418_s1 + $0xe0] sm:$0xff] }
 0x1de   : > { %v4225_v62 = vunpack.c.l.bf16 %v4033_v19  ;;  %v5401_v26 = vunpack.c.l.b16 %v4033_v19 }
 0x1e0   : > { %4917 = vmatpush.bf16.msrb.mxu3 %v12556_v46  ;;  %v8645_v17 = vsub.f32 %v7743_v16, %v4225_v62  ;;  %v8647_v54 = vpack.c.b16 %v5401_v26, %v5400_v21 }
 0x1e2   : > { %12557 = vst [vmem:[#allocation24_spill] sm:$0xff] %v8647_v54  ;;  %v2926_v30 = vpop.f32.mrf.mxu0 }
 0x1e3   : > { %v3419_v59 = vadd.f32 %v3418_v22, %v2926_v30  ;;  %v7745_v51 = vpop.eup %7744 }
 0x1e4   : > { %v3421_v2 = vpop.f32.mrf.mxu1  ;;  %v4034_v58 = vpack.c.bf16 %v7745_v51, %v7745_v51 }
 0x1e5   : > { %7746 = vtanh.f32 %v3419_v59  ;;  %7308 = vmatmul.msk.bf16.gmra.mxu3 %vm2532_vm5, %v8482_v20 }
 0x1e6   : > { %v4226_v3 = vunpack.c.l.bf16 %v4034_v58  ;;  %v5402_v28 = vunpack.c.l.b16 %v4034_v58 }
 0x1e7   : > { %7266 = vmatmul.msk.bf16.gmra.mxu1 %vm2532_vm5, %v7509_v0 }
 0x1e8   : > { %v8665_v18 = vsub.f32 %v7745_v51, %v4226_v3 }
 0x1ea   : > { %v2929_v34 = vpop.f32.mrf.mxu0 }
 0x1eb   : > { %v7747_v40 = vpop.eup %7746  ;;  %v3422_v41 = vadd.f32 %v3421_v2, %v2929_v34 }
 0x1ec   : > { %v4035_v44 = vpack.c.bf16 %v7747_v40, %v7747_v40  ;;  %v3423_v36 = vpop.f32.mrf.mxu1  ;;  %7220 = vmatmul.msk.bf16.gmra.mxu2 %vm2532_vm5, %v8674_v7 }
 0x1ed   : > { %7170 = vmatmul.msk.bf16.gmra.mxu0 %vm2532_vm5, %v7509_v0  ;;  %7748 = vtanh.f32 %v3422_v41 }
 0x1ee   : > { %v4227_v53 = vunpack.c.l.bf16 %v4035_v44  ;;  %v5403_v61 = vunpack.c.l.b16 %v4035_v44 }
 0x1f0   : > { %v8667_v29 = vsub.f32 %v7747_v40, %v4227_v53  ;;  %v8669_v13 = vpack.c.b16 %v5403_v61, %v5402_v28  ;;  %v8696_v40 = vld [vmem:[%s12418_s1 + $0x270] sm:$0xff] }
 0x1f2   : > { %12558 = vst [vmem:[#allocation25_spill] sm:$0xff] %v8669_v13  ;;  %v2931_v60 = vpop.f32.mrf.mxu0 }
 0x1f3   : > { %v3424_v16 = vadd.f32 %v3423_v36, %v2931_v60  ;;  %v7749_v22 = vpop.eup %7748  ;;  %v7511_v36 = vld [vmem:[%s12418_s1 + $0xe8] sm:$0xff] }
 0x1f4   : > { %v3426_v19 = vpop.f32.mrf.mxu1  ;;  %v4036_v5 = vpack.c.bf16 %v7749_v22, %v7749_v22 }
 0x1f5   : > { %7750 = vtanh.f32 %v3424_v16  ;;  %7309 = vmatmul.msk.bf16.gmra.mxu3 %vm2532_vm5, %v8502_v50 }
 0x1f6   : > { %v4228_v30 = vunpack.c.l.bf16 %v4036_v5  ;;  %v5404_v0 = vunpack.c.l.b16 %v4036_v5 }
 0x1f7   : > { %7267 = vmatmul.msk.bf16.gmra.mxu1 %vm2532_vm5, %v7510_v15 }
 0x1f8   : > { %v8687_v51 = vsub.f32 %v7749_v22, %v4228_v30 }
 0x1fa   : > { %v2934_v49 = vpop.f32.mrf.mxu0 }
 0x1fb   : > { %v7751_v62 = vpop.eup %7750  ;;  %v3427_v21 = vadd.f32 %v3426_v19, %v2934_v49  ;;  %v8720_v19 = vpop.f32.mrf.mxu2 }
 0x1fc   : > { %v4037_v26 = vpack.c.bf16 %v7751_v62, %v7751_v62  ;;  %v3428_v46 = vpop.f32.mrf.mxu1  ;;  %7221 = vmatmul.msk.bf16.gmra.mxu2 %vm2532_vm5, %v8696_v40 }
 0x1fd   : > { %7171 = vmatmul.msk.bf16.gmra.mxu0 %vm2532_vm5, %v7510_v15  ;;  %7752 = vtanh.f32 %v3427_v21  ;;  %v8730_v21 = vld [vmem:[%s12418_s1 + $0x278] sm:$0xff] }
 0x1fe   : > { %v4229_v59 = vunpack.c.l.bf16 %v4037_v26  ;;  %v5405_v2 = vunpack.c.l.b16 %v4037_v26 }
 0x200   : > { %v8689_v58 = vsub.f32 %v7751_v62, %v4229_v59  ;;  %v8691_v34 = vpack.c.b16 %v5405_v2, %v5404_v0 }
 0x202   : > { %12559 = vst [vmem:[#allocation26_spill] sm:$0xff] %v8691_v34  ;;  %v2936_v20 = vpop.f32.mrf.mxu0 }
 0x203   : > { %v3429_v44 = vadd.f32 %v3428_v46, %v2936_v20  ;;  %v8707_v53 = vpop.eup %7752  ;;  %v7512_v46 = vld [vmem:[%s12418_s1 + $0xf0] sm:$0xff]  ;;  %v8735_v59 = vpop.f32.mrf.mxu2 }
 0x204   : > { %v3431_v3 = vpop.f32.mrf.mxu1  ;;  %v8712_v28 = vpack.c.bf16 %v8707_v53, %v8707_v53 }
 0x205   : > { %7754 = vtanh.f32 %v3429_v44  ;;  %7310 = vmatmul.msk.bf16.gmra.mxu3 %vm2532_vm5, %v8532_v43 }
 0x206   : > { %v5406_v50 = vunpack.c.l.b16 %v8712_v28 }
 0x207   : > { %7268 = vmatmul.msk.bf16.gmra.mxu1 %vm2532_vm5, %v7511_v36 }
 0x20a   : > { %v2939_v61 = vpop.f32.mrf.mxu0 }
 0x20b   : > { %v8714_v60 = vpop.eup %7754  ;;  %v3432_v22 = vadd.f32 %v3431_v3, %v2939_v61  ;;  %v8754_v61 = vpop.f32.mrf.mxu2 }
 0x20c   : > { %v8718_v16 = vpack.c.bf16 %v8714_v60, %v8714_v60  ;;  %v3433_v15 = vpop.f32.mrf.mxu1  ;;  %7222 = vmatmul.msk.bf16.gmra.mxu2 %vm2532_vm5, %v8730_v21 }
 0x20d   : > { %7172 = vmatmul.msk.bf16.gmra.mxu0 %vm2532_vm5, %v7511_v36  ;;  %7756 = vtanh.f32 %v3432_v22 }
 0x20e   : > { %v5407_v5 = vunpack.c.l.b16 %v8718_v16 }
 0x210   : > { %v8725_v49 = vpack.c.b16 %v5407_v5, %v5406_v50 }
 0x212   : > { %12560 = vst [vmem:[#allocation27_spill] sm:$0xff] %v8725_v49  ;;  %v2941_v62 = vpop.f32.mrf.mxu0 }
 0x213   : > { %v3434_v26 = vadd.f32 %v3433_v15, %v2941_v62  ;;  %v8741_v0 = vpop.eup %7756  ;;  %v8764_v62 = vld [vmem:[%s12418_s1 + $0x280] sm:$0xff] }
 0x214   : > { %v3436_v30 = vpop.f32.mrf.mxu1  ;;  %v8746_v2 = vpack.c.bf16 %v8741_v0, %v8741_v0 }
 0x215   : > { %7758 = vtanh.f32 %v3434_v26  ;;  %7311 = vmatmul.msk.bf16.gmra.mxu3 %vm2532_vm5, %v8560_v10  ;;  %v8784_v10 = vld [vmem:[%s12418_s1 + $0x288] sm:$0xff] }
 0x216   : > { %v5408_v43 = vunpack.c.l.b16 %v8746_v2 }
 0x217   : > { %7269 = vmatmul.msk.bf16.gmra.mxu1 %vm2532_vm5, %v7512_v46 }
 0x21a   : > { %v2944_v20 = vpop.f32.mrf.mxu0 }
 0x21b   : > { %v8748_v44 = vpop.eup %7758  ;;  %v3437_v15 = vadd.f32 %v3436_v30, %v2944_v20  ;;  %v7513_v30 = vld [vmem:[%s12418_s1 + $0xf8] sm:$0xff] }
 0x21c   : > { %v8752_v36 = vpack.c.bf16 %v8748_v44, %v8748_v44  ;;  %v3438_v3 = vpop.f32.mrf.mxu1 }
 0x21d   : > { %7173 = vmatmul.msk.bf16.gmra.mxu0 %vm2532_vm5, %v7512_v46  ;;  %7760 = vtanh.f32 %v3437_v15  ;;  %v8769_v46 = vpop.f32.mrf.mxu2  ;;  %7223 = vmatmul.msk.bf16.gmra.mxu2 %vm2532_vm5, %v8764_v62 }
 0x21e   : > { %v5409_v22 = vunpack.c.l.b16 %v8752_v36 }
 0x220   : > { %v8759_v50 = vpack.c.b16 %v5409_v22, %v5408_v43 }
 0x222   : > { %12561 = vst [vmem:[#allocation28_spill] sm:$0xff] %v8759_v50  ;;  %v2946_v5 = vpop.f32.mrf.mxu0 }
 0x223   : > { %v3439_v26 = vadd.f32 %v3438_v3, %v2946_v5  ;;  %v7761_v15 = vpop.eup %7760 }
 0x224   : > { %v3441_v20 = vpop.f32.mrf.mxu1  ;;  %v4042_v43 = vpack.c.bf16 %v7761_v15, %v7761_v15 }
 0x225   : > { %7762 = vtanh.f32 %v3439_v26  ;;  %v8776_v11 = vpop.f32.mrf.mxu2  ;;  %7312 = vmatmul.msk.bf16.gmra.mxu3 %vm2532_vm5, %v8574_v23 }
 0x226   : > { %v5410_v26 = vunpack.c.l.b16 %v4042_v43  ;;  %v4234_v14 = vunpack.c.l.bf16 %v4042_v43 }
 0x227   : > { %7270 = vmatmul.msk.bf16.gmra.mxu1 %vm2532_vm5, %v7513_v30 }
 0x228   : > { %v4426_v43 = vsub.f32 %v7761_v15, %v4234_v14 }
 0x22a   : > { %v2949_v22 = vpop.f32.mrf.mxu0 }
 0x22b   : > { %v7763_v3 = vpop.eup %7762  ;;  %v3442_v5 = vadd.f32 %v3441_v20, %v2949_v22  ;;  %v7514_v20 = vld [vmem:[%s12418_s1 + $0x100] sm:$0xff] }
 0x22c   : > { %v4043_v37 = vpack.c.bf16 %v7763_v3, %v7763_v3  ;;  %v3443_v32 = vpop.f32.mrf.mxu1 }
 0x22d   : > { %7174 = vmatmul.msk.bf16.gmra.mxu0 %vm2532_vm5, %v7513_v30  ;;  %7764 = vtanh.f32 %v3442_v5  ;;  %v8789_v13 = vpop.f32.mrf.mxu2  ;;  %7224 = vmatmul.msk.bf16.gmra.mxu2 %vm2532_vm5, %v8784_v10 }
 0x22e   : > { %v5411_v41 = vunpack.c.l.b16 %v4043_v37 }
 0x230   : > { %v8779_v9 = vpack.c.b16 %v5411_v41, %v5410_v26 }
 0x232   : > { %12562 = vst [vmem:[#allocation29_spill] sm:$0xff] %v8779_v9  ;;  %v2951_v56 = vpop.f32.mrf.mxu0  ;;  %v4235_v9 = vunpack.c.l.bf16 %v4043_v37  ;;  %v7515_v37 = vld [vmem:[%s12418_s1 + $0x108] sm:$0xff] }
 0x233   : > { %v3444_v54 = vadd.f32 %v3443_v32, %v2951_v56  ;;  %v7765_v30 = vpop.eup %7764 }
 0x234   : > { %v3446_v22 = vpop.f32.mrf.mxu1  ;;  %v4044_v41 = vpack.c.bf16 %v7765_v30, %v7765_v30 }
 0x235   : > { %7766 = vtanh.f32 %v3444_v54  ;;  %v8796_v50 = vpop.f32.mrf.mxu2  ;;  %7313 = vmatmul.msk.bf16.gmra.mxu3 %vm2532_vm5, %v8589_v63 }
 0x236   : > { %v4236_v26 = vunpack.c.l.bf16 %v4044_v41  ;;  %v5412_v1 = vunpack.c.l.b16 %v4044_v41 }
 0x237   : > { %7271 = vmatmul.msk.bf16.gmra.mxu1 %vm2532_vm5, %v7514_v20 }
 0x238   : > { %v4428_v35 = vsub.f32 %v7765_v30, %v4236_v26 }
 0x23a   : > { %v2954_v5 = vpop.f32.mrf.mxu0 }
 0x23b   : > { %v7767_v56 = vpop.eup %7766  ;;  %v3447_v32 = vadd.f32 %v3446_v22, %v2954_v5  ;;  %v4427_v22 = vsub.f32 %v7763_v3, %v4235_v9  ;;  %v4233_v5 = vunpack.c.l.bf16 %v8752_v36 }
 0x23c   : > { %v4045_v34 = vpack.c.bf16 %v7767_v56, %v7767_v56  ;;  %v3448_v49 = vpop.f32.mrf.mxu1 }
 0x23d   : > { %7175 = vmatmul.msk.bf16.gmra.mxu0 %vm2532_vm5, %v7514_v20  ;;  %7768 = vtanh.f32 %v3447_v32 }
 0x23e   : > { %v4237_v54 = vunpack.c.l.bf16 %v4045_v34  ;;  %v5413_v57 = vunpack.c.l.b16 %v4045_v34 }
 0x240   : > { %v4429_v23 = vsub.f32 %v7767_v56, %v4237_v54  ;;  %v8799_v48 = vpack.c.b16 %v5413_v57, %v5412_v1  ;;  %v4232_v57 = vunpack.c.l.bf16 %v8746_v2  ;;  %v8811_v1 = vpop.f32.mrf.mxu2  ;;  %7225 = vmatmul.msk.bf16.gmra.mxu2 %vm2532_vm5, %v8805_v52  ;;  %v4230_v2 = vunpack.c.l.bf16 %v8712_v28 }
 0x242   : > { %12563 = vst [vmem:[#allocation30_spill] sm:$0xff] %v8799_v48  ;;  %v2956_v33 = vpop.f32.mrf.mxu0  ;;  %v4597_v25 = vpack.c.bf16 %v4429_v23, %v4428_v35  ;;  %v4425_v35 = vsub.f32 %v8748_v44, %v4233_v5  ;;  %v4422_v44 = vsub.f32 %v8707_v53, %v4230_v2  ;;  %v8836_v53 = vld [vmem:[%s12418_s1 + $0x298] sm:$0xff] }
 0x243   : > { %v3449_v20 = vadd.f32 %v3448_v49, %v2956_v33  ;;  %v7769_v9 = vpop.eup %7768  ;;  %v4596_v33 = vpack.c.bf16 %v4427_v22, %v4426_v43  ;;  %v4231_v49 = vunpack.c.l.bf16 %v8718_v16 }
 0x244   : > { %v3451_v34 = vpop.f32.mrf.mxu1  ;;  %4934 = vmatpush.bf16.msra.mxu2 %v4597_v25  ;;  %v4046_v14 = vpack.c.bf16 %v7769_v9, %v7769_v9  ;;  %v4424_v25 = vsub.f32 %v8741_v0, %v4232_v57  ;;  %v12565_v57 = vpack.c.bf16 %v8689_v58, %v8687_v51 }
 0x245   : > { %7770 = vtanh.f32 %v3449_v20  ;;  %v4423_v3 = vsub.f32 %v8714_v60, %v4231_v49  ;;  %7314 = vmatmul.msk.bf16.gmra.mxu3 %vm2532_vm5, %v8618_v12  ;;  %v12567_v49 = vpack.c.bf16 %v8667_v29, %v8665_v18  ;;  %v12570_v18 = vpack.c.bf16 %v8611_v39, %v8609_v55  ;;  %v7517_v55 = vld [vmem:[%s12418_s1 + $0x118] sm:$0xff] }
 0x246   : > { %v4595_v15 = vpack.c.bf16 %v4425_v35, %v4424_v25  ;;  %v4238_v32 = vunpack.c.l.bf16 %v4046_v14  ;;  %v5414_v54 = vunpack.c.l.b16 %v4046_v14 }
 0x247   : > { %7272 = vmatmul.msk.bf16.gmra.mxu1 %vm2532_vm5, %v7515_v37  ;;  %v4594_v26 = vpack.c.bf16 %v4423_v3, %v4422_v44 }
 0x248   : > { %4935 = vmatpush.bf16.msra.mxu2 %v4596_v33  ;;  %v8824_v16 = vpop.f32.mrf.mxu2  ;;  %v8827_v23 = vsub.f32 %v7769_v9, %v4238_v32 }
 0x24a   : > { %v2959_v36 = vpop.f32.mrf.mxu0 }
 0x24b   : > { %v7771_v30 = vpop.eup %7770  ;;  %v3452_v41 = vadd.f32 %v3451_v34, %v2959_v36  ;;  %v7516_v34 = vld [vmem:[%s12418_s1 + $0x110] sm:$0xff]  ;;  %v12568_v36 = vpack.c.bf16 %v8645_v17, %v8643_v47  ;;  %v8874_v17 = vld [vmem:[%s12418_s1 + $0x2a0] sm:$0xff] }
 0x24c   : > { %v4047_v63 = vpack.c.bf16 %v7771_v30, %v7771_v30  ;;  %v3453_v56 = vpop.f32.mrf.mxu1  ;;  %4936 = vmatpush.bf16.msra.mxu2 %v4595_v15 }
 0x24d   : > { %7176 = vmatmul.msk.bf16.gmra.mxu0 %vm2532_vm5, %v7515_v37  ;;  %7772 = vtanh.f32 %v3452_v41 }
 0x24e   : > { %v4239_v0 = vunpack.c.l.bf16 %v4047_v63  ;;  %v5415_v28 = vunpack.c.l.b16 %v4047_v63 }
 0x250   : > { %4937 = vmatpush.bf16.msra.mxu2 %v4594_v26  ;;  %v8829_v60 = vsub.f32 %v7771_v30, %v4239_v0  ;;  %v8831_v22 = vpack.c.b16 %v5415_v28, %v5414_v54  ;;  %v8846_v9 = vpop.f32.mrf.mxu2 }
 0x251   : > { %12566 = vst [vmem:[#allocation32_spill] sm:$0xff] %v8846_v9  ;;  %7226 = vmatmul.msk.bf16.gmra.mxu2 %vm2532_vm5, %v8836_v53 }
 0x252   : > { %12564 = vst [vmem:[#allocation31_spill] sm:$0xff] %v8831_v22  ;;  %v2961_v5 = vpop.f32.mrf.mxu0 }
 0x253   : > { %v3454_v37 = vadd.f32 %v3453_v56, %v2961_v5  ;;  %v7773_v33 = vpop.eup %7772 }
 0x254   : > { %v3456_v43 = vpop.f32.mrf.mxu1  ;;  %4938 = vmatpush.bf16.msra.mxu2 %v12565_v57  ;;  %v4048_v35 = vpack.c.bf16 %v7773_v33, %v7773_v33 }
 0x255   : > { %7774 = vtanh.f32 %v3454_v37  ;;  %7315 = vmatmul.msk.bf16.gmra.mxu3 %vm2532_vm5, %v8652_v31 }
 0x256   : > { %v4240_v3 = vunpack.c.l.bf16 %v4048_v35  ;;  %v5416_v30 = vunpack.c.l.b16 %v4048_v35 }
 0x257   : > { %7273 = vmatmul.msk.bf16.gmra.mxu1 %vm2532_vm5, %v7516_v34 }
 0x258   : > { %4939 = vmatpush.bf16.msra.mxu2 %v12567_v49  ;;  %v8859_v15 = vpop.f32.mrf.mxu2  ;;  %v8865_v29 = vsub.f32 %v7773_v33, %v4240_v3 }
 0x259   : > { %12569 = vst [vmem:[#allocation33_spill] sm:$0xff] %v8859_v15 }
 0x25a   : > { %v2964_v14 = vpop.f32.mrf.mxu0 }
 0x25b   : > { %v7775_v51 = vpop.eup %7774  ;;  %v3457_v58 = vadd.f32 %v3456_v43, %v2964_v14 }
 0x25c   : > { %v4049_v25 = vpack.c.bf16 %v7775_v51, %v7775_v51  ;;  %v3458_v2 = vpop.f32.mrf.mxu1  ;;  %4940 = vmatpush.bf16.msra.mxu2 %v12568_v36 }
 0x25d   : > { %7177 = vmatmul.msk.bf16.gmra.mxu0 %vm2532_vm5, %v7516_v34  ;;  %7776 = vtanh.f32 %v3457_v58 }
 0x25e   : > { %v4241_v12 = vunpack.c.l.bf16 %v4049_v25  ;;  %v5417_v41 = vunpack.c.l.b16 %v4049_v25 }
 0x260   : > { %4941 = vmatpush.bf16.msra.mxu2 %v12570_v18  ;;  %v8867_v63 = vsub.f32 %v7775_v51, %v4241_v12  ;;  %v8869_v56 = vpack.c.b16 %v5417_v41, %v5416_v30  ;;  %v8881_v26 = vpop.f32.mrf.mxu2  ;;  %v7518_v12 = vld [vmem:[%s12418_s1 + $0x120] sm:$0xff] }
 0x261   : > { %12572 = vst [vmem:[#allocation35_spill] sm:$0xff] %v8881_v26  ;;  %7227 = vmatmul.msk.bf16.gmra.mxu2 %vm2532_vm5, %v8874_v17 }
 0x262   : > { %12571 = vst [vmem:[#allocation34_spill] sm:$0xff] %v8869_v56  ;;  %v2966_v47 = vpop.f32.mrf.mxu0 }
 0x263   : > { %v3459_v32 = vadd.f32 %v3458_v2, %v2966_v47  ;;  %v7777_v0 = vpop.eup %7776  ;;  %v8900_v2 = vld [vmem:[%s12418_s1 + $0x2a8] sm:$0xff]  ;;  %v8913_v47 = vpop.f32.mrf.mxu3 }
 0x264   : > { %v3461_v39 = vpop.f32.mrf.mxu1  ;;  %v4050_v54 = vpack.c.bf16 %v7777_v0, %v7777_v0  ;;  %12576 = vst [vmem:[#allocation39_spill] sm:$0xff] %v8913_v47 }
 0x265   : > { %7778 = vtanh.f32 %v3459_v32  ;;  %7316 = vmatmul.msk.bf16.gmra.mxu3 %vm2532_vm5, %v8674_v7 }
 0x266   : > { %v4242_v33 = vunpack.c.l.bf16 %v4050_v54  ;;  %v5418_v49 = vunpack.c.l.b16 %v4050_v54 }
 0x267   : > { %7274 = vmatmul.msk.bf16.gmra.mxu1 %vm2532_vm5, %v7517_v55 }
 0x268   : > { %v8888_v57 = vpop.f32.mrf.mxu2  ;;  %v8891_v51 = vsub.f32 %v7777_v0, %v4242_v33 }
 0x269   : > { %12573 = vst [vmem:[#allocation36_spill] sm:$0xff] %v8888_v57 }
 0x26a   : > { %v2969_v28 = vpop.f32.mrf.mxu0 }
 0x26b   : > { %v7779_v5 = vpop.eup %7778  ;;  %v3462_v37 = vadd.f32 %v3461_v39, %v2969_v28 }
 0x26c   : > { %v4051_v34 = vpack.c.bf16 %v7779_v5, %v7779_v5  ;;  %v3463_v43 = vpop.f32.mrf.mxu1 }
 0x26d   : > { %7178 = vmatmul.msk.bf16.gmra.mxu0 %vm2532_vm5, %v7517_v55  ;;  %7780 = vtanh.f32 %v3462_v37 }
 0x26e   : > { %v4243_v35 = vunpack.c.l.bf16 %v4051_v34  ;;  %v5419_v14 = vunpack.c.l.b16 %v4051_v34  ;;  %v8919_v34 = vpop.f32.mrf.mxu3 }
 0x26f   : > { %12578 = vst [vmem:[#allocation41_spill] sm:$0xff] %v8919_v34 }
 0x270   : > { %v8893_v31 = vsub.f32 %v7779_v5, %v4243_v35  ;;  %v8895_v58 = vpack.c.b16 %v5419_v14, %v5418_v49  ;;  %v8907_v41 = vpop.f32.mrf.mxu2 }
 0x271   : > { %12575 = vst [vmem:[#allocation38_spill] sm:$0xff] %v8907_v41  ;;  %7228 = vmatmul.msk.bf16.gmra.mxu2 %vm2532_vm5, %v8900_v2 }
 0x272   : > { %12574 = vst [vmem:[#allocation37_spill] sm:$0xff] %v8895_v58  ;;  %v2971_v25 = vpop.f32.mrf.mxu0 }
 0x273   : > { %v3464_v3 = vadd.f32 %v3463_v43, %v2971_v25  ;;  %v7781_v18 = vpop.eup %7780 }
 0x274   : > { %v3466_v30 = vpop.f32.mrf.mxu1  ;;  %v4052_v32 = vpack.c.bf16 %v7781_v18, %v7781_v18 }
 0x275   : > { %7782 = vtanh.f32 %v3464_v3  ;;  %v8930_v3 = vld [vmem:[%s12418_s1 + $0x2b0] sm:$0xff]  ;;  %7317 = vmatmul.msk.bf16.gmra.mxu3 %vm2532_vm5, %v8696_v40 }
 0x276   : > { %v4244_v37 = vunpack.c.l.bf16 %v4052_v32  ;;  %v5420_v33 = vunpack.c.l.b16 %v4052_v32 }
 0x277   : > { %7275 = vmatmul.msk.bf16.gmra.mxu1 %vm2532_vm5, %v7518_v12 }
 0x278   : > { %v8916_v5 = vpop.f32.mrf.mxu2  ;;  %v8921_v35 = vsub.f32 %v7781_v18, %v4244_v37  ;;  %v7519_v18 = vld [vmem:[%s12418_s1 + $0x128] sm:$0xff] }
 0x279   : > { %12577 = vst [vmem:[#allocation40_spill] sm:$0xff] %v8916_v5 }
 0x27a   : > { %v2974_v55 = vpop.f32.mrf.mxu0 }
 0x27b   : > { %v7783_v39 = vpop.eup %7782  ;;  %v3467_v0 = vadd.f32 %v3466_v30, %v2974_v55 }
 0x27c   : > { %v4053_v54 = vpack.c.bf16 %v7783_v39, %v7783_v39  ;;  %v3468_v28 = vpop.f32.mrf.mxu1 }
 0x27d   : > { %7179 = vmatmul.msk.bf16.gmra.mxu0 %vm2532_vm5, %v7518_v12  ;;  %7784 = vtanh.f32 %v3467_v0  ;;  %v8970_v12 = vld [vmem:[%s12418_s1 + $0x2b8] sm:$0xff] }
 0x27e   : > { %v4245_v43 = vunpack.c.l.bf16 %v4053_v54  ;;  %v5421_v7 = vunpack.c.l.b16 %v4053_v54 }
 0x280   : > { %v8923_v49 = vsub.f32 %v7783_v39, %v4245_v43  ;;  %v8925_v14 = vpack.c.b16 %v5421_v7, %v5420_v33  ;;  %v8937_v55 = vpop.f32.mrf.mxu2  ;;  %v8943_v39 = vpop.f32.mrf.mxu3 }
 0x281   : > { %12580 = vst [vmem:[#allocation43_spill] sm:$0xff] %v8937_v55  ;;  %7229 = vmatmul.msk.bf16.gmra.mxu2 %vm2532_vm5, %v8930_v3 }
 0x282   : > { %12579 = vst [vmem:[#allocation42_spill] sm:$0xff] %v8925_v14  ;;  %v2976_v25 = vpop.f32.mrf.mxu0 }
 0x283   : > { %v3469_v30 = vadd.f32 %v3468_v28, %v2976_v25  ;;  %v8945_v0 = vpop.eup %7784 }
 0x284   : > { %v3471_v32 = vpop.f32.mrf.mxu1  ;;  %v8950_v54 = vpack.c.bf16 %v8945_v0, %v8945_v0 }
 0x285   : > { %7786 = vtanh.f32 %v3469_v30 }
 0x286   : > { %v5422_v30 = vunpack.c.l.b16 %v8950_v54 }
 0x287   : > { %7276 = vmatmul.msk.bf16.gmra.mxu1 %vm2532_vm5, %v7519_v18 }
 0x288   : > { %v8958_v7 = vpop.f32.mrf.mxu2  ;;  %v8961_v25 = vpop.f32.mrf.mxu3  ;;  %7318 = vmatmul.msk.bf16.gmra.mxu3 %vm2532_vm5, %v8730_v21 }
 0x289   : > { %12581 = vst [vmem:[#allocation44_spill] sm:$0xff] %v8958_v7 }
 0x28a   : > { %v2979_v28 = vpop.f32.mrf.mxu0 }
 0x28b   : > { %v8952_v37 = vpop.eup %7786  ;;  %v3472_v40 = vadd.f32 %v3471_v32, %v2979_v28 }
 0x28c   : > { %v8956_v43 = vpack.c.bf16 %v8952_v37, %v8952_v37  ;;  %v3473_v33 = vpop.f32.mrf.mxu1 }
 0x28d   : > { %7180 = vmatmul.msk.bf16.gmra.mxu0 %vm2532_vm5, %v7519_v18  ;;  %7788 = vtanh.f32 %v3472_v40  ;;  %v7520_v18 = vld [vmem:[%s12418_s1 + $0x130] sm:$0xff] }
 0x28e   : > { %v5423_v20 = vunpack.c.l.b16 %v8956_v43 }
 0x290   : > { %v8965_v44 = vpack.c.b16 %v5423_v20, %v5422_v30  ;;  %v8975_v28 = vpop.f32.mrf.mxu2  ;;  %v8981_v20 = vpop.f32.mrf.mxu3 }
 0x291   : > { %12583 = vst [vmem:[#allocation46_spill] sm:$0xff] %v8975_v28  ;;  %7230 = vmatmul.msk.bf16.gmra.mxu2 %vm2532_vm5, %v8970_v12 }
 0x292   : > { %12582 = vst [vmem:[#allocation45_spill] sm:$0xff] %v8965_v44  ;;  %v2981_v36 = vpop.f32.mrf.mxu0 }
 0x293   : > { %v3474_v22 = vadd.f32 %v3473_v33, %v2981_v36  ;;  %v8983_v40 = vpop.eup %7788 }
 0x294   : > { %v3476_v32 = vpop.f32.mrf.mxu1  ;;  %v8988_v36 = vpack.c.bf16 %v8983_v40, %v8983_v40 }
 0x295   : > { %7790 = vtanh.f32 %v3474_v22 }
 0x296   : > { %v5424_v44 = vunpack.c.l.b16 %v8988_v36 }
 0x297   : > { %7277 = vmatmul.msk.bf16.gmra.mxu1 %vm2532_vm5, %v7520_v18 }
 0x298   : > { %v8996_v58 = vpop.f32.mrf.mxu2  ;;  %v8999_v14 = vpop.f32.mrf.mxu3  ;;  %7319 = vmatmul.msk.bf16.gmra.mxu3 %vm2532_vm5, %v8764_v62 }
 0x299   : > { %12584 = vst [vmem:[#allocation47_spill] sm:$0xff] %v8996_v58 }
 0x29a   : > { %v2984_v33 = vpop.f32.mrf.mxu0 }
 0x29b   : > { %v8990_v30 = vpop.eup %7790  ;;  %v3477_v21 = vadd.f32 %v3476_v32, %v2984_v33 }
 0x29c   : > { %v8994_v22 = vpack.c.bf16 %v8990_v30, %v8990_v30  ;;  %v3478_v56 = vpop.f32.mrf.mxu1 }
 0x29d   : > { %7181 = vmatmul.msk.bf16.gmra.mxu0 %vm2532_vm5, %v7520_v18  ;;  %7792 = vtanh.f32 %v3477_v21  ;;  %v7521_v18 = vld [vmem:[%s12418_s1 + $0x138] sm:$0xff] }
 0x29e   : > { %v5425_v48 = vunpack.c.l.b16 %v8994_v22  ;;  %v4249_v9 = vunpack.c.l.bf16 %v8994_v22 }
 0x2a0   : > { %v9003_v42 = vpack.c.b16 %v5425_v48, %v5424_v44  ;;  %v9013_v33 = vpop.f32.mrf.mxu2  ;;  %v9019_v48 = vpop.f32.mrf.mxu3  ;;  %v4441_v22 = vsub.f32 %v8990_v30, %v4249_v9 }
 0x2a1   : > { %12587 = vst [vmem:[#allocation50_spill] sm:$0xff] %v9013_v33  ;;  %7231 = vmatmul.msk.bf16.gmra.mxu2 %vm2532_vm5, %v9008_v4  ;;  %v9032_v33 = vld [vmem:[%s12418_s1 + $0x2c8] sm:$0xff] }
 0x2a2   : > { %12585 = vst [vmem:[#allocation48_spill] sm:$0xff] %v9003_v42  ;;  %v2986_v8 = vpop.f32.mrf.mxu0 }
 0x2a3   : > { %v3479_v27 = vadd.f32 %v3478_v56, %v2986_v8  ;;  %v7793_v44 = vpop.eup %7792  ;;  %12590 = vst [vmem:[#allocation53_spill] sm:$0xff] %v9032_v33 }
 0x2a4   : > { %v3481_v32 = vpop.f32.mrf.mxu1  ;;  %v4058_v8 = vpack.c.bf16 %v7793_v44, %v7793_v44 }
 0x2a5   : > { %7794 = vtanh.f32 %v3479_v27 }
 0x2a6   : > { %v5426_v24 = vunpack.c.l.b16 %v4058_v8  ;;  %v4250_v26 = vunpack.c.l.bf16 %v4058_v8 }
 0x2a7   : > { %7278 = vmatmul.msk.bf16.gmra.mxu1 %vm2532_vm5, %v7521_v18 }
 0x2a8   : > { %v9022_v6 = vpop.f32.mrf.mxu2  ;;  %v9025_v27 = vpop.f32.mrf.mxu3  ;;  %7320 = vmatmul.msk.bf16.gmra.mxu3 %vm2532_vm5, %v8784_v10 }
 0x2a9   : > { %12588 = vst [vmem:[#allocation51_spill] sm:$0xff] %v9022_v6 }
 0x2aa   : > { %v2989_v56 = vpop.f32.mrf.mxu0 }
 0x2ab   : > { %v7795_v21 = vpop.eup %7794  ;;  %v3482_v42 = vadd.f32 %v3481_v32, %v2989_v56  ;;  %v7522_v56 = vld [vmem:[%s12418_s1 + $0x140] sm:$0xff] }
 0x2ac   : > { %v4059_v38 = vpack.c.bf16 %v7795_v21, %v7795_v21  ;;  %v3483_v45 = vpop.f32.mrf.mxu1 }
 0x2ad   : > { %7182 = vmatmul.msk.bf16.gmra.mxu0 %vm2532_vm5, %v7521_v18  ;;  %7796 = vtanh.f32 %v3482_v42 }
 0x2ae   : > { %v5427_v34 = vunpack.c.l.b16 %v4059_v38  ;;  %v4251_v5 = vunpack.c.l.bf16 %v4059_v38  ;;  %v7523_v38 = vld [vmem:[%s12418_s1 + $0x148] sm:$0xff] }
 0x2b0   : > { %v9027_v62 = vpack.c.b16 %v5427_v34, %v5426_v24  ;;  %v9037_v18 = vpop.f32.mrf.mxu2  ;;  %v9043_v24 = vpop.f32.mrf.mxu3  ;;  %v4443_v4 = vsub.f32 %v7795_v21, %v4251_v5 }
 0x2b1   : > { %12591 = vst [vmem:[#allocation54_spill] sm:$0xff] %v9037_v18  ;;  %7232 = vmatmul.msk.bf16.gmra.mxu2 %vm2532_vm5, %v9032_v33 }
 0x2b2   : > { %12589 = vst [vmem:[#allocation52_spill] sm:$0xff] %v9027_v62  ;;  %v2991_v47 = vpop.f32.mrf.mxu0 }
 0x2b3   : > { %v3484_v32 = vadd.f32 %v3483_v45, %v2991_v47  ;;  %v7797_v58 = vpop.eup %7796 }
 0x2b4   : > { %v3486_v6 = vpop.f32.mrf.mxu1  ;;  %v4060_v45 = vpack.c.bf16 %v7797_v58, %v7797_v58 }
 0x2b5   : > { %7798 = vtanh.f32 %v3484_v32 }
 0x2b6   : > { %v4252_v62 = vunpack.c.l.bf16 %v4060_v45  ;;  %v5428_v10 = vunpack.c.l.b16 %v4060_v45 }
 0x2b7   : > { %7279 = vmatmul.msk.bf16.gmra.mxu1 %vm2532_vm5, %v7522_v56 }
 0x2b8   : > { %v9046_v18 = vpop.f32.mrf.mxu2  ;;  %v9049_v32 = vpop.f32.mrf.mxu3  ;;  %v4444_v57 = vsub.f32 %v7797_v58, %v4252_v62  ;;  %7321 = vmatmul.msk.bf16.gmra.mxu3 %vm2532_vm5, %v8805_v52 }
 0x2b9   : > { %12592 = vst [vmem:[#allocation55_spill] sm:$0xff] %v9046_v18 }
 0x2ba   : > { %v2994_v42 = vpop.f32.mrf.mxu0 }
 0x2bb   : > { %v7799_v47 = vpop.eup %7798  ;;  %v3487_v34 = vadd.f32 %v3486_v6, %v2994_v42 }
 0x2bc   : > { %v4061_v28 = vpack.c.bf16 %v7799_v47, %v7799_v47  ;;  %v3488_v7 = vpop.f32.mrf.mxu1 }
 0x2bd   : > { %7183 = vmatmul.msk.bf16.gmra.mxu0 %vm2532_vm5, %v7522_v56  ;;  %7800 = vtanh.f32 %v3487_v34  ;;  %v9057_v56 = vld [vmem:[%s12418_s1 + $0x2d0] sm:$0xff] }
 0x2be   : > { %v4253_v55 = vunpack.c.l.bf16 %v4061_v28  ;;  %v5429_v41 = vunpack.c.l.b16 %v4061_v28 }
 0x2c0   : > { %v4445_v33 = vsub.f32 %v7799_v47, %v4253_v55  ;;  %v9051_v15 = vpack.c.b16 %v5429_v41, %v5428_v10  ;;  %v4442_v55 = vsub.f32 %v7793_v44, %v4250_v26  ;;  %v4248_v41 = vunpack.c.l.bf16 %v8988_v36  ;;  %v9063_v28 = vpop.f32.mrf.mxu2  ;;  %v9069_v5 = vpop.f32.mrf.mxu3 }
 0x2c1   : > { %7233 = vmatmul.msk.bf16.gmra.mxu2 %vm2532_vm5, %v9057_v56  ;;  %v4246_v44 = vunpack.c.l.bf16 %v8950_v54 }
 0x2c2   : > { %12593 = vst [vmem:[#allocation56_spill] sm:$0xff] %v9051_v15  ;;  %v2996_v6 = vpop.f32.mrf.mxu0  ;;  %v4605_v42 = vpack.c.bf16 %v4445_v33, %v4444_v57  ;;  %v4247_v33 = vunpack.c.l.bf16 %v8956_v43  ;;  %v4440_v36 = vsub.f32 %v8983_v40, %v4248_v41  ;;  %v7524_v41 = vld [vmem:[%s12418_s1 + $0x150] sm:$0xff] }
 0x2c3   : > { %v3489_v18 = vadd.f32 %v3488_v7, %v2996_v6  ;;  %v7801_v57 = vpop.eup %7800  ;;  %v4604_v7 = vpack.c.bf16 %v4443_v4, %v4442_v55  ;;  %v4438_v9 = vsub.f32 %v8945_v0, %v4246_v44  ;;  %v12598_v44 = vpack.c.bf16 %v8893_v31, %v8891_v51 }
 0x2c4   : > { %v3491_v58 = vpop.f32.mrf.mxu1  ;;  %4958 = vmatpush.bf16.msra.mxu3 %v4605_v42  ;;  %v4062_v26 = vpack.c.bf16 %v7801_v57, %v7801_v57  ;;  %v4603_v21 = vpack.c.bf16 %v4441_v22, %v4440_v36  ;;  %v4439_v62 = vsub.f32 %v8952_v37, %v4247_v33 }
 0x2c5   : > { %7802 = vtanh.f32 %v3489_v18 }
 0x2c6   : > { %v4254_v30 = vunpack.c.l.bf16 %v4062_v26  ;;  %v4602_v40 = vpack.c.bf16 %v4439_v62, %v4438_v9  ;;  %v5430_v34 = vunpack.c.l.b16 %v4062_v26 }
 0x2c7   : > { %7280 = vmatmul.msk.bf16.gmra.mxu1 %vm2532_vm5, %v7523_v38 }
 0x2c8   : > { %4959 = vmatpush.bf16.msra.mxu3 %v4604_v7  ;;  %v9078_v43 = vpop.f32.mrf.mxu2  ;;  %v9081_v47 = vpop.f32.mrf.mxu3  ;;  %v9083_v37 = vsub.f32 %v7801_v57, %v4254_v30  ;;  %v12596_v7 = vpack.c.bf16 %v8923_v49, %v8921_v35  ;;  %v3662_v35 = vadd.f32 %v8943_v39, %v8720_v19  ;;  %v3664_v49 = vadd.f32 %v8961_v25, %v8735_v59  ;;  %v9138_v30 = vld [vmem:[%s12418_s1 + $0x2e0] sm:$0xff] }
 0x2c9   : > { %12594 = vst [vmem:[#allocation57_spill] sm:$0xff] %v9078_v43  ;;  %7322 = vmatmul.msk.bf16.gmra.mxu3 %vm2532_vm5, %v8836_v53  ;;  %v12601_v39 = vpack.c.bf16 %v8829_v60, %v8827_v23  ;;  %v7525_v23 = vld [vmem:[%s12418_s1 + $0x158] sm:$0xff] }
 0x2ca   : > { %v2999_v8 = vpop.f32.mrf.mxu0 }
 0x2cb   : > { %v7803_v52 = vpop.eup %7802  ;;  %v3492_v18 = vadd.f32 %v3491_v58, %v2999_v8  ;;  %v9092_v58 = vld [vmem:[%s12418_s1 + $0x2d8] sm:$0xff] }
 0x2cc   : > { %v4063_v45 = vpack.c.bf16 %v7803_v52, %v7803_v52  ;;  %v3493_v4 = vpop.f32.mrf.mxu1  ;;  %4960 = vmatpush.bf16.msra.mxu3 %v4603_v21 }
 0x2cd   : > { %7184 = vmatmul.msk.bf16.gmra.mxu0 %vm2532_vm5, %v7523_v38  ;;  %7804 = vtanh.f32 %v3492_v18  ;;  %v12599_v18 = vpack.c.bf16 %v8867_v63, %v8865_v29 }
 0x2ce   : > { %v4255_v54 = vunpack.c.l.bf16 %v4063_v45  ;;  %v5431_v10 = vunpack.c.l.b16 %v4063_v45 }
 0x2d0   : > { %4961 = vmatpush.bf16.msra.mxu3 %v4602_v40  ;;  %v9085_v6 = vsub.f32 %v7803_v52, %v4255_v54  ;;  %v9087_v42 = vpack.c.b16 %v5431_v10, %v5430_v34  ;;  %v9102_v22 = vpop.f32.mrf.mxu2  ;;  %v9108_v26 = vpop.f32.mrf.mxu3 }
 0x2d1   : > { %12597 = vst [vmem:[#allocation59_spill] sm:$0xff] %v9102_v22  ;;  %7234 = vmatmul.msk.bf16.gmra.mxu2 %vm2532_vm5, %v9092_v58 }
 0x2d2   : > { %12595 = vst [vmem:[#allocation58_spill] sm:$0xff] %v9087_v42  ;;  %v3001_v0 = vpop.f32.mrf.mxu0 }
 0x2d3   : > { %v3494_v55 = vadd.f32 %v3493_v4, %v3001_v0  ;;  %v7805_v33 = vpop.eup %7804 }
 0x2d4   : > { %v3496_v57 = vpop.f32.mrf.mxu1  ;;  %4962 = vmatpush.bf16.msra.mxu3 %v12596_v7  ;;  %v4064_v36 = vpack.c.bf16 %v7805_v33, %v7805_v33 }
 0x2d5   : > { %7806 = vtanh.f32 %v3494_v55 }
 0x2d6   : > { %v4256_v4 = vunpack.c.l.bf16 %v4064_v36  ;;  %7808 = vtanh.f32 %v3662_v35  ;;  %v5432_v59 = vunpack.c.l.b16 %v4064_v36  ;;  %v3667_v36 = vadd.f32 %v8981_v20, %v8754_v61 }
 0x2d7   : > { %7281 = vmatmul.msk.bf16.gmra.mxu1 %vm2532_vm5, %v7524_v41  ;;  %7810 = vtanh.f32 %v3664_v49 }
 0x2d8   : > { %4963 = vmatpush.bf16.msra.mxu3 %v12598_v44  ;;  %v9121_v45 = vpop.f32.mrf.mxu2  ;;  %v9124_v51 = vpop.f32.mrf.mxu3  ;;  %v9129_v25 = vsub.f32 %v7805_v33, %v4256_v4  ;;  %v3669_v44 = vadd.f32 %v8999_v14, %v8769_v46 }
 0x2d9   : > { %12600 = vst [vmem:[#allocation60_spill] sm:$0xff] %v9121_v45  ;;  %7323 = vmatmul.msk.bf16.gmra.mxu3 %vm2532_vm5, %v8874_v17 }
 0x2da   : > { %v3004_v8 = vpop.f32.mrf.mxu0 }
 0x2db   : > { %v7807_v21 = vpop.eup %7806  ;;  %v3497_v62 = vadd.f32 %v3496_v57, %v3004_v8 }
 0x2dc   : > { %v4065_v52 = vpack.c.bf16 %v7807_v21, %v7807_v21  ;;  %v3498_v53 = vpop.f32.mrf.mxu1  ;;  %4964 = vmatpush.bf16.msra.mxu3 %v12599_v18  ;;  %v7809_v54 = vpop.eup %7808 }
 0x2dd   : > { %7185 = vmatmul.msk.bf16.gmra.mxu0 %vm2532_vm5, %v7524_v41  ;;  %7812 = vtanh.f32 %v3497_v62  ;;  %v7811_v60 = vpop.eup %7810  ;;  %v4132_v57 = vpack.c.bf16 %v7809_v54, %v7809_v54 }
 0x2de   : > { %v4257_v19 = vunpack.c.l.bf16 %v4065_v52  ;;  %v5433_v31 = vunpack.c.l.b16 %v4065_v52  ;;  %v4133_v7 = vpack.c.bf16 %v7811_v60, %v7811_v60 }
 0x2e0   : > { %4965 = vmatpush.bf16.msra.mxu3 %v12601_v39  ;;  %v9131_v29 = vsub.f32 %v7807_v21, %v4257_v19  ;;  %v9133_v63 = vpack.c.b16 %v5433_v31, %v5432_v59  ;;  %v9145_v0 = vpop.f32.mrf.mxu2  ;;  %v9151_v41 = vpop.f32.mrf.mxu3  ;;  %v4325_v18 = vunpack.c.l.bf16 %v4133_v7 }
 0x2e1   : > { %12603 = vst [vmem:[#allocation62_spill] sm:$0xff] %v9145_v0  ;;  %7235 = vmatmul.msk.bf16.gmra.mxu2 %vm2532_vm5, %v9138_v30 }
 0x2e2   : > { %12602 = vst [vmem:[#allocation61_spill] sm:$0xff] %v9133_v63  ;;  %v3006_v9 = vpop.f32.mrf.mxu0  ;;  %v9165_v46 = vsub.f32 %v7811_v60, %v4325_v18 }
 0x2e3   : > { %v3499_v34 = vadd.f32 %v3498_v53, %v3006_v9  ;;  %v7813_v55 = vpop.eup %7812  ;;  %v4324_v53 = vunpack.c.l.bf16 %v4132_v57 }
 0x2e4   : > { %v3501_v10 = vpop.f32.mrf.mxu1  ;;  %v4066_v33 = vpack.c.bf16 %v7813_v55, %v7813_v55  ;;  %12606 = vst [vmem:[#allocation65_spill] sm:$0xff] %v9165_v46 }
 0x2e5   : > { %7814 = vtanh.f32 %v3499_v34  ;;  %v9163_v20 = vsub.f32 %v7809_v54, %v4324_v53  ;;  %v5500_v34 = vunpack.c.l.b16 %v4132_v57  ;;  %v9178_v54 = vld [vmem:[%s12418_s1 + $0x2e8] sm:$0xff]  ;;  %v3672_v53 = vadd.f32 %v9019_v48, %v8776_v11 }
 0x2e6   : > { %v4258_v17 = vunpack.c.l.bf16 %v4066_v33  ;;  %7816 = vtanh.f32 %v3667_v36  ;;  %v5434_v14 = vunpack.c.l.b16 %v4066_v33  ;;  %v7526_v36 = vld [vmem:[%s12418_s1 + $0x160] sm:$0xff] }
 0x2e7   : > { %7282 = vmatmul.msk.bf16.gmra.mxu1 %vm2532_vm5, %v7525_v23  ;;  %7818 = vtanh.f32 %v3669_v44  ;;  %12605 = vst [vmem:[#allocation64_spill] sm:$0xff] %v9163_v20 }
 0x2e8   : > { %v9158_v52 = vpop.f32.mrf.mxu2  ;;  %v9161_v4 = vpop.f32.mrf.mxu3  ;;  %v9167_v59 = vsub.f32 %v7813_v55, %v4258_v17 }
 0x2e9   : > { %12604 = vst [vmem:[#allocation63_spill] sm:$0xff] %v9158_v52  ;;  %7324 = vmatmul.msk.bf16.gmra.mxu3 %vm2532_vm5, %v8900_v2 }
 0x2ea   : > { %v3009_v35 = vpop.f32.mrf.mxu0 }
 0x2eb   : > { %v7815_v49 = vpop.eup %7814  ;;  %v3502_v8 = vadd.f32 %v3501_v10, %v3009_v35 }
 0x2ec   : > { %v4067_v21 = vpack.c.bf16 %v7815_v49, %v7815_v49  ;;  %v3503_v62 = vpop.f32.mrf.mxu1  ;;  %v7817_v55 = vpop.eup %7816 }
 0x2ed   : > { %7186 = vmatmul.msk.bf16.gmra.mxu0 %vm2532_vm5, %v7525_v23  ;;  %7820 = vtanh.f32 %v3502_v8  ;;  %v5501_v23 = vunpack.c.l.b16 %v4133_v7  ;;  %v7819_v35 = vpop.eup %7818 }
 0x2ee   : > { %v4259_v61 = vunpack.c.l.bf16 %v4067_v21  ;;  %v5435_v19 = vunpack.c.l.b16 %v4067_v21  ;;  %v4134_v21 = vpack.c.bf16 %v7817_v55, %v7817_v55 }
 0x2ef   : > { %v9185_v44 = vpack.c.b16 %v5501_v23, %v5500_v34 }
 0x2f0   : > { %v9169_v31 = vsub.f32 %v7815_v49, %v4259_v61  ;;  %v9173_v9 = vpack.c.b16 %v5435_v19, %v5434_v14  ;;  %v9187_v7 = vpop.f32.mrf.mxu2  ;;  %v9193_v8 = vpop.f32.mrf.mxu3  ;;  %v3674_v14 = vadd.f32 %v9025_v27, %v8789_v13 }
 0x2f1   : > { %12608 = vst [vmem:[#allocation67_spill] sm:$0xff] %v9185_v44  ;;  %7236 = vmatmul.msk.bf16.gmra.mxu2 %vm2532_vm5, %v9178_v54 }
 0x2f2   : > { %12607 = vst [vmem:[#allocation66_spill] sm:$0xff] %v9173_v9  ;;  %v3011_v10 = vpop.f32.mrf.mxu0 }
 0x2f3   : > { %v3504_v33 = vadd.f32 %v3503_v62, %v3011_v10  ;;  %12609 = vst [vmem:[#allocation68_spill] sm:$0xff] %v9187_v7  ;;  %v7821_v49 = vpop.eup %7820  ;;  %v4135_v62 = vpack.c.bf16 %v7819_v35, %v7819_v35 }
 0x2f4   : > { %v3506_v57 = vpop.f32.mrf.mxu1  ;;  %v4068_v17 = vpack.c.bf16 %v7821_v49, %v7821_v49 }
 0x2f5   : > { %7822 = vtanh.f32 %v3504_v33  ;;  %v4326_v33 = vunpack.c.l.bf16 %v4134_v21  ;;  %v4327_v39 = vunpack.c.l.bf16 %v4135_v62  ;;  %v5503_v42 = vunpack.c.l.b16 %v4135_v62 }
 0x2f6   : > { %v4260_v2 = vunpack.c.l.bf16 %v4068_v17  ;;  %7824 = vtanh.f32 %v3672_v53  ;;  %v5436_v13 = vunpack.c.l.b16 %v4068_v17 }
 0x2f7   : > { %7283 = vmatmul.msk.bf16.gmra.mxu1 %vm2532_vm5, %v7526_v36  ;;  %v9205_v11 = vsub.f32 %v7817_v55, %v4326_v33  ;;  %v9207_v48 = vsub.f32 %v7819_v35, %v4327_v39  ;;  %7826 = vtanh.f32 %v3674_v14  ;;  %v9220_v39 = vld [vmem:[%s12418_s1 + $0x2f0] sm:$0xff] }
 0x2f8   : > { %v9200_v10 = vpop.f32.mrf.mxu2  ;;  %v9203_v38 = vpop.f32.mrf.mxu3 }
 0x2f9   : > { %12610 = vst [vmem:[#allocation69_spill] sm:$0xff] %v9200_v10  ;;  %7325 = vmatmul.msk.bf16.gmra.mxu3 %vm2532_vm5, %v8930_v3 }
 0x2fa   : > { %v3014_v18 = vpop.f32.mrf.mxu0  ;;  %12611 = vst [vmem:[#allocation70_spill] sm:$0xff] %v9205_v11 }
 0x2fb   : > { %v7823_v61 = vpop.eup %7822  ;;  %v3507_v19 = vadd.f32 %v3506_v57, %v3014_v18  ;;  %12612 = vst [vmem:[#allocation71_spill] sm:$0xff] %v9207_v48  ;;  %v9209_v57 = vsub.f32 %v7821_v49, %v4260_v2 }
 0x2fc   : > { %v4069_v34 = vpack.c.bf16 %v7823_v61, %v7823_v61  ;;  %v3508_v23 = vpop.f32.mrf.mxu1  ;;  %v7825_v17 = vpop.eup %7824 }
 0x2fd   : > { %7187 = vmatmul.msk.bf16.gmra.mxu0 %vm2532_vm5, %v7526_v36  ;;  %v5502_v36 = vunpack.c.l.b16 %v4134_v21  ;;  %7828 = vtanh.f32 %v3507_v19 }
 0x2fe   : > { %v4261_v40 = vunpack.c.l.bf16 %v4069_v34  ;;  %v5437_v27 = vunpack.c.l.b16 %v4069_v34 }
 0x2ff   : > { %v9227_v49 = vpack.c.b16 %v5503_v42, %v5502_v36  ;;  %v4136_v42 = vpack.c.bf16 %v7825_v17, %v7825_v17 }
 0x300   : > { %v9211_v18 = vsub.f32 %v7823_v61, %v4261_v40  ;;  %v9215_v44 = vpack.c.b16 %v5437_v27, %v5436_v13  ;;  %v7527_v40 = vld [vmem:[%s12418_s1 + $0x168] sm:$0xff]  ;;  %v9229_v62 = vpop.f32.mrf.mxu2  ;;  %v7827_v61 = vpop.eup %7826  ;;  %v3679_v13 = vadd.f32 %v9049_v32, %v8811_v1 }
 0x301   : > { %12614 = vst [vmem:[#allocation73_spill] sm:$0xff] %v9227_v49  ;;  %7237 = vmatmul.msk.bf16.gmra.mxu2 %vm2532_vm5, %v9220_v39  ;;  %v9235_v14 = vpop.f32.mrf.mxu3  ;;  %v4137_v34 = vpack.c.bf16 %v7827_v61, %v7827_v61 }
 0x302   : > { %12613 = vst [vmem:[#allocation72_spill] sm:$0xff] %v9215_v44  ;;  %v3016_v53 = vpop.f32.mrf.mxu0 }
 0x303   : > { %v3509_v35 = vadd.f32 %v3508_v23, %v3016_v53  ;;  %12615 = vst [vmem:[#allocation74_spill] sm:$0xff] %v9229_v62  ;;  %v9238_v19 = vpop.eup %7828  ;;  %v3677_v23 = vadd.f32 %v9043_v24, %v8796_v50  ;;  %v4329_v60 = vunpack.c.l.bf16 %v4137_v34 }
 0x304   : > { %v3511_v21 = vpop.f32.mrf.mxu1  ;;  %v9248_v3 = vpack.c.bf16 %v9238_v19, %v9238_v19 }
 0x305   : > { %7830 = vtanh.f32 %v3509_v35  ;;  %v4328_v35 = vunpack.c.l.bf16 %v4136_v42  ;;  %v9261_v32 = vsub.f32 %v7827_v61, %v4329_v60  ;;  %v7528_v61 = vld [vmem:[%s12418_s1 + $0x170] sm:$0xff] }
 0x306   : > { %7832 = vtanh.f32 %v3677_v23  ;;  %v5438_v55 = vunpack.c.l.b16 %v9248_v3 }
 0x307   : > { %7284 = vmatmul.msk.bf16.gmra.mxu1 %vm2532_vm5, %v7527_v40  ;;  %v9259_v1 = vsub.f32 %v7825_v17, %v4328_v35  ;;  %12618 = vst [vmem:[#allocation77_spill] sm:$0xff] %v9261_v32  ;;  %7834 = vtanh.f32 %v3679_v13  ;;  %v9272_v17 = vld [vmem:[%s12418_s1 + $0x2f8] sm:$0xff] }
 0x308   : > { %v9254_v53 = vpop.f32.mrf.mxu2 }
 0x309   : > { %12616 = vst [vmem:[#allocation75_spill] sm:$0xff] %v9254_v53  ;;  %v9257_v24 = vpop.f32.mrf.mxu3  ;;  %7326 = vmatmul.msk.bf16.gmra.mxu3 %vm2532_vm5, %v8970_v12 }
 0x30a   : > { %v3019_v2 = vpop.f32.mrf.mxu0  ;;  %12617 = vst [vmem:[#allocation76_spill] sm:$0xff] %v9259_v1 }
 0x30b   : > { %v9242_v33 = vpop.eup %7830  ;;  %v3512_v50 = vadd.f32 %v3511_v21, %v3019_v2  ;;  %v5504_v21 = vunpack.c.l.b16 %v4136_v42  ;;  %v3682_v42 = vadd.f32 %v9069_v5, %v8824_v16 }
 0x30c   : > { %v9252_v27 = vpack.c.bf16 %v9242_v33, %v9242_v33  ;;  %v3513_v36 = vpop.f32.mrf.mxu1  ;;  %v7833_v13 = vpop.eup %7832 }
 0x30d   : > { %7188 = vmatmul.msk.bf16.gmra.mxu0 %vm2532_vm5, %v7527_v40  ;;  %7836 = vtanh.f32 %v3512_v50  ;;  %v5505_v40 = vunpack.c.l.b16 %v4137_v34 }
 0x30e   : > { %v5439_v49 = vunpack.c.l.b16 %v9252_v27 }
 0x30f   : > { %v9277_v23 = vpack.c.b16 %v5505_v40, %v5504_v21  ;;  %v4138_v40 = vpack.c.bf16 %v7833_v13, %v7833_v13 }
 0x310   : > { %v9267_v9 = vpack.c.b16 %v5439_v49, %v5438_v55  ;;  %v9279_v50 = vpop.f32.mrf.mxu2  ;;  %v7835_v55 = vpop.eup %7834 }
 0x311   : > { %12620 = vst [vmem:[#allocation79_spill] sm:$0xff] %v9277_v23  ;;  %7238 = vmatmul.msk.bf16.gmra.mxu2 %vm2532_vm5, %v9272_v17  ;;  %v9285_v49 = vpop.f32.mrf.mxu3 }
 0x312   : > { %12619 = vst [vmem:[#allocation78_spill] sm:$0xff] %v9267_v9  ;;  %v3021_v2 = vpop.f32.mrf.mxu0 }
 0x313   : > { %v3514_v60 = vadd.f32 %v3513_v36, %v3021_v2  ;;  %12621 = vst [vmem:[#allocation80_spill] sm:$0xff] %v9279_v50  ;;  %v9289_v34 = vpop.eup %7836  ;;  %v12622_v36 = vld [vmem:[#allocation32_spill] sm:$0xff]  ;;  %v4139_v2 = vpack.c.bf16 %v7835_v55, %v7835_v55 }
 0x314   : > { %v3516_v35 = vpop.f32.mrf.mxu1  ;;  %v3684_v21 = vadd.f32 %v9081_v47, %v12622_v36  ;;  %v4330_v47 = vunpack.c.l.bf16 %v4138_v40 }
 0x315   : > { %7838 = vtanh.f32 %v3514_v60  ;;  %v9296_v60 = vpack.c.bf16 %v9289_v34, %v9289_v34  ;;  %v4331_v36 = vunpack.c.l.bf16 %v4139_v2 }
 0x316   : > { %7840 = vtanh.f32 %v3682_v42  ;;  %v9309_v9 = vsub.f32 %v7833_v13, %v4330_v47  ;;  %v7584_v13 = vld [vmem:[%s12419_s2 + $0x2c] sm:$0xf0] }
 0x317   : > { %7285 = vmatmul.msk.bf16.gmra.mxu1 %vm2532_vm5, %v7528_v61  ;;  %7842 = vtanh.f32 %v3684_v21  ;;  %v9311_v15 = vsub.f32 %v7835_v55, %v4331_v36  ;;  %v5440_v21 = vunpack.c.l.b16 %v9296_v60  ;;  %v5507_v55 = vunpack.c.l.b16 %v4139_v2 }
 0x318   : > { %v9304_v23 = vpop.f32.mrf.mxu2  ;;  %12624 = vst [vmem:[#allocation81_spill] sm:$0xff] %v9309_v9 }
 0x319   : > { %12623 = vst [vmem:[#allocation32_spill] sm:$0xff] %v9304_v23  ;;  %v9307_v42 = vpop.f32.mrf.mxu3 }
 0x31a   : > { %v3024_v12 = vpop.f32.mrf.mxu0  ;;  %12625 = vst [vmem:[#allocation82_spill] sm:$0xff] %v9311_v15 }
 0x31b   : > { %v9298_v63 = vpop.eup %7838  ;;  %v3517_v44 = vadd.f32 %v3516_v35, %v3024_v12  ;;  %v5506_v35 = vunpack.c.l.b16 %v4138_v40  ;;  %v12632_v40 = vld [vmem:[#allocation49_spill] sm:$0xff] }
 0x31c   : > { %v9302_v16 = vpack.c.bf16 %v9298_v63, %v9298_v63  ;;  %v3518_v5 = vpop.f32.mrf.mxu1  ;;  %v7841_v46 = vpop.eup %7840  ;;  %7327 = vmatmul.msk.bf16.gmra.mxu3 %vm2532_vm5, %v12632_v40 }
 0x31d   : > { %7189 = vmatmul.msk.bf16.gmra.mxu0 %vm2532_vm5, %v7528_v61  ;;  %v7843_v1 = vpop.eup %7842  ;;  %7844 = vtanh.f32 %v3517_v44  ;;  %v7337_v61 = vld [vmem:[%s12419_s2] sm:$0xf]  ;;  %v9332_v44 = vpack.c.bf16 %v7841_v46, %v7841_v46 }
 0x31e   : > { %v5441_v20 = vunpack.c.l.b16 %v9302_v16  ;;  %v9325_v47 = vor.u32 %v7584_v13, %v7337_v61  ;;  %v9334_v11 = vpack.c.bf16 %v7843_v1, %v7843_v1 }
 0x31f   : > { %12629 = vst [vmem:[#allocation86_spill] sm:$0xff] %v9332_v44  ;;  %v4332_v61 = vunpack.c.l.bf16 %v9332_v44 }
 0x320   : > { %v9317_v48 = vpack.c.b16 %v5441_v20, %v5440_v21  ;;  %12627 = vst [vmem:[#allocation84_spill] sm:$0xff] %v9325_v47  ;;  %v7529_v20 = vld [vmem:[%s12418_s1 + $0x178] sm:$0xff]  ;;  %v9330_v21 = vpack.c.b16 %v5507_v55, %v5506_v35  ;;  %v9336_v32 = vpop.f32.mrf.mxu2  ;;  %v4333_v13 = vunpack.c.l.bf16 %v9334_v11 }
 0x321   : > { %12630 = vst [vmem:[#allocation87_spill] sm:$0xff] %v9334_v11  ;;  %4894 = vmatmul.bf16.vlgmr.msrb.gmra.mxu2 %v9325_v47  ;;  %v9341_v2 = vpop.f32.mrf.mxu3  ;;  %v12633_v35 = vld [vmem:[#allocation33_spill] sm:$0xff]  ;;  %v9356_v15 = vsub.f32 %v7841_v46, %v4332_v61  ;;  %v7530_v61 = vld [vmem:[%s12418_s1 + $0x180] sm:$0xff]  ;;  %v12639_v11 = vld [vmem:[#allocation36_spill] sm:$0xff] }
 0x322   : > { %12626 = vst [vmem:[#allocation83_spill] sm:$0xff] %v9317_v48  ;;  %v3026_v12 = vpop.f32.mrf.mxu0  ;;  %v3687_v55 = vadd.f32 %v9108_v26, %v12633_v35 }
 0x323   : > { %v3519_v36 = vadd.f32 %v3518_v5, %v3026_v12  ;;  %12628 = vst [vmem:[#allocation85_spill] sm:$0xff] %v9330_v21  ;;  %v9343_v5 = vpop.eup %7844  ;;  %v12634_v12 = vld [vmem:[#allocation35_spill] sm:$0xff] }
 0x324   : > { %v3521_v48 = vpop.f32.mrf.mxu1  ;;  %12631 = vst [vmem:[#allocation88_spill] sm:$0xff] %v9336_v32  ;;  %v9354_v40 = vpack.c.bf16 %v9343_v5, %v9343_v5  ;;  %v9358_v32 = vsub.f32 %v7843_v1, %v4333_v13 }
 0x325   : > { %7846 = vtanh.f32 %v3519_v36  ;;  %v3689_v36 = vadd.f32 %v9124_v51, %v12634_v12  ;;  %12635 = vst [vmem:[#allocation49_spill] sm:$0xff] %v9356_v15  ;;  %v12640_v12 = vld [vmem:[#allocation38_spill] sm:$0xff] }
 0x326   : > { %12636 = vst [vmem:[#allocation33_spill] sm:$0xff] %v9358_v32  ;;  %7848 = vtanh.f32 %v3687_v55  ;;  %v5442_v51 = vunpack.c.l.b16 %v9354_v40 }
 0x327   : > { %7286 = vmatmul.msk.bf16.gmra.mxu1 %vm2532_vm5, %v7529_v20  ;;  %7850 = vtanh.f32 %v3689_v36  ;;  %v12638_v36 = vld [vmem:[#allocation53_spill] sm:$0xff] }
 0x329   : > { %v9361_v26 = vpop.f32.mrf.mxu3 }
 0x32a   : > { %v3029_v21 = vpop.f32.mrf.mxu0 }
 0x32b   : > { %v7847_v47 = vpop.eup %7846  ;;  %v3522_v9 = vadd.f32 %v3521_v48, %v3029_v21 }
 0x32c   : > { %v4075_v44 = vpack.c.bf16 %v7847_v47, %v7847_v47  ;;  %v3523_v23 = vpop.f32.mrf.mxu1  ;;  %v7849_v1 = vpop.eup %7848  ;;  %7328 = vmatmul.msk.bf16.gmra.mxu3 %vm2532_vm5, %v12638_v36 }
 0x32d   : > { %7190 = vmatmul.msk.bf16.gmra.mxu0 %vm2532_vm5, %v7529_v20  ;;  %7852 = vtanh.f32 %v3522_v9  ;;  %v7851_v20 = vpop.eup %7850 }
 0x32e   : > { %v5443_v35 = vunpack.c.l.b16 %v4075_v44  ;;  %v4267_v7 = vunpack.c.l.bf16 %v4075_v44 }
 0x330   : > { %v9366_v48 = vpack.c.b16 %v5443_v35, %v5442_v51  ;;  %v3692_v51 = vadd.f32 %v9151_v41, %v12639_v11  ;;  %v4142_v35 = vpack.c.bf16 %v7849_v1, %v7849_v1 }
 0x331   : > { %v9373_v9 = vpop.f32.mrf.mxu3 }
 0x332   : > { %12637 = vst [vmem:[#allocation35_spill] sm:$0xff] %v9366_v48  ;;  %v3031_v46 = vpop.f32.mrf.mxu0  ;;  %v3694_v48 = vadd.f32 %v9161_v4, %v12640_v12  ;;  %v4334_v62 = vunpack.c.l.bf16 %v4142_v35  ;;  %v5510_v22 = vunpack.c.l.b16 %v4142_v35 }
 0x333   : > { %v3524_v21 = vadd.f32 %v3523_v23, %v3031_v46  ;;  %v7853_v55 = vpop.eup %7852  ;;  %v4143_v23 = vpack.c.bf16 %v7851_v20, %v7851_v20 }
 0x334   : > { %v3526_v13 = vpop.f32.mrf.mxu1  ;;  %v4076_v46 = vpack.c.bf16 %v7853_v55, %v7853_v55  ;;  %v9383_v52 = vsub.f32 %v7849_v1, %v4334_v62  ;;  %v4459_v1 = vsub.f32 %v7847_v47, %v4267_v7 }
 0x335   : > { %7854 = vtanh.f32 %v3524_v21  ;;  %v4335_v10 = vunpack.c.l.bf16 %v4143_v23  ;;  %v5511_v43 = vunpack.c.l.b16 %v4143_v23  ;;  %v4263_v23 = vunpack.c.l.bf16 %v9252_v27 }
 0x336   : > { %7856 = vtanh.f32 %v3692_v51  ;;  %v4268_v50 = vunpack.c.l.bf16 %v4076_v46  ;;  %12641 = vst [vmem:[#allocation53_spill] sm:$0xff] %v9383_v52  ;;  %v5444_v4 = vunpack.c.l.b16 %v4076_v46  ;;  %v4266_v51 = vunpack.c.l.bf16 %v9354_v40 }
 0x337   : > { %7287 = vmatmul.msk.bf16.gmra.mxu1 %vm2532_vm5, %v7530_v61  ;;  %7858 = vtanh.f32 %v3694_v48  ;;  %v9385_v0 = vsub.f32 %v7851_v20, %v4335_v10  ;;  %v4265_v10 = vunpack.c.l.bf16 %v9302_v16  ;;  %v4455_v27 = vsub.f32 %v9242_v33, %v4263_v23 }
 0x338   : > { %v4458_v40 = vsub.f32 %v9343_v5, %v4266_v51  ;;  %v4262_v5 = vunpack.c.l.bf16 %v9248_v3 }
 0x339   : > { %v9381_v41 = vpop.f32.mrf.mxu3  ;;  %12642 = vst [vmem:[#allocation36_spill] sm:$0xff] %v9385_v0  ;;  %v4457_v47 = vsub.f32 %v9298_v63, %v4265_v10 }
 0x33a   : > { %v3034_v15 = vpop.f32.mrf.mxu0  ;;  %v4612_v16 = vpack.c.bf16 %v4459_v1, %v4458_v40 }
 0x33b   : > { %v7855_v32 = vpop.eup %7854  ;;  %v3527_v21 = vadd.f32 %v3526_v13, %v3034_v15  ;;  %v4460_v15 = vsub.f32 %v7853_v55, %v4268_v50  ;;  %v4264_v55 = vunpack.c.l.bf16 %v9296_v60 }
 0x33c   : > { %v4077_v53 = vpack.c.bf16 %v7855_v32, %v7855_v32  ;;  %v3528_v36 = vpop.f32.mrf.mxu1  ;;  %v7857_v45 = vpop.eup %7856  ;;  %7329 = vmatmul.msk.bf16.gmra.mxu3 %vm2532_vm5, %v9057_v56 }
 0x33d   : > { %7191 = vmatmul.msk.bf16.gmra.mxu0 %vm2532_vm5, %v7530_v61  ;;  %7860 = vtanh.f32 %v3527_v21  ;;  %v7859_v20 = vpop.eup %7858  ;;  %v4144_v60 = vpack.c.bf16 %v7857_v45, %v7857_v45  ;;  %v4456_v56 = vsub.f32 %v9289_v34, %v4264_v55 }
 0x33e   : > { %v4269_v11 = vunpack.c.l.bf16 %v4077_v53  ;;  %v5445_v12 = vunpack.c.l.b16 %v4077_v53  ;;  %v7531_v53 = vld [vmem:[%s12418_s1 + $0x188] sm:$0xff]  ;;  %v4145_v21 = vpack.c.bf16 %v7859_v20, %v7859_v20 }
 0x33f   : > { %v4611_v63 = vpack.c.bf16 %v4457_v47, %v4456_v56  ;;  %v5512_v23 = vunpack.c.l.b16 %v4144_v60 }
 0x340   : > { %v4461_v13 = vsub.f32 %v7855_v32, %v4269_v11  ;;  %v9390_v61 = vpack.c.b16 %v5445_v12, %v5444_v4  ;;  %v9396_v32 = vpack.c.b16 %v5511_v43, %v5510_v22  ;;  %v12645_v43 = vld [vmem:[#allocation40_spill] sm:$0xff]  ;;  %v12646_v11 = vld [vmem:[#allocation43_spill] sm:$0xff]  ;;  %v4337_v1 = vunpack.c.l.bf16 %v4145_v21 }
 0x341   : > { %v9402_v7 = vpop.f32.mrf.mxu3  ;;  %v3697_v22 = vadd.f32 %v9193_v8, %v12645_v43  ;;  %v3699_v4 = vadd.f32 %v9203_v38, %v12646_v11  ;;  %v5513_v43 = vunpack.c.l.b16 %v4145_v21  ;;  %v12651_v11 = vpack.c.bf16 %v9211_v18, %v9209_v57  ;;  %v12654_v18 = vld [vmem:[#allocation46_spill] sm:$0xff] }
 0x342   : > { %12643 = vst [vmem:[#allocation38_spill] sm:$0xff] %v9390_v61  ;;  %v3036_v44 = vpop.f32.mrf.mxu0  ;;  %v4613_v62 = vpack.c.bf16 %v4461_v13, %v4460_v15  ;;  %v4454_v13 = vsub.f32 %v9238_v19, %v4262_v5  ;;  %v9420_v33 = vsub.f32 %v7859_v20, %v4337_v1 }
 0x343   : > { %v3529_v46 = vadd.f32 %v3528_v36, %v3036_v44  ;;  %12644 = vst [vmem:[#allocation89_spill] sm:$0xff] %v9396_v32  ;;  %v7861_v35 = vpop.eup %7860 }
 0x344   : > { %v3531_v50 = vpop.f32.mrf.mxu1  ;;  %4982 = vmatpush.bf16.msrb.mxu2 %v4613_v62  ;;  %v4078_v36 = vpack.c.bf16 %v7861_v35, %v7861_v35  ;;  %v4336_v62 = vunpack.c.l.bf16 %v4144_v60  ;;  %v4610_v38 = vpack.c.bf16 %v4455_v27, %v4454_v13  ;;  %12648 = vst [vmem:[#allocation43_spill] sm:$0xff] %v9420_v33  ;;  %v12652_v27 = vpack.c.bf16 %v9169_v31, %v9167_v59  ;;  %v12691_v33 = vld [vmem:[#allocation68_spill] sm:$0xff] }
 0x345   : > { %7862 = vtanh.f32 %v3529_v46 }
 0x346   : > { %7864 = vtanh.f32 %v3697_v22  ;;  %v4270_v44 = vunpack.c.l.bf16 %v4078_v36  ;;  %v9418_v46 = vsub.f32 %v7857_v45, %v4336_v62  ;;  %v12655_v62 = vpack.c.bf16 %v9131_v29, %v9129_v25 }
 0x347   : > { %7288 = vmatmul.msk.bf16.gmra.mxu1 %vm2532_vm5, %v7531_v53  ;;  %7866 = vtanh.f32 %v3699_v4  ;;  %v12658_v25 = vpack.c.bf16 %v9085_v6, %v9083_v37  ;;  %v7533_v37 = vld [vmem:[%s12418_s1 + $0x198] sm:$0xff] }
 0x348   : > { %4983 = vmatpush.bf16.msrb.mxu2 %v4612_v16  ;;  %12647 = vst [vmem:[#allocation40_spill] sm:$0xff] %v9418_v46  ;;  %v9422_v40 = vsub.f32 %v7861_v35, %v4270_v44  ;;  %v7532_v35 = vld [vmem:[%s12418_s1 + $0x190] sm:$0xff] }
 0x349   : > { %v9416_v34 = vpop.f32.mrf.mxu3 }
 0x34a   : > { %v3039_v12 = vpop.f32.mrf.mxu0 }
 0x34b   : > { %v7863_v15 = vpop.eup %7862  ;;  %v3532_v8 = vadd.f32 %v3531_v50, %v3039_v12  ;;  %v5446_v50 = vunpack.c.l.b16 %v4078_v36  ;;  %v9435_v36 = vpack.c.b16 %v5513_v43, %v5512_v23 }
 0x34c   : > { %v4079_v51 = vpack.c.bf16 %v7863_v15, %v7863_v15  ;;  %v3533_v3 = vpop.f32.mrf.mxu1  ;;  %4984 = vmatpush.bf16.msrb.mxu2 %v4611_v63  ;;  %7330 = vmatmul.msk.bf16.gmra.mxu3 %vm2532_vm5, %v9092_v58 }
 0x34d   : > { %7192 = vmatmul.msk.bf16.gmra.mxu0 %vm2532_vm5, %v7531_v53  ;;  %7868 = vtanh.f32 %v3532_v8  ;;  %v7865_v53 = vpop.eup %7864  ;;  %12650 = vst [vmem:[#allocation91_spill] sm:$0xff] %v9435_v36  ;;  %v3704_v8 = vadd.f32 %v9257_v24, %v12654_v18  ;;  %v12661_v18 = vld [vmem:[#allocation47_spill] sm:$0xff] }
 0x34e   : > { %v4271_v10 = vunpack.c.l.bf16 %v4079_v51  ;;  %v5447_v19 = vunpack.c.l.b16 %v4079_v51  ;;  %v7867_v22 = vpop.eup %7866  ;;  %v4146_v21 = vpack.c.bf16 %v7865_v53, %v7865_v53 }
 0x34f   : > { %v4147_v12 = vpack.c.bf16 %v7867_v22, %v7867_v22 }
 0x350   : > { %4985 = vmatpush.bf16.msrb.mxu2 %v4610_v38  ;;  %v9424_v55 = vsub.f32 %v7863_v15, %v4271_v10  ;;  %v9428_v47 = vpack.c.b16 %v5447_v19, %v5446_v50  ;;  %v12653_v15 = vld [vmem:[#allocation44_spill] sm:$0xff]  ;;  %v4338_v38 = vunpack.c.l.bf16 %v4146_v21 }
 0x351   : > { %v9442_v60 = vpop.f32.mrf.mxu3  ;;  %v3702_v57 = vadd.f32 %v9235_v14, %v12653_v15  ;;  %v4339_v10 = vunpack.c.l.bf16 %v4147_v12 }
 0x352   : > { %12649 = vst [vmem:[#allocation90_spill] sm:$0xff] %v9428_v47  ;;  %v3041_v45 = vpop.f32.mrf.mxu0  ;;  %v9458_v14 = vsub.f32 %v7865_v53, %v4338_v38  ;;  %v5514_v53 = vunpack.c.l.b16 %v4146_v21 }
 0x353   : > { %v3534_v5 = vadd.f32 %v3533_v3, %v3041_v45  ;;  %v7869_v4 = vpop.eup %7868  ;;  %v9460_v24 = vsub.f32 %v7867_v22, %v4339_v10 }
 0x354   : > { %v3536_v56 = vpop.f32.mrf.mxu1  ;;  %4986 = vmatpush.bf16.msrb.mxu2 %v12651_v11  ;;  %v4080_v63 = vpack.c.bf16 %v7869_v4, %v7869_v4  ;;  %12656 = vst [vmem:[#allocation44_spill] sm:$0xff] %v9458_v14 }
 0x355   : > { %7870 = vtanh.f32 %v3534_v5  ;;  %12657 = vst [vmem:[#allocation46_spill] sm:$0xff] %v9460_v24  ;;  %v5515_v5 = vunpack.c.l.b16 %v4147_v12 }
 0x356   : > { %v4272_v1 = vunpack.c.l.bf16 %v4080_v63  ;;  %7872 = vtanh.f32 %v3702_v57  ;;  %v5448_v50 = vunpack.c.l.b16 %v4080_v63 }
 0x357   : > { %7289 = vmatmul.msk.bf16.gmra.mxu1 %vm2532_vm5, %v7532_v35  ;;  %7874 = vtanh.f32 %v3704_v8  ;;  %v9478_v6 = vpack.c.b16 %v5515_v5, %v5514_v53  ;;  %v3707_v8 = vadd.f32 %v9285_v49, %v12661_v18 }
 0x358   : > { %4987 = vmatpush.bf16.msrb.mxu2 %v12652_v27  ;;  %v9465_v29 = vsub.f32 %v7869_v4, %v4272_v1 }
 0x359   : > { %v9456_v59 = vpop.f32.mrf.mxu3  ;;  %12660 = vst [vmem:[#allocation93_spill] sm:$0xff] %v9478_v6 }
 0x35a   : > { %v3044_v13 = vpop.f32.mrf.mxu0 }
 0x35b   : > { %v7871_v51 = vpop.eup %7870  ;;  %v3537_v58 = vadd.f32 %v3536_v56, %v3044_v13  ;;  %v12662_v13 = vld [vmem:[#allocation50_spill] sm:$0xff] }
 0x35c   : > { %v4081_v3 = vpack.c.bf16 %v7871_v51, %v7871_v51  ;;  %v3538_v44 = vpop.f32.mrf.mxu1  ;;  %4988 = vmatpush.bf16.msrb.mxu2 %v12655_v62  ;;  %v7873_v56 = vpop.eup %7872  ;;  %7331 = vmatmul.msk.bf16.gmra.mxu3 %vm2532_vm5, %v9138_v30 }
 0x35d   : > { %7193 = vmatmul.msk.bf16.gmra.mxu0 %vm2532_vm5, %v7532_v35  ;;  %7876 = vtanh.f32 %v3537_v58  ;;  %v7875_v4 = vpop.eup %7874  ;;  %v4148_v12 = vpack.c.bf16 %v7873_v56, %v7873_v56 }
 0x35e   : > { %v4273_v31 = vunpack.c.l.bf16 %v4081_v3  ;;  %v5449_v19 = vunpack.c.l.b16 %v4081_v3  ;;  %v4149_v15 = vpack.c.bf16 %v7875_v4, %v7875_v4 }
 0x35f   : > { %v4340_v30 = vunpack.c.l.bf16 %v4148_v12 }
 0x360   : > { %4989 = vmatpush.bf16.msrb.mxu2 %v12658_v25  ;;  %v9467_v23 = vsub.f32 %v7871_v51, %v4273_v31  ;;  %v9471_v45 = vpack.c.b16 %v5449_v19, %v5448_v50  ;;  %v3709_v51 = vadd.f32 %v9307_v42, %v12662_v13  ;;  %v4341_v10 = vunpack.c.l.bf16 %v4149_v15 }
 0x361   : > { %v9482_v21 = vpop.f32.mrf.mxu3  ;;  %v9492_v19 = vsub.f32 %v7873_v56, %v4340_v30 }
 0x362   : > { %12659 = vst [vmem:[#allocation92_spill] sm:$0xff] %v9471_v45  ;;  %v3046_v22 = vpop.f32.mrf.mxu0  ;;  %v9494_v49 = vsub.f32 %v7875_v4, %v4341_v10  ;;  %v12668_v10 = vld [vmem:[#allocation54_spill] sm:$0xff] }
 0x363   : > { %v3539_v11 = vadd.f32 %v3538_v44, %v3046_v22  ;;  %v7877_v27 = vpop.eup %7876  ;;  %12663 = vst [vmem:[#allocation47_spill] sm:$0xff] %v9492_v19 }
 0x364   : > { %v3541_v63 = vpop.f32.mrf.mxu1  ;;  %v4082_v57 = vpack.c.bf16 %v7877_v27, %v7877_v27  ;;  %12664 = vst [vmem:[#allocation50_spill] sm:$0xff] %v9494_v49 }
 0x365   : > { %7878 = vtanh.f32 %v3539_v11 }
 0x366   : > { %v4274_v38 = vunpack.c.l.bf16 %v4082_v57  ;;  %7880 = vtanh.f32 %v3707_v8  ;;  %v5450_v42 = vunpack.c.l.b16 %v4082_v57 }
 0x367   : > { %7290 = vmatmul.msk.bf16.gmra.mxu1 %vm2532_vm5, %v7533_v37  ;;  %7882 = vtanh.f32 %v3709_v51 }
 0x368   : > { %v9496_v53 = vsub.f32 %v7877_v27, %v4274_v38  ;;  %v7534_v27 = vld [vmem:[%s12418_s1 + $0x1a0] sm:$0xff] }
 0x369   : > { %v9490_v31 = vpop.f32.mrf.mxu3 }
 0x36a   : > { %v3049_v58 = vpop.f32.mrf.mxu0  ;;  %v3734_v14 = vadd.f32 %v9490_v31, %v12691_v33 }
 0x36b   : > { %v7879_v3 = vpop.eup %7878  ;;  %v3542_v44 = vadd.f32 %v3541_v63, %v3049_v58  ;;  %v5517_v63 = vunpack.c.l.b16 %v4149_v15 }
 0x36c   : > { %v4083_v62 = vpack.c.bf16 %v7879_v3, %v7879_v3  ;;  %v3543_v1 = vpop.f32.mrf.mxu1  ;;  %v7881_v4 = vpop.eup %7880  ;;  %7332 = vmatmul.msk.bf16.gmra.mxu3 %vm2532_vm5, %v9178_v54 }
 0x36d   : > { %7194 = vmatmul.msk.bf16.gmra.mxu0 %vm2532_vm5, %v7533_v37  ;;  %7884 = vtanh.f32 %v3542_v44  ;;  %v5516_v37 = vunpack.c.l.b16 %v4148_v12  ;;  %v7883_v13 = vpop.eup %7882  ;;  %v4150_v15 = vpack.c.bf16 %v7881_v4, %v7881_v4 }
 0x36e   : > { %v4275_v50 = vunpack.c.l.bf16 %v4083_v62  ;;  %v5451_v25 = vunpack.c.l.b16 %v4083_v62  ;;  %v12667_v62 = vld [vmem:[#allocation51_spill] sm:$0xff] }
 0x36f   : > { %v9509_v57 = vpack.c.b16 %v5517_v63, %v5516_v37  ;;  %v4342_v54 = vunpack.c.l.bf16 %v4150_v15 }
 0x370   : > { %v9498_v5 = vsub.f32 %v7879_v3, %v4275_v50  ;;  %v9502_v11 = vpack.c.b16 %v5451_v25, %v5450_v42  ;;  %v4151_v3 = vpack.c.bf16 %v7883_v13, %v7883_v13  ;;  %v3714_v50 = vadd.f32 %v9361_v26, %v12668_v10 }
 0x371   : > { %12666 = vst [vmem:[#allocation95_spill] sm:$0xff] %v9509_v57  ;;  %v9513_v12 = vpop.f32.mrf.mxu3  ;;  %v9523_v16 = vsub.f32 %v7881_v4, %v4342_v54 }
 0x372   : > { %12665 = vst [vmem:[#allocation94_spill] sm:$0xff] %v9502_v11  ;;  %v3051_v18 = vpop.f32.mrf.mxu0  ;;  %v5519_v22 = vunpack.c.l.b16 %v4151_v3 }
 0x373   : > { %v3544_v8 = vadd.f32 %v3543_v1, %v3051_v18  ;;  %v7885_v58 = vpop.eup %7884  ;;  %v3712_v1 = vadd.f32 %v9341_v2, %v12667_v62  ;;  %v4343_v18 = vunpack.c.l.bf16 %v4151_v3  ;;  %12669 = vst [vmem:[#allocation51_spill] sm:$0xff] %v9523_v16 }
 0x374   : > { %v3546_v51 = vpop.f32.mrf.mxu1  ;;  %v4084_v44 = vpack.c.bf16 %v7885_v58, %v7885_v58 }
 0x375   : > { %7886 = vtanh.f32 %v3544_v8  ;;  %v9525_v2 = vsub.f32 %v7883_v13, %v4343_v18  ;;  %v3719_v18 = vadd.f32 %v9381_v41, %v9063_v28 }
 0x376   : > { %v4276_v63 = vunpack.c.l.bf16 %v4084_v44  ;;  %7888 = vtanh.f32 %v3712_v1  ;;  %v5452_v62 = vunpack.c.l.b16 %v4084_v44 }
 0x377   : > { %7291 = vmatmul.msk.bf16.gmra.mxu1 %vm2532_vm5, %v7534_v27  ;;  %12670 = vst [vmem:[#allocation54_spill] sm:$0xff] %v9525_v2  ;;  %7890 = vtanh.f32 %v3714_v50 }
 0x378   : > { %v9527_v26 = vsub.f32 %v7885_v58, %v4276_v63  ;;  %v7535_v58 = vld [vmem:[%s12418_s1 + $0x1a8] sm:$0xff] }
 0x379   : > { %v9521_v8 = vpop.f32.mrf.mxu3 }
 0x37a   : > { %v3054_v38 = vpop.f32.mrf.mxu0 }
 0x37b   : > { %v7887_v30 = vpop.eup %7886  ;;  %v3547_v42 = vadd.f32 %v3546_v51, %v3054_v38 }
 0x37c   : > { %v4085_v25 = vpack.c.bf16 %v7887_v30, %v7887_v30  ;;  %v3548_v37 = vpop.f32.mrf.mxu1  ;;  %7333 = vmatmul.msk.bf16.gmra.mxu3 %vm2532_vm5, %v9220_v39 }
 0x37d   : > { %7195 = vmatmul.msk.bf16.gmra.mxu0 %vm2532_vm5, %v7534_v27  ;;  %v5518_v27 = vunpack.c.l.b16 %v4150_v15  ;;  %7892 = vtanh.f32 %v3547_v42  ;;  %v9546_v15 = vpop.f32.mrf.mxu2 }
 0x37e   : > { %v4277_v48 = vunpack.c.l.bf16 %v4085_v25  ;;  %v5453_v43 = vunpack.c.l.b16 %v4085_v25 }
 0x37f   : > { %v9540_v44 = vpack.c.b16 %v5519_v22, %v5518_v27 }
 0x380   : > { %v9529_v51 = vsub.f32 %v7887_v30, %v4277_v48  ;;  %v9533_v10 = vpack.c.b16 %v5453_v43, %v5452_v62  ;;  %v7889_v48 = vpop.eup %7888 }
 0x381   : > { %12672 = vst [vmem:[#allocation97_spill] sm:$0xff] %v9540_v44  ;;  %v7891_v50 = vpop.eup %7890  ;;  %v9544_v43 = vpop.f32.mrf.mxu3  ;;  %v4152_v42 = vpack.c.bf16 %v7889_v48, %v7889_v48 }
 0x382   : > { %12671 = vst [vmem:[#allocation96_spill] sm:$0xff] %v9533_v10  ;;  %v3056_v1 = vpop.f32.mrf.mxu0  ;;  %v4153_v25 = vpack.c.bf16 %v7891_v50, %v7891_v50 }
 0x383   : > { %v3549_v13 = vadd.f32 %v3548_v37, %v3056_v1  ;;  %v9549_v3 = vpop.eup %7892  ;;  %v12673_v37 = vld [vmem:[#allocation55_spill] sm:$0xff]  ;;  %v4344_v1 = vunpack.c.l.bf16 %v4152_v42 }
 0x384   : > { %v3551_v30 = vpop.f32.mrf.mxu1  ;;  %v3717_v22 = vadd.f32 %v9373_v9, %v12673_v37  ;;  %v9559_v39 = vpack.c.bf16 %v9549_v3, %v9549_v3 }
 0x385   : > { %7894 = vtanh.f32 %v3549_v13  ;;  %v4345_v13 = vunpack.c.l.bf16 %v4153_v25  ;;  %v9568_v37 = vpop.f32.mrf.mxu2  ;;  %v9570_v28 = vsub.f32 %v7889_v48, %v4344_v1  ;;  %v7536_v48 = vld [vmem:[%s12418_s1 + $0x1b0] sm:$0xff] }
 0x386   : > { %7896 = vtanh.f32 %v3717_v22  ;;  %v5454_v20 = vunpack.c.l.b16 %v9559_v39 }
 0x387   : > { %7292 = vmatmul.msk.bf16.gmra.mxu1 %vm2532_vm5, %v7535_v58  ;;  %12674 = vst [vmem:[#allocation55_spill] sm:$0xff] %v9570_v28  ;;  %v9572_v41 = vsub.f32 %v7891_v50, %v4345_v13  ;;  %7898 = vtanh.f32 %v3719_v18 }
 0x389   : > { %v9566_v9 = vpop.f32.mrf.mxu3  ;;  %12675 = vst [vmem:[#allocation98_spill] sm:$0xff] %v9572_v41 }
 0x38a   : > { %v3059_v63 = vpop.f32.mrf.mxu0 }
 0x38b   : > { %v9553_v54 = vpop.eup %7894  ;;  %v3552_v38 = vadd.f32 %v3551_v30, %v3059_v63  ;;  %v5521_v63 = vunpack.c.l.b16 %v4153_v25 }
 0x38c   : > { %v9563_v62 = vpack.c.bf16 %v9553_v54, %v9553_v54  ;;  %v3553_v27 = vpop.f32.mrf.mxu1  ;;  %v7897_v18 = vpop.eup %7896  ;;  %7334 = vmatmul.msk.bf16.gmra.mxu3 %vm2532_vm5, %v9272_v17 }
 0x38d   : > { %7196 = vmatmul.msk.bf16.gmra.mxu0 %vm2532_vm5, %v7535_v58  ;;  %7900 = vtanh.f32 %v3552_v38  ;;  %v5520_v58 = vunpack.c.l.b16 %v4152_v42  ;;  %v7899_v13 = vpop.eup %7898  ;;  %v9591_v42 = vpop.f32.mrf.mxu2 }
 0x38e   : > { %v5455_v35 = vunpack.c.l.b16 %v9563_v62 }
 0x38f   : > { %v9583_v50 = vpack.c.b16 %v5521_v63, %v5520_v58  ;;  %v4154_v63 = vpack.c.bf16 %v7897_v18, %v7897_v18 }
 0x390   : > { %v9578_v30 = vpack.c.b16 %v5455_v35, %v5454_v20  ;;  %v12678_v20 = vld [vmem:[#allocation57_spill] sm:$0xff] }
 0x391   : > { %12677 = vst [vmem:[#allocation100_spill] sm:$0xff] %v9583_v50  ;;  %v9587_v38 = vpop.f32.mrf.mxu3  ;;  %v3722_v35 = vadd.f32 %v9402_v7, %v12678_v20  ;;  %v4346_v32 = vunpack.c.l.bf16 %v4154_v63 }
 0x392   : > { %12676 = vst [vmem:[#allocation99_spill] sm:$0xff] %v9578_v30  ;;  %v3061_v22 = vpop.f32.mrf.mxu0  ;;  %v12688_v30 = vld [vmem:[#allocation62_spill] sm:$0xff] }
 0x393   : > { %v3554_v4 = vadd.f32 %v3553_v27, %v3061_v22  ;;  %v9593_v25 = vpop.eup %7900  ;;  %v12679_v27 = vld [vmem:[#allocation59_spill] sm:$0xff]  ;;  %v4155_v22 = vpack.c.bf16 %v7899_v13, %v7899_v13  ;;  %v9613_v6 = vsub.f32 %v7897_v18, %v4346_v32  ;;  %v7339_v32 = vld [vmem:[%s12419_s2 + $0x30] sm:$0xf0]  ;;  %v5522_v18 = vunpack.c.l.b16 %v4154_v63 }
 0x394   : > { %v3556_v1 = vpop.f32.mrf.mxu1  ;;  %v3724_v58 = vadd.f32 %v9416_v34, %v12679_v27  ;;  %v9600_v17 = vpack.c.bf16 %v9593_v25, %v9593_v25 }
 0x395   : > { %7902 = vtanh.f32 %v3554_v4  ;;  %v4347_v34 = vunpack.c.l.bf16 %v4155_v22  ;;  %12680 = vst [vmem:[#allocation57_spill] sm:$0xff] %v9613_v6 }
 0x396   : > { %7904 = vtanh.f32 %v3722_v35  ;;  %v9611_v35 = vpop.f32.mrf.mxu2 }
 0x397   : > { %7293 = vmatmul.msk.bf16.gmra.mxu1 %vm2532_vm5, %v7536_v48  ;;  %7906 = vtanh.f32 %v3724_v58  ;;  %v9615_v57 = vsub.f32 %v7899_v13, %v4347_v34  ;;  %v5456_v58 = vunpack.c.l.b16 %v9600_v17  ;;  %v5523_v13 = vunpack.c.l.b16 %v4155_v22 }
 0x399   : > { %v9609_v36 = vpop.f32.mrf.mxu3  ;;  %12681 = vst [vmem:[#allocation59_spill] sm:$0xff] %v9615_v57 }
 0x39a   : > { %v3064_v4 = vpop.f32.mrf.mxu0 }
 0x39b   : > { %v9602_v56 = vpop.eup %7902  ;;  %v3557_v27 = vadd.f32 %v3556_v1, %v3064_v4 }
 0x39c   : > { %v9606_v7 = vpack.c.bf16 %v9602_v56, %v9602_v56  ;;  %v3558_v20 = vpop.f32.mrf.mxu1  ;;  %v7905_v50 = vpop.eup %7904 }
 0x39d   : > { %7197 = vmatmul.msk.bf16.gmra.mxu0 %vm2532_vm5, %v7536_v48  ;;  %v7907_v1 = vpop.eup %7906  ;;  %7908 = vtanh.f32 %v3557_v27  ;;  %v7578_v48 = vld [vmem:[%s12419_s2 + $0x4] sm:$0xf]  ;;  %v9636_v27 = vpack.c.bf16 %v7905_v50, %v7905_v50 }
 0x39e   : > { %v5457_v44 = vunpack.c.l.b16 %v9606_v7  ;;  %v9629_v34 = vor.u32 %v7578_v48, %v7339_v32  ;;  %v9638_v47 = vpack.c.bf16 %v7907_v1, %v7907_v1  ;;  %v9641_v22 = vpop.f32.mrf.mxu2 }
 0x39f   : > { %12685 = vst [vmem:[#allocation104_spill] sm:$0xff] %v9636_v27 }
 0x3a0   : > { %v9621_v45 = vpack.c.b16 %v5457_v44, %v5456_v58  ;;  %12683 = vst [vmem:[#allocation102_spill] sm:$0xff] %v9629_v34  ;;  %v7537_v44 = vld [vmem:[%s12418_s1 + $0x1b8] sm:$0xff]  ;;  %v9634_v58 = vpack.c.b16 %v5523_v13, %v5522_v18  ;;  %4918 = vmatmul.bf16.vlgmr.msrb.gmra.mxu3 %v9629_v34  ;;  %v4349_v32 = vunpack.c.l.bf16 %v9638_v47  ;;  %v12687_v18 = vld [vmem:[#allocation60_spill] sm:$0xff] }
 0x3a1   : > { %12686 = vst [vmem:[#allocation105_spill] sm:$0xff] %v9638_v47  ;;  %v3751_v63 = vpop.f32.mrf.mxu3  ;;  %v3727_v13 = vadd.f32 %v9442_v60, %v12687_v18 }
 0x3a2   : > { %12682 = vst [vmem:[#allocation101_spill] sm:$0xff] %v9621_v45  ;;  %v3066_v4 = vpop.f32.mrf.mxu0  ;;  %v3729_v45 = vadd.f32 %v9456_v59, %v12688_v30  ;;  %v9660_v52 = vsub.f32 %v7907_v1, %v4349_v32  ;;  %v9687_v16 = vadd.f32 %v3751_v63, %v9546_v15 }
 0x3a3   : > { %v3559_v11 = vadd.f32 %v3558_v20, %v3066_v4  ;;  %12684 = vst [vmem:[#allocation103_spill] sm:$0xff] %v9634_v58  ;;  %v9643_v48 = vpop.eup %7908  ;;  %v4348_v20 = vunpack.c.l.bf16 %v9636_v27 }
 0x3a4   : > { %v3561_v10 = vpop.f32.mrf.mxu1  ;;  %v9652_v4 = vpack.c.bf16 %v9643_v48, %v9643_v48 }
 0x3a5   : > { %7910 = vtanh.f32 %v3559_v11  ;;  %v9658_v61 = vsub.f32 %v7905_v50, %v4348_v20 }
 0x3a6   : > { %7912 = vtanh.f32 %v3727_v13  ;;  %v9667_v18 = vpop.f32.mrf.mxu2  ;;  %v5458_v0 = vunpack.c.l.b16 %v9652_v4 }
 0x3a7   : > { %7294 = vmatmul.msk.bf16.gmra.mxu1 %vm2532_vm5, %v7537_v44 }
 0x3a9   : > { %v9665_v60 = vpop.f32.mrf.mxu3 }
 0x3aa   : > { %v3069_v11 = vpop.f32.mrf.mxu0 }
 0x3ab   : > { %v9654_v58 = vpop.eup %7910  ;;  %v3562_v34 = vadd.f32 %v3561_v10, %v3069_v11  ;;  %v12690_v10 = vld [vmem:[#allocation63_spill] sm:$0xff] }
 0x3ac   : > { %v4091_v47 = vpack.c.bf16 %v9654_v58, %v9654_v58  ;;  %v3563_v27 = vpop.f32.mrf.mxu1  ;;  %v7913_v1 = vpop.eup %7912 }
 0x3ad   : > { %7198 = vmatmul.msk.bf16.gmra.mxu0 %vm2532_vm5, %v7537_v44  ;;  %7914 = vtanh.f32 %v3562_v34  ;;  %v7538_v44 = vld [vmem:[%s12418_s1 + $0x1c0] sm:$0xff] }
 0x3ae   : > { %v5459_v59 = vunpack.c.l.b16 %v4091_v47  ;;  %7916 = vtanh.f32 %v3729_v45  ;;  %v9679_v46 = vpop.f32.mrf.mxu2  ;;  %v4283_v41 = vunpack.c.l.bf16 %v4091_v47  ;;  %v7385_v47 = vld [vmem:[%s12419_s2 + $0x60] sm:$0xf] }
 0x3b0   : > { %v9672_v30 = vpack.c.b16 %v5459_v59, %v5458_v0  ;;  %v4158_v0 = vpack.c.bf16 %v7913_v1, %v7913_v1 }
 0x3b1   : > { %v9677_v11 = vpop.f32.mrf.mxu3 }
 0x3b2   : > { %12689 = vst [vmem:[#allocation60_spill] sm:$0xff] %v9672_v30  ;;  %v3071_v50 = vpop.f32.mrf.mxu0  ;;  %v4350_v2 = vunpack.c.l.bf16 %v4158_v0 }
 0x3b3   : > { %v3564_v20 = vadd.f32 %v3563_v27, %v3071_v50  ;;  %v7915_v32 = vpop.eup %7914  ;;  %v3732_v27 = vadd.f32 %v9482_v21, %v12690_v10 }
 0x3b4   : > { %v3566_v34 = vpop.f32.mrf.mxu1  ;;  %v7917_v13 = vpop.eup %7916  ;;  %v4092_v45 = vpack.c.bf16 %v7915_v32, %v7915_v32  ;;  %v9694_v33 = vsub.f32 %v7913_v1, %v4350_v2  ;;  %v5526_v1 = vunpack.c.l.b16 %v4158_v0 }
 0x3b5   : > { %7918 = vtanh.f32 %v3564_v20  ;;  %v4159_v59 = vpack.c.bf16 %v7917_v13, %v7917_v13 }
 0x3b6   : > { %v4284_v24 = vunpack.c.l.bf16 %v4092_v45  ;;  %7920 = vtanh.f32 %v3732_v27  ;;  %v9692_v10 = vpop.f32.mrf.mxu2  ;;  %12692 = vst [vmem:[#allocation62_spill] sm:$0xff] %v9694_v33  ;;  %v4282_v27 = vunpack.c.l.bf16 %v9652_v4  ;;  %v4475_v4 = vsub.f32 %v9654_v58, %v4283_v41 }
 0x3b7   : > { %7295 = vmatmul.msk.bf16.gmra.mxu1 %vm2532_vm5, %v7538_v44  ;;  %v4351_v28 = vunpack.c.l.bf16 %v4159_v59  ;;  %v9723_v41 = vadd.f32 %v9665_v60, %v9568_v37  ;;  %v12697_v60 = vld [vmem:[#allocation69_spill] sm:$0xff] }
 0x3b8   : > { %v4476_v63 = vsub.f32 %v7915_v32, %v4284_v24  ;;  %v5527_v24 = vunpack.c.l.b16 %v4159_v59  ;;  %v4281_v32 = vunpack.c.l.bf16 %v9606_v7  ;;  %v4474_v0 = vsub.f32 %v9643_v48, %v4282_v27 }
 0x3b9   : > { %v9690_v6 = vpop.f32.mrf.mxu3  ;;  %v9696_v31 = vsub.f32 %v7917_v13, %v4351_v28  ;;  %v4280_v59 = vunpack.c.l.bf16 %v9600_v17  ;;  %v4279_v7 = vunpack.c.l.bf16 %v9563_v62  ;;  %v4278_v17 = vunpack.c.l.bf16 %v9559_v39 }
 0x3ba   : > { %v3074_v50 = vpop.f32.mrf.mxu0  ;;  %v3737_v62 = vadd.f32 %v9513_v12, %v12697_v60 }
 0x3bb   : > { %v7919_v30 = vpop.eup %7918  ;;  %v3567_v19 = vadd.f32 %v3566_v34, %v3074_v50  ;;  %12693 = vst [vmem:[#allocation63_spill] sm:$0xff] %v9696_v31  ;;  %v5460_v34 = vunpack.c.l.b16 %v4092_v45  ;;  %v4472_v37 = vsub.f32 %v9593_v25, %v4280_v59  ;;  %v9742_v25 = vadd.f32 %v9677_v11, %v9591_v42  ;;  %v7433_v11 = vld [vmem:[%s12419_s2 + $0xc0] sm:$0xf] }
 0x3bc   : > { %v4093_v20 = vpack.c.bf16 %v7919_v30, %v7919_v30  ;;  %v3568_v49 = vpop.f32.mrf.mxu1  ;;  %v7921_v13 = vpop.eup %7920 }
 0x3bd   : > { %7199 = vmatmul.msk.bf16.gmra.mxu0 %vm2532_vm5, %v7538_v44  ;;  %7922 = vtanh.f32 %v3567_v19  ;;  %v7596_v19 = vld [vmem:[%s12419_s2 + $0x8c] sm:$0xf0]  ;;  %v4160_v48 = vpack.c.bf16 %v7921_v13, %v7921_v13 }
 0x3be   : > { %v4285_v21 = vunpack.c.l.bf16 %v4093_v20  ;;  %7924 = vtanh.f32 %v3734_v14  ;;  %v5461_v15 = vunpack.c.l.b16 %v4093_v20  ;;  %v9707_v28 = vor.u32 %v7596_v19, %v7385_v47  ;;  %v7539_v20 = vld [vmem:[%s12418_s1 + $0x1c8] sm:$0xff]  ;;  %v9729_v47 = vpop.f32.mrf.mxu2 }
 0x3bf   : > { %v4352_v12 = vunpack.c.l.bf16 %v4160_v48  ;;  %v5528_v60 = vunpack.c.l.b16 %v4160_v48  ;;  %v12704_v48 = vpack.c.bf16 %v9529_v51, %v9527_v26  ;;  %v12706_v26 = vld [vmem:[#allocation75_spill] sm:$0xff] }
 0x3c0   : > { %v4477_v50 = vsub.f32 %v7919_v30, %v4285_v21  ;;  %12694 = vst [vmem:[#allocation68_spill] sm:$0xff] %v9707_v28  ;;  %v9709_v14 = vpack.c.b16 %v5461_v15, %v5460_v34  ;;  %4899 = vmatmul.bf16.gmra.mxu2 %v9707_v28  ;;  %v9717_v21 = vpack.c.b16 %v5527_v24, %v5526_v1 }
 0x3c1   : > { %v9726_v58 = vpop.f32.mrf.mxu3  ;;  %v4471_v1 = vsub.f32 %v9553_v54, %v4279_v7  ;;  %v3742_v51 = vadd.f32 %v9544_v43, %v12706_v26  ;;  %v7345_v26 = vld [vmem:[%s12419_s2 + $0x8] sm:$0xf] }
 0x3c2   : > { %12695 = vst [vmem:[#allocation106_spill] sm:$0xff] %v9709_v14  ;;  %v3076_v30 = vpop.f32.mrf.mxu0  ;;  %v4621_v44 = vpack.c.bf16 %v4477_v50, %v4476_v63  ;;  %v4620_v63 = vpack.c.bf16 %v4475_v4, %v4474_v0  ;;  %v4473_v50 = vsub.f32 %v9602_v56, %v4281_v32 }
 0x3c3   : > { %v3569_v45 = vadd.f32 %v3568_v49, %v3076_v30  ;;  %12696 = vst [vmem:[#allocation107_spill] sm:$0xff] %v9717_v21  ;;  %v7923_v34 = vpop.eup %7922 }
 0x3c4   : > { %v3571_v15 = vpop.f32.mrf.mxu1  ;;  %5006 = vmatpush.bf16.msrb.mxu3 %v4621_v44  ;;  %v7925_v49 = vpop.eup %7924  ;;  %v4094_v19 = vpack.c.bf16 %v7923_v34, %v7923_v34  ;;  %v4619_v30 = vpack.c.bf16 %v4473_v50, %v4472_v37  ;;  %v12698_v44 = vld [vmem:[#allocation74_spill] sm:$0xff] }
 0x3c5   : > { %7926 = vtanh.f32 %v3569_v45  ;;  %v4161_v27 = vpack.c.bf16 %v7925_v49, %v7925_v49  ;;  %v3739_v4 = vadd.f32 %v9521_v8, %v12698_v44  ;;  %v4470_v45 = vsub.f32 %v9549_v3, %v4278_v17 }
 0x3c6   : > { %v4286_v39 = vunpack.c.l.bf16 %v4094_v19  ;;  %7928 = vtanh.f32 %v3737_v62  ;;  %v9747_v8 = vpop.f32.mrf.mxu2  ;;  %v5462_v50 = vunpack.c.l.b16 %v4094_v19 }
 0x3c7   : > { %7296 = vmatmul.msk.bf16.gmra.mxu1 %vm2532_vm5, %v7539_v20  ;;  %v4353_v59 = vunpack.c.l.bf16 %v4161_v27  ;;  %v4618_v54 = vpack.c.bf16 %v4471_v1, %v4470_v45  ;;  %v5529_v62 = vunpack.c.l.b16 %v4161_v27  ;;  %v9782_v27 = vadd.f32 %v9690_v6, %v9611_v35 }
 0x3c8   : > { %5007 = vmatpush.bf16.msrb.mxu3 %v4620_v63  ;;  %v9759_v17 = vsub.f32 %v7923_v34, %v4286_v39  ;;  %v7540_v34 = vld [vmem:[%s12418_s1 + $0x1d0] sm:$0xff] }
 0x3c9   : > { %v9745_v7 = vpop.f32.mrf.mxu3  ;;  %v9751_v63 = vsub.f32 %v7925_v49, %v4353_v59 }
 0x3ca   : > { %v3079_v24 = vpop.f32.mrf.mxu0 }
 0x3cb   : > { %v7927_v56 = vpop.eup %7926  ;;  %v3572_v32 = vadd.f32 %v3571_v15, %v3079_v24  ;;  %v9749_v15 = vsub.f32 %v7921_v13, %v4352_v12  ;;  %12700 = vst [vmem:[#allocation74_spill] sm:$0xff] %v9751_v63 }
 0x3cc   : > { %v4095_v0 = vpack.c.bf16 %v7927_v56, %v7927_v56  ;;  %v3573_v2 = vpop.f32.mrf.mxu1  ;;  %5008 = vmatpush.bf16.msrb.mxu3 %v4619_v30  ;;  %v7929_v30 = vpop.eup %7928 }
 0x3cd   : > { %7200 = vmatmul.msk.bf16.gmra.mxu0 %vm2532_vm5, %v7539_v20  ;;  %7930 = vtanh.f32 %v3572_v32  ;;  %12699 = vst [vmem:[#allocation69_spill] sm:$0xff] %v9749_v15  ;;  %v7608_v20 = vld [vmem:[%s12419_s2 + $0xec] sm:$0xf0]  ;;  %v4162_v12 = vpack.c.bf16 %v7929_v30, %v7929_v30 }
 0x3ce   : > { %v4287_v3 = vunpack.c.l.bf16 %v4095_v0  ;;  %7932 = vtanh.f32 %v3739_v4  ;;  %v5463_v42 = vunpack.c.l.b16 %v4095_v0  ;;  %v9765_v49 = vor.u32 %v7608_v20, %v7433_v11  ;;  %v9786_v39 = vpop.f32.mrf.mxu2  ;;  %v7401_v15 = vld [vmem:[%s12419_s2 + $0x70] sm:$0xf] }
 0x3d0   : > { %5009 = vmatpush.bf16.msrb.mxu3 %v4618_v54  ;;  %v9761_v37 = vsub.f32 %v7927_v56, %v4287_v3  ;;  %12701 = vst [vmem:[#allocation108_spill] sm:$0xff] %v9765_v49  ;;  %v9767_v19 = vpack.c.b16 %v5463_v42, %v5462_v50  ;;  %4904 = vmatmul.bf16.gmra.mxu2 %v9765_v49  ;;  %v12707_v3 = vld [vmem:[#allocation80_spill] sm:$0xff] }
 0x3d1   : > { %v9775_v56 = vpack.c.b16 %v5529_v62, %v5528_v60  ;;  %v12705_v54 = vpack.c.bf16 %v9498_v5, %v9496_v53  ;;  %v3744_v50 = vadd.f32 %v9566_v9, %v12707_v3  ;;  %v12708_v62 = vpack.c.bf16 %v9467_v23, %v9465_v29  ;;  %v7387_v29 = vld [vmem:[%s12419_s2 + $0x90] sm:$0xf0] }
 0x3d2   : > { %12702 = vst [vmem:[#allocation109_spill] sm:$0xff] %v9767_v19  ;;  %v3081_v1 = vpop.f32.mrf.mxu0  ;;  %v9801_v53 = vadd.f32 %v9726_v58, %v9641_v22  ;;  %v4354_v5 = vunpack.c.l.bf16 %v4162_v12 }
 0x3d3   : > { %v3574_v44 = vadd.f32 %v3573_v2, %v3081_v1  ;;  %12703 = vst [vmem:[#allocation110_spill] sm:$0xff] %v9775_v56  ;;  %v7931_v4 = vpop.eup %7930  ;;  %v9784_v2 = vpop.f32.mrf.mxu3 }
 0x3d4   : > { %v3576_v32 = vpop.f32.mrf.mxu1  ;;  %5010 = vmatpush.bf16.msrb.mxu3 %v12704_v48  ;;  %v7933_v45 = vpop.eup %7932  ;;  %v4096_v0 = vpack.c.bf16 %v7931_v4, %v7931_v4  ;;  %v9814_v22 = vsub.f32 %v7929_v30, %v4354_v5  ;;  %v7585_v30 = vld [vmem:[%s12419_s2 + $0x34] sm:$0xf0] }
 0x3d5   : > { %7934 = vtanh.f32 %v3574_v44  ;;  %v4163_v59 = vpack.c.bf16 %v7933_v45, %v7933_v45  ;;  %v7590_v44 = vld [vmem:[%s12419_s2 + $0x64] sm:$0xf] }
 0x3d6   : > { %v4288_v11 = vunpack.c.l.bf16 %v4096_v0  ;;  %7936 = vtanh.f32 %v3742_v51  ;;  %v9806_v9 = vpop.f32.mrf.mxu2  ;;  %12709 = vst [vmem:[#allocation75_spill] sm:$0xff] %v9814_v22  ;;  %v7545_v22 = vld [vmem:[%s12418_s1 + $0x1f8] sm:$0xff] }
 0x3d7   : > { %7297 = vmatmul.msk.bf16.gmra.mxu1 %vm2532_vm5, %v7540_v34  ;;  %v4355_v1 = vunpack.c.l.bf16 %v4163_v59  ;;  %v5531_v3 = vunpack.c.l.b16 %v4163_v59 }
 0x3d8   : > { %5011 = vmatpush.bf16.msrb.mxu3 %v12705_v54  ;;  %v12712_v54 = vpack.c.bf16 %v9424_v55, %v9422_v40  ;;  %v9829_v51 = vsub.f32 %v7931_v4, %v4288_v11  ;;  %v5530_v55 = vunpack.c.l.b16 %v4162_v12  ;;  %v9850_v12 = vadd.f32 %v9745_v7, %v9667_v18 }
 0x3d9   : > { %v9816_v58 = vsub.f32 %v7933_v45, %v4355_v1 }
 0x3da   : > { %v3084_v6 = vpop.f32.mrf.mxu0  ;;  %v9846_v11 = vpack.c.b16 %v5531_v3, %v5530_v55 }
 0x3db   : > { %v7935_v35 = vpop.eup %7934  ;;  %v3577_v42 = vadd.f32 %v3576_v32, %v3084_v6  ;;  %v9804_v43 = vpop.f32.mrf.mxu3  ;;  %12710 = vst [vmem:[#allocation80_spill] sm:$0xff] %v9816_v58  ;;  %v5464_v32 = vunpack.c.l.b16 %v4096_v0  ;;  %v9835_v6 = vor.u32 %v7585_v30, %v7345_v26  ;;  %v12717_v30 = vld [vmem:[#allocation88_spill] sm:$0xff] }
 0x3dc   : > { %v4097_v20 = vpack.c.bf16 %v7935_v35, %v7935_v35  ;;  %v3578_v60 = vpop.f32.mrf.mxu1  ;;  %5012 = vmatpush.bf16.msrb.mxu3 %v12708_v62  ;;  %12715 = vst [vmem:[#allocation114_spill] sm:$0xff] %v9846_v11  ;;  %v3749_v18 = vadd.f32 %v9609_v36, %v12717_v30  ;;  %v7602_v36 = vld [vmem:[%s12419_s2 + $0xc4] sm:$0xf]  ;;  %v7393_v30 = vld [vmem:[%s12419_s2 + $0x68] sm:$0xf] }
 0x3dd   : > { %7201 = vmatmul.msk.bf16.gmra.mxu0 %vm2532_vm5, %v7540_v34  ;;  %7938 = vtanh.f32 %v3577_v42  ;;  %v9818_v34 = vor.u32 %v7590_v44, %v7387_v29  ;;  %12713 = vst [vmem:[#allocation112_spill] sm:$0xff] %v9835_v6 }
 0x3de   : > { %v4289_v23 = vunpack.c.l.bf16 %v4097_v20  ;;  %7940 = vtanh.f32 %v3744_v50  ;;  %v5465_v48 = vunpack.c.l.b16 %v4097_v20  ;;  %v7937_v20 = vpop.eup %7936  ;;  %v9854_v44 = vpop.f32.mrf.mxu2 }
 0x3df   : > { %12711 = vst [vmem:[#allocation111_spill] sm:$0xff] %v9818_v34  ;;  %4923 = vmatmul.bf16.gmra.mxu3 %v9818_v34  ;;  %v4164_v29 = vpack.c.bf16 %v7937_v20, %v7937_v20 }
 0x3e0   : > { %5013 = vmatpush.bf16.msrb.mxu3 %v12712_v54  ;;  %v9831_v45 = vsub.f32 %v7935_v35, %v4289_v23  ;;  %v9838_v40 = vpack.c.b16 %v5465_v48, %v5464_v32  ;;  %v7541_v35 = vld [vmem:[%s12418_s1 + $0x1d8] sm:$0xff]  ;;  %4942 = vmatmul.bf16.vlgmr.msra.gmra.mxu2 %v9835_v6  ;;  %v12716_v32 = vld [vmem:[#allocation32_spill] sm:$0xff] }
 0x3e1   : > { %v3747_v48 = vadd.f32 %v9587_v38, %v12716_v32  ;;  %v4356_v13 = vunpack.c.l.bf16 %v4164_v29  ;;  %v7544_v6 = vld [vmem:[%s12418_s1 + $0x1f0] sm:$0xff] }
 0x3e2   : > { %12714 = vst [vmem:[#allocation113_spill] sm:$0xff] %v9838_v40  ;;  %v3086_v50 = vpop.f32.mrf.mxu0 }
 0x3e3   : > { %v3579_v4 = vadd.f32 %v3578_v60, %v3086_v50  ;;  %v7939_v62 = vpop.eup %7938  ;;  %v9852_v1 = vpop.f32.mrf.mxu3 }
 0x3e4   : > { %v3581_v5 = vpop.f32.mrf.mxu1  ;;  %v7941_v59 = vpop.eup %7940  ;;  %v4098_v60 = vpack.c.bf16 %v7939_v62, %v7939_v62 }
 0x3e5   : > { %7942 = vtanh.f32 %v3579_v4  ;;  %v4165_v23 = vpack.c.bf16 %v7941_v59, %v7941_v59  ;;  %v9863_v4 = vadd.f32 %v9784_v2, %v9679_v46  ;;  %v9876_v2 = vsub.f32 %v7937_v20, %v4356_v13 }
 0x3e6   : > { %v4290_v55 = vunpack.c.l.bf16 %v4098_v60  ;;  %7944 = vtanh.f32 %v3747_v48  ;;  %v9868_v38 = vpop.f32.mrf.mxu2  ;;  %v5466_v48 = vunpack.c.l.b16 %v4098_v60 }
 0x3e7   : > { %7298 = vmatmul.msk.bf16.gmra.mxu1 %vm2532_vm5, %v7541_v35  ;;  %v4357_v0 = vunpack.c.l.bf16 %v4165_v23  ;;  %12718 = vst [vmem:[#allocation32_spill] sm:$0xff] %v9876_v2 }
 0x3e8   : > { %v9888_v42 = vsub.f32 %v7939_v62, %v4290_v55 }
 0x3e9   : > { %v9878_v32 = vsub.f32 %v7941_v59, %v4357_v0  ;;  %v5532_v59 = vunpack.c.l.b16 %v4164_v29 }
 0x3ea   : > { %v3089_v54 = vpop.f32.mrf.mxu0 }
 0x3eb   : > { %v7943_v26 = vpop.eup %7942  ;;  %v3582_v7 = vadd.f32 %v3581_v5, %v3089_v54  ;;  %v9866_v24 = vpop.f32.mrf.mxu3  ;;  %v7435_v5 = vld [vmem:[%s12419_s2 + $0xf0] sm:$0xf0]  ;;  %12719 = vst [vmem:[#allocation88_spill] sm:$0xff] %v9878_v32 }
 0x3ec   : > { %v4099_v3 = vpack.c.bf16 %v7943_v26, %v7943_v26  ;;  %v3583_v50 = vpop.f32.mrf.mxu1 }
 0x3ed   : > { %7202 = vmatmul.msk.bf16.gmra.mxu0 %vm2532_vm5, %v7541_v35  ;;  %7946 = vtanh.f32 %v3582_v7  ;;  %v9880_v35 = vor.u32 %v7602_v36, %v7435_v5  ;;  %v7597_v7 = vld [vmem:[%s12419_s2 + $0x94] sm:$0xf0]  ;;  %v7945_v36 = vpop.eup %7944 }
 0x3ee   : > { %v4291_v46 = vunpack.c.l.bf16 %v4099_v3  ;;  %7948 = vtanh.f32 %v3749_v18  ;;  %v5467_v54 = vunpack.c.l.b16 %v4099_v3  ;;  %v9894_v0 = vor.u32 %v7597_v7, %v7393_v30 }
 0x3ef   : > { %12720 = vst [vmem:[#allocation115_spill] sm:$0xff] %v9880_v35  ;;  %4928 = vmatmul.bf16.gmra.mxu3 %v9880_v35  ;;  %v5533_v3 = vunpack.c.l.b16 %v4165_v23  ;;  %v9911_v23 = vpop.f32.mrf.mxu2  ;;  %v4166_v30 = vpack.c.bf16 %v7945_v36, %v7945_v36 }
 0x3f0   : > { %v9890_v21 = vsub.f32 %v7943_v26, %v4291_v46  ;;  %12721 = vst [vmem:[#allocation116_spill] sm:$0xff] %v9894_v0  ;;  %v9897_v20 = vpack.c.b16 %v5467_v54, %v5466_v48  ;;  %v7542_v26 = vld [vmem:[%s12418_s1 + $0x1e0] sm:$0xff]  ;;  %4947 = vmatmul.bf16.gmra.mxu2 %v9894_v0  ;;  %v9907_v46 = vadd.f32 %v9804_v43, %v9692_v10  ;;  %v7609_v0 = vld [vmem:[%s12419_s2 + $0xf4] sm:$0xf0] }
 0x3f1   : > { %v9909_v29 = vpack.c.b16 %v5533_v3, %v5532_v59  ;;  %v9916_v10 = vadd.f32 %v9852_v1, %v9729_v47  ;;  %v4358_v43 = vunpack.c.l.bf16 %v4166_v30 }
 0x3f2   : > { %12722 = vst [vmem:[#allocation117_spill] sm:$0xff] %v9897_v20  ;;  %v3091_v60 = vpop.f32.mrf.mxu0  ;;  %v7441_v20 = vld [vmem:[%s12419_s2 + $0xc8] sm:$0xf] }
 0x3f3   : > { %v3584_v62 = vadd.f32 %v3583_v50, %v3091_v60  ;;  %v7947_v55 = vpop.eup %7946  ;;  %12723 = vst [vmem:[#allocation118_spill] sm:$0xff] %v9909_v29  ;;  %v3776_v54 = vpop.f32.mrf.mxu3  ;;  %v9930_v1 = vsub.f32 %v7945_v36, %v4358_v43 }
 0x3f4   : > { %v3586_v5 = vpop.f32.mrf.mxu1  ;;  %v7949_v48 = vpop.eup %7948  ;;  %v4100_v50 = vpack.c.bf16 %v7947_v55, %v7947_v55 }
 0x3f5   : > { %7950 = vtanh.f32 %v3584_v62  ;;  %v4167_v7 = vpack.c.bf16 %v7949_v48, %v7949_v48  ;;  %12724 = vst [vmem:[#allocation119_spill] sm:$0xff] %v9930_v1 }
 0x3f6   : > { %v4292_v56 = vunpack.c.l.bf16 %v4100_v50  ;;  %7952 = vtanh.f32 %v9687_v16  ;;  %v5468_v16 = vunpack.c.l.b16 %v4100_v50  ;;  %v5534_v50 = vunpack.c.l.b16 %v4166_v30 }
 0x3f7   : > { %7299 = vmatmul.msk.bf16.gmra.mxu1 %vm2532_vm5, %v7542_v26  ;;  %v4359_v59 = vunpack.c.l.bf16 %v4167_v7  ;;  %v9922_v62 = vpop.f32.mrf.mxu2  ;;  %7954 = vtanh.f32 %v9723_v41  ;;  %v9949_v41 = vor.u32 %v7609_v0, %v7441_v20  ;;  %v5535_v43 = vunpack.c.l.b16 %v4167_v7 }
 0x3f8   : > { %v9943_v35 = vsub.f32 %v7947_v55, %v4292_v56 }
 0x3f9   : > { %v9932_v29 = vsub.f32 %v7949_v48, %v4359_v59  ;;  %12727 = vst [vmem:[#allocation122_spill] sm:$0xff] %v9949_v41  ;;  %v9960_v0 = vpack.c.b16 %v5535_v43, %v5534_v50 }
 0x3fa   : > { %v3094_v60 = vpop.f32.mrf.mxu0 }
 0x3fb   : > { %v7951_v13 = vpop.eup %7950  ;;  %v3587_v18 = vadd.f32 %v3586_v5, %v3094_v60  ;;  %v9919_v3 = vpop.f32.mrf.mxu3  ;;  %v7579_v5 = vld [vmem:[%s12419_s2 + $0xc] sm:$0xf]  ;;  %v7347_v60 = vld [vmem:[%s12419_s2 + $0x38] sm:$0xf0]  ;;  %12725 = vst [vmem:[#allocation120_spill] sm:$0xff] %v9932_v29 }
 0x3fc   : > { %v4101_v11 = vpack.c.bf16 %v7951_v13, %v7951_v13  ;;  %v3588_v19 = vpop.f32.mrf.mxu1  ;;  %12729 = vst [vmem:[#allocation124_spill] sm:$0xff] %v9960_v0  ;;  %v7953_v20 = vpop.eup %7952 }
 0x3fd   : > { %7203 = vmatmul.msk.bf16.gmra.mxu0 %vm2532_vm5, %v7542_v26  ;;  %v9935_v26 = vor.u32 %v7579_v5, %v7347_v60  ;;  %7956 = vtanh.f32 %v3587_v18  ;;  %v7955_v18 = vpop.eup %7954  ;;  %v4168_v60 = vpack.c.bf16 %v7953_v20, %v7953_v20 }
 0x3fe   : > { %v4293_v47 = vunpack.c.l.bf16 %v4101_v11  ;;  %v5469_v40 = vunpack.c.l.b16 %v4101_v11 }
 0x3ff   : > { %12726 = vst [vmem:[#allocation121_spill] sm:$0xff] %v9935_v26  ;;  %4966 = vmatmul.bf16.vlgmr.msra.gmra.mxu3 %v9935_v26  ;;  %v9968_v7 = vpop.f32.mrf.mxu2  ;;  %v4360_v48 = vunpack.c.l.bf16 %v4168_v60 }
 0x400   : > { %v9945_v36 = vsub.f32 %v7951_v13, %v4293_v47  ;;  %v9952_v11 = vpack.c.b16 %v5469_v40, %v5468_v16  ;;  %v7543_v13 = vld [vmem:[%s12418_s1 + $0x1e8] sm:$0xff]  ;;  %4952 = vmatmul.bf16.gmra.mxu2 %v9949_v41  ;;  %v9964_v40 = vadd.f32 %v9866_v24, %v9747_v8  ;;  %v4169_v47 = vpack.c.bf16 %v7955_v18, %v7955_v18 }
 0x402   : > { %12728 = vst [vmem:[#allocation123_spill] sm:$0xff] %v9952_v11  ;;  %v3096_v59 = vpop.f32.mrf.mxu0  ;;  %v4361_v5 = vunpack.c.l.bf16 %v4169_v47  ;;  %v7353_v11 = vld [vmem:[%s12419_s2 + $0x10] sm:$0xf] }
 0x403   : > { %v3589_v56 = vadd.f32 %v3588_v19, %v3096_v59  ;;  %v9966_v30 = vpop.f32.mrf.mxu3  ;;  %v9971_v19 = vpop.eup %7956 }
 0x404   : > { %v3591_v55 = vpop.f32.mrf.mxu1  ;;  %v9977_v43 = vpack.c.bf16 %v9971_v19, %v9971_v19  ;;  %v10070_v31 = vadd.f32 %v9966_v30, %v9854_v44 }
 0x405   : > { %7958 = vtanh.f32 %v3589_v56  ;;  %v9984_v56 = vadd.f32 %v3776_v54, %v9786_v39  ;;  %v9998_v39 = vsub.f32 %v7953_v20, %v4360_v48  ;;  %v10000_v54 = vsub.f32 %v7955_v18, %v4361_v5  ;;  %v7586_v48 = vld [vmem:[%s12419_s2 + $0x3c] sm:$0xf0] }
 0x406   : > { %7960 = vtanh.f32 %v9742_v25  ;;  %v5470_v25 = vunpack.c.l.b16 %v9977_v43  ;;  %v10015_v20 = vor.u32 %v7586_v48, %v7353_v11  ;;  %v5536_v18 = vunpack.c.l.b16 %v4168_v60 }
 0x407   : > { %7300 = vmatmul.msk.bf16.gmra.mxu1 %vm2532_vm5, %v7543_v13  ;;  %v9990_v41 = vpop.f32.mrf.mxu2  ;;  %12730 = vst [vmem:[#allocation125_spill] sm:$0xff] %v9998_v39  ;;  %7962 = vtanh.f32 %v9782_v27 }
 0x408   : > { %12731 = vst [vmem:[#allocation126_spill] sm:$0xff] %v10000_v54 }
 0x409   : > { %12733 = vst [vmem:[#allocation128_spill] sm:$0xff] %v10015_v20 }
 0x40a   : > { %v3099_v16 = vpop.f32.mrf.mxu0 }
 0x40b   : > { %v9973_v50 = vpop.eup %7958  ;;  %v3592_v8 = vadd.f32 %v3591_v55, %v3099_v16  ;;  %v9987_v0 = vpop.f32.mrf.mxu3  ;;  %v7591_v55 = vld [vmem:[%s12419_s2 + $0x6c] sm:$0xf]  ;;  %v7395_v16 = vld [vmem:[%s12419_s2 + $0x98] sm:$0xf0] }
 0x40c   : > { %v9981_v24 = vpack.c.bf16 %v9973_v50, %v9973_v50  ;;  %v3593_v59 = vpop.f32.mrf.mxu1  ;;  %v7961_v49 = vpop.eup %7960 }
 0x40d   : > { %7204 = vmatmul.msk.bf16.gmra.mxu0 %vm2532_vm5, %v7543_v13  ;;  %v10003_v13 = vor.u32 %v7591_v55, %v7395_v16  ;;  %7964 = vtanh.f32 %v3592_v8  ;;  %v5537_v55 = vunpack.c.l.b16 %v4169_v47  ;;  %v7963_v11 = vpop.eup %7962  ;;  %v4170_v47 = vpack.c.bf16 %v7961_v49, %v7961_v49 }
 0x40e   : > { %v5471_v26 = vunpack.c.l.b16 %v9981_v24 }
 0x40f   : > { %12732 = vst [vmem:[#allocation127_spill] sm:$0xff] %v10003_v13  ;;  %4971 = vmatmul.bf16.gmra.mxu3 %v10003_v13  ;;  %v10024_v34 = vpack.c.b16 %v5537_v55, %v5536_v18  ;;  %v10030_v60 = vpop.f32.mrf.mxu2  ;;  %v5538_v44 = vunpack.c.l.b16 %v4170_v47 }
 0x410   : > { %v10018_v27 = vpack.c.b16 %v5471_v26, %v5470_v25  ;;  %4990 = vmatmul.bf16.vlgmr.msrb.gmra.mxu2 %v10015_v20  ;;  %v10035_v25 = vadd.f32 %v9919_v3, %v9806_v9  ;;  %v4362_v20 = vunpack.c.l.bf16 %v4170_v47 }
 0x411   : > { %12735 = vst [vmem:[#allocation130_spill] sm:$0xff] %v10024_v34 }
 0x412   : > { %12734 = vst [vmem:[#allocation129_spill] sm:$0xff] %v10018_v27  ;;  %v3101_v8 = vpop.f32.mrf.mxu0  ;;  %v7603_v27 = vld [vmem:[%s12419_s2 + $0xcc] sm:$0xf]  ;;  %v10060_v14 = vsub.f32 %v7961_v49, %v4362_v20  ;;  %v7598_v49 = vld [vmem:[%s12419_s2 + $0x9c] sm:$0xf0] }
 0x413   : > { %v3594_v16 = vadd.f32 %v3593_v59, %v3101_v8  ;;  %v10026_v48 = vpop.f32.mrf.mxu3  ;;  %v10028_v26 = vpop.eup %7964  ;;  %v4171_v59 = vpack.c.bf16 %v7963_v11, %v7963_v11 }
 0x414   : > { %v3596_v5 = vpop.f32.mrf.mxu1  ;;  %v10040_v18 = vpack.c.bf16 %v10028_v26, %v10028_v26  ;;  %12736 = vst [vmem:[#allocation131_spill] sm:$0xff] %v10060_v14 }
 0x415   : > { %7966 = vtanh.f32 %v3594_v16  ;;  %v4363_v13 = vunpack.c.l.bf16 %v4171_v59  ;;  %v5539_v30 = vunpack.c.l.b16 %v4171_v59 }
 0x416   : > { %7968 = vtanh.f32 %v9801_v53 }
 0x417   : > { %7301 = vmatmul.msk.bf16.gmra.mxu1 %vm2532_vm5, %v7544_v6  ;;  %7970 = vtanh.f32 %v9850_v12  ;;  %v10052_v3 = vpop.f32.mrf.mxu2  ;;  %v7443_v12 = vld [vmem:[%s12419_s2 + $0xf8] sm:$0xf0]  ;;  %v10062_v28 = vsub.f32 %v7963_v11, %v4363_v13  ;;  %v10082_v11 = vor.u32 %v7598_v49, %v7401_v15  ;;  %v10089_v58 = vpack.c.b16 %v5539_v30, %v5538_v44 }
 0x419   : > { %12737 = vst [vmem:[#allocation132_spill] sm:$0xff] %v10062_v28 }
 0x41a   : > { %v3104_v55 = vpop.f32.mrf.mxu0  ;;  %12740 = vst [vmem:[#allocation135_spill] sm:$0xff] %v10082_v11 }
 0x41b   : > { %v10042_v8 = vpop.eup %7966  ;;  %v3597_v9 = vadd.f32 %v3596_v5, %v3104_v55  ;;  %v10050_v53 = vpop.f32.mrf.mxu3  ;;  %v5472_v5 = vunpack.c.l.b16 %v10040_v18  ;;  %v10066_v55 = vor.u32 %v7603_v27, %v7443_v12  ;;  %12741 = vst [vmem:[#allocation136_spill] sm:$0xff] %v10089_v58 }
 0x41c   : > { %v10047_v16 = vpack.c.bf16 %v10042_v8, %v10042_v8  ;;  %v3598_v34 = vpop.f32.mrf.mxu1  ;;  %v7969_v33 = vpop.eup %7968  ;;  %v10159_v2 = vadd.f32 %v10050_v53, %v9922_v62 }
 0x41d   : > { %7205 = vmatmul.msk.bf16.gmra.mxu0 %vm2532_vm5, %v7544_v6  ;;  %12738 = vst [vmem:[#allocation133_spill] sm:$0xff] %v10066_v55  ;;  %v7971_v27 = vpop.eup %7970  ;;  %7972 = vtanh.f32 %v3597_v9  ;;  %v10097_v9 = vadd.f32 %v9987_v0, %v9868_v38 }
 0x41e   : > { %v5473_v6 = vunpack.c.l.b16 %v10047_v16 }
 0x41f   : > { %4976 = vmatmul.bf16.gmra.mxu3 %v10066_v55 }
 0x420   : > { %v10080_v20 = vpack.c.b16 %v5473_v6, %v5472_v5  ;;  %4995 = vmatmul.bf16.gmra.mxu2 %v10082_v11  ;;  %v10091_v5 = vpack.c.bf16 %v7969_v33, %v7969_v33  ;;  %v10093_v6 = vpack.c.bf16 %v7971_v27, %v7971_v27 }
 0x422   : > { %12739 = vst [vmem:[#allocation134_spill] sm:$0xff] %v10080_v20  ;;  %v3106_v12 = vpop.f32.mrf.mxu0  ;;  %v4364_v49 = vunpack.c.l.bf16 %v10091_v5  ;;  %v4365_v44 = vunpack.c.l.bf16 %v10093_v6 }
 0x423   : > { %v3599_v63 = vadd.f32 %v3598_v34, %v3106_v12  ;;  %12742 = vst [vmem:[#allocation137_spill] sm:$0xff] %v10091_v5  ;;  %v10099_v47 = vpop.f32.mrf.mxu3  ;;  %v10101_v34 = vpop.f32.mrf.mxu2 }
 0x424   : > { %12743 = vst [vmem:[#allocation138_spill] sm:$0xff] %v10093_v6  ;;  %v3601_v15 = vpop.f32.mrf.mxu1  ;;  %v10103_v59 = vpop.eup %7972  ;;  %v10114_v0 = vsub.f32 %v7969_v33, %v4364_v49  ;;  %v10116_v13 = vsub.f32 %v7971_v27, %v4365_v44  ;;  %v10124_v6 = vadd.f32 %v10026_v48, %v9911_v23  ;;  %v7580_v27 = vld [vmem:[%s12419_s2 + $0x14] sm:$0xf]  ;;  %v7610_v48 = vld [vmem:[%s12419_s2 + $0xfc] sm:$0xf0] }
 0x425   : > { %7974 = vtanh.f32 %v3599_v63  ;;  %12744 = vst [vmem:[#allocation139_spill] sm:$0xff] %v10101_v34  ;;  %v10110_v30 = vpack.c.bf16 %v10103_v59, %v10103_v59 }
 0x426   : > { %12745 = vst [vmem:[#allocation140_spill] sm:$0xff] %v10114_v0  ;;  %7976 = vtanh.f32 %v9863_v4 }
 0x427   : > { %7302 = vmatmul.msk.bf16.gmra.mxu1 %vm2532_vm5, %v7545_v22  ;;  %12746 = vst [vmem:[#allocation141_spill] sm:$0xff] %v10116_v13  ;;  %7978 = vtanh.f32 %v9907_v46  ;;  %v5474_v23 = vunpack.c.l.b16 %v10110_v30  ;;  %v7449_v46 = vld [vmem:[%s12419_s2 + $0xd0] sm:$0xf] }
 0x42a   : > { %v3109_v12 = vpop.f32.mrf.mxu0 }
 0x42b   : > { %v10112_v38 = vpop.eup %7974  ;;  %v3602_v63 = vadd.f32 %v3601_v15, %v3109_v12  ;;  %v10128_v5 = vpop.f32.mrf.mxu3  ;;  %v7355_v15 = vld [vmem:[%s12419_s2 + $0x40] sm:$0xf0]  ;;  %v10153_v12 = vor.u32 %v7610_v48, %v7449_v46 }
 0x42c   : > { %v10120_v58 = vpack.c.bf16 %v10112_v38, %v10112_v38  ;;  %v3603_v11 = vpop.f32.mrf.mxu1  ;;  %v10131_v33 = vpop.f32.mrf.mxu2 }
 0x42d   : > { %7206 = vmatmul.msk.bf16.gmra.mxu0 %vm2532_vm5, %v7545_v22  ;;  %12747 = vst [vmem:[#allocation142_spill] sm:$0xff] %v10131_v33  ;;  %7980 = vtanh.f32 %v3602_v63  ;;  %v10141_v22 = vor.u32 %v7580_v27, %v7355_v15  ;;  %v7977_v27 = vpop.eup %7976 }
 0x42e   : > { %v5475_v4 = vunpack.c.l.b16 %v10120_v58  ;;  %12750 = vst [vmem:[#allocation145_spill] sm:$0xff] %v10153_v12  ;;  %v7979_v55 = vpop.eup %7978  ;;  %v4299_v54 = vunpack.c.l.bf16 %v10120_v58 }
 0x42f   : > { %12748 = vst [vmem:[#allocation143_spill] sm:$0xff] %v10141_v22  ;;  %5014 = vmatmul.bf16.vlgmr.msrb.gmra.mxu3 %v10141_v22  ;;  %v4175_v48 = vpack.c.bf16 %v7979_v55, %v7979_v55 }
 0x430   : > { %v10151_v44 = vpack.c.b16 %v5475_v4, %v5474_v23  ;;  %5000 = vmatmul.bf16.gmra.mxu2 %v10153_v12  ;;  %v7546_v23 = vld [vmem:[%s12418_s1 + $0x200] sm:$0xff] }
 0x431   : > { %v4367_v1 = vunpack.c.l.bf16 %v4175_v48 }
 0x432   : > { %12749 = vst [vmem:[#allocation144_spill] sm:$0xff] %v10151_v44  ;;  %v3111_v63 = vpop.f32.mrf.mxu0 }
 0x433   : > { %v3604_v15 = vadd.f32 %v3603_v11, %v3111_v63  ;;  %v7981_v32 = vpop.eup %7980  ;;  %v10164_v4 = vpop.f32.mrf.mxu3  ;;  %v4174_v11 = vpack.c.bf16 %v7977_v27, %v7977_v27 }
 0x434   : > { %v3606_v20 = vpop.f32.mrf.mxu1  ;;  %v10166_v46 = vpop.f32.mrf.mxu2  ;;  %v4108_v63 = vpack.c.bf16 %v7981_v32, %v7981_v32 }
 0x435   : > { %7982 = vtanh.f32 %v3604_v15  ;;  %v4366_v44 = vunpack.c.l.bf16 %v4174_v11 }
 0x436   : > { %7984 = vtanh.f32 %v9916_v10  ;;  %v4300_v53 = vunpack.c.l.bf16 %v4108_v63  ;;  %v7592_v10 = vld [vmem:[%s12419_s2 + $0x74] sm:$0xf]  ;;  %v5476_v28 = vunpack.c.l.b16 %v4108_v63  ;;  %v4297_v63 = vunpack.c.l.bf16 %v10047_v16 }
 0x437   : > { %7303 = vmatmul.msk.bf16.gmra.mxu1 %vm2532_vm5, %v7546_v23  ;;  %7986 = vtanh.f32 %v9964_v40  ;;  %v10185_v40 = vsub.f32 %v7979_v55, %v4367_v1  ;;  %v5543_v1 = vunpack.c.l.b16 %v4175_v48 }
 0x438   : > { %v4492_v58 = vsub.f32 %v7981_v32, %v4300_v53 }
 0x439   : > { %12753 = vst [vmem:[#allocation148_spill] sm:$0xff] %v10185_v40 }
 0x43a   : > { %v3114_v49 = vpop.f32.mrf.mxu0 }
 0x43b   : > { %v7983_v12 = vpop.eup %7982  ;;  %v3607_v62 = vadd.f32 %v3606_v20, %v3114_v49  ;;  %v10172_v29 = vpop.f32.mrf.mxu3  ;;  %v7403_v20 = vld [vmem:[%s12419_s2 + $0xa0] sm:$0xf0]  ;;  %v10183_v49 = vsub.f32 %v7977_v27, %v4366_v44  ;;  %v5542_v44 = vunpack.c.l.b16 %v4174_v11  ;;  %v4294_v11 = vunpack.c.l.bf16 %v9977_v43 }
 0x43c   : > { %v4109_v15 = vpack.c.bf16 %v7983_v12, %v7983_v12  ;;  %v3608_v22 = vpop.f32.mrf.mxu1  ;;  %v10175_v14 = vpop.f32.mrf.mxu2 }
 0x43d   : > { %7207 = vmatmul.msk.bf16.gmra.mxu0 %vm2532_vm5, %v7546_v23  ;;  %12751 = vst [vmem:[#allocation146_spill] sm:$0xff] %v10175_v14  ;;  %7988 = vtanh.f32 %v3607_v62  ;;  %v10187_v23 = vor.u32 %v7592_v10, %v7403_v20  ;;  %v4298_v14 = vunpack.c.l.bf16 %v10110_v30  ;;  %v7985_v33 = vpop.eup %7984  ;;  %v4491_v62 = vsub.f32 %v10112_v38, %v4299_v54 }
 0x43e   : > { %v4301_v39 = vunpack.c.l.bf16 %v4109_v15  ;;  %12752 = vst [vmem:[#allocation147_spill] sm:$0xff] %v10183_v49  ;;  %v5477_v0 = vunpack.c.l.b16 %v4109_v15  ;;  %v7987_v32 = vpop.eup %7986  ;;  %v4296_v15 = vunpack.c.l.bf16 %v10040_v18  ;;  %v4295_v54 = vunpack.c.l.bf16 %v9981_v24 }
 0x43f   : > { %12754 = vst [vmem:[#allocation149_spill] sm:$0xff] %v10187_v23  ;;  %5019 = vmatmul.bf16.gmra.mxu3 %v10187_v23  ;;  %v4490_v53 = vsub.f32 %v10103_v59, %v4298_v14  ;;  %v4176_v14 = vpack.c.bf16 %v7985_v33, %v7985_v33  ;;  %v4177_v18 = vpack.c.bf16 %v7987_v32, %v7987_v32 }
 0x440   : > { %v4493_v13 = vsub.f32 %v7983_v12, %v4301_v39  ;;  %v10193_v34 = vpack.c.b16 %v5477_v0, %v5476_v28  ;;  %v10197_v12 = vpack.c.b16 %v5543_v1, %v5542_v44  ;;  %v4489_v0 = vsub.f32 %v10042_v8, %v4297_v63 }
 0x441   : > { %v4628_v16 = vpack.c.bf16 %v4491_v62, %v4490_v53  ;;  %v4488_v48 = vsub.f32 %v10028_v26, %v4296_v15  ;;  %v4487_v10 = vsub.f32 %v9973_v50, %v4295_v54  ;;  %v4486_v8 = vsub.f32 %v9971_v19, %v4294_v11  ;;  %v7604_v19 = vld [vmem:[%s12419_s2 + $0xd4] sm:$0xf] }
 0x442   : > { %12755 = vst [vmem:[#allocation150_spill] sm:$0xff] %v10193_v34  ;;  %v3116_v55 = vpop.f32.mrf.mxu0  ;;  %v4629_v27 = vpack.c.bf16 %v4493_v13, %v4492_v58  ;;  %v7547_v13 = vld [vmem:[%s12418_s1 + $0x208] sm:$0xff]  ;;  %v4369_v62 = vunpack.c.l.bf16 %v4177_v18 }
 0x443   : > { %v3609_v39 = vadd.f32 %v3608_v22, %v3116_v55  ;;  %12756 = vst [vmem:[#allocation151_spill] sm:$0xff] %v10197_v12  ;;  %v7989_v28 = vpop.eup %7988  ;;  %v10205_v38 = vpop.f32.mrf.mxu3  ;;  %v4627_v20 = vpack.c.bf16 %v4489_v0, %v4488_v48  ;;  %v4626_v63 = vpack.c.bf16 %v4487_v10, %v4486_v8 }
 0x444   : > { %v3611_v30 = vpop.f32.mrf.mxu1  ;;  %5030 = vmatpush.bf16.msra.mxu2 %v4629_v27  ;;  %v10208_v22 = vpop.f32.mrf.mxu2  ;;  %v4110_v59 = vpack.c.bf16 %v7989_v28, %v7989_v28  ;;  %v4368_v27 = vunpack.c.l.bf16 %v4176_v14 }
 0x445   : > { %7990 = vtanh.f32 %v3609_v39  ;;  %v7451_v39 = vld [vmem:[%s12419_s2 + $0x100] sm:$0xf0] }
 0x446   : > { %v4302_v43 = vunpack.c.l.bf16 %v4110_v59  ;;  %7992 = vtanh.f32 %v9984_v56  ;;  %v10228_v53 = vsub.f32 %v7985_v33, %v4368_v27  ;;  %v10230_v56 = vsub.f32 %v7987_v32, %v4369_v62 }
 0x447   : > { %7304 = vmatmul.msk.bf16.gmra.mxu1 %vm2532_vm5, %v7547_v13  ;;  %7994 = vtanh.f32 %v10035_v25  ;;  %v10232_v15 = vor.u32 %v7604_v19, %v7451_v39  ;;  %v5544_v33 = vunpack.c.l.b16 %v4176_v14  ;;  %v5545_v32 = vunpack.c.l.b16 %v4177_v18 }
 0x448   : > { %5031 = vmatpush.bf16.msra.mxu2 %v4628_v16  ;;  %12758 = vst [vmem:[#allocation153_spill] sm:$0xff] %v10228_v53  ;;  %v10234_v54 = vsub.f32 %v7989_v28, %v4302_v43 }
 0x449   : > { %12759 = vst [vmem:[#allocation154_spill] sm:$0xff] %v10230_v56 }
 0x44a   : > { %v3119_v24 = vpop.f32.mrf.mxu0  ;;  %12760 = vst [vmem:[#allocation155_spill] sm:$0xff] %v10232_v15 }
 0x44b   : > { %v7991_v58 = vpop.eup %7990  ;;  %v3612_v44 = vadd.f32 %v3611_v30, %v3119_v24  ;;  %v10217_v26 = vpop.f32.mrf.mxu3 }
 0x44c   : > { %v4111_v1 = vpack.c.bf16 %v7991_v58, %v7991_v58  ;;  %v3613_v55 = vpop.f32.mrf.mxu1  ;;  %5032 = vmatpush.bf16.msra.mxu2 %v4627_v20  ;;  %v10220_v50 = vpop.f32.mrf.mxu2  ;;  %v10245_v20 = vpack.c.b16 %v5545_v32, %v5544_v33  ;;  %v8070_v33 = vld [vmem:[%s12418_s1 + $0x210] sm:$0xff] }
 0x44d   : > { %7208 = vmatmul.msk.bf16.gmra.mxu0 %vm2532_vm5, %v7547_v13  ;;  %12757 = vst [vmem:[#allocation152_spill] sm:$0xff] %v10220_v50  ;;  %7996 = vtanh.f32 %v3612_v44  ;;  %v5478_v13 = vunpack.c.l.b16 %v4110_v59  ;;  %v7993_v59 = vpop.eup %7992  ;;  %v12763_v44 = vpack.c.bf16 %v9945_v36, %v9943_v35  ;;  %v12765_v35 = vpack.c.bf16 %v9831_v45, %v9829_v51  ;;  %v7361_v36 = vld [vmem:[%s12419_s2 + $0x18] sm:$0xf] }
 0x44e   : > { %v4303_v30 = vunpack.c.l.bf16 %v4111_v1  ;;  %v5479_v25 = vunpack.c.l.b16 %v4111_v1  ;;  %12762 = vst [vmem:[#allocation157_spill] sm:$0xff] %v10245_v20  ;;  %v7995_v28 = vpop.eup %7994  ;;  %v4178_v18 = vpack.c.bf16 %v7993_v59, %v7993_v59 }
 0x44f   : > { %5024 = vmatmul.bf16.gmra.mxu3 %v10232_v15  ;;  %v4179_v43 = vpack.c.bf16 %v7995_v28, %v7995_v28 }
 0x450   : > { %5033 = vmatpush.bf16.msra.mxu2 %v4626_v63  ;;  %v10236_v16 = vsub.f32 %v7991_v58, %v4303_v30  ;;  %v10241_v11 = vpack.c.b16 %v5479_v25, %v5478_v13  ;;  %v7587_v13 = vld [vmem:[%s12419_s2 + $0x44] sm:$0xf0] }
 0x452   : > { %12761 = vst [vmem:[#allocation156_spill] sm:$0xff] %v10241_v11  ;;  %v3121_v48 = vpop.f32.mrf.mxu0 }
 0x453   : > { %v3614_v24 = vadd.f32 %v3613_v55, %v3121_v48  ;;  %v7997_v8 = vpop.eup %7996  ;;  %v10250_v1 = vpop.f32.mrf.mxu3  ;;  %v12764_v55 = vpack.c.bf16 %v9890_v21, %v9888_v42  ;;  %v4370_v21 = vunpack.c.l.bf16 %v4178_v18  ;;  %v4371_v42 = vunpack.c.l.bf16 %v4179_v43 }
 0x454   : > { %v3616_v58 = vpop.f32.mrf.mxu1  ;;  %5034 = vmatpush.bf16.msra.mxu2 %v12763_v44  ;;  %v10252_v14 = vpop.f32.mrf.mxu2  ;;  %v4112_v27 = vpack.c.bf16 %v7997_v8, %v7997_v8 }
 0x455   : > { %7998 = vtanh.f32 %v3614_v24  ;;  %v10275_v48 = vsub.f32 %v7993_v59, %v4370_v21  ;;  %v10277_v24 = vsub.f32 %v7995_v28, %v4371_v42  ;;  %v12772_v28 = vld [vmem:[#allocation49_spill] sm:$0xff] }
 0x456   : > { %v4304_v25 = vunpack.c.l.bf16 %v4112_v27  ;;  %8000 = vtanh.f32 %v10070_v31  ;;  %v5480_v31 = vunpack.c.l.b16 %v4112_v27  ;;  %v5547_v27 = vunpack.c.l.b16 %v4179_v43 }
 0x457   : > { %12768 = vst [vmem:[#allocation160_spill] sm:$0xff] %v10275_v48 }
 0x458   : > { %5035 = vmatpush.bf16.msra.mxu2 %v12764_v55  ;;  %v12770_v55 = vpack.c.bf16 %v9761_v37, %v9759_v17 }
 0x45a   : > { %v3124_v62 = vpop.f32.mrf.mxu0 }
 0x45b   : > { %v7999_v63 = vpop.eup %7998  ;;  %v3617_v19 = vadd.f32 %v3616_v58, %v3124_v62  ;;  %v10271_v51 = vpop.f32.mrf.mxu3  ;;  %v10280_v58 = vor.u32 %v7587_v13, %v7361_v36  ;;  %v10285_v62 = vsub.f32 %v7997_v8, %v4304_v25  ;;  %v5546_v36 = vunpack.c.l.b16 %v4178_v18 }
 0x45c   : > { %v4113_v39 = vpack.c.bf16 %v7999_v63, %v7999_v63  ;;  %v3618_v30 = vpop.f32.mrf.mxu1  ;;  %5036 = vmatpush.bf16.msra.mxu2 %v12765_v35  ;;  %12766 = vst [vmem:[#allocation158_spill] sm:$0xff] %v10271_v51  ;;  %v10273_v45 = vpop.f32.mrf.mxu2  ;;  %v12771_v35 = vld [vmem:[#allocation33_spill] sm:$0xff] }
 0x45d   : > { %7209 = vmatmul.msk.bf16.gmra.mxu0 %vm2532_vm5, %v8070_v33  ;;  %8002 = vtanh.f32 %v3617_v19  ;;  %12767 = vst [vmem:[#allocation159_spill] sm:$0xff] %v10273_v45  ;;  %v12773_v21 = vpack.c.bf16 %v12771_v35, %v12772_v28  ;;  %v8001_v37 = vpop.eup %8000  ;;  %v12776_v33 = vld [vmem:[#allocation82_spill] sm:$0xff]  ;;  %v12779_v28 = vld [vmem:[#allocation77_spill] sm:$0xff] }
 0x45e   : > { %v4305_v32 = vunpack.c.l.bf16 %v4113_v39  ;;  %8004 = vtanh.f32 %v10097_v9  ;;  %12769 = vst [vmem:[#allocation161_spill] sm:$0xff] %v10280_v58  ;;  %v5481_v44 = vunpack.c.l.b16 %v4113_v39 }
 0x460   : > { %5037 = vmatpush.bf16.msra.mxu2 %v12770_v55  ;;  %v10287_v19 = vsub.f32 %v7999_v63, %v4305_v32  ;;  %v10294_v9 = vpack.c.b16 %v5481_v44, %v5480_v31  ;;  %v10299_v63 = vpack.c.b16 %v5547_v27, %v5546_v36  ;;  %v12777_v32 = vld [vmem:[#allocation81_spill] sm:$0xff]  ;;  %v4180_v55 = vpack.c.bf16 %v8001_v37, %v8001_v37 }
 0x461   : > { %v12778_v31 = vpack.c.bf16 %v12776_v33, %v12777_v32  ;;  %v7409_v33 = vld [vmem:[%s12419_s2 + $0x78] sm:$0xf]  ;;  %v7599_v32 = vld [vmem:[%s12419_s2 + $0xa4] sm:$0xf0] }
 0x462   : > { %12774 = vst [vmem:[#allocation33_spill] sm:$0xff] %v10294_v9  ;;  %v3126_v39 = vpop.f32.mrf.mxu0 }
 0x463   : > { %v3619_v8 = vadd.f32 %v3618_v30, %v3126_v39  ;;  %5038 = vmatmul.bf16.vlgmr.msra.gmra.mxu2 %v10280_v58  ;;  %12775 = vst [vmem:[#allocation49_spill] sm:$0xff] %v10299_v63  ;;  %v8003_v13 = vpop.eup %8002  ;;  %v4924_v18 = vpop.f32.mrf.mxu3 }
 0x464   : > { %5078 = vmatpush.bf16.msrb.mxu2 %v12773_v21  ;;  %v3621_v25 = vpop.f32.mrf.mxu1  ;;  %v8005_v42 = vpop.eup %8004  ;;  %v4114_v44 = vpack.c.bf16 %v8003_v13, %v8003_v13  ;;  %v12780_v21 = vld [vmem:[#allocation76_spill] sm:$0xff] }
 0x465   : > { %8006 = vtanh.f32 %v3619_v8  ;;  %v4943_v43 = vpop.f32.mrf.mxu2  ;;  %v4181_v35 = vpack.c.bf16 %v8005_v42, %v8005_v42  ;;  %v12781_v30 = vpack.c.bf16 %v12779_v28, %v12780_v21  ;;  %v4372_v28 = vunpack.c.l.bf16 %v4180_v55 }
 0x466   : > { %8008 = vtanh.f32 %v10124_v6  ;;  %v4306_v57 = vunpack.c.l.bf16 %v4114_v44  ;;  %v12783_v6 = vld [vmem:[#allocation70_spill] sm:$0xff] }
 0x467   : > { %v4373_v21 = vunpack.c.l.bf16 %v4181_v35  ;;  %v10325_v12 = vsub.f32 %v8001_v37, %v4372_v28  ;;  %v5548_v28 = vunpack.c.l.b16 %v4180_v55 }
 0x468   : > { %5079 = vmatpush.bf16.msrb.mxu2 %v12778_v31  ;;  %v4920_v31 = vadd.f32 %v10250_v1, %v10166_v46  ;;  %v10330_v46 = vor.u32 %v7599_v32, %v7409_v33  ;;  %v5482_v1 = vunpack.c.l.b16 %v4114_v44  ;;  %v10332_v63 = vsub.f32 %v8003_v13, %v4306_v57 }
 0x469   : > { %v10327_v20 = vsub.f32 %v8005_v42, %v4373_v21 }
 0x46a   : > { %v3129_v39 = vpop.f32.mrf.mxu0  ;;  %v10321_v59 = vadd.f32 %v4943_v43, %v4920_v31  ;;  %12787 = vst [vmem:[#allocation77_spill] sm:$0xff] %v10330_v46 }
 0x46b   : > { %v8007_v36 = vpop.eup %8006  ;;  %v3622_v27 = vadd.f32 %v3621_v25, %v3129_v39  ;;  %v10319_v39 = vpop.f32.mrf.mxu3 }
 0x46c   : > { %5080 = vmatpush.bf16.msrb.mxu2 %v12781_v30  ;;  %v4115_v8 = vpack.c.bf16 %v8007_v36, %v8007_v36  ;;  %v3623_v0 = vpop.f32.mrf.mxu1  ;;  %v12782_v30 = vld [vmem:[#allocation71_spill] sm:$0xff]  ;;  %12785 = vst [vmem:[#allocation82_spill] sm:$0xff] %v10319_v39  ;;  %v8009_v31 = vpop.eup %8008 }
 0x46d   : > { %8010 = vtanh.f32 %v3622_v27  ;;  %v12784_v25 = vpack.c.bf16 %v12782_v30, %v12783_v6  ;;  %v10323_v10 = vpop.f32.mrf.mxu2  ;;  %v12788_v6 = vld [vmem:[#allocation65_spill] sm:$0xff] }
 0x46e   : > { %12786 = vst [vmem:[#allocation81_spill] sm:$0xff] %v10323_v10  ;;  %v4307_v17 = vunpack.c.l.bf16 %v4115_v8  ;;  %8012 = vtanh.f32 %v10159_v2  ;;  %v5483_v27 = vunpack.c.l.b16 %v4115_v8  ;;  %v5549_v2 = vunpack.c.l.b16 %v4181_v35 }
 0x470   : > { %5081 = vmatpush.bf16.msrb.mxu2 %v12784_v25  ;;  %v10334_v30 = vsub.f32 %v8007_v36, %v4307_v17  ;;  %v12789_v25 = vld [vmem:[#allocation64_spill] sm:$0xff]  ;;  %v10341_v42 = vpack.c.b16 %v5483_v27, %v5482_v1  ;;  %v10346_v17 = vpack.c.b16 %v5549_v2, %v5548_v28  ;;  %v4182_v1 = vpack.c.bf16 %v8009_v31, %v8009_v31  ;;  %v7611_v28 = vld [vmem:[%s12419_s2 + $0x104] sm:$0xf0] }
 0x471   : > { %v12790_v37 = vpack.c.bf16 %v12788_v6, %v12789_v25  ;;  %v4925_v2 = vadd.f32 %v4924_v18, %v10208_v22  ;;  %v3792_v22 = vadd.f32 %v10099_v47, %v9968_v7 }
 0x472   : > { %12791 = vst [vmem:[#allocation76_spill] sm:$0xff] %v10341_v42  ;;  %v3131_v33 = vpop.f32.mrf.mxu0 }
 0x473   : > { %v8011_v57 = vpop.eup %8010  ;;  %v3624_v13 = vadd.f32 %v3623_v0, %v3131_v33  ;;  %5043 = vmatmul.bf16.gmra.mxu2 %v10330_v46  ;;  %12792 = vst [vmem:[#allocation71_spill] sm:$0xff] %v10346_v17  ;;  %v4929_v32 = vpop.f32.mrf.mxu3  ;;  %v7457_v0 = vld [vmem:[%s12419_s2 + $0xd8] sm:$0xf]  ;;  %v4374_v33 = vunpack.c.l.bf16 %v4182_v1 }
 0x474   : > { %5082 = vmatpush.bf16.msrb.mxu2 %v12790_v37  ;;  %v3626_v36 = vpop.f32.mrf.mxu1  ;;  %v8013_v8 = vpop.eup %8012  ;;  %v4116_v6 = vpack.c.bf16 %v8011_v57, %v8011_v57  ;;  %v10365_v23 = vor.u32 %v7611_v28, %v7457_v0  ;;  %v4930_v0 = vadd.f32 %v4929_v32, %v10252_v14  ;;  %v3797_v14 = vadd.f32 %v10164_v4, %v10030_v60 }
 0x475   : > { %8014 = vtanh.f32 %v3624_v13  ;;  %v4948_v21 = vpop.f32.mrf.mxu2  ;;  %v4183_v27 = vpack.c.bf16 %v8013_v8, %v8013_v8  ;;  %v10361_v15 = vsub.f32 %v8009_v31, %v4374_v33  ;;  %v5550_v31 = vunpack.c.l.b16 %v4182_v1 }
 0x476   : > { %v4308_v37 = vunpack.c.l.bf16 %v4116_v6  ;;  %v10357_v46 = vadd.f32 %v4948_v21, %v4925_v2  ;;  %12795 = vst [vmem:[#allocation64_spill] sm:$0xff] %v10365_v23  ;;  %v5484_v11 = vunpack.c.l.b16 %v4116_v6 }
 0x477   : > { %v4375_v13 = vunpack.c.l.bf16 %v4183_v27  ;;  %v5551_v33 = vunpack.c.l.b16 %v4183_v27 }
 0x478   : > { %v10369_v18 = vsub.f32 %v8011_v57, %v4308_v37 }
 0x479   : > { %v10363_v58 = vsub.f32 %v8013_v8, %v4375_v13  ;;  %v3794_v8 = vadd.f32 %v10128_v5, %v9990_v41  ;;  %v10382_v47 = vpack.c.b16 %v5551_v33, %v5550_v31 }
 0x47a   : > { %v3134_v55 = vpop.f32.mrf.mxu0 }
 0x47b   : > { %v8015_v35 = vpop.eup %8014  ;;  %v3627_v25 = vadd.f32 %v3626_v36, %v3134_v55  ;;  %v10355_v17 = vpop.f32.mrf.mxu3  ;;  %12797 = vst [vmem:[#allocation163_spill] sm:$0xff] %v10382_v47 }
 0x47c   : > { %v4117_v43 = vpack.c.bf16 %v8015_v35, %v8015_v35  ;;  %v3628_v44 = vpop.f32.mrf.mxu1  ;;  %12793 = vst [vmem:[#allocation70_spill] sm:$0xff] %v10355_v17 }
 0x47d   : > { %v10359_v36 = vpop.f32.mrf.mxu2  ;;  %8016 = vtanh.f32 %v3627_v25 }
 0x47e   : > { %12794 = vst [vmem:[#allocation65_spill] sm:$0xff] %v10359_v36  ;;  %v4309_v55 = vunpack.c.l.bf16 %v4117_v43  ;;  %v5485_v9 = vunpack.c.l.b16 %v4117_v43  ;;  %8018 = vtanh.f32 %v3792_v22 }
 0x480   : > { %v10371_v42 = vsub.f32 %v8015_v35, %v4309_v55  ;;  %v10375_v2 = vpack.c.b16 %v5485_v9, %v5484_v11 }
 0x482   : > { %12796 = vst [vmem:[#allocation162_spill] sm:$0xff] %v10375_v2  ;;  %v3136_v6 = vpop.f32.mrf.mxu0 }
 0x483   : > { %v3629_v7 = vadd.f32 %v3628_v44, %v3136_v6  ;;  %5048 = vmatmul.bf16.gmra.mxu2 %v10365_v23  ;;  %v4967_v11 = vpop.f32.mrf.mxu3  ;;  %v10384_v1 = vpop.eup %8016 }
 0x484   : > { %v3631_v57 = vpop.f32.mrf.mxu1  ;;  %v10386_v27 = vpop.eup %8018  ;;  %v10392_v44 = vpack.c.bf16 %v10384_v1, %v10384_v1  ;;  %v4968_v2 = vadd.f32 %v4967_v11, %v10321_v59 }
 0x485   : > { %8020 = vtanh.f32 %v3629_v7  ;;  %v4953_v9 = vpop.f32.mrf.mxu2  ;;  %v10409_v31 = vpack.c.bf16 %v10386_v27, %v10386_v27 }
 0x486   : > { %8022 = vtanh.f32 %v3794_v8  ;;  %v10403_v55 = vadd.f32 %v4953_v9, %v4930_v0  ;;  %v5486_v8 = vunpack.c.l.b16 %v10392_v44  ;;  %v3799_v9 = vadd.f32 %v10172_v29, %v10052_v3 }
 0x487   : > { %v5552_v7 = vunpack.c.l.b16 %v10409_v31 }
 0x48a   : > { %v3139_v41 = vpop.f32.mrf.mxu0 }
 0x48b   : > { %v10388_v5 = vpop.eup %8020  ;;  %v10401_v28 = vpop.f32.mrf.mxu3  ;;  %v3632_v13 = vadd.f32 %v3631_v57, %v3139_v41 }
 0x48c   : > { %v10394_v35 = vpop.eup %8022  ;;  %v10398_v25 = vpack.c.bf16 %v10388_v5, %v10388_v5  ;;  %v3633_v37 = vpop.f32.mrf.mxu1  ;;  %12798 = vst [vmem:[#allocation164_spill] sm:$0xff] %v10401_v28 }
 0x48d   : > { %v10405_v22 = vpop.f32.mrf.mxu2  ;;  %v10413_v33 = vpack.c.bf16 %v10394_v35, %v10394_v35  ;;  %8024 = vtanh.f32 %v3632_v13 }
 0x48e   : > { %12799 = vst [vmem:[#allocation165_spill] sm:$0xff] %v10405_v22  ;;  %v5487_v6 = vunpack.c.l.b16 %v10398_v25  ;;  %8026 = vtanh.f32 %v3797_v14 }
 0x48f   : > { %v5553_v57 = vunpack.c.l.b16 %v10413_v33 }
 0x490   : > { %v10419_v32 = vpack.c.b16 %v5487_v6, %v5486_v8 }
 0x491   : > { %v10425_v21 = vpack.c.b16 %v5553_v57, %v5552_v7 }
 0x492   : > { %12800 = vst [vmem:[#allocation166_spill] sm:$0xff] %v10419_v32  ;;  %v3141_v41 = vpop.f32.mrf.mxu0 }
 0x493   : > { %v3634_v0 = vadd.f32 %v3633_v37, %v3141_v41  ;;  %12801 = vst [vmem:[#allocation167_spill] sm:$0xff] %v10425_v21  ;;  %v4972_v47 = vpop.f32.mrf.mxu3  ;;  %v10427_v4 = vpop.eup %8024 }
 0x494   : > { %v3636_v43 = vpop.f32.mrf.mxu1  ;;  %v10429_v8 = vpop.eup %8026  ;;  %v10435_v29 = vpack.c.bf16 %v10427_v4, %v10427_v4  ;;  %v4973_v36 = vadd.f32 %v4972_v47, %v10357_v46 }
 0x495   : > { %8028 = vtanh.f32 %v3634_v0  ;;  %v4991_v60 = vpop.f32.mrf.mxu2  ;;  %v10450_v41 = vpack.c.bf16 %v10429_v8, %v10429_v8 }
 0x496   : > { %8030 = vtanh.f32 %v3799_v9  ;;  %v5488_v21 = vunpack.c.l.b16 %v10435_v29  ;;  %v4992_v17 = vadd.f32 %v4991_v60, %v4968_v2 }
 0x49a   : > { %v3144_v6 = vpop.f32.mrf.mxu0 }
 0x49b   : > { %v10431_v23 = vpop.eup %8028  ;;  %v3637_v14 = vadd.f32 %v3636_v43, %v3144_v6  ;;  %v10443_v7 = vpop.f32.mrf.mxu3  ;;  %v5554_v6 = vunpack.c.l.b16 %v10450_v41 }
 0x49c   : > { %v10437_v3 = vpop.eup %8030  ;;  %v10441_v37 = vpack.c.bf16 %v10431_v23, %v10431_v23  ;;  %v3638_v13 = vpop.f32.mrf.mxu1  ;;  %12802 = vst [vmem:[#allocation168_spill] sm:$0xff] %v10443_v7 }
 0x49d   : > { %v10445_v57 = vpop.f32.mrf.mxu2  ;;  %v10454_v0 = vpack.c.bf16 %v10437_v3, %v10437_v3  ;;  %8032 = vtanh.f32 %v3637_v14 }
 0x49e   : > { %12803 = vst [vmem:[#allocation169_spill] sm:$0xff] %v10445_v57  ;;  %v5489_v9 = vunpack.c.l.b16 %v10441_v37  ;;  %v4313_v48 = vunpack.c.l.bf16 %v10441_v37 }
 0x49f   : > { %v5555_v32 = vunpack.c.l.b16 %v10454_v0 }
 0x4a0   : > { %v10458_v43 = vpack.c.b16 %v5489_v9, %v5488_v21 }
 0x4a1   : > { %v10462_v34 = vpack.c.b16 %v5555_v32, %v5554_v6 }
 0x4a2   : > { %12804 = vst [vmem:[#allocation170_spill] sm:$0xff] %v10458_v43  ;;  %v3146_v22 = vpop.f32.mrf.mxu0 }
 0x4a3   : > { %v3639_v45 = vadd.f32 %v3638_v13, %v3146_v22  ;;  %12805 = vst [vmem:[#allocation171_spill] sm:$0xff] %v10462_v34  ;;  %v4977_v39 = vpop.f32.mrf.mxu3  ;;  %v8033_v57 = vpop.eup %8032 }
 0x4a4   : > { %v3641_v7 = vpop.f32.mrf.mxu1  ;;  %v4122_v21 = vpack.c.bf16 %v8033_v57, %v8033_v57 }
 0x4a5   : > { %8034 = vtanh.f32 %v3639_v45  ;;  %v4996_v50 = vpop.f32.mrf.mxu2 }
 0x4a6   : > { %v10465_v59 = vadd.f32 %v4996_v50, %v4973_v36  ;;  %v5490_v22 = vunpack.c.l.b16 %v4122_v21  ;;  %v4978_v50 = vadd.f32 %v4977_v39, %v10403_v55  ;;  %v4314_v40 = vunpack.c.l.bf16 %v4122_v21 }
 0x4aa   : > { %v3149_v11 = vpop.f32.mrf.mxu0 }
 0x4ab   : > { %v8035_v14 = vpop.eup %8034  ;;  %v3642_v9 = vadd.f32 %v3641_v7, %v3149_v11  ;;  %v10467_v10 = vpop.f32.mrf.mxu3 }
 0x4ac   : > { %v4123_v43 = vpack.c.bf16 %v8035_v14, %v8035_v14  ;;  %v3643_v28 = vpop.f32.mrf.mxu1  ;;  %12806 = vst [vmem:[#allocation172_spill] sm:$0xff] %v10467_v10 }
 0x4ad   : > { %v10469_v2 = vpop.f32.mrf.mxu2  ;;  %8036 = vtanh.f32 %v3642_v9 }
 0x4ae   : > { %12807 = vst [vmem:[#allocation173_spill] sm:$0xff] %v10469_v2  ;;  %v5491_v32 = vunpack.c.l.b16 %v4123_v43 }
 0x4b0   : > { %v10471_v46 = vpack.c.b16 %v5491_v32, %v5490_v22 }
 0x4b2   : > { %12808 = vst [vmem:[#allocation174_spill] sm:$0xff] %v10471_v46  ;;  %v3151_v45 = vpop.f32.mrf.mxu0 }
 0x4b3   : > { %v3644_v47 = vadd.f32 %v3643_v28, %v3151_v45  ;;  %v8037_v36 = vpop.eup %8036  ;;  %v5015_v13 = vpop.f32.mrf.mxu3  ;;  %v4315_v28 = vunpack.c.l.bf16 %v4123_v43  ;;  %v4312_v43 = vunpack.c.l.bf16 %v10435_v29 }
 0x4b4   : > { %v3646_v60 = vpop.f32.mrf.mxu1  ;;  %v4124_v11 = vpack.c.bf16 %v8037_v36, %v8037_v36  ;;  %v10476_v22 = vadd.f32 %v5015_v13, %v4992_v17  ;;  %v4506_v17 = vsub.f32 %v8033_v57, %v4314_v40 }
 0x4b5   : > { %8038 = vtanh.f32 %v3644_v47  ;;  %v5001_v7 = vpop.f32.mrf.mxu2  ;;  %v4507_v56 = vsub.f32 %v8035_v14, %v4315_v28  ;;  %v4310_v14 = vunpack.c.l.bf16 %v10392_v44 }
 0x4b6   : > { %v10474_v6 = vadd.f32 %v5001_v7, %v4978_v50  ;;  %v4316_v2 = vunpack.c.l.bf16 %v4124_v11  ;;  %v5492_v39 = vunpack.c.l.b16 %v4124_v11 }
 0x4b8   : > { %v4508_v47 = vsub.f32 %v8037_v36, %v4316_v2 }
 0x4ba   : > { %v3154_v34 = vpop.f32.mrf.mxu0 }
 0x4bb   : > { %v8039_v10 = vpop.eup %8038  ;;  %v3647_v9 = vadd.f32 %v3646_v60, %v3154_v34  ;;  %v10478_v45 = vpop.f32.mrf.mxu3  ;;  %v4636_v60 = vpack.c.bf16 %v4507_v56, %v4506_v17  ;;  %v12812_v17 = vpack.c.bf16 %v10287_v19, %v10285_v62  ;;  %v12813_v19 = vpack.c.bf16 %v10236_v16, %v10234_v54  ;;  %v12818_v54 = vld [vmem:[#allocation59_spill] sm:$0xff]  ;;  %v12819_v16 = vld [vmem:[#allocation57_spill] sm:$0xff] }
 0x4bc   : > { %v4125_v51 = vpack.c.bf16 %v8039_v10, %v8039_v10  ;;  %v3648_v49 = vpop.f32.mrf.mxu1 }
 0x4bd   : > { %8040 = vtanh.f32 %v3647_v9 }
 0x4be   : > { %v4317_v32 = vunpack.c.l.bf16 %v4125_v51  ;;  %v5493_v55 = vunpack.c.l.b16 %v4125_v51  ;;  %v4505_v51 = vsub.f32 %v10431_v23, %v4313_v48  ;;  %v4502_v48 = vsub.f32 %v10384_v1, %v4310_v14  ;;  %v12815_v14 = vld [vmem:[#allocation139_spill] sm:$0xff] }
 0x4c0   : > { %v4509_v46 = vsub.f32 %v8039_v10, %v4317_v32  ;;  %v10480_v50 = vpack.c.b16 %v5493_v55, %v5492_v39  ;;  %v4311_v10 = vunpack.c.l.bf16 %v10398_v25  ;;  %v12809_v32 = vpack.c.bf16 %v10371_v42, %v10369_v18  ;;  %v7581_v42 = vld [vmem:[%s12419_s2 + $0x1c] sm:$0xf] }
 0x4c2   : > { %v3156_v7 = vpop.f32.mrf.mxu0  ;;  %v4637_v53 = vpack.c.bf16 %v4509_v46, %v4508_v47  ;;  %v4504_v46 = vsub.f32 %v10427_v4, %v4312_v43  ;;  %v4503_v56 = vsub.f32 %v10388_v5, %v4311_v10  ;;  %v10521_v43 = vpop.f32.mrf.mxu2 }
 0x4c3   : > { %v3649_v34 = vadd.f32 %v3648_v49, %v3156_v7  ;;  %v10486_v2 = vpop.eup %8040  ;;  %v5020_v37 = vpop.f32.mrf.mxu3  ;;  %v12811_v7 = vld [vmem:[#allocation39_spill] sm:$0xff] }
 0x4c4   : > { %5054 = vmatpush.bf16.msra.mxu3 %v4637_v53  ;;  %v3651_v21 = vpop.f32.mrf.mxu1  ;;  %v10492_v40 = vpack.c.bf16 %v10486_v2, %v10486_v2  ;;  %v4635_v53 = vpack.c.bf16 %v4505_v51, %v4504_v46  ;;  %v10504_v29 = vadd.f32 %v5020_v37, %v10465_v59  ;;  %v4634_v57 = vpack.c.bf16 %v4503_v56, %v4502_v48  ;;  %v12817_v56 = vld [vmem:[#allocation41_spill] sm:$0xff] }
 0x4c5   : > { %8042 = vtanh.f32 %v3649_v34  ;;  %v12810_v59 = vpack.c.bf16 %v10334_v30, %v10332_v63  ;;  %v7363_v63 = vld [vmem:[%s12419_s2 + $0x48] sm:$0xf0]  ;;  %v12814_v46 = vpack.c.bf16 %v9660_v52, %v9658_v61  ;;  %v3802_v37 = vadd.f32 %v10205_v38, %v12815_v14 }
 0x4c6   : > { %v5494_v44 = vunpack.c.l.b16 %v10492_v40  ;;  %v10532_v62 = vor.u32 %v7581_v42, %v7363_v63 }
 0x4c8   : > { %5055 = vmatpush.bf16.msra.mxu3 %v4636_v60 }
 0x4ca   : > { %v3159_v49 = vpop.f32.mrf.mxu0 }
 0x4cb   : > { %v10495_v23 = vpop.eup %8042  ;;  %v3652_v4 = vadd.f32 %v3651_v21, %v3159_v49  ;;  %v10509_v1 = vpop.f32.mrf.mxu3 }
 0x4cc   : > { %5056 = vmatpush.bf16.msra.mxu3 %v4635_v53  ;;  %v10500_v25 = vpack.c.bf16 %v10495_v23, %v10495_v23  ;;  %v3653_v5 = vpop.f32.mrf.mxu1 }
 0x4cd   : > { %8044 = vtanh.f32 %v3652_v4  ;;  %v12820_v4 = vpack.c.bf16 %v12818_v54, %v12819_v16 }
 0x4ce   : > { %v5495_v36 = vunpack.c.l.b16 %v10500_v25 }
 0x4d0   : > { %5057 = vmatpush.bf16.msra.mxu3 %v4634_v57  ;;  %v10507_v13 = vpack.c.b16 %v5495_v36, %v5494_v44  ;;  %v12821_v57 = vld [vmem:[#allocation98_spill] sm:$0xff]  ;;  %v12822_v36 = vld [vmem:[#allocation55_spill] sm:$0xff] }
 0x4d2   : > { %v3161_v11 = vpop.f32.mrf.mxu0 }
 0x4d3   : > { %v3654_v9 = vadd.f32 %v3653_v5, %v3161_v11  ;;  %v8045_v28 = vpop.eup %8044  ;;  %v5025_v30 = vpop.f32.mrf.mxu3 }
 0x4d4   : > { %5058 = vmatpush.bf16.msra.mxu3 %v12809_v32  ;;  %v4128_v55 = vpack.c.bf16 %v8045_v28, %v8045_v28  ;;  %v10530_v51 = vadd.f32 %v5025_v30, %v10474_v6  ;;  %v12816_v6 = vld [vmem:[#allocation142_spill] sm:$0xff]  ;;  %v7593_v32 = vld [vmem:[%s12419_s2 + $0x7c] sm:$0xf] }
 0x4d5   : > { %8046 = vtanh.f32 %v3654_v9  ;;  %v3804_v53 = vadd.f32 %v10217_v26, %v12816_v6  ;;  %v12823_v26 = vpack.c.bf16 %v12821_v57, %v12822_v36  ;;  %v12830_v57 = vld [vmem:[#allocation46_spill] sm:$0xff]  ;;  %v12831_v36 = vld [vmem:[#allocation44_spill] sm:$0xff] }
 0x4d6   : > { %v5496_v18 = vunpack.c.l.b16 %v4128_v55  ;;  %v4320_v42 = vunpack.c.l.bf16 %v4128_v55  ;;  %v4318_v55 = vunpack.c.l.bf16 %v10492_v40 }
 0x4d8   : > { %5059 = vmatpush.bf16.msra.mxu3 %v12810_v59  ;;  %v7411_v59 = vld [vmem:[%s12419_s2 + $0xa8] sm:$0xf0]  ;;  %v4510_v40 = vsub.f32 %v10486_v2, %v4318_v55  ;;  %v4379_v2 = vunpack.c.l.bf16 %v10454_v0 }
 0x4d9   : > { %v10570_v14 = vor.u32 %v7593_v32, %v7411_v59  ;;  %v7369_v59 = vld [vmem:[%s12419_s2 + $0x20] sm:$0xf]  ;;  %v7459_v0 = vld [vmem:[%s12419_s2 + $0x108] sm:$0xf0] }
 0x4da   : > { %v3164_v39 = vpop.f32.mrf.mxu0 }
 0x4db   : > { %v8047_v47 = vpop.eup %8046  ;;  %v3657_v34 = vadd.f32 %v12811_v7, %v3164_v39 }
 0x4dc   : > { %5060 = vmatpush.bf16.msra.mxu3 %v12812_v17  ;;  %v4129_v60 = vpack.c.bf16 %v8047_v47, %v8047_v47 }
 0x4dd   : > { %8048 = vtanh.f32 %v3657_v34  ;;  %v12825_v34 = vld [vmem:[#allocation51_spill] sm:$0xff] }
 0x4de   : > { %v5497_v10 = vunpack.c.l.b16 %v4129_v60 }
 0x4e0   : > { %5061 = vmatpush.bf16.msra.mxu3 %v12813_v19  ;;  %v10537_v21 = vpack.c.b16 %v5497_v10, %v5496_v18  ;;  %v4321_v18 = vunpack.c.l.bf16 %v4129_v60  ;;  %v4512_v60 = vsub.f32 %v8045_v28, %v4320_v42 }
 0x4e2   : > { %v3166_v49 = vpop.f32.mrf.mxu0 }
 0x4e3   : > { %v3659_v48 = vadd.f32 %v12817_v56, %v3166_v49  ;;  %5062 = vmatmul.bf16.vlgmr.msra.gmra.mxu3 %v10532_v62  ;;  %v8049_v44 = vpop.eup %8048  ;;  %v12827_v56 = vld [vmem:[#allocation50_spill] sm:$0xff] }
 0x4e4   : > { %5102 = vmatpush.bf16.msrb.mxu3 %v12814_v46  ;;  %v4130_v38 = vpack.c.bf16 %v8049_v44, %v8049_v44 }
 0x4e5   : > { %8050 = vtanh.f32 %v3659_v48  ;;  %v12828_v48 = vld [vmem:[#allocation47_spill] sm:$0xff] }
 0x4e6   : > { %8052 = vtanh.f32 %v3802_v37  ;;  %v5039_v52 = vpop.f32.mrf.mxu2  ;;  %v4322_v39 = vunpack.c.l.bf16 %v4130_v38  ;;  %v5498_v10 = vunpack.c.l.b16 %v4130_v38  ;;  %v12829_v54 = vpack.c.bf16 %v12827_v56, %v12828_v48  ;;  %v12840_v56 = vld [vmem:[#allocation140_spill] sm:$0xff] }
 0x4e7   : > { %8054 = vtanh.f32 %v3804_v53  ;;  %v10552_v61 = vadd.f32 %v5039_v52, %v10476_v22  ;;  %v12824_v22 = vld [vmem:[#allocation54_spill] sm:$0xff]  ;;  %v4319_v52 = vunpack.c.l.bf16 %v10500_v25 }
 0x4e8   : > { %5103 = vmatpush.bf16.msrb.mxu3 %v12820_v4  ;;  %v12826_v17 = vpack.c.bf16 %v12824_v22, %v12825_v34  ;;  %v4514_v49 = vsub.f32 %v8049_v44, %v4322_v39  ;;  %v4513_v4 = vsub.f32 %v8047_v47, %v4321_v18  ;;  %v7588_v39 = vld [vmem:[%s12419_s2 + $0x4c] sm:$0xf0]  ;;  %v4378_v22 = vunpack.c.l.bf16 %v10450_v41  ;;  %v12833_v34 = vld [vmem:[#allocation43_spill] sm:$0xff]  ;;  %v7605_v41 = vld [vmem:[%s12419_s2 + $0xdc] sm:$0xf] }
 0x4e9   : > { %v4511_v28 = vsub.f32 %v10495_v23, %v4319_v52  ;;  %v12834_v23 = vld [vmem:[#allocation40_spill] sm:$0xff]  ;;  %v4571_v18 = vsub.f32 %v10437_v3, %v4379_v2  ;;  %v10624_v3 = vor.u32 %v7605_v41, %v7459_v0  ;;  %v12855_v2 = vpack.c.bf16 %v10327_v20, %v10325_v12  ;;  %v12864_v12 = vld [vmem:[#allocation154_spill] sm:$0xff]  ;;  %v12865_v20 = vld [vmem:[#allocation153_spill] sm:$0xff] }
 0x4ea   : > { %v7465_v41 = vld [vmem:[%s12419_s2 + $0xe0] sm:$0xf]  ;;  %v7612_v0 = vld [vmem:[%s12419_s2 + $0x10c] sm:$0xf0] }
 0x4eb   : > { %v8051_v5 = vpop.eup %8050 }
 0x4ec   : > { %5104 = vmatpush.bf16.msrb.mxu3 %v12823_v26  ;;  %v8053_v11 = vpop.eup %8052  ;;  %v4131_v9 = vpack.c.bf16 %v8051_v5, %v8051_v5  ;;  %v12832_v26 = vpack.c.bf16 %v12830_v57, %v12831_v36 }
 0x4ed   : > { %v8055_v7 = vpop.eup %8054  ;;  %v10568_v46 = vpack.c.bf16 %v8053_v11, %v8053_v11 }
 0x4ee   : > { %v10566_v63 = vpop.f32.mrf.mxu2  ;;  %v4323_v30 = vunpack.c.l.bf16 %v4131_v9  ;;  %v5499_v19 = vunpack.c.l.b16 %v4131_v9  ;;  %v10572_v37 = vpack.c.bf16 %v8055_v7, %v8055_v7  ;;  %v4639_v9 = vpack.c.bf16 %v4513_v4, %v4512_v60  ;;  %v12843_v60 = vld [vmem:[#allocation131_spill] sm:$0xff] }
 0x4ef   : > { %v4380_v38 = vunpack.c.l.bf16 %v10568_v46 }
 0x4f0   : > { %5105 = vmatpush.bf16.msrb.mxu3 %v12826_v17  ;;  %v4515_v6 = vsub.f32 %v8051_v5, %v4323_v30  ;;  %v10574_v53 = vpack.c.b16 %v5499_v19, %v5498_v10  ;;  %v4381_v44 = vunpack.c.l.bf16 %v10572_v37  ;;  %v12835_v17 = vpack.c.bf16 %v12833_v34, %v12834_v23  ;;  %v12836_v19 = vld [vmem:[#allocation36_spill] sm:$0xff]  ;;  %v12857_v34 = vld [vmem:[#allocation75_spill] sm:$0xff] }
 0x4f1   : > { %v4572_v25 = vsub.f32 %v8053_v11, %v4380_v38  ;;  %v10603_v11 = vor.u32 %v7588_v39, %v7369_v59  ;;  %v4570_v30 = vsub.f32 %v10429_v8, %v4378_v22  ;;  %v4377_v10 = vunpack.c.l.bf16 %v10413_v33  ;;  %v12845_v38 = vld [vmem:[#allocation126_spill] sm:$0xff]  ;;  %v12852_v59 = vld [vmem:[#allocation88_spill] sm:$0xff] }
 0x4f2   : > { %v4640_v16 = vpack.c.bf16 %v4515_v6, %v4514_v49  ;;  %v4573_v32 = vsub.f32 %v8055_v7, %v4381_v44  ;;  %v4376_v7 = vunpack.c.l.bf16 %v10409_v31  ;;  %v12837_v49 = vld [vmem:[#allocation53_spill] sm:$0xff]  ;;  %v12853_v39 = vld [vmem:[#allocation32_spill] sm:$0xff] }
 0x4f3   : > { %5067 = vmatmul.bf16.gmra.mxu3 %v10570_v14  ;;  %v12838_v6 = vpack.c.bf16 %v12836_v19, %v12837_v49  ;;  %v12839_v31 = vld [vmem:[#allocation141_spill] sm:$0xff]  ;;  %v4569_v33 = vsub.f32 %v10394_v35, %v4377_v10  ;;  %v7600_v35 = vld [vmem:[%s12419_s2 + $0xac] sm:$0xf0]  ;;  %v12854_v22 = vpack.c.bf16 %v12852_v59, %v12853_v39  ;;  %v12868_v10 = vld [vmem:[#allocation62_spill] sm:$0xff] }
 0x4f4   : > { %5106 = vmatpush.bf16.msrb.mxu3 %v12829_v54  ;;  %5083 = vmatpush.bf16.msrb.mxu2 %v4640_v16  ;;  %v4669_v42 = vpack.c.bf16 %v4573_v32, %v4572_v25  ;;  %v12841_v48 = vpack.c.bf16 %v12839_v31, %v12840_v56  ;;  %v4668_v54 = vpack.c.bf16 %v4571_v18, %v4570_v30  ;;  %v12842_v16 = vld [vmem:[#allocation132_spill] sm:$0xff]  ;;  %v12846_v44 = vld [vmem:[#allocation125_spill] sm:$0xff]  ;;  %v12873_v56 = vld [vmem:[#allocation14_spill] sm:$0xff] }
 0x4f5   : > { %v4568_v55 = vsub.f32 %v10386_v27, %v4376_v7  ;;  %v12844_v4 = vpack.c.bf16 %v12842_v16, %v12843_v60  ;;  %v12847_v57 = vpack.c.bf16 %v12845_v38, %v12846_v44  ;;  %v7417_v27 = vld [vmem:[%s12419_s2 + $0x80] sm:$0xf]  ;;  %v7371_v32 = vld [vmem:[%s12419_s2 + $0x50] sm:$0xf0]  ;;  %v12866_v18 = vpack.c.bf16 %v12864_v12, %v12865_v20  ;;  %v12875_v16 = vld [vmem:[#allocation13_spill] sm:$0xff] }
 0x4f6   : > { %v5044_v5 = vpop.f32.mrf.mxu2  ;;  %v10650_v25 = vor.u32 %v7600_v35, %v7417_v27  ;;  %v12861_v7 = vld [vmem:[#allocation74_spill] sm:$0xff]  ;;  %v12870_v49 = vld [vmem:[#allocation148_spill] sm:$0xff]  ;;  %v12876_v60 = vld [vmem:[#allocation21_spill] sm:$0xff] }
 0x4f7   : > { %v10590_v47 = vadd.f32 %v5044_v5, %v10504_v29  ;;  %v4638_v29 = vpack.c.bf16 %v4511_v28, %v4510_v40  ;;  %v4667_v52 = vpack.c.bf16 %v4569_v33, %v4568_v55  ;;  %v12848_v5 = vld [vmem:[#allocation120_spill] sm:$0xff]  ;;  %v12851_v28 = vpack.c.bf16 %v10363_v58, %v10361_v15  ;;  %v7594_v55 = vld [vmem:[%s12419_s2 + $0x84] sm:$0xf]  ;;  %v12879_v44 = vld [vmem:[#allocation11_spill] sm:$0xff] }
 0x4f8   : > { %5107 = vmatpush.bf16.msrb.mxu3 %v12832_v26  ;;  %5084 = vmatpush.bf16.msrb.mxu2 %v4639_v9  ;;  %v12849_v9 = vld [vmem:[#allocation119_spill] sm:$0xff]  ;;  %v12856_v58 = vld [vmem:[#allocation80_spill] sm:$0xff]  ;;  %v7589_v27 = vld [vmem:[%s12419_s2 + $0x54] sm:$0xf0] }
 0x4f9   : > { %v12850_v40 = vpack.c.bf16 %v12848_v5, %v12849_v9  ;;  %v12858_v23 = vpack.c.bf16 %v12856_v58, %v12857_v34  ;;  %v7419_v33 = vld [vmem:[%s12419_s2 + $0xb0] sm:$0xf0]  ;;  %v12881_v35 = vld [vmem:[#allocation10_spill] sm:$0xff]  ;;  %v12884_v59 = vld [vmem:[#allocation17_spill] sm:$0xff] }
 0x4fa   : > { %v12878_v38 = vld [vmem:[#allocation20_spill] sm:$0xff]  ;;  %v12882_v9 = vld [vmem:[#allocation18_spill] sm:$0xff]  ;;  %v12889_v34 = vld [vmem:[#allocation15_spill] sm:$0xff] }
 0x4fb   : > { %v12885_v39 = vld [vmem:[#allocation8_spill] sm:$0xff]  ;;  %v12888_v58 = vld [vmem:[#allocation30_spill] sm:$0xff] }
 0x4fc   : > { %5108 = vmatpush.bf16.msrb.mxu3 %v12835_v17  ;;  %5085 = vmatpush.bf16.msrb.mxu2 %v4638_v29  ;;  %v12859_v17 = vld [vmem:[#allocation160_spill] sm:$0xff] }
 0x4fd   : > { %v12860_v29 = vpack.c.bf16 %v10277_v24, %v12859_v17  ;;  %v12867_v24 = vld [vmem:[#allocation63_spill] sm:$0xff]  ;;  %v7601_v17 = vld [vmem:[%s12419_s2 + $0xb4] sm:$0xf0]  ;;  %v12891_v20 = vld [vmem:[#allocation28_spill] sm:$0xff] }
 0x4fe   : > { %v10621_v8 = vpop.f32.mrf.mxu2  ;;  %v12869_v19 = vpack.c.bf16 %v12867_v24, %v12868_v10  ;;  %v12895_v24 = vld [vmem:[#allocation52_spill] sm:$0xff]  ;;  %v7473_v10 = vld [vmem:[%s12419_s2 + $0xe8] sm:$0xf] }
 0x4ff   : > { %5086 = vmatmul.bf16.vlgmr.msrb.gmra.mxu2 %v10603_v11 }
 0x500   : > { %5109 = vmatpush.bf16.msrb.mxu3 %v12838_v6  ;;  %5126 = vmatpush.bf16.msra.mxu2 %v12841_v48  ;;  %v12871_v6 = vld [vmem:[#allocation147_spill] sm:$0xff]  ;;  %v12874_v48 = vld [vmem:[#allocation22_spill] sm:$0xff] }
 0x501   : > { %v12872_v31 = vpack.c.bf16 %v12870_v49, %v12871_v6  ;;  %v12896_v6 = vld [vmem:[#allocation25_spill] sm:$0xff] }
 0x503   : > { %5072 = vmatmul.bf16.gmra.mxu3 %v10624_v3 }
 0x504   : > { %5150 = vmatpush.bf16.msra.mxu3 %v4669_v42  ;;  %5127 = vmatpush.bf16.msra.mxu2 %v12844_v4  ;;  %v12862_v42 = vld [vmem:[#allocation69_spill] sm:$0xff]  ;;  %v10705_v4 = vor.u32 %v7594_v55, %v7419_v33  ;;  %v12899_v33 = vld [vmem:[#allocation24_spill] sm:$0xff] }
 0x505   : > { %v12863_v30 = vpack.c.bf16 %v12861_v7, %v12862_v42  ;;  %v7583_v42 = vld [vmem:[%s12419_s2 + $0x2c] sm:$0xf] }
 0x506   : > { %v5049_v36 = vpop.f32.mrf.mxu2 }
 0x507   : > { %v10636_v26 = vadd.f32 %v5049_v36, %v10530_v51  ;;  %v7582_v51 = vld [vmem:[%s12419_s2 + $0x24] sm:$0xf]  ;;  %v7377_v36 = vld [vmem:[%s12419_s2 + $0x28] sm:$0xf] }
 0x508   : > { %5151 = vmatpush.bf16.msra.mxu3 %v4668_v54  ;;  %5128 = vmatpush.bf16.msra.mxu2 %v12847_v57  ;;  %v10665_v15 = vor.u32 %v7582_v51, %v7371_v32  ;;  %v10694_v54 = vor.u32 %v7612_v0, %v7465_v41  ;;  %v12880_v57 = vld [vmem:[#allocation19_spill] sm:$0xff]  ;;  %v10719_v5 = vor.u32 %v7589_v27, %v7377_v36  ;;  %v12883_v51 = vld [vmem:[#allocation9_spill] sm:$0xff]  ;;  %v12893_v41 = vld [vmem:[#allocation56_spill] sm:$0xff]  ;;  %v10795_v27 = vpop.f32.mrf.mxu3 }
 0x509   : > { %v12894_v0 = vld [vmem:[#allocation26_spill] sm:$0xff]  ;;  %v7475_v36 = vld [vmem:[%s12419_s2 + $0x118] sm:$0xf0] }
 0x50c   : > { %5152 = vmatpush.bf16.msra.mxu3 %v4667_v52  ;;  %5129 = vmatpush.bf16.msra.mxu2 %v12850_v40  ;;  %v12877_v52 = vld [vmem:[#allocation12_spill] sm:$0xff]  ;;  %v7606_v40 = vld [vmem:[%s12419_s2 + $0xe4] sm:$0xf] }
 0x50f   : > { %5091 = vmatmul.bf16.gmra.mxu2 %v10650_v25 }
 0x510   : > { %5153 = vmatpush.bf16.msra.mxu3 %v12851_v28  ;;  %5130 = vmatpush.bf16.msra.mxu2 %v12854_v22  ;;  %v7467_v28 = vld [vmem:[%s12419_s2 + $0x110] sm:$0xf0] }
 0x511   : > { %v10730_v32 = vor.u32 %v7606_v40, %v7467_v28  ;;  %v12886_v22 = vld [vmem:[#allocation16_spill] sm:$0xff]  ;;  %v12907_v40 = vld [vmem:[#allocation31_spill] sm:$0xff]  ;;  %v12908_v28 = vld [vmem:[#allocation38_spill] sm:$0xff] }
 0x513   : > { %5110 = vmatmul.bf16.vlgmr.msrb.gmra.mxu3 %v10665_v15 }
 0x514   : > { %5154 = vmatpush.bf16.msra.mxu3 %v12855_v2  ;;  %5131 = vmatpush.bf16.msra.mxu2 %v12858_v23  ;;  %v12887_v2 = vld [vmem:[#allocation7_spill] sm:$0xff] }
 0x515   : > { %v7425_v23 = vld [vmem:[%s12419_s2 + $0x88] sm:$0xf] }
 0x516   : > { %v10746_v7 = vor.u32 %v7601_v17, %v7425_v23  ;;  %v12913_v23 = vld [vmem:[#allocation72_spill] sm:$0xff]  ;;  %v12914_v17 = vld [vmem:[#allocation102_spill] sm:$0xff] }
 0x518   : > { %5155 = vmatpush.bf16.msra.mxu3 %v12860_v29  ;;  %5132 = vmatpush.bf16.msra.mxu2 %v12863_v30  ;;  %v12890_v29 = vld [vmem:[#allocation29_spill] sm:$0xff] }
 0x519   : > { %v7379_v30 = vld [vmem:[%s12419_s2 + $0x58] sm:$0xf0] }
 0x51a   : > { %v10755_v12 = vor.u32 %v7583_v42, %v7379_v30  ;;  %v12916_v42 = vld [vmem:[#allocation106_spill] sm:$0xff] }
 0x51b   : > { %v12917_v30 = vld [vmem:[#allocation146_spill] sm:$0xff] }
 0x51c   : > { %5156 = vmatpush.bf16.msra.mxu3 %v12866_v18  ;;  %5133 = vmatpush.bf16.msra.mxu2 %v12869_v19  ;;  %v12892_v18 = vld [vmem:[#allocation27_spill] sm:$0xff]  ;;  %v7613_v19 = vld [vmem:[%s12419_s2 + $0x114] sm:$0xf0] }
 0x51d   : > { %v10769_v49 = vor.u32 %v7613_v19, %v7473_v10  ;;  %v12921_v10 = vld [vmem:[#allocation81_spill] sm:$0xff] }
 0x51f   : > { %5096 = vmatmul.bf16.gmra.mxu2 %v10694_v54 }
 0x520   : > { %5157 = vmatpush.bf16.msra.mxu3 %v12872_v31  ;;  %5750 = vmatpush.bf16.msrb.mxu2 %v12873_v56  ;;  %v12897_v31 = vld [vmem:[#allocation48_spill] sm:$0xff]  ;;  %v7595_v56 = vld [vmem:[%s12419_s2 + $0x8c] sm:$0xf] }
 0x523   : > { %5115 = vmatmul.bf16.gmra.mxu3 %v10705_v4 }
 0x524   : > { %5774 = vmatpush.bf16.msrb.mxu3 %v12874_v48  ;;  %5751 = vmatpush.bf16.msrb.mxu2 %v12875_v16  ;;  %v7427_v48 = vld [vmem:[%s12419_s2 + $0xb8] sm:$0xf0] }
 0x525   : > { %v10780_v55 = vor.u32 %v7595_v56, %v7427_v48  ;;  %v12900_v16 = vld [vmem:[#allocation45_spill] sm:$0xff]  ;;  %v12924_v48 = vld [vmem:[#allocation164_spill] sm:$0xff] }
 0x526   : > { %v12923_v56 = vld [vmem:[#allocation101_spill] sm:$0xff] }
 0x527   : > { %12898 = vst [vmem:[#allocation39_spill] sm:$0xff] %v10780_v55 }
 0x528   : > { %5775 = vmatpush.bf16.msrb.mxu3 %v12876_v60  ;;  %5752 = vmatpush.bf16.msrb.mxu2 %v12877_v52  ;;  %v12901_v60 = vld [vmem:[#allocation23_spill] sm:$0xff]  ;;  %v12902_v52 = vld [vmem:[#allocation42_spill] sm:$0xff] }
 0x52c   : > { %5776 = vmatpush.bf16.msrb.mxu3 %v12878_v38  ;;  %5753 = vmatpush.bf16.msrb.mxu2 %v12879_v44  ;;  %v12903_v38 = vld [vmem:[#allocation37_spill] sm:$0xff]  ;;  %v12904_v44 = vld [vmem:[#allocation34_spill] sm:$0xff] }
 0x52f   : > { %5134 = vmatmul.bf16.vlgmr.msra.gmra.mxu2 %v10719_v5 }
 0x530   : > { %5777 = vmatpush.bf16.msrb.mxu3 %v12880_v57  ;;  %5754 = vmatpush.bf16.msrb.mxu2 %v12881_v35  ;;  %v7607_v57 = vld [vmem:[%s12419_s2 + $0xec] sm:$0xf]  ;;  %v12905_v35 = vld [vmem:[#allocation84_spill] sm:$0xff] }
 0x533   : > { %5120 = vmatmul.bf16.gmra.mxu3 %v10730_v32 }
 0x534   : > { %5778 = vmatpush.bf16.msrb.mxu3 %v12882_v9  ;;  %5755 = vmatpush.bf16.msrb.mxu2 %v12883_v51  ;;  %v10798_v9 = vor.u32 %v7607_v57, %v7475_v36  ;;  %v12909_v51 = vld [vmem:[#allocation35_spill] sm:$0xff] }
 0x535   : > { %v12928_v36 = vld [vmem:[#allocation111_spill] sm:$0xff] }
 0x536   : > { %12906 = vst [vmem:[#allocation139_spill] sm:$0xff] %v10798_v9 }
 0x538   : > { %5779 = vmatpush.bf16.msrb.mxu3 %v12884_v59  ;;  %5756 = vmatpush.bf16.msrb.mxu2 %v12885_v39 }
 0x53c   : > { %5780 = vmatpush.bf16.msrb.mxu3 %v12886_v22  ;;  %5757 = vmatpush.bf16.msrb.mxu2 %v12887_v2  ;;  %v12910_v22 = vld [vmem:[#allocation83_spill] sm:$0xff]  ;;  %v12911_v2 = vld [vmem:[#allocation78_spill] sm:$0xff] }
 0x53f   : > { %5139 = vmatmul.bf16.gmra.mxu2 %v10746_v7 }
 0x540   : > { %5798 = vmatpush.bf16.msra.mxu2 %v12888_v58  ;;  %5781 = vmatpush.bf16.msrb.mxu3 %v12889_v34  ;;  %v12912_v34 = vld [vmem:[#allocation68_spill] sm:$0xff] }
 0x543   : > { %5158 = vmatmul.bf16.vlgmr.msra.gmra.mxu3 %v10755_v12 }
 0x544   : > { %5799 = vmatpush.bf16.msra.mxu2 %v12890_v29  ;;  %5822 = vmatpush.bf16.msra.mxu3 %v12893_v41  ;;  %v12915_v29 = vld [vmem:[#allocation66_spill] sm:$0xff] }
 0x548   : > { %5800 = vmatpush.bf16.msra.mxu2 %v12891_v20  ;;  %5823 = vmatpush.bf16.msra.mxu3 %v12895_v24  ;;  %v12918_v20 = vld [vmem:[#allocation158_spill] sm:$0xff]  ;;  %v12920_v24 = vld [vmem:[#allocation60_spill] sm:$0xff] }
 0x54c   : > { %5801 = vmatpush.bf16.msra.mxu2 %v12892_v18  ;;  %5824 = vmatpush.bf16.msra.mxu3 %v12897_v31  ;;  %v4922_v18 = vadd.f32 %v12918_v20, %v12917_v30  ;;  %v12922_v31 = vld [vmem:[#allocation58_spill] sm:$0xff]  ;;  %v12934_v20 = vld [vmem:[#allocation92_spill] sm:$0xff] }
 0x54e   : > { %v4946_v19 = vadd.f32 %v12921_v10, %v4922_v18  ;;  %v12935_v18 = vld [vmem:[#allocation168_spill] sm:$0xff]  ;;  %v12938_v10 = vld [vmem:[#allocation150_spill] sm:$0xff] }
 0x54f   : > { %5144 = vmatmul.bf16.gmra.mxu2 %v10769_v49 }
 0x550   : > { %5802 = vmatpush.bf16.msra.mxu2 %v12894_v0  ;;  %5825 = vmatpush.bf16.msra.mxu3 %v12900_v16  ;;  %v12919_v0 = vld [vmem:[#allocation61_spill] sm:$0xff] }
 0x553   : > { %5163 = vmatmul.bf16.gmra.mxu3 %v10780_v55 }
 0x554   : > { %5803 = vmatpush.bf16.msra.mxu2 %v12896_v6  ;;  %5826 = vmatpush.bf16.msra.mxu3 %v12902_v52  ;;  %v5051_v6 = vpop.f32.mrf.mxu2  ;;  %v12926_v52 = vld [vmem:[#allocation99_spill] sm:$0xff] }
 0x558   : > { %5804 = vmatpush.bf16.msra.mxu2 %v12899_v33  ;;  %5827 = vmatpush.bf16.msra.mxu3 %v12903_v38  ;;  %v4970_v33 = vadd.f32 %v12924_v48, %v4946_v19  ;;  %v12927_v38 = vld [vmem:[#allocation169_spill] sm:$0xff]  ;;  %v12942_v48 = vld [vmem:[#allocation159_spill] sm:$0xff] }
 0x55c   : > { %5805 = vmatpush.bf16.msra.mxu2 %v12901_v60  ;;  %5828 = vmatpush.bf16.msra.mxu3 %v12904_v44  ;;  %v12925_v60 = vld [vmem:[#allocation108_spill] sm:$0xff] }
 0x55f   : > { %5758 = vmatmul.bf16.vlgmr.msrb.gmra.mxu2 %v12905_v35  ;;  %v12929_v35 = vld [vmem:[#allocation96_spill] sm:$0xff] }
 0x560   : > { %5829 = vmatpush.bf16.msra.mxu3 %v12907_v40  ;;  %5846 = vmatpush.bf16.msrb.mxu2 %v12908_v28  ;;  %v12930_v40 = vld [vmem:[#allocation152_spill] sm:$0xff]  ;;  %v12931_v28 = vld [vmem:[#allocation82_spill] sm:$0xff] }
 0x563   : > { %5168 = vmatmul.bf16.gmra.mxu3 %v10798_v9 }
 0x564   : > { %5847 = vmatpush.bf16.msrb.mxu2 %v12909_v51  ;;  %v4927_v51 = vadd.f32 %v12931_v28, %v12930_v40 }
 0x566   : > { %v5063_v59 = vpop.f32.mrf.mxu3 }
 0x567   : > { %v5064_v39 = vadd.f32 %v5063_v59, %v10552_v61 }
 0x568   : > { %5848 = vmatpush.bf16.msrb.mxu2 %v12910_v22 }
 0x56c   : > { %5849 = vmatpush.bf16.msrb.mxu2 %v12911_v2 }
 0x56e   : > { %v5065_v58 = vpop.f32.mrf.mxu3 }
 0x56f   : > { %5763 = vmatmul.bf16.gmra.mxu2 %v12912_v34 }
 0x570   : > { %5850 = vmatpush.bf16.msrb.mxu2 %v12913_v23  ;;  %v12932_v23 = vld [vmem:[#allocation94_spill] sm:$0xff] }
 0x573   : > { %5782 = vmatmul.bf16.vlgmr.msrb.gmra.mxu3 %v12914_v17  ;;  %v12933_v17 = vld [vmem:[#allocation65_spill] sm:$0xff] }
 0x574   : > { %5851 = vmatpush.bf16.msrb.mxu2 %v12915_v29  ;;  %5870 = vmatpush.bf16.msrb.mxu3 %v12916_v42  ;;  %v4951_v29 = vadd.f32 %v12933_v17, %v4927_v51 }
 0x576   : > { %v5068_v41 = vpop.f32.mrf.mxu3 }
 0x577   : > { %v5069_v61 = vadd.f32 %v5068_v41, %v10590_v47  ;;  %v4994_v47 = vadd.f32 %v12927_v38, %v4970_v33  ;;  %v4975_v41 = vadd.f32 %v12935_v18, %v4951_v29  ;;  %v12943_v33 = vld [vmem:[#allocation70_spill] sm:$0xff]  ;;  %v12948_v29 = vld [vmem:[#allocation116_spill] sm:$0xff] }
 0x578   : > { %5852 = vmatpush.bf16.msrb.mxu2 %v12919_v0  ;;  %5871 = vmatpush.bf16.msrb.mxu3 %v12920_v24  ;;  %v12936_v24 = vld [vmem:[#allocation112_spill] sm:$0xff] }
 0x579   : > { %v5018_v59 = vadd.f32 %v10478_v45, %v4994_v47  ;;  %v12937_v45 = vld [vmem:[#allocation90_spill] sm:$0xff] }
 0x57b   : > { %v5042_v2 = vadd.f32 %v10566_v63, %v5018_v59  ;;  %v12939_v63 = vld [vmem:[#allocation173_spill] sm:$0xff] }
 0x57c   : > { %5853 = vmatpush.bf16.msrb.mxu2 %v12922_v31  ;;  %5872 = vmatpush.bf16.msrb.mxu3 %v12923_v56  ;;  %v12940_v56 = vld [vmem:[#allocation115_spill] sm:$0xff]  ;;  %v12946_v59 = vld [vmem:[#allocation129_spill] sm:$0xff] }
 0x57d   : > { %v5066_v42 = vadd.f32 %v5065_v58, %v5042_v2  ;;  %v12941_v58 = vld [vmem:[#allocation144_spill] sm:$0xff] }
 0x57e   : > { %v5070_v16 = vpop.f32.mrf.mxu3 }
 0x57f   : > { %5768 = vmatmul.bf16.gmra.mxu2 %v12925_v60  ;;  %v4932_v60 = vadd.f32 %v12943_v33, %v12942_v48  ;;  %v12959_v48 = vld [vmem:[#allocation162_spill] sm:$0xff] }
 0x580   : > { %5873 = vmatpush.bf16.msrb.mxu3 %v12926_v52 }
 0x582   : > { %v5087_v44 = vpop.f32.mrf.mxu2 }
 0x583   : > { %v5088_v57 = vadd.f32 %v5087_v44, %v5064_v39  ;;  %5787 = vmatmul.bf16.gmra.mxu3 %v12928_v36  ;;  %v12944_v36 = vld [vmem:[#allocation134_spill] sm:$0xff] }
 0x584   : > { %5874 = vmatpush.bf16.msrb.mxu3 %v12929_v35  ;;  %v12945_v35 = vld [vmem:[#allocation165_spill] sm:$0xff] }
 0x585   : > { %v4956_v40 = vadd.f32 %v12945_v35, %v4932_v60  ;;  %v12960_v60 = vld [vmem:[#allocation76_spill] sm:$0xff] }
 0x586   : > { %v5073_v22 = vpop.f32.mrf.mxu3 }
 0x587   : > { %v5074_v34 = vadd.f32 %v5073_v22, %v10636_v26  ;;  %v4999_v26 = vadd.f32 %v12939_v63, %v4975_v41  ;;  %v12947_v22 = vld [vmem:[#allocation172_spill] sm:$0xff] }
 0x588   : > { %5875 = vmatpush.bf16.msrb.mxu3 %v12932_v23  ;;  %v4980_v2 = vadd.f32 %v12947_v22, %v4956_v40  ;;  %v12965_v22 = vld [vmem:[#allocation156_spill] sm:$0xff] }
 0x589   : > { %v5023_v52 = vadd.f32 %v10509_v1, %v4999_v26  ;;  %v12949_v1 = vld [vmem:[#allocation123_spill] sm:$0xff]  ;;  %v12954_v26 = vld [vmem:[#allocation109_spill] sm:$0xff] }
 0x58a   : > { %v5089_v39 = vpop.f32.mrf.mxu2 }
 0x58b   : > { %v5090_v30 = vadd.f32 %v5089_v39, %v5066_v42  ;;  %v5047_v47 = vadd.f32 %v10621_v8, %v5023_v52  ;;  %v5004_v8 = vadd.f32 %v10521_v43, %v4980_v2  ;;  %v12950_v39 = vld [vmem:[#allocation121_spill] sm:$0xff] }
 0x58c   : > { %5876 = vmatpush.bf16.msrb.mxu3 %v12934_v20  ;;  %v12951_v20 = vld [vmem:[#allocation117_spill] sm:$0xff] }
 0x58d   : > { %v5071_v28 = vadd.f32 %v5070_v16, %v5047_v47  ;;  %v5028_v16 = vadd.f32 %v10795_v27, %v5004_v8  ;;  %v12966_v8 = vld [vmem:[#allocation133_spill] sm:$0xff] }
 0x58e   : > { %v5075_v0 = vpop.f32.mrf.mxu3 }
 0x58f   : > { %5806 = vmatmul.bf16.vlgmr.msra.gmra.mxu2 %v12936_v24  ;;  %v5052_v41 = vadd.f32 %v5051_v6, %v5028_v16 }
 0x590   : > { %5877 = vmatpush.bf16.msrb.mxu3 %v12937_v45  ;;  %5894 = vmatpush.bf16.msra.mxu2 %v12938_v10  ;;  %v12953_v45 = vld [vmem:[#allocation174_spill] sm:$0xff] }
 0x591   : > { %v5076_v10 = vadd.f32 %v5075_v0, %v5052_v41 }
 0x592   : > { %v5092_v19 = vpop.f32.mrf.mxu2 }
 0x593   : > { %v5093_v31 = vadd.f32 %v5092_v19, %v5069_v61  ;;  %5792 = vmatmul.bf16.gmra.mxu3 %v12940_v56 }
 0x594   : > { %5895 = vmatpush.bf16.msra.mxu2 %v12941_v58  ;;  %v12956_v58 = vld [vmem:[#allocation122_spill] sm:$0xff] }
 0x596   : > { %v5111_v38 = vpop.f32.mrf.mxu3 }
 0x597   : > { %v5112_v44 = vadd.f32 %v5111_v38, %v5088_v57  ;;  %v12961_v38 = vld [vmem:[#allocation86_spill] sm:$0xff] }
 0x598   : > { %5896 = vmatpush.bf16.msra.mxu2 %v12944_v36  ;;  %v5508_v47 = vunpack.c.l.b16 %v12961_v38  ;;  %v12962_v36 = vld [vmem:[#allocation87_spill] sm:$0xff] }
 0x599   : > { %v5509_v35 = vunpack.c.l.b16 %v12962_v36 }
 0x59a   : > { %v5094_v51 = vpop.f32.mrf.mxu2 }
 0x59b   : > { %v5095_v61 = vadd.f32 %v5094_v51, %v5071_v28  ;;  %v12963_v28 = vld [vmem:[#allocation33_spill] sm:$0xff] }
 0x59c   : > { %5897 = vmatpush.bf16.msra.mxu2 %v12946_v59  ;;  %v12964_v59 = vld [vmem:[#allocation128_spill] sm:$0xff] }
 0x59e   : > { %v5113_v23 = vpop.f32.mrf.mxu3 }
 0x59f   : > { %v5114_v17 = vadd.f32 %v5113_v23, %v5090_v30  ;;  %5811 = vmatmul.bf16.gmra.mxu2 %v12948_v29  ;;  %v12952_v30 = vld [vmem:[#allocation113_spill] sm:$0xff] }
 0x5a0   : > { %5898 = vmatpush.bf16.msra.mxu2 %v12949_v1  ;;  %v10871_v23 = vld [vmem:[%s8238_s10 + $0x7] sm:$0x1] }
 0x5a1   : > { %v261_v29 = vand.u32 2139095040, %v10871_v23 }
 0x5a2   : > { %v5097_v57 = vpop.f32.mrf.mxu2 }
 0x5a3   : > { %v5098_v42 = vadd.f32 %v5097_v57, %v5074_v34  ;;  %5830 = vmatmul.bf16.vlgmr.msra.gmra.mxu3 %v12950_v39  ;;  %v12955_v34 = vld [vmem:[#allocation170_spill] sm:$0xff]  ;;  %v12967_v57 = vld [vmem:[#allocation85_spill] sm:$0xff] }
 0x5a4   : > { %5899 = vmatpush.bf16.msra.mxu2 %v12951_v20  ;;  %5918 = vmatpush.bf16.msra.mxu3 %v10480_v50  ;;  %v12957_v50 = vld [vmem:[#allocation166_spill] sm:$0xff]  ;;  %v12968_v20 = vld [vmem:[#allocation79_spill] sm:$0xff] }
 0x5a6   : > { %v5116_v18 = vpop.f32.mrf.mxu3 }
 0x5a7   : > { %v5117_v24 = vadd.f32 %v5116_v18, %v5093_v31  ;;  %v12958_v31 = vld [vmem:[#allocation127_spill] sm:$0xff] }
 0x5a8   : > { %5900 = vmatpush.bf16.msra.mxu2 %v12952_v30  ;;  %5919 = vmatpush.bf16.msra.mxu3 %v12953_v45  ;;  %v12969_v30 = vld [vmem:[#allocation73_spill] sm:$0xff] }
 0x5aa   : > { %v5099_v63 = vpop.f32.mrf.mxu2 }
 0x5ab   : > { %v5100_v43 = vadd.f32 %v5099_v63, %v5076_v10  ;;  %v12970_v10 = vld [vmem:[#allocation104_spill] sm:$0xff] }
 0x5ac   : > { %5901 = vmatpush.bf16.msra.mxu2 %v12954_v26  ;;  %5920 = vmatpush.bf16.msra.mxu3 %v12955_v34  ;;  %v5524_v63 = vunpack.c.l.b16 %v12970_v10 }
 0x5ae   : > { %v5118_v19 = vpop.f32.mrf.mxu3 }
 0x5af   : > { %v5119_v56 = vadd.f32 %v5118_v19, %v5095_v61  ;;  %5816 = vmatmul.bf16.gmra.mxu2 %v12956_v58  ;;  %v5629_v61 = vpack.c.b16 %v5509_v35, %v5508_v47  ;;  %v12972_v19 = vld [vmem:[#allocation135_spill] sm:$0xff] }
 0x5b0   : > { %5921 = vmatpush.bf16.msra.mxu3 %v12957_v50  ;;  %v12973_v58 = vld [vmem:[#allocation67_spill] sm:$0xff] }
 0x5b2   : > { %v5135_v27 = vpop.f32.mrf.mxu2 }
 0x5b3   : > { %v5136_v6 = vadd.f32 %v5135_v27, %v5112_v44  ;;  %5835 = vmatmul.bf16.gmra.mxu3 %v12958_v31 }
 0x5b4   : > { %5922 = vmatpush.bf16.msra.mxu3 %v12959_v48 }
 0x5b6   : > { %v5121_v0 = vpop.f32.mrf.mxu3 }
 0x5b7   : > { %v5122_v33 = vadd.f32 %v5121_v0, %v5098_v42  ;;  %v262_v42 = vshrl.u32 %v261_v29, 23 }
 0x5b8   : > { %5923 = vmatpush.bf16.msra.mxu3 %v12960_v60  ;;  %v12975_v60 = vld [vmem:[#allocation103_spill] sm:$0xff] }
 0x5b9   : > { %v6729_v18 = vadd.s32 4294967169, %v262_v42 }
 0x5ba   : > { %v5137_v52 = vpop.f32.mrf.mxu2 }
 0x5bb   : > { %v5138_v40 = vadd.f32 %v5137_v52, %v5114_v17 }
 0x5bc   : > { %5924 = vmatpush.bf16.msra.mxu3 %v12963_v28 }
 0x5be   : > { %v5123_v51 = vpop.f32.mrf.mxu3 }
 0x5bf   : > { %v5124_v44 = vadd.f32 %v5123_v51, %v5100_v43  ;;  %5854 = vmatmul.bf16.vlgmr.msrb.gmra.mxu2 %v12964_v59  ;;  %v12971_v43 = vld [vmem:[#allocation105_spill] sm:$0xff]  ;;  %v12504_v59 = vmov 1326507024  }
 0x5c0   : > { %5925 = vmatpush.bf16.msra.mxu3 %v12965_v22  ;;  %5942 = vmatpush.bf16.msrb.mxu2 %v5629_v61  ;;  %v5525_v26 = vunpack.c.l.b16 %v12971_v43  ;;  %v12978_v51 = vld [vmem:[#allocation97_spill] sm:$0xff]  ;;  %v12502_v61 = vmov 920167782   ;;  %v12507_v43 = vmov 683565275  }
 0x5c2   : > { %v5140_v2 = vpop.f32.mrf.mxu2  ;;  %v5637_v27 = vpack.c.b16 %v5525_v26, %v5524_v63  ;;  %v12980_v63 = vld [vmem:[#allocation95_spill] sm:$0xff] }
 0x5c3   : > { %v5141_v1 = vadd.f32 %v5140_v2, %v5117_v24  ;;  %5840 = vmatmul.bf16.gmra.mxu3 %v12966_v8  ;;  %v268_v24 = vadd.s32 1, %v6729_v18  ;;  %v12500_v2 = vand.u32 2147483647, %v10871_v23 }
 0x5c4   : > { %5943 = vmatpush.bf16.msrb.mxu2 %v12967_v57 }
 0x5c5   : > { %vm269_vm6 = vcmp.gt.s32.totalorder %v268_v24, 0 }
 0x5c6   : > { %v5159_v17 = vpop.f32.mrf.mxu3  ;;  %v270_v31 = vsel %vm269_vm6, %v268_v24, 0 }
 0x5c7   : > { %v5160_v39 = vadd.f32 %v5159_v17, %v5136_v6  ;;  %v272_v52 = vand.u32 31, %v270_v31  ;;  %v10908_v29 = vshrl.u32 %v270_v31, 5 }
 0x5c8   : > { %5944 = vmatpush.bf16.msrb.mxu2 %v12968_v20  ;;  %v12979_v20 = vld [vmem:[#allocation149_spill] sm:$0xff] }
 0x5c9   : > { %v10894_v36 = vsub.s32 32, %v272_v52  ;;  %vm293_vm7 = vcmp.lt.s32.totalorder %v10908_v29, 4  ;;  %vm290_vm8 = vcmp.lt.s32.totalorder %v10908_v29, 1  ;;  %vm292_vm9 = vcmp.lt.s32.totalorder %v10908_v29, 3 }
 0x5ca   : > { %v5142_v16 = vpop.f32.mrf.mxu2  ;;  %vm291_vm10 = vcmp.lt.s32.totalorder %v10908_v29, 2 }
 0x5cb   : > { %v5143_v41 = vadd.f32 %v5142_v16, %v5119_v56  ;;  %v12974_v56 = vld [vmem:[#allocation143_spill] sm:$0xff]  ;;  %v285_v57 = vshrl.u32 %v12502_v61, %v10894_v36  ;;  %v12510_v16 = vmov 2475754826  }
 0x5cc   : > { %5945 = vmatpush.bf16.msrb.mxu2 %v12969_v30  ;;  %v278_v18 = vshll.u32 %v12510_v16, %v272_v52  ;;  %v276_v26 = vshrl.u32 %v12510_v16, %v10894_v36 }
 0x5ce   : > { %v5161_v45 = vpop.f32.mrf.mxu3 }
 0x5cf   : > { %v10880_v34 = vadd.f32 %v5161_v45, %v5138_v40  ;;  %5859 = vmatmul.bf16.gmra.mxu2 %v12972_v19 }
 0x5d0   : > { %5946 = vmatpush.bf16.msrb.mxu2 %v12973_v58  ;;  %v265_v58 = vand.u32 8388607, %v12500_v2 }
 0x5d2   : > { %v5145_v50 = vpop.f32.mrf.mxu2 }
 0x5d3   : > { %v5146_v6 = vadd.f32 %v5145_v50, %v5122_v33  ;;  %5878 = vmatmul.bf16.vlgmr.msrb.gmra.mxu3 %v12974_v56  ;;  %v12976_v33 = vld [vmem:[#allocation100_spill] sm:$0xff] }
 0x5d4   : > { %5947 = vmatpush.bf16.msrb.mxu2 %v10574_v53  ;;  %5966 = vmatpush.bf16.msrb.mxu3 %v5637_v27  ;;  %v10897_v53 = vld [vmem:[%s8238_s10 + $0x8] sm:$0x1] }
 0x5d5   : > { %v570_v35 = vand.u32 2139095040, %v10897_v53 }
 0x5d6   : > { %v5164_v48 = vpop.f32.mrf.mxu3 }
 0x5d7   : > { %v10886_v0 = vadd.f32 %v5164_v48, %v5141_v1  ;;  %v571_v22 = vshrl.u32 %v570_v35, 23  ;;  %v12515_v1 = vmov 2102212464   ;;  %v266_v35 = vor.u32 8388608, %v265_v58 }
 0x5d8   : > { %5948 = vmatpush.bf16.msrb.mxu2 %v10537_v21  ;;  %5967 = vmatpush.bf16.msrb.mxu3 %v12975_v60  ;;  %v12977_v21 = vld [vmem:[#allocation145_spill] sm:$0xff]  ;;  %v284_v8 = vshll.u32 %v12515_v1, %v272_v52  ;;  %v282_v10 = vshrl.u32 %v12515_v1, %v10894_v36 }
 0x5d9   : > { %v6735_v19 = vadd.s32 4294967169, %v571_v22  ;;  %v12981_v60 = vld [vmem:[#allocation93_spill] sm:$0xff] }
 0x5da   : > { %v5147_v38 = vpop.f32.mrf.mxu2  ;;  %v286_v50 = vor.u32 %v285_v57, %v284_v8 }
 0x5db   : > { %v10890_v47 = vadd.f32 %v5147_v38, %v5124_v44  ;;  %v287_v44 = vshll.u32 %v12502_v61, %v272_v52 }
 0x5dc   : > { %5949 = vmatpush.bf16.msrb.mxu2 %v10507_v13  ;;  %5968 = vmatpush.bf16.msrb.mxu3 %v12976_v33  ;;  %v288_v13 = vshrl.u32 %v12504_v59, %v10894_v36  ;;  %v577_v33 = vadd.s32 1, %v6735_v19  ;;  %v12986_v19 = vld [vmem:[#allocation89_spill] sm:$0xff] }
 0x5de   : > { %v5166_v40 = vpop.f32.mrf.mxu3  ;;  %v289_v24 = vor.u32 %v288_v13, %v287_v44  ;;  %v12983_v44 = vld [vmem:[#allocation138_spill] sm:$0xff]  ;;  %vm578_vm11 = vcmp.gt.s32.totalorder %v577_v33, 0 }
 0x5df   : > { %v10900_v28 = vadd.f32 %v5166_v40, %v5143_v41  ;;  %5864 = vmatmul.bf16.gmra.mxu2 %v12977_v21  ;;  %v12513_v41 = vmov 2131351028   ;;  %v12982_v21 = vld [vmem:[#allocation137_spill] sm:$0xff]  ;;  %v5541_v13 = vunpack.c.l.b16 %v12983_v44 }
 0x5e0   : > { %5969 = vmatpush.bf16.msrb.mxu3 %v12978_v51  ;;  %v279_v30 = vshrl.u32 %v12513_v41, %v10894_v36  ;;  %v281_v45 = vshll.u32 %v12513_v41, %v272_v52  ;;  %v303_v38 = vsel %vm293_vm7, %v289_v24, 1326507024  ;;  %v5540_v51 = vunpack.c.l.b16 %v12982_v21 }
 0x5e1   : > { %v304_v57 = vsel %vm292_vm9, %v286_v50, %v303_v38  ;;  %v579_v24 = vsel %vm578_vm11, %v577_v33, 0 }
 0x5e2   : > { %v5759_v17 = vpop.f32.mrf.mxu2  ;;  %v10931_v31 = vor.u32 %v279_v30, %v278_v18  ;;  %v10933_v48 = vor.u32 %v282_v10, %v281_v45  ;;  %v10962_v18 = vshll.u32 %v266_v35, 8  ;;  %v5645_v45 = vpack.c.b16 %v5541_v13, %v5540_v51  ;;  %v12987_v35 = vld [vmem:[#allocation155_spill] sm:$0xff] }
 0x5e3   : > { %v10913_v42 = vadd.f32 %v5759_v17, %v5160_v39  ;;  %5883 = vmatmul.bf16.gmra.mxu3 %v12979_v20  ;;  %v275_v39 = vshll.u32 %v12507_v43, %v272_v52  ;;  %v12984_v17 = vld [vmem:[#allocation91_spill] sm:$0xff]  ;;  %v581_v38 = vand.u32 31, %v579_v24 }
 0x5e4   : > { %5970 = vmatpush.bf16.msrb.mxu3 %v12980_v63  ;;  %v302_v8 = vsel %vm290_vm8, %v10931_v31, %v10933_v48  ;;  %v307_v58 = vand.u32 65535, %v10962_v18  ;;  %v308_v33 = vshrl.u32 %v10962_v18, 16 }
 0x5e5   : > { %v10937_v52 = vor.u32 %v276_v26, %v275_v39  ;;  %v10966_v10 = vsel %vm291_vm10, %v302_v8, %v304_v57  ;;  %v12985_v39 = vld [vmem:[#allocation161_spill] sm:$0xff]  ;;  %v12989_v57 = vld [vmem:[#allocation130_spill] sm:$0xff] }
 0x5e6   : > { %v5169_v27 = vpop.f32.mrf.mxu3 }
 0x5e7   : > { %v10929_v56 = vadd.f32 %v5169_v27, %v5146_v6  ;;  %v299_v6 = vsel %vm293_vm7, %v286_v50, 920167782  ;;  %v298_v20 = vsel %vm290_vm8, %v10937_v52, %v10931_v31  ;;  %v12506_v50 = vshrl.u32 %v10966_v10, 16 }
 0x5e8   : > { %5971 = vmatpush.bf16.msrb.mxu3 %v12981_v60 }
 0x5e9   : > { %v10989_v21 = vmul.u32 %v12506_v50, %v307_v58 }
 0x5ea   : > { %v5761_v40 = vpop.f32.mrf.mxu2 }
 0x5eb   : > { %v5762_v22 = vadd.f32 %v5761_v40, %v10880_v34  ;;  %v300_v34 = vsel %vm292_vm9, %v10933_v48, %v299_v6  ;;  %v12988_v6 = vld [vmem:[#allocation136_spill] sm:$0xff]  ;;  %v309_v40 = vand.u32 65535, %v10966_v10 }
 0x5ec   : > { %5972 = vmatpush.bf16.msrb.mxu3 %v12984_v17  ;;  %v10974_v26 = vsel %vm291_vm10, %v298_v20, %v300_v34  ;;  %v315_v20 = vshll.u32 %v10989_v21, 16 }
 0x5ed   : > { %v12501_v60 = vshrl.u32 %v10974_v26, 16  ;;  %v331_v51 = vand.u32 65535, %v10974_v26  ;;  %v311_v17 = vmul.u32 %v309_v40, %v307_v58  ;;  %v11033_v9 = vmul.u32 %v309_v40, %v308_v33 }
 0x5ee   : > { %v5171_v30 = vpop.f32.mrf.mxu3 }
 0x5ef   : > { %v10969_v63 = vadd.f32 %v5171_v30, %v10890_v47  ;;  %5902 = vmatmul.bf16.vlgmr.msra.gmra.mxu2 %v12985_v39  ;;  %v10994_v13 = vmul.u32 %v12501_v60, %v307_v58  ;;  %v333_v34 = vmul.u32 %v331_v51, %v307_v58  ;;  %v11003_v30 = vmul.u32 %v331_v51, %v308_v33  ;;  %v12990_v51 = vld [vmem:[#allocation124_spill] sm:$0xff] }
 0x5f0   : > { %5973 = vmatpush.bf16.msrb.mxu3 %v12986_v19  ;;  %5990 = vmatpush.bf16.msra.mxu2 %v5645_v45  ;;  %v593_v19 = vshll.u32 %v12515_v1, %v581_v38  ;;  %v587_v60 = vshll.u32 %v12510_v16, %v581_v38  ;;  %vm11039_vm13 = vc.u32 %v311_v17, %v315_v20 }
 0x5f1   : > { %v337_v39 = vshll.u32 %v10994_v13, 16 }
 0x5f2   : > { %v5764_v27 = vpop.f32.mrf.mxu2 }
 0x5f3   : > { %v10981_v47 = vadd.f32 %v5764_v27, %v10886_v0  ;;  %5888 = vmatmul.bf16.gmra.mxu3 %v12987_v35  ;;  %v10996_v0 = vsub.s32 32, %v581_v38  ;;  %vm11044_vm14 = vc.u32 %v333_v34, %v337_v39 }
 0x5f4   : > { %5991 = vmatpush.bf16.msra.mxu2 %v12988_v6  ;;  %v11013_v6 = vshrl.u32 %v579_v24, 5 }
 0x5f5   : > { %v594_v27 = vshrl.u32 %v12502_v61, %v10996_v0  ;;  %v597_v58 = vshrl.u32 %v12504_v59, %v10996_v0  ;;  %v585_v2 = vshrl.u32 %v12510_v16, %v10996_v0  ;;  %v588_v24 = vshrl.u32 %v12513_v41, %v10996_v0 }
 0x5f6   : > { %v5783_v44 = vpop.f32.mrf.mxu3  ;;  %v5556_v59 = vunpack.c.l.b16 %v10568_v46  ;;  %vm602_vm12 = vcmp.lt.s32.totalorder %v11013_v6, 4  ;;  %v339_v46 = vshll.u32 %v11003_v30, 16  ;;  %vm599_vm15 = vcmp.lt.s32.totalorder %v11013_v6, 1 }
 0x5f7   : > { %v10999_v8 = vadd.f32 %v5783_v44, %v10913_v42  ;;  %v596_v44 = vshll.u32 %v12502_v61, %v581_v38  ;;  %v595_v50 = vor.u32 %v594_v27, %v593_v19  ;;  %v12991_v42 = vld [vmem:[#allocation77_spill] sm:$0xff]  ;;  %v11052_v40 = vor.u32 %v588_v24, %v587_v60 }
 0x5f8   : > { %5992 = vmatpush.bf16.msra.mxu2 %v12989_v57  ;;  %v584_v57 = vshll.u32 %v12507_v43, %v581_v38  ;;  %vm601_vm0 = vcmp.lt.s32.totalorder %v11013_v6, 3  ;;  %v321_v60 = vadd.s32 %v315_v20, %v311_v17  ;;  %v13001_v24 = vshrl.u32 %v10974_v26, 16 }
 0x5f9   : > { %v598_v55 = vor.u32 %v597_v58, %v596_v44  ;;  %v12999_v58 = vshrl.u32 %v10966_v10, 16  ;;  %vm600_vm1 = vcmp.lt.s32.totalorder %v11013_v6, 2 }
 0x5fa   : > { %v5766_v45 = vpop.f32.mrf.mxu2 }
 0x5fb   : > { %v11010_v35 = vadd.f32 %v5766_v45, %v10900_v28  ;;  %v590_v28 = vshll.u32 %v12513_v41, %v581_v38  ;;  %v591_v45 = vshrl.u32 %v12515_v1, %v10996_v0  ;;  %v12992_v38 = vand.u32 2147483647, %v10897_v53  ;;  %v12993_v41 = vld [vmem:[#allocation118_spill] sm:$0xff] }
 0x5fc   : > { %5993 = vmatpush.bf16.msra.mxu2 %v12990_v51  ;;  %v5557_v51 = vunpack.c.l.b16 %v10572_v37 }
 0x5fd   : > { %v574_v16 = vand.u32 8388607, %v12992_v38  ;;  %v11054_v19 = vor.u32 %v591_v45, %v590_v28  ;;  %v13000_v28 = vmov 0   ;;  %v13002_v45 = vld [vmem:[#allocation110_spill] sm:$0xff] }
 0x5fe   : > { %v5785_v61 = vpop.f32.mrf.mxu3 }
 0x5ff   : > { %v11030_v43 = vadd.f32 %v5785_v61, %v5762_v22  ;;  %5907 = vmatmul.bf16.gmra.mxu2 %v12991_v42  ;;  %v11048_v61 = vadd.s32 %v337_v39, %v333_v34  ;;  %v11050_v22 = vor.u32 %v585_v2, %v584_v57  ;;  %v608_v42 = vsel %vm602_vm12, %v595_v50, 920167782 }
 0x600   : > { %5994 = vmatpush.bf16.msra.mxu2 %v12993_v41  ;;  %v5653_v41 = vpack.c.b16 %v5557_v51, %v5556_v59  ;;  %v317_v2 = vshll.u32 %v11033_v9, 16  ;;  %v575_v34 = vor.u32 8388608, %v574_v16  ;;  %v612_v39 = vsel %vm602_vm12, %v598_v55, 1326507024  ;;  %v12998_v59 = vld [vmem:[#allocation114_spill] sm:$0xff]  ;;  %v13003_v51 = vld [vmem:[#allocation171_spill] sm:$0xff] }
 0x601   : > { %v314_v57 = vmul.u32 %v12999_v58, %v308_v33  ;;  %v342_v16 = vsel %vm11044_vm14, 1, %v13000_v28  ;;  %v607_v55 = vsel %vm599_vm15, %v11050_v22, %v11052_v40  ;;  %v609_v10 = vsel %vm601_vm0, %v11054_v19, %v608_v42 }
 0x602   : > { %v5769_v27 = vpop.f32.mrf.mxu2  ;;  %vm345_vm2 = vc.u32 %v11048_v61, %v339_v46  ;;  %v611_v26 = vsel %vm599_vm15, %v11052_v40, %v11054_v19  ;;  %vm323_vm3 = vc.u32 %v321_v60, %v317_v2  ;;  %v11098_v20 = vshll.u32 %v575_v34, 8 }
 0x603   : > { %v11061_v44 = vadd.f32 %v5769_v27, %v10929_v56  ;;  %5926 = vmatmul.bf16.vlgmr.msra.gmra.mxu3 %v10532_v62  ;;  %v320_v56 = vsel %vm11039_vm13, 1, %v13000_v28  ;;  %v336_v62 = vmul.u32 %v13001_v24, %v308_v33  ;;  %v613_v33 = vsel %vm601_vm0, %v595_v50, %v612_v39  ;;  %v13004_v39 = vld [vmem:[#allocation107_spill] sm:$0xff] }
 0x604   : > { %5995 = vmatpush.bf16.msra.mxu2 %v12998_v59  ;;  %6014 = vmatpush.bf16.msra.mxu3 %v5653_v41  ;;  %v610_v37 = vsel %vm600_vm1, %v607_v55, %v609_v10  ;;  %v322_v27 = vadd.s32 %v320_v56, %v314_v57  ;;  %v346_v41 = vsel %vm345_vm2, 1, %v13000_v28  ;;  %v614_v50 = vsel %vm600_vm1, %v611_v26, %v613_v33  ;;  %v13005_v59 = vld [vmem:[#allocation167_spill] sm:$0xff] }
 0x605   : > { %v344_v38 = vadd.s32 %v342_v16, %v336_v62  ;;  %v616_v60 = vand.u32 65535, %v11098_v20  ;;  %v641_v34 = vshrl.u32 %v610_v37, 16  ;;  %v338_v58 = vshrl.u32 %v10994_v13, 16 }
 0x606   : > { %v5788_v1 = vpop.f32.mrf.mxu3  ;;  %v619_v56 = vshrl.u32 %v614_v50, 16  ;;  %v316_v24 = vshrl.u32 %v10989_v21, 16  ;;  %v13006_v55 = vmov 683565275   ;;  %v295_v26 = vsel %vm293_vm7, %v10933_v48, 2102212464 }
 0x607   : > { %v11096_v17 = vadd.f32 %v5788_v1, %v10981_v47  ;;  %v324_v47 = vsel %vm323_vm3, 1, %v13000_v28  ;;  %v348_v57 = vadd.s32 %v346_v41, %v344_v38  ;;  %v274_v10 = vshrl.u32 %v13006_v55, %v10894_v36  ;;  %v13007_v1 = vld [vmem:[#allocation64_spill] sm:$0xff]  ;;  %v13008_v21 = vld [vmem:[#allocation163_spill] sm:$0xff] }
 0x608   : > { %5996 = vmatpush.bf16.msra.mxu2 %v13002_v45  ;;  %6015 = vmatpush.bf16.msra.mxu3 %v13003_v51  ;;  %v326_v62 = vadd.s32 %v324_v47, %v322_v27  ;;  %v617_v13 = vshrl.u32 %v11098_v20, 16  ;;  %v640_v33 = vand.u32 65535, %v610_v37  ;;  %v11126_v45 = vmul.u32 %v641_v34, %v616_v60 }
 0x609   : > { %v340_v51 = vshrl.u32 %v11003_v30, 16  ;;  %v349_v38 = vadd.s32 %v348_v57, %v338_v58  ;;  %v618_v36 = vand.u32 65535, %v614_v50  ;;  %v11130_v27 = vmul.u32 %v619_v56, %v616_v60 }
 0x60a   : > { %v5771_v42 = vpop.f32.mrf.mxu2  ;;  %v327_v41 = vadd.s32 %v326_v62, %v316_v24  ;;  %v294_v48 = vsel %vm290_vm8, %v274_v10, %v10937_v52  ;;  %v296_v47 = vsel %vm292_vm9, %v10931_v31, %v295_v26  ;;  %v11141_v50 = vmul.u32 %v640_v33, %v617_v13 }
 0x60b   : > { %v11109_v2 = vadd.f32 %v5771_v42, %v10969_v63  ;;  %v350_v58 = vadd.s32 %v349_v38, %v340_v51  ;;  %v620_v57 = vmul.u32 %v618_v36, %v616_v60  ;;  %v622_v24 = vmul.u32 %v618_v36, %v617_v13  ;;  %v13011_v36 = vld [vmem:[#allocation157_spill] sm:$0xff] }
 0x60c   : > { %5997 = vmatpush.bf16.msra.mxu2 %v13004_v39  ;;  %6016 = vmatpush.bf16.msra.mxu3 %v13005_v59  ;;  %v642_v39 = vmul.u32 %v640_v33, %v616_v60  ;;  %v646_v59 = vshll.u32 %v11126_v45, 16  ;;  %v624_v52 = vshll.u32 %v11130_v27, 16  ;;  %v648_v10 = vshll.u32 %v11141_v50, 16 }
 0x60d   : > { %v354_v26 = vadd.s32 1, %v350_v58  ;;  %v626_v33 = vshll.u32 %v622_v24, 16  ;;  %vm260_vm14 = vcmp.lt.s32.totalorder %v10871_v23, 0 }
 0x60e   : > { %v5790_v16 = vpop.f32.mrf.mxu3  ;;  %vm650_vm4 = vc.u32 %v642_v39, %v646_v59  ;;  %v652_v60 = vadd.s32 %v646_v59, %v642_v39  ;;  %vm628_vm5 = vc.u32 %v620_v57, %v624_v52  ;;  %v630_v30 = vadd.s32 %v624_v52, %v620_v57 }
 0x60f   : > { %v11119_v63 = vadd.f32 %v5790_v16, %v11010_v35  ;;  %5912 = vmatmul.bf16.gmra.mxu2 %v13007_v1  ;;  %v318_v35 = vshrl.u32 %v11033_v9, 16  ;;  %v13009_v9 = vld [vmem:[#allocation71_spill] sm:$0xff]  ;;  %v297_v16 = vsel %vm291_vm10, %v294_v48, %v296_v47  ;;  %v13010_v1 = vld [vmem:[#allocation49_spill] sm:$0xff]  ;;  %v629_v38 = vsel %vm628_vm5, 1, %v13000_v28 }
 0x610   : > { %6017 = vmatpush.bf16.msra.mxu3 %v13008_v21  ;;  %v651_v21 = vsel %vm650_vm4, 1, %v13000_v28  ;;  %v351_v51 = vmul.u32 %v10962_v18, %v297_v16  ;;  %vm654_vm7 = vc.u32 %v652_v60, %v648_v10  ;;  %vm632_vm8 = vc.u32 %v630_v30, %v626_v33  ;;  %v13012_v18 = vld [vmem:[#allocation151_spill] sm:$0xff] }
 0x611   : > { %v11146_v62 = vadd.s32 %v327_v41, %v318_v35  ;;  %v647_v47 = vshrl.u32 %v11126_v45, 16 }
 0x612   : > { %v5807_v42 = vpop.f32.mrf.mxu2 }
 0x613   : > { %v5808_v37 = vadd.f32 %v5807_v42, %v10999_v8  ;;  %5931 = vmatmul.bf16.gmra.mxu3 %v10570_v14  ;;  %v11151_v14 = vadd.s32 %v11048_v61, %v339_v46  ;;  %v645_v46 = vmul.u32 %v641_v34, %v617_v13  ;;  %v655_v34 = vsel %vm654_vm7, 1, %v13000_v28 }
 0x614   : > { %6018 = vmatpush.bf16.msra.mxu3 %v13009_v9  ;;  %v625_v9 = vshrl.u32 %v11130_v27, 16  ;;  %v604_v27 = vsel %vm602_vm12, %v11054_v19, 2102212464 }
 0x615   : > { %vm353_vm6 = vc.u32 %v11146_v62, %v11151_v14  ;;  %v653_v41 = vadd.s32 %v651_v21, %v645_v46 }
 0x616   : > { %v5793_v31 = vpop.f32.mrf.mxu3  ;;  %v355_v35 = vsel %vm353_vm6, %v354_v26, %v350_v58 }
 0x617   : > { %v11154_v8 = vadd.f32 %v5793_v31, %v11061_v44  ;;  %v623_v44 = vmul.u32 %v619_v56, %v617_v13  ;;  %v356_v13 = vadd.s32 %v355_v35, %v351_v51  ;;  %v657_v39 = vadd.s32 %v655_v34, %v653_v41 }
 0x618   : > { %6019 = vmatpush.bf16.msra.mxu3 %v13010_v1  ;;  %v627_v1 = vshrl.u32 %v622_v24, 16  ;;  %v11192_v24 = vadd.s32 %v652_v60, %v648_v10 }
 0x619   : > { %v631_v48 = vadd.s32 %v629_v38, %v623_v44  ;;  %v357_v52 = vadd.s32 536870912, %v356_v13  ;;  %v658_v31 = vadd.s32 %v657_v39, %v647_v47 }
 0x61a   : > { %v5809_v61 = vpop.f32.mrf.mxu2 }
 0x61b   : > { %v5810_v29 = vadd.f32 %v5809_v61, %v11030_v43  ;;  %v633_v43 = vsel %vm632_vm8, 1, %v13000_v28  ;;  %v11179_v33 = vshrl.u32 %v357_v52, 30  ;;  %v352_v52 = vadd.s32 %v11151_v14, %v11146_v62 }
 0x61c   : > { %6020 = vmatpush.bf16.msra.mxu3 %v13011_v36  ;;  %v635_v58 = vadd.s32 %v633_v43, %v631_v48  ;;  %vm401_vm8 = vweird.f32 %v10871_v23 }
 0x61d   : > { %v359_v46 = vshll.u32 %v11179_v33, 30 }
 0x61e   : > { %v5795_v42 = vpop.f32.mrf.mxu3  ;;  %v636_v26 = vadd.s32 %v635_v58, %v625_v9 }
 0x61f   : > { %v5796_v56 = vadd.f32 %v5795_v42, %v11109_v2  ;;  %5950 = vmatmul.bf16.vlgmr.msrb.gmra.mxu2 %v10603_v11  ;;  %v583_v11 = vshrl.u32 %v13006_v55, %v10996_v0  ;;  %v649_v2 = vshrl.u32 %v11141_v50, 16  ;;  %v605_v0 = vsel %vm601_vm0, %v11052_v40, %v604_v27 }
 0x620   : > { %6021 = vmatpush.bf16.msra.mxu3 %v13012_v18  ;;  %v11190_v50 = vadd.s32 %v636_v26, %v627_v1  ;;  %v360_v40 = vsub.s32 %v356_v13, %v359_v46  ;;  %vm569_vm0 = vcmp.lt.s32.totalorder %v10897_v53, 0 }
 0x622   : > { %v5812_v59 = vpop.f32.mrf.mxu2  ;;  %vm662_vm9 = vc.u32 %v11190_v50, %v11192_v24  ;;  %v362_v51 = vsub.s32 0, %v360_v40  ;;  %vm361_vm10 = vcmp.lt.s32.totalorder %v360_v40, 0 }
 0x623   : > { %v5813_v57 = vadd.f32 %v5812_v59, %v11096_v17  ;;  %5936 = vmatmul.bf16.gmra.mxu3 %v10624_v3  ;;  %v603_v3 = vsel %vm599_vm15, %v583_v11, %v11050_v22  ;;  %v659_v17 = vadd.s32 %v658_v31, %v649_v2 }
 0x624   : > { %v606_v19 = vsel %vm600_vm1, %v603_v3, %v605_v0  ;;  %v363_v35 = vsel %vm361_vm10, %v362_v51, %v360_v40 }
 0x625   : > { %v663_v61 = vadd.s32 1, %v659_v17  ;;  %v660_v21 = vmul.u32 %v11098_v20, %v606_v19 }
 0x626   : > { %v5831_v16 = vpop.f32.mrf.mxu3 }
 0x627   : > { %v5832_v45 = vadd.f32 %v5831_v16, %v5808_v37  ;;  %v664_v10 = vsel %vm662_vm9, %v663_v61, %v659_v17  ;;  %v6038_v17 = vld [vmem:[%s12420_s3] sm:$0xff] }
 0x628   : > { %v665_v6 = vadd.s32 %v664_v10, %v660_v21  ;;  %6046 = vperm.xlu1 %7669, %v6038_v17  }
 0x62a   : > { %v5814_v30 = vpop.f32.mrf.mxu2  ;;  %v666_v41 = vadd.s32 536870912, %v665_v6 }
 0x62b   : > { %v5815_v37 = vadd.f32 %v5814_v30, %v11119_v63 }
 0x62e   : > { %v5833_v44 = vpop.f32.mrf.mxu3 }
 0x62f   : > { %v5834_v22 = vadd.f32 %v5833_v44, %v5810_v29  ;;  %5955 = vmatmul.bf16.gmra.mxu2 %v10650_v25  ;;  %v364_v29 = vclz %v363_v35  ;;  %v11204_v25 = vshrl.u32 %v666_v41, 30  ;;  %v6040_v35 = vld [vmem:[%s12420_s3 + $0x10] sm:$0xff]  ;;  %v13013_v41 = vand.u32 2147483647, %v10871_v23 }
 0x630   : > { %6056 = vperm.xlu0 %7668, %v6040_v35  }
 0x631   : > { %v6730_v20 = vadd.s32 4294967294, %v364_v29  ;;  %vm11229_vm15 = vcmp.le.f32.partialorder %v13013_v41, 0.7853982 }
 0x632   : > { %v5817_v60 = vpop.f32.mrf.mxu2 }
 0x633   : > { %v5818_v63 = vadd.f32 %v5817_v60, %v11154_v8  ;;  %5974 = vmatmul.bf16.vlgmr.msrb.gmra.mxu3 %v10665_v15  ;;  %v668_v8 = vshll.u32 %v11204_v25, 30  ;;  %vm6731_vm11 = vcmp.lt.s32.totalorder %v6730_v20, 0 }
 0x634   : > { %v367_v47 = vsel %vm6731_vm11, 0, %v6730_v20 }
 0x635   : > { %v669_v18 = vsub.s32 %v665_v6, %v668_v8  ;;  %v372_v9 = vsub.s32 4294967266, %v367_v47  ;;  %v369_v1 = vshll.u32 %v360_v40, %v367_v47 }
 0x636   : > { %v5836_v38 = vpop.f32.mrf.mxu3 }
 0x637   : > { %v5837_v36 = vadd.f32 %v5836_v38, %v5813_v57  ;;  %vm670_vm12 = vcmp.lt.s32.totalorder %v669_v18, 0  ;;  %v373_v11 = vadd.s32 127, %v372_v9 }
 0x63a   : > { %v5819_v42 = vpop.f32.mrf.mxu2 }
 0x63b   : > { %v5820_v48 = vadd.f32 %v5819_v42, %v5796_v56  ;;  %v671_v56 = vsub.s32 0, %v669_v18 }
 0x63d   : > { %v672_v2 = vsel %vm670_vm12, %v671_v56, %v669_v18 }
 0x63e   : > { %v5838_v34 = vpop.f32.mrf.mxu3 }
 0x63f   : > { %v5839_v13 = vadd.f32 %v5838_v34, %v5815_v37  ;;  %5960 = vmatmul.bf16.gmra.mxu2 %v10694_v54  ;;  %v368_v54 = vsub.s32 32, %v367_v47 }
 0x641   : > { %v370_v26 = vshrl.u32 %v352_v52, %v368_v54 }
 0x642   : > { %v5855_v15 = vpop.f32.mrf.mxu2 }
 0x643   : > { %v5856_v43 = vadd.f32 %v5855_v15, %v5832_v45  ;;  %5979 = vmatmul.bf16.gmra.mxu3 %v10705_v4  ;;  %v673_v4 = vclz %v672_v2  ;;  %v374_v45 = vshll.u32 %v373_v11, 23  ;;  %v371_v14 = vor.u32 %v370_v26, %v369_v1  ;;  %v13016_v2 = vld [vmem:[#allocation39_spill] sm:$0xff] }
 0x645   : > { %v6736_v62 = vadd.s32 4294967294, %v673_v4  ;;  %v375_v30 = vor.u32 4788187, %v374_v45  ;;  %v378_v46 = vcvt.s32.f32 %v371_v14  ;;  %v382_v45 = vsub.s32 4, %v11179_v33 }
 0x646   : > { %v5841_v39 = vpop.f32.mrf.mxu3 }
 0x647   : > { %v5842_v59 = vadd.f32 %v5841_v39, %v5818_v63  ;;  %vm6737_vm13 = vcmp.lt.s32.totalorder %v6736_v62, 0  ;;  %v661_v63 = vadd.s32 %v11192_v24, %v11190_v50 }
 0x648   : > { %v676_v61 = vsel %vm6737_vm13, 0, %v6736_v62 }
 0x649   : > { %v681_v40 = vsub.s32 4294967266, %v676_v61  ;;  %v677_v51 = vsub.s32 32, %v676_v61  ;;  %v678_v24 = vshll.u32 %v669_v18, %v676_v61  ;;  %v6042_v18 = vld [vmem:[%s12420_s3 + $0x20] sm:$0xff] }
 0x64a   : > { %v5857_v58 = vpop.f32.mrf.mxu2  ;;  %6066 = vperm.xlu0 %7668, %v6042_v18  }
 0x64b   : > { %v5858_v57 = vadd.f32 %v5857_v58, %v5834_v22  ;;  %v682_v6 = vadd.s32 127, %v681_v40  ;;  %v679_v42 = vshrl.u32 %v661_v63, %v677_v51  ;;  %v6041_v63 = vld [vmem:[%s12420_s3 + $0x18] sm:$0xff] }
 0x64c   : > { %6061 = vperm.xlu2 %7670, %v6041_v63  }
 0x64d   : > { %v683_v29 = vshll.u32 %v682_v6, 23  ;;  %v680_v20 = vor.u32 %v679_v42, %v678_v24  ;;  %v11282_v42 = vld [vmem:[%s8238_s10 + $0x4] sm:$0x1] }
 0x64e   : > { %v5843_v31 = vpop.f32.mrf.mxu3  ;;  %v12518_v63 = vand.u32 2147483647, %v11282_v42 }
 0x64f   : > { %v5844_v16 = vadd.f32 %v5843_v31, %v5820_v48  ;;  %5998 = vmatmul.bf16.vlgmr.msra.gmra.mxu2 %v10719_v5  ;;  %v376_v5 = vand.u32 2147483647, %v375_v30  ;;  %v687_v39 = vcvt.s32.f32 %v680_v20  ;;  %v879_v20 = vand.u32 2139095040, %v11282_v42 }
 0x651   : > { %v379_v22 = vmul.f32 %v378_v46, %v376_v5 }
 0x652   : > { %v5860_v27 = vpop.f32.mrf.mxu2 }
 0x653   : > { %v5861_v3 = vadd.f32 %v5860_v27, %v5837_v36  ;;  %5984 = vmatmul.bf16.gmra.mxu3 %v10730_v32  ;;  %v6039_v32 = vld [vmem:[%s12420_s3 + $0x8] sm:$0xff]  ;;  %v380_v60 = vxor.u32 2147483648, %v379_v22 }
 0x654   : > { %6051 = vperm.xlu1 %7669, %v6039_v32  }
 0x655   : > { %v381_v50 = vsel %vm260_vm14, %v380_v60, %v379_v22  ;;  %v13020_v60 = vld [vmem:[#allocation139_spill] sm:$0xff] }
 0x656   : > { %v5879_v0 = vpop.f32.mrf.mxu3 }
 0x657   : > { %v5880_v37 = vadd.f32 %v5879_v0, %v5856_v43  ;;  %v383_v0 = vsel %vm260_vm14, %v382_v45, %v11179_v33 }
 0x65a   : > { %v5862_v19 = vpop.f32.mrf.mxu2 }
 0x65b   : > { %v5863_v44 = vadd.f32 %v5862_v19, %v5839_v13  ;;  %v684_v13 = vor.u32 4788187, %v683_v29 }
 0x65d   : > { %v685_v47 = vand.u32 2147483647, %v684_v13 }
 0x65e   : > { %v5881_v21 = vpop.f32.mrf.mxu3 }
 0x65f   : > { %v5882_v10 = vadd.f32 %v5881_v21, %v5858_v57  ;;  %6003 = vmatmul.bf16.gmra.mxu2 %v10746_v7  ;;  %v688_v57 = vmul.f32 %v687_v39, %v685_v47  ;;  %v11290_v47 = vld [vmem:[%s8238_s10 + $0x3] sm:$0x1] }
 0x662   : > { %v5865_v38 = vpop.f32.mrf.mxu2 }
 0x663   : > { %v5866_v36 = vadd.f32 %v5865_v38, %v5842_v59  ;;  %6022 = vmatmul.bf16.vlgmr.msra.gmra.mxu3 %v10755_v12  ;;  %v384_v12 = vsel %vm11229_vm15, %v10871_v23, %v381_v50 }
 0x664   : > { %v386_v15 = vmul.f32 %v384_v12, %v384_v12 }
 0x666   : > { %v5884_v48 = vpop.f32.mrf.mxu3  ;;  %v394_v9 = vmul.f32 -0.00019511016, %v386_v15  ;;  %v387_v58 = vmul.f32 -0.001358992, %v386_v15 }
 0x667   : > { %v5885_v34 = vadd.f32 %v5884_v48, %v5861_v3  ;;  %v691_v48 = vsub.s32 4, %v11204_v25 }
 0x668   : > { %v395_v54 = vadd.f32 0.008332121, %v394_v9  ;;  %v388_v31 = vadd.f32 0.041655596, %v387_v58 }
 0x66a   : > { %v5867_v8 = vpop.f32.mrf.mxu2  ;;  %v396_v1 = vmul.f32 %v395_v54, %v386_v15  ;;  %v389_v27 = vmul.f32 %v388_v31, %v386_v15 }
 0x66b   : > { %v5868_v43 = vadd.f32 %v5867_v8, %v5844_v16  ;;  %v689_v16 = vxor.u32 2147483648, %v688_v57 }
 0x66c   : > { %v397_v14 = vadd.f32 -0.16666654, %v396_v1  ;;  %v390_v5 = vadd.f32 -0.4999988, %v389_v27 }
 0x66d   : > { %v690_v17 = vsel %vm569_vm0, %v689_v16, %v688_v57 }
 0x66e   : > { %v5886_v59 = vpop.f32.mrf.mxu3  ;;  %v398_v19 = vmul.f32 %v397_v14, %v386_v15  ;;  %v391_v22 = vmul.f32 %v390_v5, %v386_v15  ;;  %v6043_v14 = vld [vmem:[%s12420_s3 + $0x28] sm:$0xff] }
 0x66f   : > { %v5887_v56 = vadd.f32 %v5886_v59, %v5863_v44  ;;  %6008 = vmatmul.bf16.gmra.mxu2 %v10769_v49  ;;  %v13017_v49 = vand.u32 2147483647, %v10897_v53  ;;  %v385_v44 = vsel %vm11229_vm15, 0, %v383_v0  ;;  %v692_v59 = vsel %vm569_vm0, %v691_v48, %v11204_v25  ;;  %v11303_v25 = vld [vmem:[%s8238_s10 + $0x6] sm:$0x1]  ;;  %6071 = vperm.xlu2 %7670, %v6043_v14  }
 0x670   : > { %v399_v33 = vadd.f32 1.0, %v398_v19  ;;  %v402_v21 = vadd.s32 3, %v385_v44  ;;  %v392_v6 = vadd.f32 1.0, %v391_v22  ;;  %v557_v50 = vand.u32 3, %v385_v44 }
 0x671   : > { %vm11249_vm1 = vcmp.le.f32.partialorder %v13017_v49, 0.7853982 }
 0x672   : > { %v5903_v52 = vpop.f32.mrf.mxu2  ;;  %v403_v35 = vand.u32 3, %v402_v21  ;;  %v409_v29 = vxor.u32 2147483648, %v392_v6  ;;  %vm562_vm4 = vcmp.eq.s32.totalorder %v557_v50, 2  ;;  %vm558_vm6 = vcmp.lt.s32.totalorder %v557_v50, 2 }
 0x673   : > { %v5904_v11 = vadd.f32 %v5903_v52, %v5880_v37  ;;  %6027 = vmatmul.bf16.gmra.mxu3 %v13016_v2  ;;  %v11261_v37 = vsel %vm11249_vm1, %v10897_v53, %v690_v17  ;;  %vm559_vm7 = vcmp.eq.s32.totalorder %v557_v50, 0  ;;  %v694_v53 = vsel %vm11249_vm1, 0, %v692_v59 }
 0x674   : > { %v11269_v32 = vmul.f32 %v11261_v37, %v11261_v37  ;;  %vm408_vm2 = vcmp.eq.s32.totalorder %v403_v35, 2  ;;  %vm405_vm3 = vcmp.eq.s32.totalorder %v403_v35, 0  ;;  %vm404_vm5 = vcmp.lt.s32.totalorder %v403_v35, 2 }
 0x675   : > { %v711_v1 = vadd.s32 3, %v694_v53  ;;  %v11330_v21 = vand.u32 3, %v694_v53 }
 0x676   : > { %v5889_v4 = vpop.f32.mrf.mxu3  ;;  %v703_v51 = vmul.f32 -0.00019511016, %v11269_v32  ;;  %v696_v41 = vmul.f32 -0.001358992, %v11269_v32 }
 0x677   : > { %v11244_v26 = vadd.f32 %v5889_v4, %v5866_v36  ;;  %v400_v36 = vmul.f32 %v399_v33, %v384_v12  ;;  %v11325_v44 = vand.u32 3, %v711_v1 }
 0x678   : > { %v704_v24 = vadd.f32 0.008332121, %v703_v51  ;;  %v697_v8 = vadd.f32 0.041655596, %v696_v41  ;;  %v883_v41 = vand.u32 8388607, %v12518_v63 }
 0x679   : > { %v406_v13 = vxor.u32 2147483648, %v400_v36  ;;  %v410_v39 = vsel %vm408_vm2, %v409_v29, %v400_v36  ;;  %v564_v57 = vsel %vm562_vm4, %v409_v29, %v400_v36  ;;  %vm714_vm4 = vcmp.eq.s32.totalorder %v11325_v44, 0 }
 0x67a   : > { %v5905_v62 = vpop.f32.mrf.mxu2  ;;  %v705_v15 = vmul.f32 %v704_v24, %v11269_v32  ;;  %v698_v52 = vmul.f32 %v697_v8, %v11269_v32  ;;  %v13025_v24 = vmov 2475754826  }
 0x67b   : > { %v5906_v30 = vadd.f32 %v5905_v62, %v5882_v10  ;;  %v407_v58 = vsel %vm405_vm3, %v392_v6, %v406_v13  ;;  %vm717_vm3 = vcmp.eq.s32.totalorder %v11325_v44, 2 }
 0x67c   : > { %v706_v2 = vadd.f32 -0.16666654, %v705_v15  ;;  %v411_v4 = vsel %vm404_vm5, %v407_v58, %v410_v39  ;;  %v699_v17 = vadd.f32 -0.4999988, %v698_v52  ;;  %v13027_v58 = vmov 1326507024  }
 0x67d   : > { %v11319_v19 = vsel %vm401_vm8, nan, %v411_v4  ;;  %vm868_vm5 = vcmp.eq.s32.totalorder %v11330_v21, 0 }
 0x67e   : > { %v5891_v46 = vpop.f32.mrf.mxu3  ;;  %13021 = vst [vmem:[#allocation142_spill] sm:$0xff] %v11319_v19  ;;  %v700_v33 = vmul.f32 %v699_v17, %v11269_v32 }
 0x67f   : > { %v11263_v61 = vadd.f32 %v5891_v46, %v5868_v43  ;;  %v880_v43 = vshrl.u32 %v879_v20, 23  ;;  %v11315_v46 = vmax.f32 %v11303_v25, 0.01 }
 0x681   : > { %v6741_v9 = vadd.s32 4294967169, %v880_v43  ;;  %v884_v43 = vor.u32 8388608, %v883_v41 }
 0x682   : > { %v5908_v40 = vpop.f32.mrf.mxu2 }
 0x683   : > { %v11271_v10 = vadd.f32 %v5908_v40, %v5885_v34  ;;  %6032 = vmatmul.bf16.gmra.mxu3 %v13020_v60  ;;  %v886_v31 = vadd.s32 1, %v6741_v9  ;;  %v11386_v1 = vshll.u32 %v884_v43, 8 }
 0x685   : > { %vm887_vm9 = vcmp.gt.s32.totalorder %v886_v31, 0  ;;  %v925_v14 = vand.u32 65535, %v11386_v1 }
 0x686   : > { %v5927_v38 = vpop.f32.mrf.mxu3  ;;  %v888_v3 = vsel %vm887_vm9, %v886_v31, 0 }
 0x687   : > { %v11279_v7 = vadd.f32 %v5927_v38, %v5904_v11  ;;  %v561_v11 = vsel %vm559_vm7, %v392_v6, %v406_v13  ;;  %v890_v0 = vand.u32 31, %v888_v3  ;;  %v13023_v6 = vmov 2102212464  }
 0x688   : > { %v565_v49 = vsel %vm558_vm6, %v561_v11, %v564_v57  ;;  %v13024_v38 = vmov 920167782   ;;  %v11341_v50 = vshrl.u32 %v888_v3, 5  ;;  %v926_v3 = vshrl.u32 %v11386_v1, 16 }
 0x689   : > { %v11327_v40 = vsub.s32 32, %v890_v0  ;;  %v902_v23 = vshll.u32 %v13023_v6, %v890_v0  ;;  %v896_v48 = vshll.u32 %v13025_v24, %v890_v0 }
 0x68a   : > { %v5910_v34 = vpop.f32.mrf.mxu2  ;;  %vm908_vm11 = vcmp.lt.s32.totalorder %v11341_v50, 1  ;;  %vm909_vm12 = vcmp.lt.s32.totalorder %v11341_v50, 2  ;;  %vm910_vm13 = vcmp.lt.s32.totalorder %v11341_v50, 3  ;;  %vm911_vm14 = vcmp.lt.s32.totalorder %v11341_v50, 4 }
 0x68b   : > { %v11286_v12 = vadd.f32 %v5910_v34, %v5887_v56  ;;  %v1188_v56 = vand.u32 2139095040, %v11290_v47  ;;  %v903_v36 = vshrl.u32 %v13024_v38, %v11327_v40  ;;  %v13026_v34 = vmov 2131351028  }
 0x68c   : > { %v897_v20 = vshrl.u32 %v13026_v34, %v11327_v40  ;;  %v899_v13 = vshll.u32 %v13026_v34, %v890_v0  ;;  %v900_v8 = vshrl.u32 %v13023_v6, %v11327_v40  ;;  %v906_v57 = vshrl.u32 %v13027_v58, %v11327_v40 }
 0x68d   : > { %v1189_v16 = vshrl.u32 %v1188_v56, 23  ;;  %v904_v59 = vor.u32 %v903_v36, %v902_v23  ;;  %v905_v56 = vshll.u32 %v13024_v38, %v890_v0 }
 0x68e   : > { %v5929_v18 = vpop.f32.mrf.mxu3  ;;  %v11359_v9 = vor.u32 %v900_v8, %v899_v13 }
 0x68f   : > { %v11297_v54 = vadd.f32 %v5929_v18, %v5906_v30  ;;  %v6747_v27 = vadd.s32 4294967169, %v1189_v16  ;;  %v707_v30 = vmul.f32 %v706_v2, %v11269_v32  ;;  %v893_v32 = vshll.u32 %v13006_v55, %v890_v0 }
 0x690   : > { %v11357_v18 = vor.u32 %v897_v20, %v896_v48  ;;  %v907_v52 = vor.u32 %v906_v57, %v905_v56  ;;  %v917_v2 = vsel %vm911_vm14, %v904_v59, 920167782 }
 0x691   : > { %v1195_v5 = vadd.s32 1, %v6747_v27  ;;  %v708_v51 = vadd.f32 1.0, %v707_v30  ;;  %v918_v53 = vsel %vm910_vm13, %v11359_v9, %v917_v2 }
 0x692   : > { %v5913_v45 = vpop.f32.mrf.mxu2  ;;  %v920_v4 = vsel %vm908_vm11, %v11357_v18, %v11359_v9 }
 0x693   : > { %v11308_v62 = vadd.f32 %v5913_v45, %v11244_v26  ;;  %v11323_v26 = vsel %vm401_vm8, nan, %v565_v49  ;;  %vm1196_vm10 = vcmp.gt.s32.totalorder %v1195_v5, 0  ;;  %v11388_v45 = vadd.f32 1.0, %v700_v33 }
 0x694   : > { %13022 = vst [vmem:[#allocation41_spill] sm:$0xff] %v11323_v26  ;;  %v1197_v35 = vsel %vm1196_vm10, %v1195_v5, 0  ;;  %v12517_v49 = vand.u32 2147483647, %v11290_v47  ;;  %v11400_v0 = vmul.f32 %v708_v51, %v11261_v37 }
 0x695   : > { %v11374_v31 = vand.u32 31, %v1197_v35 }
 0x696   : > { %v5932_v22 = vpop.f32.mrf.mxu3  ;;  %v11414_v37 = vand.u32 8388607, %v12517_v49 }
 0x697   : > { %v11333_v60 = vadd.f32 %v5932_v22, %v11271_v10  ;;  %v894_v10 = vshrl.u32 %v13025_v24, %v11327_v40  ;;  %v11405_v23 = vsub.s32 32, %v11374_v31  ;;  %v1202_v43 = vshll.u32 %v13006_v55, %v11374_v31 }
 0x699   : > { %v11355_v39 = vor.u32 %v894_v10, %v893_v32  ;;  %v11410_v10 = vshrl.u32 %v1197_v35, 5  ;;  %v1203_v35 = vshrl.u32 %v13025_v24, %v11405_v23  ;;  %v1212_v50 = vshrl.u32 %v13024_v38, %v11405_v23 }
 0x69a   : > { %v5915_v29 = vpop.f32.mrf.mxu2 }
 0x69b   : > { %v11353_v15 = vadd.f32 %v5915_v29, %v11263_v61  ;;  %v916_v11 = vsel %vm908_vm11, %v11355_v39, %v11357_v18  ;;  %vm1217_vm6 = vcmp.lt.s32.totalorder %v11410_v10, 1  ;;  %vm1219_vm8 = vcmp.lt.s32.totalorder %v11410_v10, 3 }
 0x69c   : > { %v919_v27 = vsel %vm909_vm12, %v916_v11, %v918_v53  ;;  %vm1218_vm9 = vcmp.lt.s32.totalorder %v11410_v10, 2  ;;  %vm1220_vm10 = vcmp.lt.s32.totalorder %v11410_v10, 4 }
 0x69d   : > { %v949_v30 = vand.u32 65535, %v919_v27  ;;  %v950_v33 = vshrl.u32 %v919_v27, 16  ;;  %v1206_v27 = vshrl.u32 %v13026_v34, %v11405_v23 }
 0x69e   : > { %v5934_v61 = vpop.f32.mrf.mxu3 }
 0x69f   : > { %v11377_v16 = vadd.f32 %v5934_v61, %v11286_v12  ;;  %v921_v12 = vsel %vm911_vm14, %v907_v52, 1326507024  ;;  %v951_v29 = vmul.u32 %v949_v30, %v925_v14  ;;  %v952_v48 = vmul.u32 %v950_v33, %v925_v14 }
 0x6a0   : > { %v922_v17 = vsel %vm910_vm13, %v904_v59, %v921_v12  ;;  %v953_v20 = vmul.u32 %v949_v30, %v926_v3 }
 0x6a1   : > { %v923_v22 = vsel %vm909_vm12, %v920_v4, %v922_v17  ;;  %v955_v56 = vshll.u32 %v952_v48, 16  ;;  %v1205_v4 = vshll.u32 %v13025_v24, %v11374_v31  ;;  %v956_v30 = vshrl.u32 %v952_v48, 16 }
 0x6a2   : > { %v5951_v5 = vpop.f32.mrf.mxu2  ;;  %v927_v41 = vand.u32 65535, %v923_v22  ;;  %v928_v32 = vshrl.u32 %v923_v22, 16  ;;  %v957_v57 = vshll.u32 %v953_v20, 16  ;;  %v913_v48 = vsel %vm911_vm14, %v11359_v9, 2102212464 }
 0x6a3   : > { %v11408_v36 = vadd.f32 %v5951_v5, %v11279_v7  ;;  %v954_v7 = vmul.u32 %v950_v33, %v926_v3  ;;  %vm959_vm15 = vc.u32 %v951_v29, %v955_v56  ;;  %v961_v53 = vadd.s32 %v955_v56, %v951_v29 }
 0x6a4   : > { %v929_v51 = vmul.u32 %v927_v41, %v925_v14  ;;  %v930_v13 = vmul.u32 %v928_v32, %v925_v14  ;;  %v931_v8 = vmul.u32 %v927_v41, %v926_v3  ;;  %v932_v52 = vmul.u32 %v928_v32, %v926_v3 }
 0x6a5   : > { %v960_v17 = vsel %vm959_vm15, 1, %v13000_v28  ;;  %v1208_v14 = vshll.u32 %v13026_v34, %v11374_v31  ;;  %vm963_vm1 = vc.u32 %v961_v53, %v957_v57  ;;  %v892_v32 = vshrl.u32 %v13006_v55, %v11327_v40 }
 0x6a6   : > { %v5937_v59 = vpop.f32.mrf.mxu3  ;;  %v933_v11 = vshll.u32 %v930_v13, 16  ;;  %v935_v2 = vshll.u32 %v931_v8, 16  ;;  %v962_v5 = vadd.s32 %v960_v17, %v954_v7  ;;  %v934_v33 = vshrl.u32 %v930_v13, 16 }
 0x6a7   : > { %v11421_v61 = vadd.f32 %v5937_v59, %v11308_v62  ;;  %v964_v59 = vsel %vm963_vm1, 1, %v13000_v28  ;;  %v936_v7 = vshrl.u32 %v931_v8, 16  ;;  %v912_v13 = vsel %vm908_vm11, %v892_v32, %v11355_v39 }
 0x6a8   : > { %vm937_vm0 = vc.u32 %v929_v51, %v933_v11  ;;  %v939_v12 = vadd.s32 %v933_v11, %v929_v51  ;;  %v958_v51 = vshrl.u32 %v953_v20, 16  ;;  %v966_v11 = vadd.s32 %v964_v59, %v962_v5 }
 0x6a9   : > { %v938_v3 = vsel %vm937_vm0, 1, %v13000_v28  ;;  %v914_v40 = vsel %vm910_vm13, %v11357_v18, %v913_v48  ;;  %v1209_v20 = vshrl.u32 %v13023_v6, %v11405_v23  ;;  %v1204_v39 = vor.u32 %v1203_v35, %v1202_v43 }
 0x6aa   : > { %v5953_v62 = vpop.f32.mrf.mxu2  ;;  %v940_v41 = vadd.s32 %v938_v3, %v932_v52  ;;  %vm941_vm2 = vc.u32 %v939_v12, %v935_v2  ;;  %v11447_v52 = vadd.s32 %v961_v53, %v957_v57  ;;  %v915_v8 = vsel %vm909_vm12, %v912_v13, %v914_v40 }
 0x6ab   : > { %v11432_v22 = vadd.f32 %v5953_v62, %v11297_v54  ;;  %v942_v29 = vsel %vm941_vm2, 1, %v13000_v28  ;;  %v967_v12 = vadd.s32 %v966_v11, %v956_v30  ;;  %v11459_v18 = vor.u32 %v1206_v27, %v1205_v4 }
 0x6ac   : > { %v944_v56 = vadd.s32 %v942_v29, %v940_v41  ;;  %v1210_v57 = vor.u32 %v1209_v20, %v1208_v14  ;;  %v1211_v53 = vshll.u32 %v13023_v6, %v11374_v31  ;;  %v1214_v62 = vshll.u32 %v13024_v38, %v11374_v31 }
 0x6ad   : > { %v969_v30 = vmul.u32 %v11386_v1, %v915_v8  ;;  %v1193_v43 = vor.u32 8388608, %v11414_v37  ;;  %v1215_v35 = vshrl.u32 %v13027_v58, %v11405_v23  ;;  %v1225_v31 = vsel %vm1217_vm6, %v1204_v39, %v11459_v18 }
 0x6ae   : > { %v5939_v54 = vpop.f32.mrf.mxu3  ;;  %v945_v2 = vadd.s32 %v944_v56, %v934_v33  ;;  %v1213_v27 = vor.u32 %v1212_v50, %v1211_v53  ;;  %v718_v1 = vxor.u32 2147483648, %v11388_v45  ;;  %v1229_v33 = vsel %vm1217_vm6, %v11459_v18, %v1210_v57 }
 0x6af   : > { %v11453_v9 = vadd.f32 %v5939_v54, %v11353_v15  ;;  %v968_v15 = vadd.s32 %v967_v12, %v958_v51  ;;  %v1216_v14 = vor.u32 %v1215_v35, %v1214_v62  ;;  %v715_v41 = vxor.u32 2147483648, %v11400_v0 }
 0x6b0   : > { %v11463_v17 = vadd.s32 %v945_v2, %v936_v7  ;;  %v1226_v5 = vsel %vm1220_vm10, %v1213_v27, 920167782  ;;  %v1201_v7 = vshrl.u32 %v13006_v55, %v11405_v23  ;;  %vm871_vm11 = vcmp.eq.s32.totalorder %v11330_v21, 2 }
 0x6b1   : > { %v972_v4 = vadd.s32 1, %v968_v15  ;;  %v1227_v51 = vsel %vm1219_vm8, %v1210_v57, %v1226_v5  ;;  %v1230_v59 = vsel %vm1220_vm10, %v1216_v14, 1326507024  ;;  %v11507_v40 = vshll.u32 %v1193_v43, 8 }
 0x6b2   : > { %v11469_v3 = vpop.f32.mrf.mxu2  ;;  %vm971_vm7 = vc.u32 %v11463_v17, %v11447_v52  ;;  %v1228_v56 = vsel %vm1218_vm9, %v1225_v31, %v1227_v51  ;;  %v1231_v11 = vsel %vm1219_vm8, %v1213_v27, %v1230_v59  ;;  %vm713_vm12 = vcmp.lt.s32.totalorder %v11325_v44, 2 }
 0x6b3   : > { %v973_v37 = vsel %vm971_vm7, %v972_v4, %v968_v15  ;;  %v1232_v13 = vsel %vm1218_vm9, %v1229_v33, %v1231_v11  ;;  %v1258_v8 = vand.u32 65535, %v1228_v56  ;;  %v1259_v2 = vshrl.u32 %v1228_v56, 16  ;;  %v11532_v4 = vld [vmem:[%s8238_s10 + $0x5] sm:$0x1] }
 0x6b4   : > { %v974_v29 = vadd.s32 %v973_v37, %v969_v30  ;;  %v1237_v20 = vshrl.u32 %v1232_v13, 16  ;;  %v719_v23 = vsel %vm717_vm3, %v718_v1, %v11400_v0  ;;  %vm867_vm13 = vcmp.lt.s32.totalorder %v11330_v21, 2 }
 0x6b5   : > { %v1234_v15 = vand.u32 65535, %v11507_v40  ;;  %v1235_v50 = vshrl.u32 %v11507_v40, 16  ;;  %v716_v62 = vsel %vm714_vm4, %v11388_v45, %v715_v41  ;;  %v870_v30 = vsel %vm868_vm5, %v11388_v45, %v715_v41 }
 0x6b6   : > { %v5975_v32 = vpop.f32.mrf.mxu3  ;;  %v975_v54 = vadd.s32 536870912, %v974_v29  ;;  %v873_v43 = vsel %vm871_vm11, %v718_v1, %v11400_v0  ;;  %v1221_v35 = vsel %vm1217_vm6, %v1201_v7, %v1204_v39  ;;  %v1222_v5 = vsel %vm1220_vm10, %v1210_v57, 2102212464 }
 0x6b7   : > { %v11496_v48 = vadd.f32 %v5975_v32, %v11408_v36  ;;  %v1236_v36 = vand.u32 65535, %v1232_v13  ;;  %v1239_v31 = vmul.u32 %v1237_v20, %v1234_v15  ;;  %v1241_v33 = vmul.u32 %v1237_v20, %v1235_v50  ;;  %v8073_v13 = vld [vmem:[%s8238_s10 + $0x8] sm:$0x1] }
 0x6b8   : > { %v11516_v53 = vshrl.u32 %v975_v54, 30  ;;  %v1261_v45 = vmul.u32 %v1259_v2, %v1234_v15  ;;  %v11537_v41 = vmul.u32 %v1258_v8, %v1235_v50  ;;  %v1260_v51 = vmul.u32 %v1258_v8, %v1234_v15 }
 0x6b9   : > { %v1238_v14 = vmul.u32 %v1236_v36, %v1234_v15  ;;  %v1240_v37 = vmul.u32 %v1236_v36, %v1235_v50  ;;  %v1242_v1 = vshll.u32 %v1239_v31, 16  ;;  %v1263_v7 = vmul.u32 %v1259_v2, %v1235_v50 }
 0x6ba   : > { %v11514_v12 = vpop.f32.mrf.mxu2  ;;  %v977_v27 = vshll.u32 %v11516_v53, 30  ;;  %v1264_v56 = vshll.u32 %v1261_v45, 16  ;;  %v1497_v11 = vand.u32 2139095040, %v11532_v4  ;;  %vm710_vm0 = vweird.f32 %v8073_v13 }
 0x6bb   : > { %v1244_v39 = vshll.u32 %v1240_v37, 16  ;;  %vm1246_vm15 = vc.u32 %v1238_v14, %v1242_v1  ;;  %v1248_v54 = vadd.s32 %v1242_v1, %v1238_v14  ;;  %v1243_v36 = vshrl.u32 %v1239_v31, 16 }
 0x6bc   : > { %v11539_v0 = vsub.s32 %v974_v29, %v977_v27  ;;  %v1223_v29 = vsel %vm1219_vm8, %v11459_v18, %v1222_v5  ;;  %v1266_v20 = vshll.u32 %v11537_v41, 16  ;;  %vm1268_vm2 = vc.u32 %v1260_v51, %v1264_v56 }
 0x6bd   : > { %vm1250_vm1 = vc.u32 %v1248_v54, %v1244_v39  ;;  %v1245_v27 = vshrl.u32 %v1240_v37, 16  ;;  %v1270_v18 = vadd.s32 %v1264_v56, %v1260_v51  ;;  %v1498_v5 = vshrl.u32 %v1497_v11, 23 }
 0x6be   : > { %v5977_v32 = vpop.f32.mrf.mxu3  ;;  %vm979_vm14 = vcmp.lt.s32.totalorder %v11539_v0, 0  ;;  %v980_v57 = vsub.s32 0, %v11539_v0  ;;  %v1251_v14 = vsel %vm1250_vm1, 1, %v13000_v28  ;;  %v720_v49 = vsel %vm713_vm12, %v716_v62, %v719_v23 }
 0x6bf   : > { %v11542_v59 = vadd.f32 %v5977_v32, %v11432_v22  ;;  %v1247_v22 = vsel %vm1246_vm15, 1, %v13000_v28  ;;  %v1269_v32 = vsel %vm1268_vm2, 1, %v13000_v28  ;;  %v874_v63 = vsel %vm867_vm13, %v870_v30, %v873_v43 }
 0x6c0   : > { %v981_v2 = vsel %vm979_vm14, %v980_v57, %v11539_v0  ;;  %v1249_v15 = vadd.s32 %v1247_v22, %v1241_v33  ;;  %v1271_v31 = vadd.s32 %v1269_v32, %v1263_v7  ;;  %v1224_v33 = vsel %vm1218_vm9, %v1221_v35, %v1223_v29 }
 0x6c1   : > { %v982_v50 = vclz %v981_v2  ;;  %v1265_v54 = vshrl.u32 %v1261_v45, 16  ;;  %vm1272_vm3 = vc.u32 %v1270_v18, %v1266_v20  ;;  %v6753_v22 = vadd.s32 4294967169, %v1498_v5 }
 0x6c2   : > { %v11553_v8 = vpop.f32.mrf.mxu2  ;;  %v1253_v1 = vadd.s32 %v1251_v14, %v1249_v15  ;;  %v970_v51 = vadd.s32 %v11447_v52, %v11463_v17  ;;  %v1267_v44 = vshrl.u32 %v11537_v41, 16  ;;  %v1273_v23 = vsel %vm1272_vm3, 1, %v13000_v28 }
 0x6c3   : > { %v6742_v57 = vadd.s32 4294967294, %v982_v50  ;;  %v11572_v30 = vadd.s32 %v1270_v18, %v1266_v20  ;;  %v1275_v10 = vadd.s32 %v1273_v23, %v1271_v31  ;;  %v1504_v7 = vadd.s32 1, %v6753_v22 }
 0x6c4   : > { %v1254_v37 = vadd.s32 %v1253_v1, %v1243_v36  ;;  %v6130_v56 = vmul.f32 %v11323_v26, %v11315_v46  ;;  %v6133_v52 = vmul.f32 %v11319_v19, %v11315_v46  ;;  %v11580_v11 = vsel %vm710_vm0, nan, %v720_v49  ;;  %v13030_v1 = vld [vmem:[#allocation6_spill] sm:$0xff] }
 0x6c5   : > { %vm6743_vm4 = vcmp.lt.s32.totalorder %v6742_v57, 0  ;;  %v1276_v41 = vadd.s32 %v1275_v10, %v1265_v54  ;;  %13028 = vst [vmem:[#allocation59_spill] sm:$0xff] %v11580_v11  ;;  %v1278_v15 = vmul.u32 %v11507_v40, %v1224_v33  ;;  %vm1505_vm5 = vcmp.gt.s32.totalorder %v1504_v7, 0  ;;  %v254_v54 = vld [vmem:[%s8238_s10 + $0x10] sm:$0x1] }
 0x6c6   : > { %v11564_v39 = vpop.f32.mrf.mxu3  ;;  %v985_v21 = vsel %vm6743_vm4, 0, %v6742_v57  ;;  %v11570_v62 = vadd.s32 %v1254_v37, %v1245_v27  ;;  %v1506_v49 = vsel %vm1505_vm5, %v1504_v7, 0  ;;  %v11605_v57 = vmul.f32 %v11580_v11, %v11315_v46 }
 0x6c7   : > { %v986_v43 = vsub.s32 32, %v985_v21  ;;  %v987_v35 = vshll.u32 %v11539_v0, %v985_v21  ;;  %v990_v45 = vsub.s32 4294967266, %v985_v21  ;;  %v11586_v0 = vsel %vm710_vm0, nan, %v874_v63 }
 0x6c8   : > { %v1277_v2 = vadd.s32 %v1276_v41, %v1267_v44  ;;  %vm1280_vm6 = vc.u32 %v11570_v62, %v11572_v30  ;;  %v12519_v63 = vand.u32 2147483647, %v11532_v4  ;;  %v1508_v32 = vand.u32 31, %v1506_v49 }
 0x6c9   : > { %v988_v36 = vshrl.u32 %v970_v51, %v986_v43  ;;  %v991_v20 = vadd.s32 127, %v990_v45  ;;  %8056 = vrcp.f32 %v11586_v0  ;;  %v11601_v5 = vmul.f32 %v6130_v56, %v11586_v0 }
 0x6ca   : > { %v5963_v17 = vpop.f32.mrf.mxu2  ;;  %v1281_v13 = vadd.s32 1, %v1277_v2  ;;  %v11608_v33 = vmul.f32 %v6133_v52, %v11586_v0  ;;  %v11612_v37 = vmul.f32 %v11586_v0, %v11323_v26  ;;  %v11621_v23 = vmul.f32 %v11586_v0, %v11319_v19 }
 0x6cb   : > { %v11583_v29 = vadd.f32 %v5963_v17, %v11453_v9  ;;  %v989_v50 = vor.u32 %v988_v36, %v987_v35  ;;  %v992_v27 = vshll.u32 %v991_v20, 23  ;;  %v11593_v9 = vmul.f32 %v11580_v11, %v11303_v25  ;;  %v12081_v11 = vld [vmem:[%s8238_s10 + $0xb] sm:$0x1] }
 0x6cc   : > { %v1282_v25 = vsel %vm1280_vm6, %v1281_v13, %v1277_v2  ;;  %13031 = vst [vmem:[#allocation98_spill] sm:$0xff] %v11612_v37  ;;  %v11627_v10 = vand.u32 8388607, %v12519_v63  ;;  %v11629_v43 = vsub.s32 32, %v1508_v32  ;;  %v5957_v45 = vadd.f32 %v11469_v3, %v11333_v60 }
 0x6cd   : > { %13029 = vst [vmem:[#allocation57_spill] sm:$0xff] %v11593_v9  ;;  %v993_v18 = vor.u32 4788187, %v992_v27  ;;  %v996_v31 = vcvt.s32.f32 %v989_v50  ;;  %v1283_v51 = vadd.s32 %v1282_v25, %v1278_v15  ;;  %v11617_v44 = vmul.f32 %v11593_v9, %v11323_v26 }
 0x6ce   : > { %v11595_v14 = vpop.f32.mrf.mxu3  ;;  %13033 = vst [vmem:[#allocation54_spill] sm:$0xff] %v11621_v23  ;;  %v11633_v35 = vmul.f32 %v11593_v9, %v11319_v19  ;;  %v5959_v52 = vadd.f32 %v11514_v12, %v11377_v16  ;;  %v11641_v17 = vadd.f32 %v11553_v8, %v11421_v61  ;;  %v6128_v41 = vmul.f32 0.04, %v254_v54 }
 0x6cf   : > { %v994_v22 = vand.u32 2147483647, %v993_v18  ;;  %13032 = vst [vmem:[#allocation55_spill] sm:$0xff] %v11617_v44  ;;  %v1284_v56 = vadd.s32 536870912, %v1283_v51  ;;  %vm878_vm7 = vcmp.lt.s32.totalorder %v11282_v42, 0  ;;  %v1523_v3 = vshll.u32 %v13024_v38, %v1508_v32  ;;  %v11653_v15 = vpop.eup %8056 }
 0x6d0   : > { %13034 = vst [vmem:[#allocation51_spill] sm:$0xff] %v11633_v35  ;;  %v13035_v36 = vand.u32 2147483647, %v11282_v42  ;;  %v11656_v16 = vadd.f32 %v11564_v39, %v5957_v45  ;;  %v1502_v12 = vor.u32 8388608, %v11627_v10  ;;  %v11659_v8 = vshrl.u32 %v1506_v49, 5 }
 0x6d1   : > { %v997_v7 = vmul.f32 %v996_v31, %v994_v22  ;;  %v11650_v60 = vshrl.u32 %v1284_v56, 30  ;;  %v1524_v50 = vshrl.u32 %v13027_v58, %v11629_v43  ;;  %v1514_v18 = vshll.u32 %v13025_v24, %v1508_v32 }
 0x6d2   : > { %v11623_v21 = vpop.f32.mrf.mxu2  ;;  %vm11646_vm8 = vcmp.le.f32.partialorder %v13035_v36, 0.7853982  ;;  %v1515_v31 = vshrl.u32 %v13026_v34, %v11629_v43  ;;  %v11669_v39 = vsub.f32 1.0, %v6128_v41  ;;  %v1517_v25 = vshll.u32 %v13026_v34, %v1508_v32 }
 0x6d3   : > { %v998_v2 = vxor.u32 2147483648, %v997_v7  ;;  %v1286_v13 = vshll.u32 %v11650_v60, 30  ;;  %v1518_v58 = vshrl.u32 %v13023_v6, %v11629_v43  ;;  %v1511_v10 = vshll.u32 %v13006_v55, %v1508_v32 }
 0x6d4   : > { %v1525_v45 = vor.u32 %v1524_v50, %v1523_v3  ;;  %v1520_v56 = vshll.u32 %v13023_v6, %v1508_v32  ;;  %v1521_v41 = vshrl.u32 %v13024_v38, %v11629_v43  ;;  %vm1529_vm9 = vcmp.lt.s32.totalorder %v11659_v8, 4 }
 0x6d5   : > { %v999_v27 = vsel %vm878_vm7, %v998_v2, %v997_v7  ;;  %v11681_v22 = vsub.s32 %v1283_v51, %v1286_v13  ;;  %v1512_v7 = vshrl.u32 %v13025_v24, %v11629_v43  ;;  %v11691_v2 = vor.u32 %v1515_v31, %v1514_v18 }
 0x6d6   : > { %v5985_v61 = vpop.f32.mrf.mxu3  ;;  %v11674_v49 = vsel %vm11646_vm8, %v11282_v42, %v999_v27  ;;  %v1519_v50 = vor.u32 %v1518_v58, %v1517_v25  ;;  %vm1526_vm11 = vcmp.lt.s32.totalorder %v11659_v8, 1  ;;  %vm1528_vm12 = vcmp.lt.s32.totalorder %v11659_v8, 3  ;;  %v11708_v58 = vld [vmem:[%s8238_s10 + $0x2] sm:$0x1] }
 0x6d7   : > { %v1004_v54 = vmul.f32 %v11674_v49, %v11674_v49  ;;  %vm1288_vm10 = vcmp.lt.s32.totalorder %v11681_v22, 0  ;;  %v1289_v3 = vsub.s32 0, %v11681_v22  ;;  %v1279_v24 = vadd.s32 %v11572_v30, %v11570_v62 }
 0x6d8   : > { %v1539_v32 = vsel %vm1529_vm9, %v1525_v45, 1326507024  ;;  %v1000_v13 = vsub.s32 4, %v11516_v53  ;;  %v1513_v31 = vor.u32 %v1512_v7, %v1511_v10  ;;  %v1522_v40 = vor.u32 %v1521_v41, %v1520_v56 }
 0x6d9   : > { %v1005_v34 = vmul.f32 -0.001358992, %v1004_v54  ;;  %v1012_v36 = vmul.f32 -0.00019511016, %v1004_v54  ;;  %v1290_v18 = vsel %vm1288_vm10, %v1289_v3, %v11681_v22  ;;  %vm1527_vm13 = vcmp.lt.s32.totalorder %v11659_v8, 2 }
 0x6da   : > { %v11693_v51 = vpop.f32.mrf.mxu2  ;;  %v1291_v63 = vclz %v1290_v18  ;;  %v1001_v62 = vsel %vm878_vm7, %v1000_v13, %v11516_v53  ;;  %v1538_v30 = vsel %vm1526_vm11, %v11691_v2, %v1519_v50  ;;  %v1540_v10 = vsel %vm1528_vm12, %v1522_v40, %v1539_v32 }
 0x6db   : > { %v1006_v6 = vadd.f32 0.041655596, %v1005_v34  ;;  %v1013_v38 = vadd.f32 0.008332121, %v1012_v36  ;;  %v11722_v41 = vadd.f32 %v11595_v14, %v5959_v52  ;;  %v11724_v53 = vshll.u32 %v1502_v12, 8 }
 0x6dc   : > { %v6748_v56 = vadd.s32 4294967294, %v1291_v63  ;;  %v6000_v20 = vadd.f32 %v11623_v21, %v11496_v48  ;;  %v11733_v32 = vadd.f32 %v5985_v61, %v11641_v17  ;;  %v1534_v14 = vsel %vm1526_vm11, %v1513_v31, %v11691_v2 }
 0x6dd   : > { %v1007_v34 = vmul.f32 %v1006_v6, %v1004_v54  ;;  %v1014_v36 = vmul.f32 %v1013_v38, %v1004_v54  ;;  %v11727_v6 = vmul.f32 7.03e-06, %v11708_v58  ;;  %v1541_v63 = vsel %vm1527_vm13, %v1538_v30, %v1540_v10 }
 0x6de   : > { %v5987_v27 = vpop.f32.mrf.mxu3  ;;  %vm6749_vm14 = vcmp.lt.s32.totalorder %v6748_v56, 0  ;;  %v1535_v48 = vsel %vm1529_vm9, %v1522_v40, 920167782  ;;  %v11743_v21 = vand.u32 65535, %v11724_v53  ;;  %v1510_v61 = vshrl.u32 %v13006_v55, %v11629_v43 }
 0x6df   : > { %v11705_v25 = vadd.f32 %v5987_v27, %v11583_v29  ;;  %v1003_v29 = vsel %vm11646_vm8, 0, %v1001_v62  ;;  %v1008_v45 = vadd.f32 -0.4999988, %v1007_v34  ;;  %v1015_v7 = vadd.f32 -0.16666654, %v1014_v36 }
 0x6e0   : > { %v1020_v3 = vadd.s32 3, %v1003_v29  ;;  %v1294_v34 = vsel %vm6749_vm14, 0, %v6748_v56  ;;  %v1175_v62 = vand.u32 3, %v1003_v29  ;;  %v1545_v30 = vand.u32 65535, %v1541_v63 }
 0x6e1   : > { %v1009_v27 = vmul.f32 %v1008_v45, %v1004_v54  ;;  %v1016_v13 = vmul.f32 %v1015_v7, %v1004_v54  ;;  %v1295_v45 = vsub.s32 32, %v1294_v34  ;;  %v1546_v10 = vshrl.u32 %v1541_v63, 16 }
 0x6e2   : > { %v1021_v18 = vand.u32 3, %v1020_v3  ;;  %v6004_v36 = vpop.f32.mrf.mxu2  ;;  %v1296_v56 = vshll.u32 %v11681_v22, %v1294_v34  ;;  %v1531_v29 = vsel %vm1529_vm9, %v1519_v50, 2102212464  ;;  %vm1187_vm0 = vcmp.lt.s32.totalorder %v11290_v47, 0 }
 0x6e3   : > { %v1010_v52 = vadd.f32 1.0, %v1009_v27  ;;  %v1017_v12 = vadd.f32 1.0, %v1016_v13  ;;  %v1297_v3 = vshrl.u32 %v1279_v24, %v1295_v45  ;;  %v1536_v40 = vsel %vm1528_vm12, %v1519_v50, %v1535_v48 }
 0x6e4   : > { %vm1026_vm15 = vcmp.eq.s32.totalorder %v1021_v18, 2  ;;  %vm1023_vm1 = vcmp.eq.s32.totalorder %v1021_v18, 0  ;;  %vm1177_vm2 = vcmp.eq.s32.totalorder %v1175_v62, 0  ;;  %vm1180_vm3 = vcmp.eq.s32.totalorder %v1175_v62, 2 }
 0x6e5   : > { %v1018_v17 = vmul.f32 %v1017_v12, %v11674_v49  ;;  %v1027_v7 = vxor.u32 2147483648, %v1010_v52  ;;  %v11755_v49 = vshrl.u32 %v11724_v53, 16  ;;  %v1299_v55 = vsub.s32 4294967266, %v1294_v34 }
 0x6e6   : > { %v6023_v54 = vpop.f32.mrf.mxu3  ;;  %v1530_v43 = vsel %vm1526_vm11, %v1510_v61, %v1513_v31  ;;  %v1532_v22 = vsel %vm1528_vm12, %v11691_v2, %v1531_v29  ;;  %v1547_v24 = vmul.u32 %v1545_v30, %v11743_v21  ;;  %v11764_v13 = vmul.u32 %v1546_v10, %v11743_v21 }
 0x6e7   : > { %v1024_v27 = vxor.u32 2147483648, %v1018_v17  ;;  %vm1022_vm4 = vcmp.lt.s32.totalorder %v1021_v18, 2  ;;  %v1028_v50 = vsel %vm1026_vm15, %v1027_v7, %v1018_v17  ;;  %v13038_v63 = vand.u32 2147483647, %v11290_v47 }
 0x6e8   : > { %v1298_v34 = vor.u32 %v1297_v3, %v1296_v56  ;;  %v1300_v45 = vadd.s32 127, %v1299_v55  ;;  %vm1176_vm6 = vcmp.lt.s32.totalorder %v1175_v62, 2  ;;  %v1182_v61 = vsel %vm1180_vm3, %v1027_v7, %v1018_v17  ;;  %v6047_v62 = vpop.permute.xlu1 %6046 }
 0x6e9   : > { %vm11768_vm5 = vcmp.le.f32.partialorder %v13038_v63, 0.7853982  ;;  %v1025_v31 = vsel %vm1023_vm1, %v1010_v52, %v1024_v27  ;;  %v1179_v48 = vsel %vm1177_vm2, %v1010_v52, %v1024_v27  ;;  %v1309_v38 = vsub.s32 4, %v11650_v60 }
 0x6ea   : > { %v1301_v29 = vshll.u32 %v1300_v45, 23  ;;  %v11774_v9 = vmul.u32 %v1545_v30, %v11755_v49  ;;  %v1551_v35 = vshll.u32 %v11764_v13, 16  ;;  %v6002_v63 = vadd.f32 %v11693_v51, %v11542_v59  ;;  %v6006_v52 = vpop.f32.mrf.mxu2 }
 0x6eb   : > { %v6024_v23 = vadd.f32 %v6023_v54, %v6000_v20  ;;  %v6179_v56 = vrot.slane %v11669_v39, 3  ;;  %vm1019_vm7 = vweird.f32 %v11282_v42  ;;  %v1029_v17 = vsel %vm1022_vm4, %v1025_v31, %v1028_v50 }
 0x6ec   : > { %v1183_v7 = vsel %vm1176_vm6, %v1179_v48, %v1182_v61  ;;  %v1302_v3 = vor.u32 4788187, %v1301_v29  ;;  %v1305_v27 = vcvt.s32.f32 %v1298_v34  ;;  %v6005_v30 = vadd.f32 %v6004_v36, %v11656_v16 }
 0x6ed   : > { %v11785_v55 = vsel %vm1527_vm13, %v1530_v43, %v1532_v22  ;;  %v1537_v59 = vsel %vm1527_vm13, %v1534_v14, %v1536_v40  ;;  %v1550_v51 = vmul.u32 %v1546_v10, %v11755_v49  ;;  %v1310_v18 = vsel %vm1187_vm0, %v1309_v38, %v11650_v60 }
 0x6ee   : > { %v6025_v2 = vpop.f32.mrf.mxu3  ;;  %v1303_v20 = vand.u32 2147483647, %v1302_v3  ;;  %v1553_v54 = vshll.u32 %v11774_v9, 16  ;;  %vm1555_vm8 = vc.u32 %v1547_v24, %v1551_v35  ;;  %v11794_v50 = vadd.f32 %v6047_v62, %v6024_v23 }
 0x6ef   : > { %v6007_v16 = vadd.f32 %v6006_v52, %v11722_v41  ;;  %v11799_v36 = vsel %vm1019_vm7, nan, %v1029_v17  ;;  %v11803_v8 = vsel %vm1019_vm7, nan, %v1183_v7  ;;  %v1556_v10 = vsel %vm1555_vm8, 1, %v13000_v28 }
 0x6f0   : > { %v1306_v14 = vmul.f32 %v1305_v27, %v1303_v20  ;;  %v1557_v40 = vadd.s32 %v1551_v35, %v1547_v24  ;;  %v1567_v60 = vand.u32 65535, %v1537_v59  ;;  %v1312_v38 = vsel %vm11768_vm5, 0, %v1310_v18 }
 0x6f1   : > { %v1552_v23 = vshrl.u32 %v11764_v13, 16  ;;  %v1558_v43 = vadd.s32 %v1556_v10, %v1550_v51  ;;  %v1568_v41 = vshrl.u32 %v1537_v59, 16  ;;  %v12523_v42 = vsub.f32 1.0, %v11727_v6 }
 0x6f2   : > { %v1307_v34 = vxor.u32 2147483648, %v1306_v14  ;;  %vm1559_vm9 = vc.u32 %v1557_v40, %v1553_v54  ;;  %v1571_v45 = vmul.u32 %v1567_v60, %v11755_v49  ;;  %v6026_v31 = vadd.f32 %v6025_v2, %v6002_v63  ;;  %v6009_v18 = vpop.f32.mrf.mxu2  ;;  %v6057_v54 = vpop.permute.xlu0 %6056 }
 0x6f3   : > { %v1560_v48 = vsel %vm1559_vm9, 1, %v13000_v28  ;;  %v1569_v35 = vmul.u32 %v1567_v60, %v11743_v21  ;;  %v1570_v24 = vmul.u32 %v1568_v41, %v11743_v21  ;;  %v1329_v13 = vadd.s32 3, %v1312_v38 }
 0x6f4   : > { %v1308_v61 = vsel %vm1187_vm0, %v1307_v34, %v1306_v14  ;;  %v1554_v29 = vshrl.u32 %v11774_v9, 16  ;;  %v1562_v62 = vadd.s32 %v1560_v48, %v1558_v43  ;;  %v1572_v2 = vmul.u32 %v1568_v41, %v11755_v49 }
 0x6f5   : > { %v11820_v52 = vsel %vm11768_vm5, %v11290_v47, %v1308_v61  ;;  %v1573_v63 = vshll.u32 %v1570_v24, 16  ;;  %v1575_v17 = vshll.u32 %v1571_v45, 16  ;;  %v1808_v3 = vmax.f32 %v12523_v42, 1e-06  ;;  %v6052_v47 = vpop.permute.xlu1 %6051 }
 0x6f6   : > { %v6028_v22 = vpop.f32.mrf.mxu3  ;;  %v1313_v7 = vmul.f32 %v11820_v52, %v11820_v52  ;;  %v1563_v21 = vadd.s32 %v1562_v62, %v1552_v23  ;;  %8058 = vrcp.f32 %v11315_v46  ;;  %v11828_v27 = vand.u32 3, %v1312_v38 }
 0x6f7   : > { %v6029_v9 = vadd.f32 %v6028_v22, %v6005_v30  ;;  %vm1577_vm10 = vc.u32 %v1569_v35, %v1573_v63  ;;  %v1579_v12 = vadd.s32 %v1573_v63, %v1569_v35  ;;  %v1574_v49 = vshrl.u32 %v1570_v24, 16  ;;  %v6062_v30 = vpop.permute.xlu2 %6061 }
 0x6f8   : > { %v1314_v59 = vmul.f32 -0.001358992, %v1313_v7  ;;  %v1321_v51 = vmul.f32 -0.00019511016, %v1313_v7  ;;  %v1578_v20 = vsel %vm1577_vm10, 1, %v13000_v28  ;;  %v11831_v14 = vadd.s32 %v1563_v21, %v1554_v29 }
 0x6f9   : > { %v1580_v10 = vadd.s32 %v1578_v20, %v1572_v2  ;;  %vm1581_vm11 = vc.u32 %v1579_v12, %v1575_v17  ;;  %v11833_v40 = vadd.s32 %v1579_v12, %v1575_v17  ;;  %8060 = vlog2.f32 %v1808_v3 }
 0x6fa   : > { %v1315_v38 = vadd.f32 0.041655596, %v1314_v59  ;;  %v1322_v23 = vadd.f32 0.008332121, %v1321_v51  ;;  %v1582_v43 = vsel %vm1581_vm11, 1, %v13000_v28  ;;  %v11836_v41 = vadd.f32 %v6052_v47, %v6026_v31 }
 0x6fb   : > { %v1576_v34 = vshrl.u32 %v1571_v45, 16  ;;  %v1584_v48 = vadd.s32 %v1582_v43, %v1580_v10  ;;  %v11840_v29 = vand.u32 3, %v1329_v13  ;;  %v1587_v62 = vmul.u32 %v11724_v53, %v11785_v55 }
 0x6fc   : > { %v11838_v35 = vpop.eup %8058  ;;  %v1316_v24 = vmul.f32 %v1315_v38, %v1313_v7  ;;  %v1323_v61 = vmul.f32 %v1322_v23, %v1313_v7  ;;  %v11844_v2 = vadd.f32 %v6057_v54, %v6029_v9  ;;  %vm1589_vm12 = vc.u32 %v11831_v14, %v11833_v40  ;;  %v6011_v38 = vpop.f32.mrf.mxu2 }
 0x6fd   : > { %v1585_v28 = vadd.s32 %v1584_v48, %v1574_v49  ;;  %v6081_v31 = vmul.f32 %v11838_v35, %v11315_v46  ;;  %vm6085_vm13 = vweird.f32 %v11315_v46  ;;  %v6089_v17 = vand.u32 2147483647, %v11315_v46 }
 0x6fe   : > { %v6030_v60 = vpop.f32.mrf.mxu3  ;;  %v1324_v45 = vadd.f32 -0.16666654, %v1323_v61  ;;  %vm6086_vm14 = vweird.f32 %v11838_v35  ;;  %v6091_v12 = vand.u32 2147483648, %v11315_v46  ;;  %vm1489_vm15 = vcmp.eq.s32.totalorder %v11828_v27, 2 }
 0x6ff   : > { %v6031_v22 = vadd.f32 %v6030_v60, %v6007_v16  ;;  %v1317_v16 = vadd.f32 -0.4999988, %v1316_v24  ;;  %v1586_v53 = vadd.s32 %v1585_v28, %v1576_v34  ;;  %v6082_v55 = vsub.f32 1.0, %v6081_v31  ;;  %v8061_v21 = vpop.eup %8060  ;;  %vm11886_vm0 = vmor %vm6085_vm13, %vm6086_vm14 }
 0x700   : > { %v1325_v9 = vmul.f32 %v1324_v45, %v1313_v7  ;;  %v1810_v51 = vmul.f32 0.6931472, %v8061_v21  ;;  %v6010_v20 = vadd.f32 %v6009_v18, %v11733_v32  ;;  %v13041_v54 = vrot.slane %v11669_v39, 1  ;;  %v252_v45 = vld [vmem:[%s8238_s10 + $0xe] sm:$0x1] }
 0x701   : > { %v11846_v63 = vadd.f32 %v6062_v30, %v6031_v22  ;;  %v1318_v3 = vmul.f32 %v1317_v16, %v1313_v7  ;;  %v1590_v59 = vadd.s32 1, %v1586_v53  ;;  %v6083_v49 = vmul.f32 %v11838_v35, %v6082_v55 }
 0x702   : > { %v11865_v10 = vmul.f32 %v13041_v54, %v11844_v2  ;;  %v1326_v7 = vadd.f32 1.0, %v1325_v9  ;;  %v6181_v30 = vmul.f32 %v6179_v56, %v11844_v2  ;;  %v1811_v18 = vmul.f32 4.14, %v1810_v51 }
 0x703   : > { %v6319_v13 = vmul.f32 %v6179_v56, %v11846_v63  ;;  %v1591_v32 = vsel %vm1589_vm12, %v1590_v59, %v1586_v53  ;;  %v13042_v43 = vmov %v13041_v54  ;;  %v11879_v34 = vadd.f32 1.0, %v1318_v3 }
 0x704   : > { %v6192_v22 = vmul.f32 %v13042_v43, %v11836_v41  ;;  %v1592_v48 = vadd.s32 %v1591_v32, %v1587_v62  ;;  %v6084_v56 = vadd.f32 %v11838_v35, %v6083_v49  ;;  %v6092_v61 = vor.u32 1.1754944e-38, %v6091_v12 }
 0x705   : > { %v6321_v47 = vrot.slane %v6319_v13, 7  ;;  %vm1332_vm1 = vcmp.eq.s32.totalorder %v11840_v29, 0  ;;  %vm1486_vm2 = vcmp.eq.s32.totalorder %v11828_v27, 0  ;;  %v1812_v28 = vmul.f32 1.442695, %v1811_v18 }
 0x706   : > { %v6033_v60 = vpop.f32.mrf.mxu3  ;;  %vm11892_vm3 = vcmp.eq.f32.partialorder %v6089_v17, 8.507059e+37  ;;  %v6183_v62 = vrot.slane %v6181_v30, 7  ;;  %v6012_v16 = vadd.f32 %v6011_v38, %v11705_v25  ;;  %v253_v13 = vld [vmem:[%s8238_s10 + $0xf] sm:$0x1]  ;;  %v1327_v53 = vmul.f32 %v1326_v7, %v11820_v52  ;;  %v8074_v18 = vld [vmem:[%s8238_s10 + $0x3] sm:$0x1] }
 0x707   : > { %v11871_v23 = vadd.f32 %v6321_v47, %v11836_v41  ;;  %vm1335_vm4 = vcmp.eq.s32.totalorder %v11840_v29, 2  ;;  %v1593_v55 = vadd.s32 536870912, %v1592_v48  ;;  %vm1331_vm5 = vcmp.lt.s32.totalorder %v11840_v29, 2 }
 0x708   : > { %8062 = vpow2.f32 %v1812_v28  ;;  %v6088_v17 = vsel %vm11886_vm0, %v11838_v35, %v6084_v56  ;;  %v6185_v21 = vadd.f32 %v6183_v62, %v11794_v50  ;;  %v6194_v3 = vrot.slane %v6192_v22, 7  ;;  %v11932_v22 = vld [vmem:[%s8238_s10 + $0xa] sm:$0x1] }
 0x709   : > { %v6268_v9 = vrot.slane %v11865_v10, 7  ;;  %v1336_v25 = vxor.u32 2147483648, %v11879_v34  ;;  %vm1485_vm6 = vcmp.lt.s32.totalorder %v11828_v27, 2  ;;  %v1594_v52 = vshrl.u32 %v1593_v55, 30  ;;  %v6072_v10 = vpop.permute.xlu2 %6071 }
 0x70a   : > { %v11911_v12 = vsel %vm11892_vm3, %v6092_v61, %v6088_v17  ;;  %vm1496_vm7 = vcmp.lt.s32.totalorder %v11532_v4, 0  ;;  %v11916_v35 = vadd.s32 %v11833_v40, %v11831_v14  ;;  %v11918_v47 = vmul.f32 0.046511628, %v252_v45 }
 0x70b   : > { %13047 = vst [vmem:[#allocation50_spill] sm:$0xff] %v11911_v12  ;;  %v11920_v59 = vmul.f32 0.033333335, %v253_v13  ;;  %v11923_v51 = vmul.f32 5.66, %v11911_v12  ;;  %v6034_v49 = vadd.f32 %v6033_v60, %v6010_v20  ;;  %v1333_v7 = vxor.u32 2147483648, %v1327_v53 }
 0x70c   : > { %v1337_v30 = vsel %vm1335_vm4, %v1336_v25, %v1327_v53  ;;  %v1595_v38 = vshll.u32 %v1594_v52, 30  ;;  %vm1328_vm8 = vweird.f32 %v8074_v18  ;;  %v6187_v14 = vrot.slane %v6185_v21, 6 }
 0x70d   : > { %v6196_v40 = vadd.f32 %v6194_v3, %v11794_v50  ;;  %v6199_v43 = vmul.f32 %v11669_v39, %v11844_v2  ;;  %v1334_v20 = vsel %vm1332_vm1, %v11879_v34, %v1333_v7  ;;  %v1491_v60 = vsel %vm1489_vm15, %v1336_v25, %v1327_v53 }
 0x70e   : > { %v6035_v54 = vpop.f32.mrf.mxu3  ;;  %v13048_v56 = vand.u32 2147483647, %v11532_v4  ;;  %v1596_v61 = vsub.s32 %v1592_v48, %v1595_v38  ;;  %v12522_v28 = vrot.slane %v11669_v39, 5  ;;  %v8063_v31 = vpop.eup %8062  ;;  %v1618_v62 = vsub.s32 4, %v1594_v52 }
 0x70f   : > { %v6036_v32 = vadd.f32 %v6035_v54, %v6012_v16  ;;  %v6189_v45 = vmul.f32 %v6187_v14, %v11923_v51  ;;  %v6201_v13 = vrot.slane %v6199_v43, 7  ;;  %v1814_v17 = vmul.f32 0.002377, %v8063_v31 }
 0x710   : > { %vm11941_vm9 = vcmp.le.f32.partialorder %v13048_v56, 0.7853982  ;;  %vm1597_vm10 = vcmp.lt.s32.totalorder %v1596_v61, 0  ;;  %v1598_v55 = vsub.s32 0, %v1596_v61  ;;  %v6216_v53 = vmul.f32 %v12522_v28, %v11846_v63 }
 0x711   : > { %v11946_v16 = vadd.f32 %v6072_v10, %v6036_v32  ;;  %v6197_v21 = vmul.f32 %v6189_v45, %v11932_v22  ;;  %v6203_v48 = vadd.f32 %v6201_v13, %v11836_v41  ;;  %v11955_v3 = vadd.f32 %v6201_v13, %v11794_v50 }
 0x712   : > { %v1488_v54 = vsel %vm1486_vm2, %v11879_v34, %v1333_v7  ;;  %v1599_v10 = vsel %vm1597_vm10, %v1598_v55, %v1596_v61  ;;  %v1827_v38 = vmul.f32 0.5, %v1814_v17  ;;  %v6218_v32 = vrot.slane %v6216_v53, 7  ;;  %v6067_v7 = vpop.permute.xlu0 %6066 }
 0x713   : > { %v11959_v25 = vmul.f32 %v11946_v16, %v11794_v50  ;;  %v1600_v14 = vclz %v1599_v10  ;;  %v11964_v43 = vadd.f32 %v6197_v21, %v6196_v40  ;;  %v6205_v56 = vrot.slane %v6203_v48, 1 }
 0x714   : > { %v12524_v31 = vrot.slane %v11669_v39, 7  ;;  %v1338_v45 = vsel %vm1331_vm5, %v1334_v20, %v1337_v30  ;;  %v1619_v13 = vsel %vm1496_vm7, %v1618_v62, %v1594_v52  ;;  %v1828_v28 = vmul.f32 %v1827_v38, %v11315_v46 }
 0x715   : > { %v6220_v42 = vadd.f32 %v6218_v32, %v11836_v41  ;;  %v1492_v40 = vsel %vm1485_vm6, %v1488_v54, %v1491_v60  ;;  %v6754_v55 = vadd.s32 4294967294, %v1600_v14  ;;  %v11977_v53 = vadd.f32 %v6268_v9, %v11836_v41 }
 0x716   : > { %v11979_v29 = vadd.f32 %v6067_v7, %v6034_v49  ;;  %v11982_v30 = vmul.f32 %v1828_v28, %v11315_v46  ;;  %v11985_v52 = vmul.f32 15.0, %v11911_v12  ;;  %v6207_v20 = vmul.f32 %v6205_v56, %v11923_v51 }
 0x717   : > { %v11989_v62 = vsel %vm1328_vm8, nan, %v1338_v45  ;;  %vm6755_vm11 = vcmp.lt.s32.totalorder %v6754_v55, 0  ;;  %v1621_v27 = vsel %vm11941_vm9, 0, %v1619_v13  ;;  %v11996_v9 = vmul.f32 %v12524_v31, %v11844_v2 }
 0x718   : > { %v11999_v49 = vsel %vm1328_vm8, nan, %v1492_v40  ;;  %v1603_v60 = vsel %vm6755_vm11, 0, %v6754_v55  ;;  %v13051_v28 = vsub.f32 1.0, %v11727_v6  ;;  %v12525_v48 = vrot.slane %v11669_v39, 2  ;;  %6639 = vst [vmem:[%s8247_s11 + $0x16] sm:$0x1] %v11982_v30 }
 0x719   : > { %v1604_v54 = vsub.s32 32, %v1603_v60  ;;  %v1605_v10 = vshll.u32 %v1596_v61, %v1603_v60  ;;  %v1608_v38 = vsub.s32 4294967266, %v1603_v60  ;;  %vm1805_vm12 = vcmp.ge.f32.partialorder %v11708_v58, 35000.0 }
 0x71a   : > { %v1806_v21 = vmul.f32 519.0, %v13051_v28  ;;  %v1638_v32 = vadd.s32 3, %v1621_v27  ;;  %v6209_v14 = vmul.f32 %v6207_v20, %v11932_v22  ;;  %v6222_v56 = vrot.slane %v6220_v42, 4 }
 0x71b   : > { %v12009_v18 = vrot.slane %v11669_v39, 6  ;;  %v1606_v45 = vshrl.u32 %v11916_v35, %v1604_v54  ;;  %v1609_v6 = vadd.s32 127, %v1608_v38  ;;  %v6111_v61 = vmul.f32 %v11653_v15, %v11586_v0 }
 0x71c   : > { %v1807_v40 = vsel %vm1805_vm12, 390.0, %v1806_v21  ;;  %v12021_v42 = vmul.f32 %v12525_v48, %v11844_v2  ;;  %v1830_v60 = vmul.f32 1715.0, %v1814_v17  ;;  %v12025_v28 = vand.u32 3, %v1638_v32 }
 0x71d   : > { %v6250_v58 = vmul.f32 %v12009_v18, %v11979_v29  ;;  %v1607_v55 = vor.u32 %v1606_v45, %v1605_v10  ;;  %v1610_v20 = vshll.u32 %v1609_v6, 23  ;;  %v12023_v35 = vmul.f32 2402.82, %v1807_v40 }
 0x71e   : > { %8064 = vrcp.f32 %v11803_v8  ;;  %v6211_v21 = vrot.slane %v6209_v14, 7  ;;  %v6224_v54 = vmul.f32 %v6222_v56, %v11923_v51  ;;  %v6104_v34 = vand.u32 2147483647, %v11803_v8 }
 0x71f   : > { %v1611_v38 = vor.u32 4788187, %v1610_v20  ;;  %v1614_v31 = vcvt.s32.f32 %v1607_v55  ;;  %8066 = vrsqrt.f32 %v12023_v35  ;;  %v12031_v48 = vand.u32 3, %v1621_v27 }
 0x720   : > { %v1831_v10 = vmul.f32 %v1830_v60, %v1807_v40  ;;  %v6106_v45 = vand.u32 2147483648, %v11803_v8  ;;  %v6112_v6 = vsub.f32 1.0, %v6111_v61  ;;  %vm6100_vm13 = vweird.f32 %v11803_v8 }
 0x721   : > { %v1612_v17 = vand.u32 2147483647, %v1611_v38  ;;  %vm6115_vm14 = vweird.f32 %v11586_v0  ;;  %vm6116_vm15 = vweird.f32 %v11653_v15  ;;  %vm1822_vm0 = vweird.f32 %v12023_v35 }
 0x722   : > { %vm1832_vm1 = vcmp.eq.f32.partialorder %v1831_v10, 0.0  ;;  %v6113_v51 = vmul.f32 %v11653_v15, %v6112_v6  ;;  %v6121_v27 = vand.u32 2147483648, %v11586_v0  ;;  %v12041_v32 = vadd.f32 %v6211_v21, %v11955_v3  ;;  %vm12053_vm3 = vmor %vm6115_vm14, %vm6116_vm15 }
 0x723   : > { %v1615_v14 = vmul.f32 %v1614_v31, %v1612_v17  ;;  %v1833_v56 = vsel %vm1832_vm1, 1715.0, %v1831_v10  ;;  %vm12043_vm2 = vcmp.eq.f32.partialorder %v6104_v34, 8.507059e+37  ;;  %v12048_v61 = vmul.f32 %v6224_v54, %v11932_v22 }
 0x724   : > { %v8065_v55 = vpop.eup %8064  ;;  %v6107_v20 = vor.u32 1.1754944e-38, %v6106_v45  ;;  %v12051_v60 = vadd.f32 %v11653_v15, %v6113_v51  ;;  %v6226_v3 = vmul.f32 0.1, %v12041_v32  ;;  %v6252_v31 = vrot.slane %v6250_v58, 1  ;;  %6640 = vst [vmem:[%s8247_s11 + $0x17] sm:$0x1] %v1833_v56 }
 0x725   : > { %v8067_v34 = vpop.eup %8066  ;;  %v1616_v21 = vxor.u32 2147483648, %v1615_v14  ;;  %v6096_v10 = vmul.f32 %v8065_v55, %v11803_v8  ;;  %v12061_v6 = vor.u32 1.1754944e-38, %v6121_v27  ;;  %vm6101_vm5 = vweird.f32 %v8065_v55 }
 0x726   : > { %13054 = vst [vmem:[#allocation47_spill] sm:$0xff] %v12051_v60  ;;  %v1817_v45 = vmul.f32 %v8067_v34, %v12023_v35  ;;  %vm1823_vm4 = vweird.f32 %v8067_v34  ;;  %v6240_v17 = vrot.slane %v12048_v61, 6  ;;  %v6228_v7 = vrot.slane %v6226_v3, 7  ;;  %vm12094_vm6 = vmor %vm6100_vm13, %vm6101_vm5  ;;  %v8075_v60 = vld [vmem:[%s8238_s10 + $0x5] sm:$0x1] }
 0x727   : > { %13057 = vst [vmem:[#allocation46_spill] sm:$0xff] %v12061_v6  ;;  %v1617_v51 = vsel %vm1496_vm7, %v1616_v21, %v1615_v14  ;;  %v6097_v58 = vsub.f32 1.0, %v6096_v10  ;;  %v12077_v13 = vadd.f32 %v6252_v31, %v11979_v29  ;;  %v6259_v61 = vrot.slane %v12021_v42, 7  ;;  %vm12115_vm7 = vmor %vm1822_vm0, %vm1823_vm4  ;;  %v12140_v31 = vld [vmem:[%s8238_s10 + $0x9] sm:$0x1] }
 0x728   : > { %v12074_v27 = vsel %vm11941_vm9, %v11532_v4, %v1617_v51  ;;  %v1818_v54 = vmul.f32 %v8067_v34, %v1817_v45  ;;  %v6160_v3 = vmul.f32 %v11601_v5, %v11799_v36  ;;  %v12089_v24 = vmul.f32 %v11989_v62, %v11803_v8 }
 0x729   : > { %v1622_v14 = vmul.f32 %v12074_v27, %v12074_v27  ;;  %v6098_v21 = vmul.f32 %v8065_v55, %v6097_v58  ;;  %v12100_v42 = vmul.f32 %v11999_v49, %v11803_v8  ;;  %v6167_v10 = vmul.f32 %v11989_v62, %v11932_v22 }
 0x72a   : > { %v1819_v4 = vmul.f32 0.5, %v1818_v54  ;;  %v6168_v45 = vmul.f32 %v11999_v49, %v12081_v11  ;;  %v6162_v56 = vmul.f32 %v12089_v24, %v11605_v57  ;;  %v6172_v37 = vmul.f32 %v11999_v49, %v11932_v22 }
 0x72b   : > { %13060 = vst [vmem:[#allocation44_spill] sm:$0xff] %v12100_v42  ;;  %v1623_v51 = vmul.f32 -0.001358992, %v1622_v14  ;;  %v1630_v58 = vmul.f32 -0.00019511016, %v1622_v14  ;;  %v6099_v54 = vadd.f32 %v8065_v55, %v6098_v21  ;;  %v6165_v26 = vmul.f32 %v12100_v42, %v11608_v33 }
 0x72c   : > { %v1820_v19 = vsub.f32 1.5, %v1819_v4  ;;  %v6169_v44 = vadd.f32 %v6168_v45, %v6167_v10  ;;  %v6163_v4 = vsub.f32 %v6160_v3, %v6162_v56  ;;  %vm1644_vm8 = vcmp.eq.s32.totalorder %v12025_v28, 2 }
 0x72d   : > { %v1624_v12 = vadd.f32 0.041655596, %v1623_v51  ;;  %v1631_v6 = vadd.f32 0.008332121, %v1630_v58  ;;  %v6103_v21 = vsel %vm12094_vm6, %v8065_v55, %v6099_v54  ;;  %vm1798_vm9 = vcmp.eq.s32.totalorder %v12031_v48, 2 }
 0x72e   : > { %v1821_v10 = vmul.f32 %v8067_v34, %v1820_v19  ;;  %v6108_v45 = vsel %vm12043_vm2, %v6107_v20, %v6103_v21  ;;  %v6173_v51 = vmul.f32 %v11989_v62, %v12081_v11  ;;  %v6230_v35 = vadd.f32 %v6228_v7, %v11959_v25 }
 0x72f   : > { %v1625_v58 = vmul.f32 %v1624_v12, %v1622_v14  ;;  %v1632_v42 = vmul.f32 %v1631_v6, %v1622_v14  ;;  %v6125_v55 = vmul.f32 %v6108_v45, %v11799_v36  ;;  %v6166_v56 = vsub.f32 %v6163_v4, %v6165_v26 }
 0x730   : > { %vm1641_vm10 = vcmp.eq.s32.totalorder %v12025_v28, 0  ;;  %vm1795_vm11 = vcmp.eq.s32.totalorder %v12031_v48, 0  ;;  %v1825_v19 = vsel %vm12115_vm7, %v8067_v34, %v1821_v10  ;;  %v6174_v40 = vsub.f32 %v6172_v37, %v6173_v51 }
 0x731   : > { %v6175_v20 = vmul.f32 %v6169_v44, %v6108_v45  ;;  %v13063_v3 = vrot.slane %v11996_v9, 7  ;;  %v1626_v25 = vadd.f32 -0.4999988, %v1625_v58  ;;  %v1633_v7 = vadd.f32 -0.16666654, %v1632_v42 }
 0x732   : > { %vm1640_vm12 = vcmp.lt.s32.totalorder %v12025_v28, 2  ;;  %vm1794_vm13 = vcmp.lt.s32.totalorder %v12031_v48, 2  ;;  %v1826_v26 = vmul.f32 %v1825_v19, %v11315_v46  ;;  %v6170_v6 = vmul.f32 %v6169_v44, %v6125_v55  ;;  %6619 = vst [vmem:[%s8247_s11 + $0x2] sm:$0x1] %v6166_v56 }
 0x733   : > { %v6237_v12 = vadd.f32 %v13063_v3, %v6230_v35  ;;  %vm1637_vm14 = vweird.f32 %v8075_v60  ;;  %v6261_v9 = vadd.f32 %v6259_v61, %v11794_v50  ;;  %v6271_v34 = vmul.f32 %v11977_v53, %v11985_v52  ;;  %6621 = vst [vmem:[%s8247_s11 + $0x4] sm:$0x1] %v6174_v40 }
 0x734   : > { %v6272_v42 = vmul.f32 %v12009_v18, %v11844_v2  ;;  %v1627_v54 = vmul.f32 %v1626_v25, %v1622_v14  ;;  %v1634_v21 = vmul.f32 %v1633_v7, %v1622_v14  ;;  %v6171_v44 = vadd.f32 %v6170_v6, %v12140_v31  ;;  %6622 = vst [vmem:[%s8247_s11 + $0x5] sm:$0x1] %v6175_v20 }
 0x735   : > { %v6242_v37 = vadd.f32 %v6240_v17, %v6237_v12  ;;  %v6278_v4 = vrot.slane %v11918_v47, 7  ;;  %v13064_v10 = vrot.slane %v11946_v16, 7  ;;  %v6263_v61 = vrot.slane %v6261_v9, 7  ;;  %6638 = vst [vmem:[%s8247_s11 + $0x15] sm:$0x1] %v1826_v26 }
 0x736   : > { %v6274_v45 = vrot.slane %v6272_v42, 7  ;;  %v6286_v53 = vrot.slane %v11920_v59, 2  ;;  %v1628_v51 = vadd.f32 1.0, %v1627_v54  ;;  %v1635_v35 = vadd.f32 1.0, %v1634_v21  ;;  %6620 = vst [vmem:[%s8247_s11 + $0x3] sm:$0x1] %v6171_v44 }
 0x737   : > { %v12154_v17 = vadd.f32 %v13064_v10, %v6242_v37  ;;  %v6280_v58 = vmul.f32 %v6278_v4, %v12077_v13  ;;  %v6298_v14 = vmul.f32 %v6271_v34, %v12140_v31  ;;  %v6265_v55 = vmul.f32 %v6263_v61, %v11985_v52 }
 0x738   : > { %v6276_v56 = vadd.f32 %v6274_v45, %v11794_v50  ;;  %v6288_v19 = vmul.f32 %v6286_v53, %v11846_v63  ;;  %v12165_v40 = vrot.slane %v11669_v39, 4  ;;  %v1636_v20 = vmul.f32 %v1635_v35, %v12074_v27 }
 0x739   : > { %v1645_v3 = vxor.u32 2147483648, %v1628_v51  ;;  %v6143_v12 = vmul.f32 %v11999_v49, %v11799_v36  ;;  %v6282_v25 = vrot.slane %v6280_v58, 6  ;;  %v6293_v7 = vmul.f32 %v6265_v55, %v12081_v11 }
 0x73a   : > { %v6290_v13 = vrot.slane %v6288_v19, 3  ;;  %v6305_v26 = vmul.f32 %v12165_v40, %v11979_v29  ;;  %v6310_v6 = vmul.f32 %v12165_v40, %v11846_v63  ;;  %v1642_v37 = vxor.u32 2147483648, %v1636_v20 }
 0x73b   : > { %v1646_v9 = vsel %vm1644_vm8, %v1645_v3, %v1636_v20  ;;  %v1800_v27 = vsel %vm1798_vm9, %v1645_v3, %v1636_v20  ;;  %v6284_v34 = vadd.f32 %v6282_v25, %v6276_v56  ;;  %v6295_v42 = vrot.slane %v6293_v7, 5 }
 0x73c   : > { %v6300_v54 = vrot.slane %v6298_v14, 5  ;;  %v6307_v21 = vrot.slane %v6305_v26, 1  ;;  %v6312_v44 = vrot.slane %v6310_v6, 7  ;;  %v1643_v4 = vsel %vm1641_vm10, %v1628_v51, %v1642_v37 }
 0x73d   : > { %v1797_v10 = vsel %vm1795_vm11, %v1628_v51, %v1642_v37  ;;  %v6292_v61 = vadd.f32 %v6290_v13, %v6284_v34  ;;  %v13065_v45 = vrot.slane %v11669_v39, 5  ;;  %v1647_v35 = vsel %vm1640_vm12, %v1643_v4, %v1646_v9 }
 0x73e   : > { %v1801_v58 = vsel %vm1794_vm13, %v1797_v10, %v1800_v27  ;;  %v6314_v14 = vadd.f32 %v6312_v44, %v11836_v41  ;;  %v13066_v55 = vrot.slane %v11871_v23, 6  ;;  %v1648_v19 = vsel %vm1637_vm14, nan, %v1647_v35 }
 0x73f   : > { %v6328_v53 = vmul.f32 %v13065_v45, %v11844_v2  ;;  %v1802_v51 = vsel %vm1637_vm14, nan, %v1801_v58  ;;  %v6297_v20 = vadd.f32 %v6295_v42, %v6292_v61  ;;  %v6139_v13 = vmul.f32 %v1648_v19, %v11999_v49 }
 0x740   : > { %v6327_v56 = vmul.f32 %v13066_v55, %v11985_v52  ;;  %v6135_v25 = vmul.f32 %v1802_v51, %v11803_v8  ;;  %v6137_v28 = vmul.f32 %v1802_v51, %v11989_v62  ;;  %v6144_v48 = vmul.f32 %v6143_v12, %v1802_v51 }
 0x741   : > { %v6330_v3 = vrot.slane %v6328_v53, 7  ;;  %v6145_v7 = vmul.f32 %v1648_v19, %v11989_v62  ;;  %v6149_v26 = vmul.f32 %v1648_v19, %v11803_v8  ;;  %v6152_v23 = vmul.f32 %v1802_v51, %v11999_v49 }
 0x742   : > { %v6156_v6 = vmul.f32 %v6143_v12, %v1648_v19  ;;  %v6138_v37 = vmul.f32 %v6137_v28, %v11799_v36  ;;  %v12203_v60 = vadd.f32 %v6300_v54, %v6297_v20  ;;  %v6309_v9 = vadd.f32 %v6307_v21, %v11979_v29 }
 0x743   : > { %v6316_v27 = vrot.slane %v6314_v14, 5  ;;  %v6136_v34 = vmul.f32 %v6135_v25, %v11601_v5  ;;  %v6146_v42 = vadd.f32 %v6145_v7, %v6144_v48  ;;  %v6151_v44 = vmul.f32 %v6145_v7, %v11799_v36 }
 0x744   : > { %v6157_v4 = vsub.f32 %v6156_v6, %v6137_v28  ;;  %v6140_v10 = vsub.f32 %v6138_v37, %v6139_v13  ;;  %v6332_v45 = vadd.f32 %v6330_v3, %v11794_v50  ;;  %v6333_v12 = vmul.f32 0.1, %v12203_v60 }
 0x745   : > { %v6318_v61 = vmul.f32 %v6316_v27, %v11985_v52  ;;  %v6147_v53 = vmul.f32 %v6146_v42, %v11608_v33  ;;  %v6150_v54 = vmul.f32 %v6149_v26, %v11601_v5  ;;  %v6153_v35 = vadd.f32 %v6152_v23, %v6151_v44 }
 0x746   : > { %v6339_v21 = vrot.slane %v11918_v47, 5  ;;  %v6141_v58 = vmul.f32 %v6140_v10, %v11605_v57  ;;  %v6334_v14 = vmul.f32 0.37733334, %v6333_v12  ;;  %v6346_v55 = vrot.slane %v11920_v59, 1 }
 0x747   : > { %v6353_v19 = vmul.f32 %v6318_v61, %v12081_v11  ;;  %v6154_v51 = vmul.f32 %v6153_v35, %v11605_v57  ;;  %v6158_v20 = vmul.f32 %v6157_v4, %v11608_v33  ;;  %v6358_v25 = vmul.f32 %v6327_v56, %v12140_v31 }
 0x748   : > { %v6341_v3 = vmul.f32 %v6339_v21, %v6309_v9  ;;  %v6142_v28 = vadd.f32 %v6141_v58, %v6136_v34  ;;  %v6336_v13 = vrot.slane %v6334_v14, 7  ;;  %v6348_v48 = vmul.f32 %v6346_v55, %v11846_v63 }
 0x749   : > { %v13067_v7 = vrot.slane %v13030_v1, 1  ;;  %v6155_v23 = vadd.f32 %v6154_v51, %v6150_v54  ;;  %v6355_v37 = vrot.slane %v6353_v19, 4  ;;  %v6360_v27 = vrot.slane %v6358_v25, 4 }
 0x74a   : > { %v6343_v6 = vrot.slane %v6341_v3, 7  ;;  %v6148_v42 = vadd.f32 %v6147_v53, %v6142_v28  ;;  %v6338_v44 = vsub.f32 %v6332_v45, %v6336_v13  ;;  %v6350_v4 = vrot.slane %v6348_v48, 3 }
 0x74b   : > { %v6366_v26 = vmul.f32 %v13067_v7, %v11979_v29  ;;  %v13068_v56 = vrot.slane %v11669_v39, 2  ;;  %v6159_v34 = vadd.f32 %v6158_v20, %v6155_v23  ;;  %v13069_v10 = vrot.slane %v11669_v39, 7  ;;  %v250_v39 = vld [vmem:[%s8238_s10 + $0xc] sm:$0x1] }
 0x74c   : > { %v6385_v12 = vmul.f32 %v12009_v18, %v11846_v63  ;;  %v6394_v54 = vmul.f32 %v12165_v40, %v11844_v2  ;;  %v6345_v53 = vadd.f32 %v6343_v6, %v6338_v44  ;;  %v6399_v35 = vrot.slane %v11918_v47, 3  ;;  %6617 = vst [vmem:[%s8247_s11] sm:$0x1] %v6148_v42 }
 0x74d   : > { %v6371_v9 = vmul.f32 %v13068_v56, %v11979_v29  ;;  %v6376_v61 = vmul.f32 %v13069_v10, %v11846_v63  ;;  %v6403_v21 = vmul.f32 %v11920_v59, %v11979_v29  ;;  %v6368_v58 = vrot.slane %v6366_v26, 3  ;;  %6618 = vst [vmem:[%s8247_s11 + $0x1] sm:$0x1] %v6159_v34 }
 0x74e   : > { %v6387_v55 = vrot.slane %v6385_v12, 7  ;;  %v6396_v19 = vrot.slane %v6394_v54, 7  ;;  %v6352_v51 = vadd.f32 %v6350_v4, %v6345_v53  ;;  %v6418_v2 = vmul.f32 %v11946_v16, %v13030_v1 }
 0x74f   : > { %v6373_v45 = vrot.slane %v6371_v9, 1  ;;  %v6378_v14 = vrot.slane %v6376_v61, 7  ;;  %v6423_v18 = vmul.f32 %v11605_v57, %v12081_v11  ;;  %v13070_v47 = vand.u32 2147483647, %v11586_v0 }
 0x750   : > { %v6389_v20 = vadd.f32 %v6387_v55, %v11836_v41  ;;  %v6398_v3 = vadd.f32 %v6396_v19, %v11794_v50  ;;  %v6405_v25 = vrot.slane %v6403_v21, 3  ;;  %v6424_v1 = vmul.f32 %v11608_v33, %v11932_v22 }
 0x751   : > { %v6375_v63 = vadd.f32 %v6373_v45, %v11979_v29  ;;  %vm12247_vm15 = vcmp.eq.f32.partialorder %v13070_v47, 8.507059e+37  ;;  %v6380_v40 = vadd.f32 %v6378_v14, %v11836_v41  ;;  %v6357_v29 = vadd.f32 %v6355_v37, %v6352_v51 }
 0x752   : > { %v6426_v16 = vmul.f32 32.17, %v11799_v36  ;;  %v6391_v48 = vrot.slane %v6389_v20, 3  ;;  %v6428_v7 = vmul.f32 300.0, %v11982_v30  ;;  %v6432_v26 = vmul.f32 0.0015700066, %v250_v39 }
 0x753   : > { %v6401_v28 = vmul.f32 %v6399_v35, %v6375_v63  ;;  %v6382_v13 = vrot.slane %v6380_v40, 2  ;;  %v6362_v23 = vadd.f32 %v6360_v27, %v6357_v29  ;;  %v6425_v42 = vsub.f32 %v6423_v18, %v6424_v1  ;;  %v13073_v18 = vld [vmem:[#allocation47_spill] sm:$0xff]  ;;  %v13075_v40 = vld [vmem:[#allocation46_spill] sm:$0xff] }
 0x754   : > { %v6434_v41 = vmul.f32 %v11608_v33, %v12140_v31  ;;  %v6393_v37 = vmul.f32 %v6391_v48, %v11985_v52  ;;  %v6429_v44 = vmul.f32 %v6428_v7, %v11964_v43  ;;  %v6435_v4 = vmul.f32 %v11601_v5, %v12081_v11  ;;  %v13076_v1 = vld [vmem:[#allocation50_spill] sm:$0xff] }
 0x755   : > { %v6402_v6 = vadd.f32 %v6401_v28, %v6398_v3  ;;  %v6384_v50 = vmul.f32 %v6382_v13, %v11985_v52  ;;  %v6370_v56 = vadd.f32 %v6368_v58, %v6362_v23  ;;  %v6427_v34 = vsub.f32 %v6425_v42, %v6426_v16 }
 0x756   : > { %v6437_v10 = vmul.f32 32.17, %v11803_v8  ;;  %v6413_v61 = vmul.f32 %v6393_v37, %v12140_v31  ;;  %v6430_v12 = vmul.f32 0.0015700066, %v6429_v44  ;;  %v6436_v54 = vsub.f32 %v6434_v41, %v6435_v4 }
 0x757   : > { %v6407_v9 = vadd.f32 %v6405_v25, %v6402_v6  ;;  %v6408_v27 = vmul.f32 %v6384_v50, %v12081_v11  ;;  %v6441_v52 = vrot.slane %v12203_v60, 3  ;;  %v6446_v43 = vmul.f32 %v11601_v5, %v11932_v22 }
 0x758   : > { %v6438_v53 = vmul.f32 %v6437_v10, %v11989_v62  ;;  %v6447_v45 = vmul.f32 %v11605_v57, %v12140_v31  ;;  %v6415_v21 = vrot.slane %v6413_v61, 3  ;;  %v6431_v58 = vadd.f32 %v6430_v12, %v6427_v34 }
 0x759   : > { %v6410_v35 = vrot.slane %v6408_v27, 3  ;;  %v6449_v8 = vmul.f32 %v6437_v10, %v11999_v49  ;;  %v6443_v55 = vmul.f32 %v6441_v52, %v6428_v7  ;;  %v6452_v39 = vrot.slane %v12041_v32, 1 }
 0x75a   : > { %v6439_v14 = vadd.f32 %v6438_v53, %v6436_v54  ;;  %v6448_v19 = vsub.f32 %v6446_v43, %v6447_v45  ;;  %v6433_v62 = vadd.f32 %v6432_v26, %v6431_v58  ;;  %v6466_v60 = vmul.f32 %v11601_v5, %v11601_v5 }
 0x75b   : > { %v6412_v51 = vadd.f32 %v6410_v35, %v6407_v9  ;;  %v6467_v63 = vmul.f32 %v11608_v33, %v11608_v33  ;;  %v13074_v47 = vsel %vm12053_vm3, %v11653_v15, %v13073_v18  ;;  %v6444_v20 = vmul.f32 0.0015700066, %v6443_v55 }
 0x75c   : > { %v12288_v49 = vsel %vm12247_vm15, %v13075_v40, %v13074_v47  ;;  %v6450_v32 = vadd.f32 %v6449_v8, %v6448_v19  ;;  %v6454_v3 = vmul.f32 %v6452_v39, %v6428_v7  ;;  %v6420_v29 = vrot.slane %v6418_v2, 3 }
 0x75d   : > { %v6417_v25 = vadd.f32 %v6415_v21, %v6412_v51  ;;  %v6468_v28 = vadd.f32 %v6467_v63, %v6466_v60  ;;  %v12292_v16 = vmul.f32 %v13076_v1, %v13076_v1  ;;  %v6445_v13 = vadd.f32 %v6444_v20, %v6439_v14 }
 0x75e   : > { %v6455_v38 = vmul.f32 0.0015700066, %v6454_v3  ;;  %v6492_v48 = vrot.slane %v11982_v30, 3  ;;  %v6497_v15 = vrot.slane %v11982_v30, 6  ;;  %v6457_v59 = vmul.f32 %v6433_v62, %v11601_v5 }
 0x75f   : > { %v6422_v26 = vadd.f32 %v6420_v29, %v6417_v25  ;;  %v12298_v23 = vmul.f32 %v6433_v62, %v11608_v33  ;;  %8068 = vrcp.f32 %v6468_v28  ;;  %v6458_v2 = vmul.f32 %v6445_v13, %v11605_v57 }
 0x760   : > { %v6456_v7 = vadd.f32 %v6455_v38, %v6450_v32  ;;  %vm6474_vm0 = vweird.f32 %v6468_v28  ;;  %v6478_v6 = vand.u32 2147483647, %v6468_v28  ;;  %v6480_v42 = vand.u32 2147483648, %v6468_v28 }
 0x761   : > { %v6485_v41 = vmul.f32 %v6445_v13, %v11315_v46  ;;  %v6494_v50 = vmul.f32 %v6492_v48, %v6422_v26  ;;  %v6499_v37 = vmul.f32 %v6497_v15, %v12154_v17  ;;  %v6502_v44 = vrot.slane %v11982_v30, 4  ;;  %v13081_v46 = vld [vmem:[#allocation98_spill] sm:$0xff] }
 0x762   : > { %v6459_v4 = vadd.f32 %v6458_v2, %v6457_v59  ;;  %v6460_v9 = vmul.f32 %v6456_v7, %v11608_v33  ;;  %v6463_v34 = vmul.f32 %v6456_v7, %v11601_v5  ;;  %v6481_v10 = vor.u32 1.1754944e-38, %v6480_v42 }
 0x763   : > { %v6495_v27 = vmul.f32 300.0, %v6494_v50  ;;  %v6500_v61 = vmul.f32 300.0, %v6499_v37  ;;  %v6504_v12 = vmul.f32 %v6502_v44, %v6370_v56  ;;  %v6513_v54 = vmul.f32 4.607109e+08, %v11932_v22 }
 0x764   : > { %v6461_v53 = vadd.f32 %v6460_v9, %v6459_v4  ;;  %v6465_v52 = vsub.f32 %v6463_v34, %v12298_v23  ;;  %vm12308_vm1 = vcmp.eq.f32.partialorder %v6478_v6, 8.507059e+37  ;;  %v6519_v30 = vmul.f32 16479924.0, %v12140_v31 }
 0x765   : > { %v6525_v17 = vmul.f32 982.0, %v11932_v22  ;;  %v8069_v33 = vpop.eup %8068  ;;  %v6496_v43 = vmul.f32 30.0, %v6495_v27  ;;  %v6501_v5 = vmul.f32 11.32, %v6500_v61  ;;  %v6505_v45 = vmul.f32 300.0, %v6504_v12 }
 0x766   : > { %v6514_v56 = vmul.f32 %v6513_v54, %v12081_v11  ;;  %v12316_v35 = vmul.f32 %v6461_v53, %v13076_v1  ;;  %v6470_v21 = vmul.f32 %v8069_v33, %v6468_v28  ;;  %vm6475_vm2 = vweird.f32 %v8069_v33  ;;  %v8076_v54 = vld [vmem:[%s8238_s10 + $0x6] sm:$0x1]  ;;  %s7479_s10 = sshll.u32 %s6723_s19, 3 }
 0x767   : > { %v6520_v58 = vmul.f32 %v6519_v30, %v11932_v22  ;;  %v6506_v8 = vmul.f32 30.0, %v6505_v45  ;;  %v6507_v14 = vmul.f32 63100.0, %v6496_v43  ;;  %v6526_v19 = vmul.f32 0.0, %v6525_v17  ;;  %vm12332_vm3 = vmor %vm6474_vm0, %vm6475_vm2  ;;  %s6652_s14 = scalar_lea.hbm %s12421_s4, %s7479_s10 }
 0x768   : > { %v6516_v55 = vrot.slane %v6514_v56, 3  ;;  %v6471_v39 = vsub.f32 1.0, %v6470_v21  ;;  %v6486_v51 = vmul.f32 %v12316_v35, %v11605_v57  ;;  %v6532_v60 = vmul.f32 53604.0, %v12140_v31  ;;  %6623 = vst [vmem:[%s8247_s11 + $0x6] sm:$0x1] %v12316_v35 }
 0x769   : > { %v6522_v62 = vrot.slane %v6520_v58, 3  ;;  %v6508_v63 = vmul.f32 982.0, %v6506_v8  ;;  %v6528_v18 = vrot.slane %v6526_v19, 3  ;;  %v6538_v47 = vmul.f32 %v12140_v31, %v12140_v31  ;;  %v13083_v56 = vld [vmem:[#allocation41_spill] sm:$0xff]  ;;  %v13084_v58 = vld [vmem:[#allocation142_spill] sm:$0xff]  ;;  %s12380_s19 = sshll.u32 %s6652_s14, 4  ;;  %s6656_s19 = int_to_ptr.hbm [resolvable:$true] %s12380_s19 }
 0x76a   : > { %v6539_v40 = vmul.f32 %v12081_v11, %v12081_v11  ;;  %v6472_v20 = vmul.f32 %v8069_v33, %v6471_v39  ;;  %v6487_v32 = vsub.f32 %v6485_v41, %v6486_v51  ;;  %v6533_v3 = vmul.f32 %v6532_v60, %v12081_v11  ;;  %s8091_s23 = sshra.s32 %s6656_s19, 4  ;;  %s8092_s23 = int_to_ptr.hbm [resolvable:$true] %s8091_s23 }
 0x76b   : > { %v6546_v25 = vmul.f32 0.0, %v12081_v11  ;;  %v6510_v29 = vrot.slane %v6508_v63, 7  ;;  %v6552_v13 = vmul.f32 9496.0, %v6506_v8  ;;  %v6553_v38 = vmul.f32 982.0, %v6496_v43  ;;  %v13082_v43 = vld [vmem:[#allocation55_spill] sm:$0xff]  ;;  %s8093_s27 = scalar_lea.hbm %s8092_s23, 24  ;;  %p8098_p2 = scmp.lt.s32.totalorder %s8092_s23, %s12421_s4 }
 0x76c   : > { %v6540_v1 = vsub.f32 %v6538_v47, %v6539_v40  ;;  %v6473_v48 = vadd.f32 %v8069_v33, %v6472_v20  ;;  %v6489_v15 = vmul.f32 %v12292_v16, %v6487_v32  ;;  %v6535_v26 = vrot.slane %v6533_v3, 6  ;;  %v13087_v20 = vld [vmem:[#allocation51_spill] sm:$0xff]  ;;  %p8094_p13 = scmp.ne.s32.totalorder %s8092_s23, %s8093_s27  ;;  %p8099_p3 = scmp.lt.s32.totalorder %s8097_s30, %s8093_s27 }
 0x76d   : > { %v6548_v59 = vrot.slane %v6546_v25, 6  ;;  %v6512_v23 = vadd.f32 %v6510_v29, %v6507_v14  ;;  %v6555_v2 = vrot.slane %v6553_v38, 1  ;;  %v6558_v6 = vmul.f32 -4.388714e+08, %v12140_v31 }
 0x76e   : > { %v6541_v7 = vmul.f32 982.0, %v6540_v1  ;;  %v6477_v28 = vsel %vm12332_vm3, %v8069_v33, %v6473_v48  ;;  %v6490_v42 = vmul.f32 %v6489_v15, %v12288_v49  ;;  %v6537_v41 = vadd.f32 %v6535_v26, %v6501_v5  ;;  %v13088_v1 = vld [vmem:[#allocation57_spill] sm:$0xff]  ;;  %p8095_p0 = pnand %p8094_p13, %p8215_p6  ;;  %p8100_p4 = por %p8099_p3, %p8098_p2 }
 0x76f   : > { %v6564_v50 = vmul.f32 16479924.0, %v11932_v22  ;;  %v6482_v16 = vsel %vm12308_vm1, %v6481_v10, %v6477_v28  ;;  %v6518_v37 = vsub.f32 %v6512_v23, %v6516_v55  ;;  %v6557_v4 = vadd.f32 %v6555_v2, %v6552_v13 }
 0x770   : > { %v6543_v44 = vrot.slane %v6541_v7, 6  ;;  %v6484_v9 = vmul.f32 %v6482_v16, %v6465_v52  ;;  %v6559_v34 = vmul.f32 %v6558_v6, %v11932_v22  ;;  %v6570_v61 = vmul.f32 9496.0, %v11932_v22  ;;  %6625 = vst [vmem:[%s8247_s11 + $0x8] sm:$0x1] %v6490_v42  ;;  %p8096_p1 = pneg %p8095_p0 }
 0x771   : > { %v6565_v27 = vmul.f32 %v6564_v50, %v12081_v11  ;;  %v6524_v12 = vadd.f32 %v6522_v62, %v6518_v37  ;;  %v6577_v53 = vmul.f32 %v8076_v54, %v11586_v0  ;;  %v6582_v10 = vmul.f32 %v13081_v46, %v12316_v35  ;;  %v13085_v0 = vld [vmem:[#allocation59_spill] sm:$0xff] }
 0x772   : > { %v6545_v49 = vsub.f32 %v6537_v41, %v6543_v44  ;;  %v6561_v30 = vrot.slane %v6559_v34, 4  ;;  %v6571_v33 = vmul.f32 0.0, %v6570_v61  ;;  %v6584_v52 = vmul.f32 %v13082_v43, %v6490_v42  ;;  %6624 = vst [vmem:[%s8247_s11 + $0x7] sm:$0x1] %v6484_v9  ;;  %p8101_p5 = pnand %p8100_p4, %p8096_p1 }
 0x773   : > { %v6567_v17 = vrot.slane %v6565_v27, 4  ;;  %v6530_v5 = vadd.f32 %v6528_v18, %v6524_v12  ;;  %v6578_v21 = vmul.f32 %v6577_v53, %v13083_v56  ;;  %v6580_v8 = vmul.f32 %v6577_v53, %v13084_v58  ;;  %v13086_v18 = vld [vmem:[#allocation54_spill] sm:$0xff] }
 0x774   : > { %v6550_v45 = vsub.f32 %v6545_v49, %v6548_v59  ;;  %v6563_v14 = vadd.f32 %v6561_v30, %v6557_v4  ;;  %v6573_v55 = vrot.slane %v6571_v33, 4  ;;  %v6585_v19 = vsub.f32 %v6582_v10, %v6584_v52  ;;  %v13089_v4 = vld [vmem:[#allocation44_spill] sm:$0xff] }
 0x775   : > { %v6588_v39 = vmul.f32 %v12316_v35, %v13085_v0  ;;  %v6531_v51 = vmul.f32 1.6715888e-09, %v6530_v5  ;;  %v6586_v60 = vmul.f32 %v6580_v8, %v6484_v9  ;;  %v6589_v63 = vmul.f32 %v6577_v53, %v6490_v42 }
 0x776   : > { %v6551_v62 = vmul.f32 1.791665e-05, %v6550_v45  ;;  %v6569_v47 = vsub.f32 %v6563_v14, %v6567_v17  ;;  %v6592_v40 = vmul.f32 %v13086_v18, %v12316_v35  ;;  %v6594_v32 = vmul.f32 %v13087_v20, %v6490_v42 }
 0x777   : > { %v6596_v3 = vmul.f32 %v6578_v21, %v6484_v9  ;;  %v6587_v25 = vsub.f32 %v6585_v19, %v6586_v60  ;;  %v6590_v57 = vadd.f32 %v6589_v63, %v6588_v39  ;;  %v6598_v29 = vmul.f32 %v6580_v8, %v11932_v22  ;;  %6626 = vst [vmem:[%s8247_s11 + $0x4] sm:$0x20] %v6531_v51 }
 0x778   : > { %v6600_v13 = vmul.f32 %v13088_v1, %v12081_v11  ;;  %v6575_v38 = vadd.f32 %v6573_v55, %v6569_v47  ;;  %v6595_v48 = vsub.f32 %v6592_v40, %v6594_v32  ;;  %v6604_v15 = vmul.f32 %v6578_v21, %v12081_v11  ;;  %6627 = vst [vmem:[%s8247_s11 + $0x8] sm:$0x4] %v6551_v62 }
 0x779   : > { %v6606_v26 = vmul.f32 %v6580_v8, %v12140_v31  ;;  %v6599_v35 = vadd.f32 %v6598_v29, %v6587_v25  ;;  %v6610_v59 = vmul.f32 %v13088_v1, %v12140_v31  ;;  %v6612_v6 = vmul.f32 %v6578_v21, %v11932_v22 }
 0x77a   : > { %v6576_v23 = vmul.f32 1.6715888e-09, %v6575_v38  ;;  %v6597_v7 = vadd.f32 %v6596_v3, %v6595_v48  ;;  %v6605_v2 = vadd.f32 %v6604_v15, %v6590_v57 }
 0x77b   : > { %v6601_v28 = vsub.f32 %v6599_v35, %v6600_v13 }
 0x77c   : > { %v6607_v42 = vsub.f32 %v6605_v2, %v6606_v26  ;;  %v6611_v11 = vadd.f32 %v6610_v59, %v6597_v7  ;;  %6628 = vst [vmem:[%s8247_s11 + $0x7] sm:$0x10] %v6576_v23 }
 0x77d   : > { %v6602_v41 = vmul.f32 0.031080997, %v6601_v28 }
 0x77e   : > { %v6608_v31 = vmul.f32 0.031080997, %v6607_v42  ;;  %v6613_v50 = vsub.f32 %v6611_v11, %v6612_v6 }
 0x77f   : > { %v6603_v16 = vadd.f32 %v6602_v41, %v11799_v36 }
 0x780   : > { %v6609_v22 = vsub.f32 %v6608_v31, %v12089_v24  ;;  %v6614_v37 = vsub.f32 0.0, %v6613_v50 }
 0x781   : > { %6635 = vst [vmem:[%s8247_s11 + $0x12] sm:$0x1] %v6603_v16 }
 0x782   : > { %v6615_v44 = vmul.f32 0.031080997, %v6614_v37  ;;  %6636 = vst [vmem:[%s8247_s11 + $0x13] sm:$0x1] %v6609_v22 }
 0x784   : > { %v6616_v9 = vadd.f32 %v6615_v44, %v13089_v4 }
 0x786   : > { %6637 = vst [vmem:[%s8247_s11 + $0x14] sm:$0x1] %v6616_v9 }
 0x787   : > { %8104 = shalt.err (!%p8101_p5)
}
 0x788   : > { %s8149_s8 = smov 128   ;;  %s8150_s11 = smov 256  }
 0x789   : > { %s8151_s7 = smov 8  }
 0x78a   : > { %7618 = dma.vmem_to_hbm [thread:$0]  (%p8215_p6), %s6654_s20, 384, %s6656_s19, %s6642_s22, %s8149_s8, %s8150_s11, %s8151_s7  }
 0x78b PF: > { %s6670_s9 = sand.u32 1, %s8127_s15   ;;  %p7621_p7 = pnand %p6726_p9, %p8219_p8 }
 0x78c   : > { %s6671_s10 = scalar_lea.sflag [#allocation4], %s6670_s9 }
 0x78d   : > { %p7622_p10 = pneg %p7621_p7 }
 0x78f   : > { %8122 = dma.done.wait (%p7622_p10), %s6671_s10, 384  }
 0x790   : > { %8124 = vsyncadd (%p7622_p10), %s6671_s10, 4294966912  ;;  %p14_p11 = scmp.ge.s32.totalorder %s8200_s21, 4   ;;  %s13090_s15 = smov %s8131_s16 }
 0x791   : > { %s13091_s16 = smov %s8135_s17  ;;  %s13092_s17 = smov %s8213_s24 }
 0x792   : > { %s13093_s18 = smov %s8200_s21  ;;  %16 = sbr.rel (!%p14_p11) target bundleno = 3 (0x3), region = 114 }
 0x797   :  { %6677 = vsyncpa [#allocation4], 1 }
 0x798   :  { %6679 = vsyncpa [#allocation4 + $0x1], 1 }

</bundles_post_ra>
